<compile_context>
chip_gen: v6e
topology: v6e:2x2x1
jax: 0.10.0
libtpu: 0.0.40
codegen_flags: <defaults>
</compile_context>

<pallas_src>
import jax
import jax.numpy as jnp
from jax.experimental import pallas as pl
from jax.experimental.pallas import tpu as pltpu

BN_EPS = 1e-5
LEAKY_SLOPE = 0.01  # torch.nn.LeakyReLU default negative_slope


def _softplus(x):
    # matches F.softplus(beta=1, threshold=20); the untaken exp branch overflows to inf
    # (not NaN), so no inner clamp is needed.
    return jnp.where(x > 20.0, x, jnp.log1p(jnp.exp(x)))


def _leaky_relu(x):
    return jnp.where(x >= 0.0, x, LEAKY_SLOPE * x)


# ---------------------------------------------------------------------------
# Kernel
# ---------------------------------------------------------------------------
def _make_vae_kernel(n_enc, n_dec, out_p, bias_slices, head_chunk):
    """Fused kernel over one batch tile:
       encoder MLP -> latent -> decoder MLP -> chunked fused (mu|var) head."""
    n_w = n_enc + 1 + n_dec + 1  # enc layers + latent head + dec layers + fused head

    def kernel(*refs):
        x_ref = refs[0]
        w_refs = refs[1:1 + n_w]
        b_ref = refs[1 + n_w]
        z_ref, means_ref, vars_ref = refs[2 + n_w:5 + n_w]

        def bias(i):
            off, width = bias_slices[i]
            return b_ref[:, off:off + width]        # static slice, (1, width)

        def dense(h_bf16, i):
            # bf16 x bf16 MXU matmul with f32 accumulation; bias-add in f32.
            return (jnp.dot(h_bf16, w_refs[i][...],
                            preferred_element_type=jnp.float32) + bias(i))

        # ---- encoder hidden layers (eval BN already folded into w/b) ----
        h = x_ref[...]                              # already bf16
        li = 0
        for _ in range(n_enc):
            h = jnp.maximum(dense(h, li), 0.0).astype(jnp.bfloat16)  # ReLU; dropout = eval id
            li += 1

        # ---- encoder latent head ----
        z = dense(h, li)
        li += 1
        z_ref[...] = z
        h = z.astype(jnp.bfloat16)

        # ---- decoder hidden layers ----
        for _ in range(n_dec):
            h = jnp.maximum(dense(h, li), 0.0).astype(jnp.bfloat16)
            li += 1

        # ---- fused (mu | var) head, computed in lane chunks (bounded live ranges) ----
        head_w = w_refs[li]
        head_b_off = bias_slices[li][0]

        @pl.loop(0, out_p // head_chunk)
        def _(c):
            c0 = pl.multiple_of(c * head_chunk, head_chunk)

            mu = (jnp.dot(h, head_w[:, pl.ds(c0, head_chunk)],
                          preferred_element_type=jnp.float32)
                  + b_ref[:, pl.ds(head_b_off + c0, head_chunk)])
            means_ref[:, pl.ds(c0, head_chunk)] = _softplus(_leaky_relu(mu)) + 0.001

            vr = (jnp.dot(h, head_w[:, pl.ds(out_p + c0, head_chunk)],
                          preferred_element_type=jnp.float32)
                  + b_ref[:, pl.ds(head_b_off + out_p + c0, head_chunk)])
            vars_ref[:, pl.ds(c0, head_chunk)] = _softplus(_leaky_relu(vr)) + 0.001

    return kernel


# ---------------------------------------------------------------------------
# Wrapper
# ---------------------------------------------------------------------------
def _vmem_budget_bytes(frac=0.8, fallback=64 * 1024 * 1024):
    # v7x has 64 MiB physical VMEM per TensorCore (128 MiB on v5e/v6e): budget a fraction
    # of the detected capacity instead of hard-coding the full 64 MiB.
    try:
        cap = int(pltpu.get_tpu_info().vmem_capacity_bytes)
    except Exception:
        cap = fallback
    return int(frac * cap)


def _pick_batch_tile(batch, requested=None, cap=512, min_steps=4):
    """Largest multiple-of-8 divisor of `batch` <= cap; when auto, also keep >= min_steps
    grid steps so v7x's two TensorCores each see >= 2 pipelined 'parallel' steps."""
    assert batch % 8 == 0, "batch must be a multiple of 8"
    target = min(requested if requested is not None else cap, batch)
    if requested is None:
        target = min(target, max(8, batch // min_steps))
    tb = 8
    for cand in range(8, target + 1, 8):
        if batch % cand == 0:
            tb = cand
    return tb


def vae_forward(x, packed, *, batch_tile=None, vmem_fraction=0.8):
    """packed: dict from fold_and_pack(). Returns (z_latent, (gene_means, gene_vars))."""
    dims = packed["dims"]
    batch, in_dim = x.shape
    assert in_dim == dims["in"]
    in_p, latent_p, out_p = dims["in_p"], dims["latent_p"], dims["out_p"]

    tb = _pick_batch_tile(batch, batch_tile)
    grid = (batch // tb,)

    # bf16 input (the kernel would quantize to bf16 before the first matmul anyway):
    # halves the only per-grid-step HBM->VMEM stream. Zero-pad features to in_p.
    x_b = jnp.pad(x, ((0, 0), (0, in_p - in_dim))).astype(jnp.bfloat16)

    flat = [x_b] + list(packed["weights"]) + [packed["bias"]]

    def batch_spec(d):
        return pl.BlockSpec((tb, d), lambda i: (i, 0))

    def const_spec(a, single_buffer):
        # Full-array block, constant block index -> resident across grid steps.
        if single_buffer:
            return pl.BlockSpec(a.shape, lambda i, nd=a.ndim: (0,) * nd,
                                pipeline_mode=pl.Buffered(1))
        return pl.BlockSpec(a.shape, lambda i, nd=a.ndim: (0,) * nd)

    out_specs = (batch_spec(latent_p), batch_spec(out_p), batch_spec(out_p))
    out_shape = (
        jax.ShapeDtypeStruct((batch, latent_p), jnp.float32),
        jax.ShapeDtypeStruct((batch, out_p), jnp.float32),
        jax.ShapeDtypeStruct((batch, out_p), jnp.float32),
    )

    head_chunk = 256 if out_p % 256 == 0 else 128
    kernel = _make_vae_kernel(packed["n_enc"], packed["n_dec"], out_p,
                              tuple(packed["bias_slices"]), head_chunk)

    def run(single_buffer_weights):
        in_specs = [batch_spec(in_p)] + [
            const_spec(a, single_buffer_weights) for a in flat[1:]]
        return pl.pallas_call(
            kernel,
            out_shape=out_shape,
            grid_spec=pltpu.PrefetchScalarGridSpec(
                num_scalar_prefetch=0,
                grid=grid,
                in_specs=in_specs,
                out_specs=out_specs,
            ),
            compiler_params=pltpu.CompilerParams(
                dimension_semantics=("parallel",),
                vmem_limit_bytes=_vmem_budget_bytes(vmem_fraction),
            ),
        )(*flat)

    try:
        # Weights never change block index -> single-buffer them (halves their VMEM cost).
        z_p, means_p, vars_p = run(single_buffer_weights=True)
    except Exception:
        # Older runtimes may reject buffer_count=1; default double-buffering still works.
        z_p, means_p, vars_p = run(single_buffer_weights=False)

    # Crop host-side feature padding back off.
    z = z_p[:, :dims["latent"]]
    means = means_p[:, :dims["out"]]
    gvars = vars_p[:, :dims["out"]]
    return z, (means, gvars)


# ---------------------------------------------------------------------------
# Host-side parameter construction (torch-style raw params), BN folding & packing.
# ---------------------------------------------------------------------------
def _xavier(key, fan_in, fan_out):
    bound = (6.0 / (fan_in + fan_out)) ** 0.5
    return jax.random.uniform(
        key, (fan_in, fan_out), minval=-bound, maxval=bound, dtype=jnp.float32)


def init_raw_params(key, in_dim, enc_hidden, latent_dim, dec_hidden, out_dim):
    """Torch-layout params: Linear weight (in,out)+bias, BN (gamma,beta,rmean,rvar).
    Running stats are random so the BN folding is actually exercised."""
    raw = {"enc_layers": [], "dec_layers": []}
    n_keys = 2 * (len(enc_hidden) + len(dec_hidden)) + 8
    keys = iter(jax.random.split(key, n_keys))

    def bn_params(k, dim):
        k1, k2 = jax.random.split(k)
        gamma = jnp.ones((dim,), jnp.float32)
        beta = jnp.zeros((dim,), jnp.float32)
        rmean = 0.1 * jax.random.normal(k1, (dim,), dtype=jnp.float32)
        rvar = jax.random.uniform(k2, (dim,), minval=0.5, maxval=1.5, dtype=jnp.float32)
        return gamma, beta, rmean, rvar

    dims = [in_dim] + list(enc_hidden)
    for i in range(len(enc_hidden)):
        w = _xavier(next(keys), dims[i], dims[i + 1])
        b = jnp.zeros((dims[i + 1],), jnp.float32)
        raw["enc_layers"].append((w, b) + bn_params(next(keys), dims[i + 1]))
    raw["enc_latent_w"] = _xavier(next(keys), enc_hidden[-1], latent_dim)
    raw["enc_latent_b"] = jnp.zeros((latent_dim,), jnp.float32)

    dims = [latent_dim] + list(dec_hidden)
    for i in range(len(dec_hidden)):
        w = _xavier(next(keys), dims[i], dims[i + 1])
        b = jnp.zeros((dims[i + 1],), jnp.float32)
        raw["dec_layers"].append((w, b) + bn_params(next(keys), dims[i + 1]))

    raw["w_mu"] = _xavier(next(keys), dec_hidden[-1], out_dim)
    raw["b_mu"] = 0.01 * jax.random.normal(next(keys), (out_dim,), dtype=jnp.float32)
    raw["w_var"] = _xavier(next(keys), dec_hidden[-1], out_dim)
    raw["b_var"] = 0.01 * jax.random.normal(next(keys), (out_dim,), dtype=jnp.float32)
    return raw


def _round_up(n, m):
    return ((n + m - 1) // m) * m


def _default_pad_to():
    # 256x256 MXUs on v6e/v7x want K/N padded to 256; v5e's 128x128 tiles are full at 128.
    try:
        kind = jax.devices()[0].device_kind.lower()
    except Exception:
        return 128
    return 128 if any(v in kind for v in ("v2", "v3", "v4", "v5")) else 256


def fold_and_pack(raw, eps=BN_EPS, pad_to=None):
    """Fold eval-mode BN into the preceding Linear, zero-pad every feature dim to a
    multiple of pad_to, cast weights to bf16, fuse the two decoder heads into one
    (H, 2*out) matmul and pack all biases into one contiguous f32 row."""
    if pad_to is None:
        pad_to = _default_pad_to()

    def fold(w, b, gamma, beta, rmean, rvar):
        scale = gamma * jax.lax.rsqrt(rvar + eps)
        return w * scale[None, :], (b - rmean) * scale + beta

    def pad_w(w, rows, cols):
        return jnp.pad(w, ((0, rows - w.shape[0]), (0, cols - w.shape[1])))

    def pad_b(b, n):
        return jnp.pad(b, (0, n - b.shape[0]))

    weights, biases = [], []

    def add_layer(w, b, rows_p, cols_p):
        weights.append(pad_w(w, rows_p, cols_p).astype(jnp.bfloat16))
        biases.append(pad_b(b, cols_p).astype(jnp.float32))

    in_dim = raw["enc_layers"][0][0].shape[0]
    in_p = _round_up(in_dim, pad_to)

    prev_p = in_p
    for layer in raw["enc_layers"]:
        w, b = fold(*layer)
        cols_p = _round_up(w.shape[1], pad_to)
        add_layer(w, b, prev_p, cols_p)
        prev_p = cols_p

    latent_dim = raw["enc_latent_w"].shape[1]
    latent_p = _round_up(latent_dim, pad_to)
    add_layer(raw["enc_latent_w"], raw["enc_latent_b"], prev_p, latent_p)
    prev_p = latent_p

    for layer in raw["dec_layers"]:
        w, b = fold(*layer)
        cols_p = _round_up(w.shape[1], pad_to)
        add_layer(w, b, prev_p, cols_p)
        prev_p = cols_p

    out_dim = raw["w_mu"].shape[1]
    out_p = _round_up(out_dim, pad_to)
    head_w = jnp.concatenate(
        [pad_w(raw["w_mu"], prev_p, out_p), pad_w(raw["w_var"], prev_p, out_p)], axis=1)
    head_b = jnp.concatenate([pad_b(raw["b_mu"], out_p), pad_b(raw["b_var"], out_p)])
    weights.append(head_w.astype(jnp.bfloat16))
    biases.append(head_b.astype(jnp.float32))

    bias_slices, off = [], 0
    for b in biases:
        bias_slices.append((off, b.shape[0]))
        off += b.shape[0]
    bias_packed = jnp.concatenate(biases).reshape(1, -1)

    return {
        "weights": weights,
        "bias": bias_packed,
        "bias_slices": bias_slices,
        "n_enc": len(raw["enc_layers"]),
        "n_dec": len(raw["dec_layers"]),
        "dims": {"in": in_dim, "in_p": in_p,
                 "latent": latent_dim, "latent_p": latent_p,
                 "out": out_dim, "out_p": out_p},
    }


# ---------------------------------------------------------------------------
# References.
# ---------------------------------------------------------------------------
def _layer_biases(packed):
    b = packed["bias"][0]
    return [b[off:off + width] for off, width in packed["bias_slices"]]


def reference_forward_packed(x, packed):
    """Pure-JAX reference with the SAME folded/padded bf16 params as the kernel."""
    dims = packed["dims"]
    biases = _layer_biases(packed)
    ws = packed["weights"]

    def db(h, w, b):
        return jnp.dot(h, w, preferred_element_type=jnp.float32) + b[None, :]

    h = jnp.pad(x, ((0, 0), (0, dims["in_p"] - dims["in"]))).astype(jnp.bfloat16)
    li = 0
    for _ in range(packed["n_enc"]):
        h = jnp.maximum(db(h, ws[li], biases[li]), 0.0).astype(jnp.bfloat16)
        li += 1
    z = db(h, ws[li], biases[li]); li += 1
    h = z.astype(jnp.bfloat16)
    for _ in range(packed["n_dec"]):
        h = jnp.maximum(db(h, ws[li], biases[li]), 0.0).astype(jnp.bfloat16)
        li += 1
    heads = db(h, ws[li], biases[li])
    out_p, out = dims["out_p"], dims["out"]
    mu = _softplus(_leaky_relu(heads[:, :out])) + 0.001
    vr = _softplus(_leaky_relu(heads[:, out_p:out_p + out])) + 0.001
    return z[:, :dims["latent"]], (mu, vr)


def reference_forward_raw(x, raw):
    """Full-precision torch-semantics reference: unfolded f32 Linear + eval BN."""
    h = x
    for (w, b, g, beta, rm, rv) in raw["enc_layers"]:
        h = h @ w + b
        h = (h - rm) / jnp.sqrt(rv + BN_EPS) * g + beta
        h = jnp.maximum(h, 0.0)
    z = h @ raw["enc_latent_w"] + raw["enc_latent_b"]
    h = z
    for (w, b, g, beta, rm, rv) in raw["dec_layers"]:
        h = h @ w + b
        h = (h - rm) / jnp.sqrt(rv + BN_EPS) * g + beta
        h = jnp.maximum(h, 0.0)
    mu = h @ raw["w_mu"] + raw["b_mu"]
    vr = h @ raw["w_var"] + raw["b_var"]
    return z, (_softplus(_leaky_relu(mu)) + 0.001, _softplus(_leaky_relu(vr)) + 0.001)


if __name__ == "__main__":
    # Small but lane-dense shapes; padding/cropping and the chunked head are exercised.
    batch = 256
    in_dim = 256
    enc_hidden = [256, 128]
    latent_dim = 128
    dec_hidden = [128, 256]
    out_dim = 256

    key = jax.random.PRNGKey(0)
    k_x, k_p = jax.random.split(key)

    x = jax.random.normal(k_x, (batch, in_dim), dtype=jnp.float32)
    raw = init_raw_params(k_p, in_dim, enc_hidden, latent_dim, dec_hidden, out_dim)
    packed = fold_and_pack(raw)  # pad_to auto: 256 on v6e/v7x, 128 on v5e

    z, (means, gvars) = vae_forward(x, packed)
    z, means, gvars = jax.block_until_ready((z, means, gvars))

    assert z.shape == (batch, latent_dim)
    assert means.shape == (batch, out_dim) and gvars.shape == (batch, out_dim)

    # Tight check: kernel vs pure-JAX reference using the identical folded bf16 params.
    z_ref, (m_ref, v_ref) = reference_forward_packed(x, packed)
    assert jnp.allclose(z, z_ref, atol=1e-3, rtol=1e-3)
    assert jnp.allclose(means, m_ref, atol=1e-3, rtol=1e-3)
    assert jnp.allclose(gvars, v_ref, atol=1e-3, rtol=1e-3)

    # Loose check: kernel (folded BN + bf16 weights) vs full-precision torch-semantics ref.
    z_f32, (m_f32, v_f32) = reference_forward_raw(x, raw)
    assert jnp.allclose(z, z_f32, atol=1e-1, rtol=1e-1)
    assert jnp.allclose(means, m_f32, atol=1e-1, rtol=1e-1)
    assert jnp.allclose(gvars, v_f32, atol=1e-1, rtol=1e-1)

    print("KERNEL_OK")
</pallas_src>

<mosaic_0001>
module attributes {stable_mosaic.version = 11 : i64} {
  func.func @kernel(%arg0: i32, %arg1: memref<64x256xbf16, #tpu.memory_space<vmem>>, %arg2: memref<256x256xbf16, #tpu.memory_space<vmem>>, %arg3: memref<256x256xbf16, #tpu.memory_space<vmem>>, %arg4: memref<256x256xbf16, #tpu.memory_space<vmem>>, %arg5: memref<256x256xbf16, #tpu.memory_space<vmem>>, %arg6: memref<256x256xbf16, #tpu.memory_space<vmem>>, %arg7: memref<256x512xbf16, #tpu.memory_space<vmem>>, %arg8: memref<1x1792xf32, #tpu.memory_space<vmem>>, %arg9: memref<64x256xf32, #tpu.memory_space<vmem>>, %arg10: memref<64x256xf32, #tpu.memory_space<vmem>>, %arg11: memref<64x256xf32, #tpu.memory_space<vmem>>) attributes {dimension_semantics = [#tpu.dimension_semantics<parallel>], iteration_bounds = array<i64: 4>, scalar_prefetch = 0 : i64, scratch_operands = 0 : i64, tpu.core_type = #tpu.core_type<tc>, window_params = [{transform_indices = @transform_0, window_bounds = array<i64: 64, 256>}, {pipeline_mode = #tpu.pipeline_mode<synchronous>, transform_indices = @transform_1, window_bounds = array<i64: 256, 256>}, {pipeline_mode = #tpu.pipeline_mode<synchronous>, transform_indices = @transform_2, window_bounds = array<i64: 256, 256>}, {pipeline_mode = #tpu.pipeline_mode<synchronous>, transform_indices = @transform_3, window_bounds = array<i64: 256, 256>}, {pipeline_mode = #tpu.pipeline_mode<synchronous>, transform_indices = @transform_4, window_bounds = array<i64: 256, 256>}, {pipeline_mode = #tpu.pipeline_mode<synchronous>, transform_indices = @transform_5, window_bounds = array<i64: 256, 256>}, {pipeline_mode = #tpu.pipeline_mode<synchronous>, transform_indices = @transform_6, window_bounds = array<i64: 256, 512>}, {pipeline_mode = #tpu.pipeline_mode<synchronous>, transform_indices = @transform_7, window_bounds = array<i64: 1, 1792>}, {transform_indices = @transform_8, window_bounds = array<i64: 64, 256>}, {transform_indices = @transform_9, window_bounds = array<i64: 64, 256>}, {transform_indices = @transform_10, window_bounds = array<i64: 64, 256>}]} {
    %c0 = arith.constant 0 : index
    %c0_0 = arith.constant 0 : index
    %0 = vector.load %arg1[%c0, %c0_0] : memref<64x256xbf16, #tpu.memory_space<vmem>>, vector<64x256xbf16>
    %c0_1 = arith.constant 0 : index
    %c0_2 = arith.constant 0 : index
    %1 = vector.load %arg2[%c0_1, %c0_2] : memref<256x256xbf16, #tpu.memory_space<vmem>>, vector<256x256xbf16>
    %cst = arith.constant dense<0.000000e+00> : vector<64x256xf32>
    %2 = tpu.matmul %0, %1, %cst {dimension_numbers = #tpu.dot_dimension_numbers<[1], [0], [0], [1], [0, 0, 1, 1], [], []>} : vector<64x256xbf16>, vector<256x256xbf16>, vector<64x256xf32> -> vector<64x256xf32>
    %c0_3 = arith.constant 0 : index
    %c0_4 = arith.constant 0 : index
    %3 = vector.load %arg8[%c0_3, %c0_4] : memref<1x1792xf32, #tpu.memory_space<vmem>>, vector<1x256xf32>
    %4 = vector.broadcast %3 : vector<1x256xf32> to vector<64x256xf32>
    %5 = arith.addf %2, %4 : vector<64x256xf32>
    %cst_5 = arith.constant 0.000000e+00 : f32
    %6 = vector.broadcast %cst_5 : f32 to vector<64x256xf32>
    %7 = arith.maximumf %5, %6 : vector<64x256xf32>
    %8 = arith.truncf %7 : vector<64x256xf32> to vector<64x256xbf16>
    %c0_6 = arith.constant 0 : index
    %c0_7 = arith.constant 0 : index
    %9 = vector.load %arg3[%c0_6, %c0_7] : memref<256x256xbf16, #tpu.memory_space<vmem>>, vector<256x256xbf16>
    %cst_8 = arith.constant dense<0.000000e+00> : vector<64x256xf32>
    %10 = tpu.matmul %8, %9, %cst_8 {dimension_numbers = #tpu.dot_dimension_numbers<[1], [0], [0], [1], [0, 0, 1, 1], [], []>} : vector<64x256xbf16>, vector<256x256xbf16>, vector<64x256xf32> -> vector<64x256xf32>
    %c0_9 = arith.constant 0 : index
    %c256 = arith.constant 256 : index
    %11 = vector.load %arg8[%c0_9, %c256] : memref<1x1792xf32, #tpu.memory_space<vmem>>, vector<1x256xf32>
    %12 = vector.broadcast %11 : vector<1x256xf32> to vector<64x256xf32>
    %13 = arith.addf %10, %12 : vector<64x256xf32>
    %cst_10 = arith.constant 0.000000e+00 : f32
    %14 = vector.broadcast %cst_10 : f32 to vector<64x256xf32>
    %15 = arith.maximumf %13, %14 : vector<64x256xf32>
    %16 = arith.truncf %15 : vector<64x256xf32> to vector<64x256xbf16>
    %c0_11 = arith.constant 0 : index
    %c0_12 = arith.constant 0 : index
    %17 = vector.load %arg4[%c0_11, %c0_12] : memref<256x256xbf16, #tpu.memory_space<vmem>>, vector<256x256xbf16>
    %cst_13 = arith.constant dense<0.000000e+00> : vector<64x256xf32>
    %18 = tpu.matmul %16, %17, %cst_13 {dimension_numbers = #tpu.dot_dimension_numbers<[1], [0], [0], [1], [0, 0, 1, 1], [], []>} : vector<64x256xbf16>, vector<256x256xbf16>, vector<64x256xf32> -> vector<64x256xf32>
    %c0_14 = arith.constant 0 : index
    %c512 = arith.constant 512 : index
    %19 = vector.load %arg8[%c0_14, %c512] : memref<1x1792xf32, #tpu.memory_space<vmem>>, vector<1x256xf32>
    %20 = vector.broadcast %19 : vector<1x256xf32> to vector<64x256xf32>
    %21 = arith.addf %18, %20 : vector<64x256xf32>
    %c0_15 = arith.constant 0 : index
    %c0_16 = arith.constant 0 : index
    %22 = vector.load %arg9[%c0_15, %c0_16] : memref<64x256xf32, #tpu.memory_space<vmem>>, vector<64x256xf32>
    tpu.vector_store %arg9[%c0_15, %c0_16], %21 {strides = array<i32>} : memref<64x256xf32, #tpu.memory_space<vmem>>, vector<64x256xf32>,
    %23 = arith.truncf %21 : vector<64x256xf32> to vector<64x256xbf16>
    %c0_17 = arith.constant 0 : index
    %c0_18 = arith.constant 0 : index
    %24 = vector.load %arg5[%c0_17, %c0_18] : memref<256x256xbf16, #tpu.memory_space<vmem>>, vector<256x256xbf16>
    %cst_19 = arith.constant dense<0.000000e+00> : vector<64x256xf32>
    %25 = tpu.matmul %23, %24, %cst_19 {dimension_numbers = #tpu.dot_dimension_numbers<[1], [0], [0], [1], [0, 0, 1, 1], [], []>} : vector<64x256xbf16>, vector<256x256xbf16>, vector<64x256xf32> -> vector<64x256xf32>
    %c0_20 = arith.constant 0 : index
    %c768 = arith.constant 768 : index
    %26 = vector.load %arg8[%c0_20, %c768] : memref<1x1792xf32, #tpu.memory_space<vmem>>, vector<1x256xf32>
    %27 = vector.broadcast %26 : vector<1x256xf32> to vector<64x256xf32>
    %28 = arith.addf %25, %27 : vector<64x256xf32>
    %cst_21 = arith.constant 0.000000e+00 : f32
    %29 = vector.broadcast %cst_21 : f32 to vector<64x256xf32>
    %30 = arith.maximumf %28, %29 : vector<64x256xf32>
    %31 = arith.truncf %30 : vector<64x256xf32> to vector<64x256xbf16>
    %c0_22 = arith.constant 0 : index
    %c0_23 = arith.constant 0 : index
    %32 = vector.load %arg6[%c0_22, %c0_23] : memref<256x256xbf16, #tpu.memory_space<vmem>>, vector<256x256xbf16>
    %cst_24 = arith.constant dense<0.000000e+00> : vector<64x256xf32>
    %33 = tpu.matmul %31, %32, %cst_24 {dimension_numbers = #tpu.dot_dimension_numbers<[1], [0], [0], [1], [0, 0, 1, 1], [], []>} : vector<64x256xbf16>, vector<256x256xbf16>, vector<64x256xf32> -> vector<64x256xf32>
    %c0_25 = arith.constant 0 : index
    %c1024 = arith.constant 1024 : index
    %34 = vector.load %arg8[%c0_25, %c1024] : memref<1x1792xf32, #tpu.memory_space<vmem>>, vector<1x256xf32>
    %35 = vector.broadcast %34 : vector<1x256xf32> to vector<64x256xf32>
    %36 = arith.addf %33, %35 : vector<64x256xf32>
    %cst_26 = arith.constant 0.000000e+00 : f32
    %37 = vector.broadcast %cst_26 : f32 to vector<64x256xf32>
    %38 = arith.maximumf %36, %37 : vector<64x256xf32>
    %39 = arith.truncf %38 : vector<64x256xf32> to vector<64x256xbf16>
    %c0_i32 = arith.constant 0 : i32
    %c1_i32 = arith.constant 1 : i32
    %40 = arith.muli %c0_i32, %c1_i32 : i32
    %c0_i32_27 = arith.constant 0 : i32
    %41 = arith.addi %c0_i32_27, %40 : i32
    %c256_i32 = arith.constant 256 : i32
    %42 = arith.muli %41, %c256_i32 : i32
    %43 = tpu.assume_multiple %42, 256 : i32
    %c0_28 = arith.constant 0 : index
    %44 = arith.index_cast %43 : i32 to index
    %45 = vector.load %arg7[%c0_28, %44] : memref<256x512xbf16, #tpu.memory_space<vmem>>, vector<256x256xbf16>
    %cst_29 = arith.constant dense<0.000000e+00> : vector<64x256xf32>
    %46 = tpu.matmul %39, %45, %cst_29 {dimension_numbers = #tpu.dot_dimension_numbers<[1], [0], [0], [1], [0, 0, 1, 1], [], []>} : vector<64x256xbf16>, vector<256x256xbf16>, vector<64x256xf32> -> vector<64x256xf32>
    %c1280_i32 = arith.constant 1280 : i32
    %47 = arith.addi %c1280_i32, %43 : i32
    %c0_30 = arith.constant 0 : index
    %48 = arith.index_cast %47 : i32 to index
    %49 = vector.load %arg8[%c0_30, %48] : memref<1x1792xf32, #tpu.memory_space<vmem>>, vector<1x256xf32>
    %50 = vector.broadcast %49 : vector<1x256xf32> to vector<64x256xf32>
    %51 = arith.addf %46, %50 : vector<64x256xf32>
    %cst_31 = arith.constant 0.000000e+00 : f32
    %52 = vector.broadcast %cst_31 : f32 to vector<64x256xf32>
    %53 = arith.cmpf oge, %51, %52 : vector<64x256xf32>
    %cst_32 = arith.constant 0.00999999977 : f32
    %54 = vector.broadcast %cst_32 : f32 to vector<64x256xf32>
    %55 = arith.mulf %54, %51 : vector<64x256xf32>
    %56 = arith.select %53, %51, %55 : vector<64x256xi1>, vector<64x256xf32>
    %cst_33 = arith.constant 2.000000e+01 : f32
    %57 = vector.broadcast %cst_33 : f32 to vector<64x256xf32>
    %58 = arith.cmpf ogt, %56, %57 : vector<64x256xf32>
    %59 = math.exp %56 : vector<64x256xf32>
    %60 = math.log1p %59 : vector<64x256xf32>
    %61 = arith.select %58, %56, %60 : vector<64x256xi1>, vector<64x256xf32>
    %cst_34 = arith.constant 1.000000e-03 : f32
    %62 = vector.broadcast %cst_34 : f32 to vector<64x256xf32>
    %63 = arith.addf %61, %62 : vector<64x256xf32>
    %c0_35 = arith.constant 0 : index
    %64 = arith.index_cast %43 : i32 to index
    %65 = vector.load %arg10[%c0_35, %64] : memref<64x256xf32, #tpu.memory_space<vmem>>, vector<64x256xf32>
    tpu.vector_store %arg10[%c0_35, %64], %63 {strides = array<i32>} : memref<64x256xf32, #tpu.memory_space<vmem>>, vector<64x256xf32>,
    %c256_i32_36 = arith.constant 256 : i32
    %66 = arith.addi %c256_i32_36, %43 : i32
    %c0_37 = arith.constant 0 : index
    %67 = arith.index_cast %66 : i32 to index
    %68 = vector.load %arg7[%c0_37, %67] : memref<256x512xbf16, #tpu.memory_space<vmem>>, vector<256x256xbf16>
    %cst_38 = arith.constant dense<0.000000e+00> : vector<64x256xf32>
    %69 = tpu.matmul %39, %68, %cst_38 {dimension_numbers = #tpu.dot_dimension_numbers<[1], [0], [0], [1], [0, 0, 1, 1], [], []>} : vector<64x256xbf16>, vector<256x256xbf16>, vector<64x256xf32> -> vector<64x256xf32>
    %c1536_i32 = arith.constant 1536 : i32
    %70 = arith.addi %c1536_i32, %43 : i32
    %c0_39 = arith.constant 0 : index
    %71 = arith.index_cast %70 : i32 to index
    %72 = vector.load %arg8[%c0_39, %71] : memref<1x1792xf32, #tpu.memory_space<vmem>>, vector<1x256xf32>
    %73 = vector.broadcast %72 : vector<1x256xf32> to vector<64x256xf32>
    %74 = arith.addf %69, %73 : vector<64x256xf32>
    %cst_40 = arith.constant 0.000000e+00 : f32
    %75 = vector.broadcast %cst_40 : f32 to vector<64x256xf32>
    %76 = arith.cmpf oge, %74, %75 : vector<64x256xf32>
    %cst_41 = arith.constant 0.00999999977 : f32
    %77 = vector.broadcast %cst_41 : f32 to vector<64x256xf32>
    %78 = arith.mulf %77, %74 : vector<64x256xf32>
    %79 = arith.select %76, %74, %78 : vector<64x256xi1>, vector<64x256xf32>
    %cst_42 = arith.constant 2.000000e+01 : f32
    %80 = vector.broadcast %cst_42 : f32 to vector<64x256xf32>
    %81 = arith.cmpf ogt, %79, %80 : vector<64x256xf32>
    %82 = math.exp %79 : vector<64x256xf32>
    %83 = math.log1p %82 : vector<64x256xf32>
    %84 = arith.select %81, %79, %83 : vector<64x256xi1>, vector<64x256xf32>
    %cst_43 = arith.constant 1.000000e-03 : f32
    %85 = vector.broadcast %cst_43 : f32 to vector<64x256xf32>
    %86 = arith.addf %84, %85 : vector<64x256xf32>
    %c0_44 = arith.constant 0 : index
    %87 = arith.index_cast %43 : i32 to index
    %88 = vector.load %arg11[%c0_44, %87] : memref<64x256xf32, #tpu.memory_space<vmem>>, vector<64x256xf32>
    tpu.vector_store %arg11[%c0_44, %87], %86 {strides = array<i32>} : memref<64x256xf32, #tpu.memory_space<vmem>>, vector<64x256xf32>,
    %c1_i32_45 = arith.constant 1 : i32
    return
  }
  func.func @transform_0(%arg0: i32) -> (i32, i32) {
    %c0_i32 = arith.constant 0 : i32
    %c0_i32_0 = arith.constant 0 : i32
    return %arg0, %c0_i32 : i32, i32
  }
  func.func @transform_1(%arg0: i32) -> (i32, i32) {
    %c0_i32 = arith.constant 0 : i32
    %c0_i32_0 = arith.constant 0 : i32
    %c0_i32_1 = arith.constant 0 : i32
    return %c0_i32, %c0_i32_0 : i32, i32
  }
  func.func @transform_2(%arg0: i32) -> (i32, i32) {
    %c0_i32 = arith.constant 0 : i32
    %c0_i32_0 = arith.constant 0 : i32
    %c0_i32_1 = arith.constant 0 : i32
    return %c0_i32, %c0_i32_0 : i32, i32
  }
  func.func @transform_3(%arg0: i32) -> (i32, i32) {
    %c0_i32 = arith.constant 0 : i32
    %c0_i32_0 = arith.constant 0 : i32
    %c0_i32_1 = arith.constant 0 : i32
    return %c0_i32, %c0_i32_0 : i32, i32
  }
  func.func @transform_4(%arg0: i32) -> (i32, i32) {
    %c0_i32 = arith.constant 0 : i32
    %c0_i32_0 = arith.constant 0 : i32
    %c0_i32_1 = arith.constant 0 : i32
    return %c0_i32, %c0_i32_0 : i32, i32
  }
  func.func @transform_5(%arg0: i32) -> (i32, i32) {
    %c0_i32 = arith.constant 0 : i32
    %c0_i32_0 = arith.constant 0 : i32
    %c0_i32_1 = arith.constant 0 : i32
    return %c0_i32, %c0_i32_0 : i32, i32
  }
  func.func @transform_6(%arg0: i32) -> (i32, i32) {
    %c0_i32 = arith.constant 0 : i32
    %c0_i32_0 = arith.constant 0 : i32
    %c0_i32_1 = arith.constant 0 : i32
    return %c0_i32, %c0_i32_0 : i32, i32
  }
  func.func @transform_7(%arg0: i32) -> (i32, i32) {
    %c0_i32 = arith.constant 0 : i32
    %c0_i32_0 = arith.constant 0 : i32
    %c0_i32_1 = arith.constant 0 : i32
    return %c0_i32, %c0_i32_0 : i32, i32
  }
  func.func @transform_8(%arg0: i32) -> (i32, i32) {
    %c0_i32 = arith.constant 0 : i32
    %c0_i32_0 = arith.constant 0 : i32
    return %arg0, %c0_i32 : i32, i32
  }
  func.func @transform_9(%arg0: i32) -> (i32, i32) {
    %c0_i32 = arith.constant 0 : i32
    %c0_i32_0 = arith.constant 0 : i32
    return %arg0, %c0_i32 : i32, i32
  }
  func.func @transform_10(%arg0: i32) -> (i32, i32) {
    %c0_i32 = arith.constant 0 : i32
    %c0_i32_0 = arith.constant 0 : i32
    return %arg0, %c0_i32 : i32, i32
  }
}

module attributes {stable_mosaic.version = 11 : i64} {
  func.func @kernel(%arg0: i32, %arg1: memref<64x256xbf16, #tpu.memory_space<vmem>>, %arg2: memref<256x256xbf16, #tpu.memory_space<vmem>>, %arg3: memref<256x256xbf16, #tpu.memory_space<vmem>>, %arg4: memref<256x256xbf16, #tpu.memory_space<vmem>>, %arg5: memref<256x256xbf16, #tpu.memory_space<vmem>>, %arg6: memref<256x256xbf16, #tpu.memory_space<vmem>>, %arg7: memref<256x512xbf16, #tpu.memory_space<vmem>>, %arg8: memref<1x1792xf32, #tpu.memory_space<vmem>>, %arg9: memref<64x256xf32, #tpu.memory_space<vmem>>, %arg10: memref<64x256xf32, #tpu.memory_space<vmem>>, %arg11: memref<64x256xf32, #tpu.memory_space<vmem>>) attributes {dimension_semantics = [#tpu.dimension_semantics<parallel>], iteration_bounds = array<i64: 4>, scalar_prefetch = 0 : i64, scratch_operands = 0 : i64, tpu.core_type = #tpu.core_type<tc>, window_params = [{transform_indices = @transform_0, window_bounds = array<i64: 64, 256>}, {pipeline_mode = #tpu.pipeline_mode<synchronous>, transform_indices = @transform_1, window_bounds = array<i64: 256, 256>}, {pipeline_mode = #tpu.pipeline_mode<synchronous>, transform_indices = @transform_2, window_bounds = array<i64: 256, 256>}, {pipeline_mode = #tpu.pipeline_mode<synchronous>, transform_indices = @transform_3, window_bounds = array<i64: 256, 256>}, {pipeline_mode = #tpu.pipeline_mode<synchronous>, transform_indices = @transform_4, window_bounds = array<i64: 256, 256>}, {pipeline_mode = #tpu.pipeline_mode<synchronous>, transform_indices = @transform_5, window_bounds = array<i64: 256, 256>}, {pipeline_mode = #tpu.pipeline_mode<synchronous>, transform_indices = @transform_6, window_bounds = array<i64: 256, 512>}, {pipeline_mode = #tpu.pipeline_mode<synchronous>, transform_indices = @transform_7, window_bounds = array<i64: 1, 1792>}, {transform_indices = @transform_8, window_bounds = array<i64: 64, 256>}, {transform_indices = @transform_9, window_bounds = array<i64: 64, 256>}, {transform_indices = @transform_10, window_bounds = array<i64: 64, 256>}]} {
    %c0 = arith.constant 0 : index
    %c0_0 = arith.constant 0 : index
    %0 = vector.load %arg1[%c0, %c0_0] : memref<64x256xbf16, #tpu.memory_space<vmem>>, vector<64x256xbf16>
    %c0_1 = arith.constant 0 : index
    %c0_2 = arith.constant 0 : index
    %1 = vector.load %arg2[%c0_1, %c0_2] : memref<256x256xbf16, #tpu.memory_space<vmem>>, vector<256x256xbf16>
    %cst = arith.constant dense<0.000000e+00> : vector<64x256xf32>
    %2 = tpu.matmul %0, %1, %cst {dimension_numbers = #tpu.dot_dimension_numbers<[1], [0], [0], [1], [0, 0, 1, 1], [], []>} : vector<64x256xbf16>, vector<256x256xbf16>, vector<64x256xf32> -> vector<64x256xf32>
    %c0_3 = arith.constant 0 : index
    %c0_4 = arith.constant 0 : index
    %3 = vector.load %arg8[%c0_3, %c0_4] : memref<1x1792xf32, #tpu.memory_space<vmem>>, vector<1x256xf32>
    %4 = vector.broadcast %3 : vector<1x256xf32> to vector<64x256xf32>
    %5 = arith.addf %2, %4 : vector<64x256xf32>
    %cst_5 = arith.constant 0.000000e+00 : f32
    %6 = vector.broadcast %cst_5 : f32 to vector<64x256xf32>
    %7 = arith.maximumf %5, %6 : vector<64x256xf32>
    %8 = arith.truncf %7 : vector<64x256xf32> to vector<64x256xbf16>
    %c0_6 = arith.constant 0 : index
    %c0_7 = arith.constant 0 : index
    %9 = vector.load %arg3[%c0_6, %c0_7] : memref<256x256xbf16, #tpu.memory_space<vmem>>, vector<256x256xbf16>
    %cst_8 = arith.constant dense<0.000000e+00> : vector<64x256xf32>
    %10 = tpu.matmul %8, %9, %cst_8 {dimension_numbers = #tpu.dot_dimension_numbers<[1], [0], [0], [1], [0, 0, 1, 1], [], []>} : vector<64x256xbf16>, vector<256x256xbf16>, vector<64x256xf32> -> vector<64x256xf32>
    %c0_9 = arith.constant 0 : index
    %c256 = arith.constant 256 : index
    %11 = vector.load %arg8[%c0_9, %c256] : memref<1x1792xf32, #tpu.memory_space<vmem>>, vector<1x256xf32>
    %12 = vector.broadcast %11 : vector<1x256xf32> to vector<64x256xf32>
    %13 = arith.addf %10, %12 : vector<64x256xf32>
    %cst_10 = arith.constant 0.000000e+00 : f32
    %14 = vector.broadcast %cst_10 : f32 to vector<64x256xf32>
    %15 = arith.maximumf %13, %14 : vector<64x256xf32>
    %16 = arith.truncf %15 : vector<64x256xf32> to vector<64x256xbf16>
    %c0_11 = arith.constant 0 : index
    %c0_12 = arith.constant 0 : index
    %17 = vector.load %arg4[%c0_11, %c0_12] : memref<256x256xbf16, #tpu.memory_space<vmem>>, vector<256x256xbf16>
    %cst_13 = arith.constant dense<0.000000e+00> : vector<64x256xf32>
    %18 = tpu.matmul %16, %17, %cst_13 {dimension_numbers = #tpu.dot_dimension_numbers<[1], [0], [0], [1], [0, 0, 1, 1], [], []>} : vector<64x256xbf16>, vector<256x256xbf16>, vector<64x256xf32> -> vector<64x256xf32>
    %c0_14 = arith.constant 0 : index
    %c512 = arith.constant 512 : index
    %19 = vector.load %arg8[%c0_14, %c512] : memref<1x1792xf32, #tpu.memory_space<vmem>>, vector<1x256xf32>
    %20 = vector.broadcast %19 : vector<1x256xf32> to vector<64x256xf32>
    %21 = arith.addf %18, %20 : vector<64x256xf32>
    %c0_15 = arith.constant 0 : index
    %c0_16 = arith.constant 0 : index
    %22 = vector.load %arg9[%c0_15, %c0_16] : memref<64x256xf32, #tpu.memory_space<vmem>>, vector<64x256xf32>
    tpu.vector_store %arg9[%c0_15, %c0_16], %21 {strides = array<i32>} : memref<64x256xf32, #tpu.memory_space<vmem>>, vector<64x256xf32>,
    %23 = arith.truncf %21 : vector<64x256xf32> to vector<64x256xbf16>
    %c0_17 = arith.constant 0 : index
    %c0_18 = arith.constant 0 : index
    %24 = vector.load %arg5[%c0_17, %c0_18] : memref<256x256xbf16, #tpu.memory_space<vmem>>, vector<256x256xbf16>
    %cst_19 = arith.constant dense<0.000000e+00> : vector<64x256xf32>
    %25 = tpu.matmul %23, %24, %cst_19 {dimension_numbers = #tpu.dot_dimension_numbers<[1], [0], [0], [1], [0, 0, 1, 1], [], []>} : vector<64x256xbf16>, vector<256x256xbf16>, vector<64x256xf32> -> vector<64x256xf32>
    %c0_20 = arith.constant 0 : index
    %c768 = arith.constant 768 : index
    %26 = vector.load %arg8[%c0_20, %c768] : memref<1x1792xf32, #tpu.memory_space<vmem>>, vector<1x256xf32>
    %27 = vector.broadcast %26 : vector<1x256xf32> to vector<64x256xf32>
    %28 = arith.addf %25, %27 : vector<64x256xf32>
    %cst_21 = arith.constant 0.000000e+00 : f32
    %29 = vector.broadcast %cst_21 : f32 to vector<64x256xf32>
    %30 = arith.maximumf %28, %29 : vector<64x256xf32>
    %31 = arith.truncf %30 : vector<64x256xf32> to vector<64x256xbf16>
    %c0_22 = arith.constant 0 : index
    %c0_23 = arith.constant 0 : index
    %32 = vector.load %arg6[%c0_22, %c0_23] : memref<256x256xbf16, #tpu.memory_space<vmem>>, vector<256x256xbf16>
    %cst_24 = arith.constant dense<0.000000e+00> : vector<64x256xf32>
    %33 = tpu.matmul %31, %32, %cst_24 {dimension_numbers = #tpu.dot_dimension_numbers<[1], [0], [0], [1], [0, 0, 1, 1], [], []>} : vector<64x256xbf16>, vector<256x256xbf16>, vector<64x256xf32> -> vector<64x256xf32>
    %c0_25 = arith.constant 0 : index
    %c1024 = arith.constant 1024 : index
    %34 = vector.load %arg8[%c0_25, %c1024] : memref<1x1792xf32, #tpu.memory_space<vmem>>, vector<1x256xf32>
    %35 = vector.broadcast %34 : vector<1x256xf32> to vector<64x256xf32>
    %36 = arith.addf %33, %35 : vector<64x256xf32>
    %cst_26 = arith.constant 0.000000e+00 : f32
    %37 = vector.broadcast %cst_26 : f32 to vector<64x256xf32>
    %38 = arith.maximumf %36, %37 : vector<64x256xf32>
    %39 = arith.truncf %38 : vector<64x256xf32> to vector<64x256xbf16>
    %c0_i32 = arith.constant 0 : i32
    %c1_i32 = arith.constant 1 : i32
    %40 = arith.muli %c0_i32, %c1_i32 : i32
    %c0_i32_27 = arith.constant 0 : i32
    %41 = arith.addi %c0_i32_27, %40 : i32
    %c256_i32 = arith.constant 256 : i32
    %42 = arith.muli %41, %c256_i32 : i32
    %43 = tpu.assume_multiple %42, 256 : i32
    %c0_28 = arith.constant 0 : index
    %44 = arith.index_cast %43 : i32 to index
    %45 = vector.load %arg7[%c0_28, %44] : memref<256x512xbf16, #tpu.memory_space<vmem>>, vector<256x256xbf16>
    %cst_29 = arith.constant dense<0.000000e+00> : vector<64x256xf32>
    %46 = tpu.matmul %39, %45, %cst_29 {dimension_numbers = #tpu.dot_dimension_numbers<[1], [0], [0], [1], [0, 0, 1, 1], [], []>} : vector<64x256xbf16>, vector<256x256xbf16>, vector<64x256xf32> -> vector<64x256xf32>
    %c1280_i32 = arith.constant 1280 : i32
    %47 = arith.addi %c1280_i32, %43 : i32
    %c0_30 = arith.constant 0 : index
    %48 = arith.index_cast %47 : i32 to index
    %49 = vector.load %arg8[%c0_30, %48] : memref<1x1792xf32, #tpu.memory_space<vmem>>, vector<1x256xf32>
    %50 = vector.broadcast %49 : vector<1x256xf32> to vector<64x256xf32>
    %51 = arith.addf %46, %50 : vector<64x256xf32>
    %cst_31 = arith.constant 0.000000e+00 : f32
    %52 = vector.broadcast %cst_31 : f32 to vector<64x256xf32>
    %53 = arith.cmpf oge, %51, %52 : vector<64x256xf32>
    %cst_32 = arith.constant 0.00999999977 : f32
    %54 = vector.broadcast %cst_32 : f32 to vector<64x256xf32>
    %55 = arith.mulf %54, %51 : vector<64x256xf32>
    %56 = arith.select %53, %51, %55 : vector<64x256xi1>, vector<64x256xf32>
    %cst_33 = arith.constant 2.000000e+01 : f32
    %57 = vector.broadcast %cst_33 : f32 to vector<64x256xf32>
    %58 = arith.cmpf ogt, %56, %57 : vector<64x256xf32>
    %59 = math.exp %56 : vector<64x256xf32>
    %60 = math.log1p %59 : vector<64x256xf32>
    %61 = arith.select %58, %56, %60 : vector<64x256xi1>, vector<64x256xf32>
    %cst_34 = arith.constant 1.000000e-03 : f32
    %62 = vector.broadcast %cst_34 : f32 to vector<64x256xf32>
    %63 = arith.addf %61, %62 : vector<64x256xf32>
    %c0_35 = arith.constant 0 : index
    %64 = arith.index_cast %43 : i32 to index
    %65 = vector.load %arg10[%c0_35, %64] : memref<64x256xf32, #tpu.memory_space<vmem>>, vector<64x256xf32>
    tpu.vector_store %arg10[%c0_35, %64], %63 {strides = array<i32>} : memref<64x256xf32, #tpu.memory_space<vmem>>, vector<64x256xf32>,
    %c256_i32_36 = arith.constant 256 : i32
    %66 = arith.addi %c256_i32_36, %43 : i32
    %c0_37 = arith.constant 0 : index
    %67 = arith.index_cast %66 : i32 to index
    %68 = vector.load %arg7[%c0_37, %67] : memref<256x512xbf16, #tpu.memory_space<vmem>>, vector<256x256xbf16>
    %cst_38 = arith.constant dense<0.000000e+00> : vector<64x256xf32>
    %69 = tpu.matmul %39, %68, %cst_38 {dimension_numbers = #tpu.dot_dimension_numbers<[1], [0], [0], [1], [0, 0, 1, 1], [], []>} : vector<64x256xbf16>, vector<256x256xbf16>, vector<64x256xf32> -> vector<64x256xf32>
    %c1536_i32 = arith.constant 1536 : i32
    %70 = arith.addi %c1536_i32, %43 : i32
    %c0_39 = arith.constant 0 : index
    %71 = arith.index_cast %70 : i32 to index
    %72 = vector.load %arg8[%c0_39, %71] : memref<1x1792xf32, #tpu.memory_space<vmem>>, vector<1x256xf32>
    %73 = vector.broadcast %72 : vector<1x256xf32> to vector<64x256xf32>
    %74 = arith.addf %69, %73 : vector<64x256xf32>
    %cst_40 = arith.constant 0.000000e+00 : f32
    %75 = vector.broadcast %cst_40 : f32 to vector<64x256xf32>
    %76 = arith.cmpf oge, %74, %75 : vector<64x256xf32>
    %cst_41 = arith.constant 0.00999999977 : f32
    %77 = vector.broadcast %cst_41 : f32 to vector<64x256xf32>
    %78 = arith.mulf %77, %74 : vector<64x256xf32>
    %79 = arith.select %76, %74, %78 : vector<64x256xi1>, vector<64x256xf32>
    %cst_42 = arith.constant 2.000000e+01 : f32
    %80 = vector.broadcast %cst_42 : f32 to vector<64x256xf32>
    %81 = arith.cmpf ogt, %79, %80 : vector<64x256xf32>
    %82 = math.exp %79 : vector<64x256xf32>
    %83 = math.log1p %82 : vector<64x256xf32>
    %84 = arith.select %81, %79, %83 : vector<64x256xi1>, vector<64x256xf32>
    %cst_43 = arith.constant 1.000000e-03 : f32
    %85 = vector.broadcast %cst_43 : f32 to vector<64x256xf32>
    %86 = arith.addf %84, %85 : vector<64x256xf32>
    %c0_44 = arith.constant 0 : index
    %87 = arith.index_cast %43 : i32 to index
    %88 = vector.load %arg11[%c0_44, %87] : memref<64x256xf32, #tpu.memory_space<vmem>>, vector<64x256xf32>
    tpu.vector_store %arg11[%c0_44, %87], %86 {strides = array<i32>} : memref<64x256xf32, #tpu.memory_space<vmem>>, vector<64x256xf32>,
    %c1_i32_45 = arith.constant 1 : i32
    return
  }
  func.func @transform_0(%arg0: i32) -> (i32, i32) {
    %c0_i32 = arith.constant 0 : i32
    %c0_i32_0 = arith.constant 0 : i32
    return %arg0, %c0_i32 : i32, i32
  }
  func.func @transform_1(%arg0: i32) -> (i32, i32) {
    %c0_i32 = arith.constant 0 : i32
    %c0_i32_0 = arith.constant 0 : i32
    %c0_i32_1 = arith.constant 0 : i32
    return %c0_i32, %c0_i32_0 : i32, i32
  }
  func.func @transform_2(%arg0: i32) -> (i32, i32) {
    %c0_i32 = arith.constant 0 : i32
    %c0_i32_0 = arith.constant 0 : i32
    %c0_i32_1 = arith.constant 0 : i32
    return %c0_i32, %c0_i32_0 : i32, i32
  }
  func.func @transform_3(%arg0: i32) -> (i32, i32) {
    %c0_i32 = arith.constant 0 : i32
    %c0_i32_0 = arith.constant 0 : i32
    %c0_i32_1 = arith.constant 0 : i32
    return %c0_i32, %c0_i32_0 : i32, i32
  }
  func.func @transform_4(%arg0: i32) -> (i32, i32) {
    %c0_i32 = arith.constant 0 : i32
    %c0_i32_0 = arith.constant 0 : i32
    %c0_i32_1 = arith.constant 0 : i32
    return %c0_i32, %c0_i32_0 : i32, i32
  }
  func.func @transform_5(%arg0: i32) -> (i32, i32) {
    %c0_i32 = arith.constant 0 : i32
    %c0_i32_0 = arith.constant 0 : i32
    %c0_i32_1 = arith.constant 0 : i32
    return %c0_i32, %c0_i32_0 : i32, i32
  }
  func.func @transform_6(%arg0: i32) -> (i32, i32) {
    %c0_i32 = arith.constant 0 : i32
    %c0_i32_0 = arith.constant 0 : i32
    %c0_i32_1 = arith.constant 0 : i32
    return %c0_i32, %c0_i32_0 : i32, i32
  }
  func.func @transform_7(%arg0: i32) -> (i32, i32) {
    %c0_i32 = arith.constant 0 : i32
    %c0_i32_0 = arith.constant 0 : i32
    %c0_i32_1 = arith.constant 0 : i32
    return %c0_i32, %c0_i32_0 : i32, i32
  }
  func.func @transform_8(%arg0: i32) -> (i32, i32) {
    %c0_i32 = arith.constant 0 : i32
    %c0_i32_0 = arith.constant 0 : i32
    return %arg0, %c0_i32 : i32, i32
  }
  func.func @transform_9(%arg0: i32) -> (i32, i32) {
    %c0_i32 = arith.constant 0 : i32
    %c0_i32_0 = arith.constant 0 : i32
    return %arg0, %c0_i32 : i32, i32
  }
  func.func @transform_10(%arg0: i32) -> (i32, i32) {
    %c0_i32 = arith.constant 0 : i32
    %c0_i32_0 = arith.constant 0 : i32
    return %arg0, %c0_i32 : i32, i32
  }
}

</mosaic_0001>

<bundles_post_ra>
// kernel: tpu_custom_call.1
= control target key start
LH: loop header
LB: loop body
LE: loop exit
PB: predicated region body
PF: predicated region fallthrough
CT: control target
= control target key end

     0   :  { %s5943_s0 = inlined_call_operand.hbm [shape: bf16[256,256], index: 0, kind: input, shape index: {}]   ;;  %s5944_s1 = inlined_call_operand.hbm [shape: bf16[256,256], index: 1, kind: input, shape index: {}]   ;;  %s5945_s2 = inlined_call_operand.hbm [shape: bf16[256,256], index: 2, kind: input, shape index: {}]   ;;  %s5946_s3 = inlined_call_operand.hbm [shape: bf16[256,256], index: 3, kind: input, shape index: {}]   ;;  %s5947_s4 = inlined_call_operand.hbm [shape: bf16[256,256], index: 4, kind: input, shape index: {}]   ;;  %s5948_s5 = inlined_call_operand.hbm [shape: bf16[256,256], index: 5, kind: input, shape index: {}]   ;;  %s5949_s6 = inlined_call_operand.hbm [shape: bf16[256,512], index: 6, kind: input, shape index: {}]   ;;  %s5950_s7 = inlined_call_operand.hbm [shape: f32[1,1792], index: 7, kind: input, shape index: {}]   ;;  %s5951_s8 = inlined_call_operand.hbm [shape: f32[256,256], index: 8, kind: output, shape index: {0}]   ;;  %s5952_s9 = inlined_call_operand.hbm [shape: f32[256,256], index: 9, kind: output, shape index: {1}]   ;;  %s5953_s10 = inlined_call_operand.hbm [shape: f32[256,256], index: 10, kind: output, shape index: {2}]  }
   0x1   :  { %5961 = sst [smem:[#allocation27_spill]] %s5944_s1 }
   0x2   :  { %5962 = sst [smem:[#allocation28_spill]] %s5945_s2 }
   0x3   :  { %5963 = sst [smem:[#allocation29_spill]] %s5946_s3 }
   0x4   :  { %5964 = sst [smem:[#allocation30_spill]] %s5947_s4 }
   0x5   :  { %16 = vsyncpa [#allocation3], 0 }
   0x6   :  { %18 = vsyncpa [#allocation3 + $0x1], 0 }
   0x7   :  { %19 = vsyncpa [#allocation6], 0 }
   0x8   :  { %20 = vsyncpa [#allocation9], 0 }
   0x9   :  { %21 = vsyncpa [#allocation12], 0 }
   0xa   :  { %22 = vsyncpa [#allocation15], 0 }
   0xb   :  { %23 = vsyncpa [#allocation4], 0 }
   0xc   :  { %25 = vsyncpa [#allocation4 + $0x1], 0 }
   0xd   :  { %26 = vsyncpa [#allocation18], 0 }
   0xe   :  { %28 = vsyncpa [#allocation18 + $0x1], 0  ;;  %s4802_s13 = smov 0   ;;  %s4804_s14 = smov 0  }
   0xf   :  { %s4806_s15 = smov 0   ;;  %s4808_s16 = smov 0  }
  0x10 LB: > { %s4730_s17 = smov [#allocation5]   ;;  %s4823_s19 = sadd.s32 4294967295, %s4728_s16   ;;  %s4728_s16 = sphi %s4808_s16, %s6033_s16   ;;  %s4724_s15 = sphi %s4806_s15, %s6032_s15   ;;  %s4720_s14 = sphi %s4804_s14, %s6031_s14   ;;  %s4716_s13 = sphi %s4802_s13, %s6030_s13  }
  0x11   : > { %s302_s18 = sshll.u32 %s4730_s17, 4  ;;  %p3462_p0 = scmp.ge.s32.totalorder %s4728_s16, 1  ;;  %s303_s18 = int_to_ptr.vmem [resolvable:$true] %s302_s18 }
  0x12   : > { %p5957_p1 = scmp.eq.s32.totalorder %s4823_s19, 0  ;;  %p290_p2 = scmp.lt.s32.totalorder %s4728_s16, 5 }
  0x13   : > { %s4731_s21 = smov [#allocation8]   ;;  %s4732_s24 = smov [#allocation11]  }
  0x14   : > { %p4828_p3 = pnand %p3462_p0, %p290_p2  ;;  %s328_s22 = sshll.u32 %s4731_s21, 4  ;;  %s4840_s22 = int_to_ptr.vmem [resolvable:$true] %s328_s22 }
  0x15   : > { %s354_s25 = sshll.u32 %s4732_s24, 4  ;;  %s4393_s27 = scalar_lea.vmem %s303_s18, 4096  ;;  %s4842_s25 = int_to_ptr.vmem [resolvable:$true] %s354_s25 }
  0x16   : > { %s5965_s20 = scalar_select %p4828_p3, 1, 0 }
  0x17   : > { %p3809_p4 = pneg %p4828_p3  ;;  %p4394_p7 = scmp.ne.s32.totalorder %s303_s18, %s4393_s27 }
  0x18   : > { %p4401_p10 = scmp.lt.s32.totalorder %s303_s18, %s303_s18  ;;  %p4402_p11 = scmp.lt.s32.totalorder %s4393_s27, %s4393_s27 }
  0x19   : > { %p4836_p5 = pnand %p3809_p4, %p5957_p1 }
  0x1a   : > { %p4403_p12 = por %p4402_p11, %p4401_p10 }
  0x1b   : > { %p4846_p6 = pneg %p4836_p5 }
  0x1d   : > { %p4396_p8 = pnand %p4394_p7, %p4846_p6 }
  0x1f   : > { %p4397_p9 = pneg %p4396_p8 }
  0x21   : > { %p4404_p13 = pnand %p4403_p12, %p4397_p9 }
  0x23   : > { %4407 = shalt.err (!%p4404_p13)
}
  0x24   : > { %s5954_s28 = smov 128   ;;  %s5955_s29 = smov 8  }
  0x25   : > { %s5968_s1 = sld [smem:[#allocation27_spill]]  ;;  %s4419_s12 = scalar_lea.vmem %s4840_s22, 4096 }
  0x26   : > { %p4420_p0 = scmp.ne.s32.totalorder %s4840_s22, %s4419_s12  ;;  %p4427_p7 = scmp.lt.s32.totalorder %s4840_s22, %s4840_s22 }
  0x27   : > { %p4428_p8 = scmp.lt.s32.totalorder %s4419_s12, %s4419_s12 }
  0x28   : > { %p4422_p2 = pnand %p4420_p0, %p4846_p6 }
  0x29   : > { %p4429_p9 = por %p4428_p8, %p4427_p7 }
  0x2a   : > { %p4423_p4 = pneg %p4422_p2 }
  0x2b   : > { %3812 = dma.hbm_to_vmem [thread:$0]  (!%p4836_p5), %s5968_s1, 4096, %s303_s18, [#allocation6], %s5954_s28, %s5954_s28, %s5955_s29  }
  0x2c   : > { %p4430_p10 = pnand %p4429_p9, %p4423_p4 }
  0x2e   : > { %4433 = shalt.err (!%p4430_p10)
}
  0x2f   : > { %s5969_s3 = sld [smem:[#allocation29_spill]]  ;;  %s4445_s18 = scalar_lea.vmem %s4842_s25, 4096 }
  0x30   : > { %p4446_p11 = scmp.ne.s32.totalorder %s4842_s25, %s4445_s18  ;;  %p4453_p0 = scmp.lt.s32.totalorder %s4842_s25, %s4842_s25 }
  0x31   : > { %p4454_p2 = scmp.lt.s32.totalorder %s4445_s18, %s4445_s18 }
  0x32   : > { %p4448_p12 = pnand %p4446_p11, %p4846_p6 }
  0x33   : > { %p4455_p4 = por %p4454_p2, %p4453_p0 }
  0x34   : > { %p4449_p13 = pneg %p4448_p12 }
  0x35   : > { %3818 = dma.hbm_to_vmem [thread:$0]  (!%p4836_p5), %s5969_s3, 4096, %s4840_s22, [#allocation9], %s5954_s28, %s5954_s28, %s5955_s29  }
  0x36   : > { %p4456_p7 = pnand %p4455_p4, %p4449_p13 }
  0x38   : > { %4459 = shalt.err (!%p4456_p7)
}
  0x39   : > { %3824 = dma.hbm_to_vmem [thread:$0]  (!%p4836_p5), %s5948_s5, 4096, %s4842_s25, [#allocation12], %s5954_s28, %s5954_s28, %s5955_s29  }
  0x3a   : > { %s4735_s22 = smov [#allocation7]   ;;  %s4736_s11 = smov [#allocation10]  }
  0x3b   : > { %s315_s30 = sshll.u32 %s4735_s22, 4  ;;  %s341_s12 = sshll.u32 %s4736_s11, 4  ;;  %s316_s30 = int_to_ptr.vmem [resolvable:$true] %s315_s30  ;;  %s342_s12 = int_to_ptr.vmem [resolvable:$true] %s341_s12 }
  0x3c   : > { %s4471_s17 = scalar_lea.vmem %s316_s30, 4096  ;;  %p4479_p11 = scmp.lt.s32.totalorder %s316_s30, %s316_s30 }
  0x3d   : > { %p4472_p8 = scmp.ne.s32.totalorder %s316_s30, %s4471_s17  ;;  %p4480_p12 = scmp.lt.s32.totalorder %s4471_s17, %s4471_s17 }
  0x3f   : > { %p4474_p9 = pnand %p4472_p8, %p4846_p6  ;;  %p4481_p13 = por %p4480_p12, %p4479_p11 }
  0x41   : > { %p4475_p10 = pneg %p4474_p9 }
  0x43   : > { %p4482_p0 = pnand %p4481_p13, %p4475_p10 }
  0x45   : > { %4485 = shalt.err (!%p4482_p0)
}
  0x46   : > { %s5970_s2 = sld [smem:[#allocation28_spill]]  ;;  %s4497_s18 = scalar_lea.vmem %s342_s12, 4096 }
  0x47   : > { %p4498_p2 = scmp.ne.s32.totalorder %s342_s12, %s4497_s18  ;;  %p4505_p8 = scmp.lt.s32.totalorder %s342_s12, %s342_s12 }
  0x48   : > { %p4506_p9 = scmp.lt.s32.totalorder %s4497_s18, %s4497_s18 }
  0x49   : > { %p4500_p4 = pnand %p4498_p2, %p4846_p6 }
  0x4a   : > { %p4507_p10 = por %p4506_p9, %p4505_p8 }
  0x4b   : > { %p4501_p7 = pneg %p4500_p4 }
  0x4c   : > { %3815 = dma.hbm_to_vmem [thread:$0]  (!%p4836_p5), %s5970_s2, 4096, %s316_s30, [#allocation6], %s5954_s28, %s5954_s28, %s5955_s29  }
  0x4d   : > { %p4508_p11 = pnand %p4507_p10, %p4501_p7 }
  0x4f   : > { %4511 = shalt.err (!%p4508_p11)
}
  0x50   : > { %s5971_s4 = sld [smem:[#allocation30_spill]]  ;;  %s4737_s22 = smov [#allocation13]  }
  0x51   : > { %s367_s30 = sshll.u32 %s4737_s22, 4  ;;  %s368_s30 = int_to_ptr.vmem [resolvable:$true] %s367_s30 }
  0x52   : > { %s4523_s11 = scalar_lea.vmem %s368_s30, 8192  ;;  %p4531_p2 = scmp.lt.s32.totalorder %s368_s30, %s368_s30 }
  0x53   : > { %p4524_p12 = scmp.ne.s32.totalorder %s368_s30, %s4523_s11  ;;  %p4532_p4 = scmp.lt.s32.totalorder %s4523_s11, %s4523_s11 }
  0x55   : > { %p4526_p13 = pnand %p4524_p12, %p4846_p6  ;;  %p4533_p7 = por %p4532_p4, %p4531_p2 }
  0x56   : > { %3821 = dma.hbm_to_vmem [thread:$0]  (!%p4836_p5), %s5971_s4, 4096, %s342_s12, [#allocation9], %s5954_s28, %s5954_s28, %s5955_s29  }
  0x57   : > { %p4527_p0 = pneg %p4526_p13 }
  0x59   : > { %p4534_p8 = pnand %p4533_p7, %p4527_p0 }
  0x5b   : > { %4537 = shalt.err (!%p4534_p8)
}
  0x5c   : > { %s4738_s17 = smov 256   ;;  %s4739_s25 = smov 16  }
  0x5d   : > { %3827 = dma.hbm_to_vmem [thread:$0]  (!%p4836_p5), %s5949_s6, 8192, %s368_s30, [#allocation12], %s4738_s17, %s4738_s17, %s4739_s25  }
  0x5e   : > { %s4740_s18 = smov [#allocation14]  }
  0x5f   : > { %s381_s24 = sshll.u32 %s4740_s18, 4  ;;  %s382_s24 = int_to_ptr.vmem [resolvable:$true] %s381_s24 }
  0x60   : > { %s4549_s27 = scalar_lea.vmem %s382_s24, 224  ;;  %p4557_p12 = scmp.lt.s32.totalorder %s382_s24, %s382_s24 }
  0x61   : > { %p4550_p9 = scmp.ne.s32.totalorder %s382_s24, %s4549_s27  ;;  %p4558_p13 = scmp.lt.s32.totalorder %s4549_s27, %s4549_s27 }
  0x63   : > { %p4552_p10 = pnand %p4550_p9, %p4846_p6  ;;  %p4559_p0 = por %p4558_p13, %p4557_p12 }
  0x65   : > { %p4553_p11 = pneg %p4552_p10 }
  0x67   : > { %p4560_p2 = pnand %p4559_p0, %p4553_p11 }
  0x69   : > { %4563 = shalt.err (!%p4560_p2)
}
  0x6a   : > { %3830 = dma.hbm_to_vmem [thread:$0]  (!%p4836_p5), %s5950_s7, 224, %s382_s24, [#allocation15]  }
  0x6b   : > { %s5956_s23 = sadd.s32 4294967294, %s4728_s16   ;;  %s4926_s26 = sadd.s32 1, %s4728_s16  }
  0x6c   : > { %s41_s30 = sadd.s32 1, %s4724_s15  ;;  %s38_s17 = ssub.s32 %s4728_s16, %s4926_s26 }
  0x6d   : > { %p48_p6 = scmp.ne.s32.totalorder %s4724_s15, %s4720_s14  ;;  %p39_p4 = scmp.eq.s32.totalorder %s38_s17, 0 }
  0x6e   : > { %p49_p7 = scmp.eq.s32.totalorder %s4728_s16, 0  ;;  %p54_p8 = scmp.ne.s32.totalorder %s4720_s14, %s4716_s13 }
  0x6f   : > { %p225_p9 = scmp.eq.s32.totalorder %s4823_s19, 3  ;;  %p231_p12 = scmp.eq.s32.totalorder %s5956_s23, 3 }
  0x70   : > { %s4938_s25 = scalar_select %p39_p4, %s4724_s15, %s41_s30  }
  0x71   : > { %p50_p10 = por %p49_p7, %p48_p6  ;;  %p4942_p11 = por %p5957_p1, %p54_p8 }
  0x72   : > { %p4946_p5 = por %p225_p9, %p48_p6  ;;  %p3852_p13 = scmp.lt.s32.totalorder %s4728_s16, 4 }
  0x73   : > { %s5972_s21 = scalar_select %p4942_p11, 1, 0 }
  0x74   : > { %s5973_s12 = scalar_select %p4946_p5, 1, 0 }
  0x75   : > { %s392_s18 = sand.u32 1, %s4724_s15   ;;  %p4954_p0 = por %p231_p12, %p54_p8 }
  0x76   : > { %s3471_s27 = sshll.u32 %s392_s18, 6  ;;  %s3734_s22 = sshll.u32 %s4728_s16, 10 }
  0x77   : > { %s5974_s24 = scalar_select %p4954_p0, 1, 0 }
  0x78   : > { %s4962_s17 = scalar_lea.hbm %s5943_s0, %s3734_s22  ;;  %s396_s28 = scalar_lea.vmem [#allocation2], %s3471_s27 }
  0x79   : > { %s404_s29 = sshll.u32 %s396_s28, 4  ;;  %p4964_p2 = pnand %p3852_p13, %p50_p10  ;;  %s4968_s29 = int_to_ptr.vmem [resolvable:$true] %s404_s29 }
  0x7a   : > { %s4970_s1 = scalar_lea.sflag [#allocation3], %s392_s18  ;;  %s4564_s2 = scalar_lea.hbm %s4962_s17, 1024 }
  0x7b   : > { %p4565_p6 = scmp.ne.s32.totalorder %s4962_s17, %s4564_s2  ;;  %p4566_p4 = pneg %p4964_p2 }
  0x7c   : > { %s4569_s27 = scalar_lea.hbm %s5943_s0, 4096  ;;  %p4570_p9 = scmp.lt.s32.totalorder %s4962_s17, %s5943_s0 }
  0x7d   : > { %p4567_p7 = pnand %p4566_p4, %p4565_p6  ;;  %p4571_p10 = scmp.lt.s32.totalorder %s4569_s27, %s4564_s2 }
  0x7f   : > { %p4568_p8 = pneg %p4567_p7  ;;  %p4572_p12 = por %p4571_p10, %p4570_p9 }
  0x81   : > { %p4573_p13 = pnand %p4572_p12, %p4568_p8 }
  0x83   : > { %4576 = shalt.err (!%p4573_p13)
}
  0x84   : > { %s4577_s18 = scalar_lea.vmem %s4968_s29, 1024  ;;  %s4741_s3 = smov [#allocation2]  }
  0x85   : > { %p4578_p1 = scmp.ne.s32.totalorder %s4968_s29, %s4577_s18  ;;  %s4582_s4 = sshll.u32 %s4741_s3, 4  ;;  %s4583_s4 = int_to_ptr.vmem [resolvable:$false] %s4582_s4 }
  0x86   : > { %s4584_s22 = scalar_lea.vmem %s4583_s4, 2048  ;;  %p4585_p7 = scmp.lt.s32.totalorder %s4968_s29, %s4583_s4 }
  0x87   : > { %p4580_p0 = pnand %p4578_p1, %p4566_p4  ;;  %p4586_p5 = scmp.lt.s32.totalorder %s4584_s22, %s4577_s18 }
  0x89   : > { %p4581_p6 = pneg %p4580_p0  ;;  %p4587_p11 = por %p4586_p5, %p4585_p7 }
  0x8b   : > { %p4588_p3 = pnand %p4587_p11, %p4581_p6 }
  0x8d   : > { %4591 = shalt.err (!%p4588_p3)
}
  0x8e   : > { %s5976_s2 = smov 8   ;;  %s5977_s11 = smov 128  }
  0x8f   : > { %3834 = dma.hbm_to_vmem [thread:$0]  (!%p4964_p2), %s4962_s17, 1024, %s4968_s29, %s4970_s1, %s5977_s11, %s5977_s11, %s5976_s2  }
  0x90   : > { %p5978_p1 = scmp.ne.s32.totalorder %s5965_s20, 0 }
  0x91   : > { %s4997_s3 = sand.u32 (!%p5978_p1), 1, %s4720_s14   ;;  %p5979_p3 = scmp.ne.s32.totalorder (!%p5978_p1), %s5972_s21, 0 }
  0x92   : > { %416 = sbr.rel (%p5978_p1) target bundleno = 1660 (0x67c), region = 52  ;;  %s3476_s4 = sshll.u32 (!%p5978_p1), %s4997_s3, 6 }
  0x93   : > { %s419_s27 = scalar_lea.sflag (!%p5978_p1), [#allocation3], %s4997_s3  ;;  %s5001_s28 = scalar_lea.vmem (!%p5978_p1), [#allocation2], %s3476_s4 }
  0x97   : > { %4687 = dma.done.wait (%p5979_p3), %s419_s27, 1024  }
  0x98   : > { %4689 = vsyncadd (%p5979_p3), %s419_s27, 4294966272  ;;  %p5980_p11 = scmp.eq.s32.totalorder %s4823_s19, 0 }
  0x9a   : > { %4691 = dma.done.wait (%p5980_p11), [#allocation6], 8192   ;;  %p5981_p5 = pmov %p5980_p11 }
  0x9c   : > { %4693 = vsyncadd (%p5981_p5), [#allocation6], 4294959104  ;;  %p5982_p0 = pmov %p5981_p5 }
  0x9e   : > { %4695 = dma.done.wait (%p5982_p0), [#allocation9], 8192   ;;  %p5983_p2 = pmov %p5982_p0 }
  0x9f   : > { %p5984_p4 = pmov %p5982_p0 }
  0xa0   : > { %4697 = vsyncadd (%p5983_p2), [#allocation9], 4294959104 }
  0xa1   : > { %4699 = dma.done.wait (%p5984_p4), [#allocation12], 12288   ;;  %p5985_p8 = pmov %p5982_p0 }
  0xa2   : > { %p5986_p9 = pmov %p5982_p0 }
  0xa3   : > { %4701 = vsyncadd (%p5985_p8), [#allocation12], 4294955008 }
  0xa4   : > { %4703 = dma.done.wait (%p5986_p9), [#allocation15], 224   ;;  %p5987_p10 = pmov %p5982_p0 }
  0xa5   : > { %v3906_v0 = vld [vmem:[#allocation5 + $0x74] ss:$8 sps:$4 sm:$0xff]   ;;  %v3908_v1 = vld [vmem:[#allocation5 + $0x70] ss:$8 sps:$4 sm:$0xff]   ;;  %v3909_v2 = vld [vmem:[#allocation5 + $0x64] ss:$8 sps:$4 sm:$0xff]  }
  0xa6   : > { %4705 = vsyncadd (%p5987_p10), [#allocation15], 4294967072  ;;  %753 = vmatprep.subr.bf16.mxu0 %v3906_v0  ;;  %v3911_v3 = vld [vmem:[#allocation5 + $0x60] ss:$8 sps:$4 sm:$0xff]   ;;  %v3912_v4 = vld [vmem:[#allocation5 + $0x54] ss:$8 sps:$4 sm:$0xff]  }
  0xa7   : > { %754 = vmatpush1.bf16.msra.mxu0 %v3908_v1  ;;  %v3914_v5 = vld [vmem:[#allocation5 + $0x50] ss:$8 sps:$4 sm:$0xff]   ;;  %v3915_v6 = vld [vmem:[#allocation5 + $0x44] ss:$8 sps:$4 sm:$0xff]   ;;  %v3917_v7 = vld [vmem:[#allocation5 + $0x40] ss:$8 sps:$4 sm:$0xff]  }
  0xa8   : > { %755 = vmatprep.subr.bf16.mxu0 %v3909_v2  ;;  %v3918_v8 = vld [vmem:[#allocation5 + $0x34] ss:$8 sps:$4 sm:$0xff]   ;;  %v3920_v9 = vld [vmem:[#allocation5 + $0x30] ss:$8 sps:$4 sm:$0xff]   ;;  %v3921_v10 = vld [vmem:[#allocation5 + $0x24] ss:$8 sps:$4 sm:$0xff]  }
  0xa9   : > { %v3923_v11 = vld [vmem:[#allocation5 + $0x20] ss:$8 sps:$4 sm:$0xff]   ;;  %v3924_v12 = vld [vmem:[#allocation5 + $0x14] ss:$8 sps:$4 sm:$0xff]   ;;  %v3956_v13 = vld [vmem:[%s5001_s28 + $0x4] ss:$8 sps:$4 sm:$0xff]  }
  0xaa   : > { %v3926_v14 = vld [vmem:[#allocation5 + $0x10] ss:$8 sps:$4 sm:$0xff]   ;;  %v3927_v15 = vld [vmem:[#allocation5 + $0x4] ss:$8 sps:$4 sm:$0xff]   ;;  %785 = vmatprep.mubr.bf16.mxu0 %v3956_v13  ;;  %v3929_v16 = vld [vmem:[#allocation5] ss:$8 sps:$4 sm:$0xff]  }
  0xab   : > { %756 = vmatpush1.bf16.msra.mxu0 %v3911_v3  ;;  %v3930_v17 = vld [vmem:[#allocation5 + $0xf4] ss:$8 sps:$4 sm:$0xff]   ;;  %v3968_v19 = vld [vmem:[#allocation7 + $0x70] ss:$8 sps:$4 sm:$0xff]   ;;  %v3969_v20 = vld [vmem:[#allocation7 + $0x64] ss:$8 sps:$4 sm:$0xff]  }
  0xac   : > { %757 = vmatprep.subr.bf16.mxu0 %v3912_v4  ;;  %v3966_v18 = vld [vmem:[#allocation7 + $0x74] ss:$8 sps:$4 sm:$0xff]   ;;  %v3971_v21 = vld [vmem:[#allocation7 + $0x60] ss:$8 sps:$4 sm:$0xff]   ;;  %v3932_v22 = vld [vmem:[#allocation5 + $0xf0] ss:$8 sps:$4 sm:$0xff]  }
  0xad   : > { %1054 = vmatprep.subr.bf16.mxu1 %v3966_v18  ;;  %v3972_v23 = vld [vmem:[#allocation7 + $0x54] ss:$8 sps:$4 sm:$0xff]   ;;  %v3933_v24 = vld [vmem:[#allocation5 + $0xe4] ss:$8 sps:$4 sm:$0xff]   ;;  %v3974_v25 = vld [vmem:[#allocation7 + $0x50] ss:$8 sps:$4 sm:$0xff]  }
  0xae   : > { %1055 = vmatpush1.bf16.msra.mxu1 %v3968_v19  ;;  %v3935_v26 = vld [vmem:[#allocation5 + $0xe0] ss:$8 sps:$4 sm:$0xff]   ;;  %v3975_v27 = vld [vmem:[#allocation7 + $0x44] ss:$8 sps:$4 sm:$0xff]   ;;  %v3936_v28 = vld [vmem:[#allocation5 + $0xd4] ss:$8 sps:$4 sm:$0xff]  }
  0xaf   : > { %758 = vmatpush1.bf16.msra.mxu0 %v3914_v5  ;;  %1056 = vmatprep.subr.bf16.mxu1 %v3969_v20  ;;  %v3977_v29 = vld [vmem:[#allocation7 + $0x40] ss:$8 sps:$4 sm:$0xff]   ;;  %v3938_v30 = vld [vmem:[#allocation5 + $0xd0] ss:$8 sps:$4 sm:$0xff]   ;;  %v3978_v31 = vld [vmem:[#allocation7 + $0x34] ss:$8 sps:$4 sm:$0xff]  }
  0xb0   : > { %759 = vmatprep.subr.bf16.mxu0 %v3915_v6  ;;  %v3939_v32 = vld [vmem:[#allocation5 + $0xc4] ss:$8 sps:$4 sm:$0xff]   ;;  %v3941_v33 = vld [vmem:[#allocation5 + $0xc0] ss:$8 sps:$4 sm:$0xff]   ;;  %v3980_v34 = vld [vmem:[#allocation7 + $0x30] ss:$8 sps:$4 sm:$0xff]  }
  0xb1   : > { %v3942_v35 = vld [vmem:[#allocation5 + $0xb4] ss:$8 sps:$4 sm:$0xff]   ;;  %v3981_v36 = vld [vmem:[#allocation7 + $0x24] ss:$8 sps:$4 sm:$0xff]   ;;  %v3983_v37 = vld [vmem:[#allocation7 + $0x20] ss:$8 sps:$4 sm:$0xff]  }
  0xb2   : > { %1057 = vmatpush1.bf16.msra.mxu1 %v3971_v21  ;;  %v3944_v38 = vld [vmem:[#allocation5 + $0xb0] ss:$8 sps:$4 sm:$0xff]   ;;  %v3984_v39 = vld [vmem:[#allocation7 + $0x14] ss:$8 sps:$4 sm:$0xff]   ;;  %v3945_v40 = vld [vmem:[#allocation5 + $0xa4] ss:$8 sps:$4 sm:$0xff]  }
  0xb3   : > { %760 = vmatpush1.bf16.msra.mxu0 %v3917_v7  ;;  %1058 = vmatprep.subr.bf16.mxu1 %v3972_v23  ;;  %v3986_v41 = vld [vmem:[#allocation7 + $0x10] ss:$8 sps:$4 sm:$0xff]   ;;  %v3947_v42 = vld [vmem:[#allocation5 + $0xa0] ss:$8 sps:$4 sm:$0xff]   ;;  %v3987_v43 = vld [vmem:[#allocation7 + $0x4] ss:$8 sps:$4 sm:$0xff]  }
  0xb4   : > { %761 = vmatprep.subr.bf16.mxu0 %v3918_v8  ;;  %v3948_v44 = vld [vmem:[#allocation5 + $0x94] ss:$8 sps:$4 sm:$0xff]   ;;  %v3989_v45 = vld [vmem:[#allocation7] ss:$8 sps:$4 sm:$0xff]   ;;  %v3950_v46 = vld [vmem:[#allocation5 + $0x90] ss:$8 sps:$4 sm:$0xff]  }
  0xb5   : > { %v3990_v47 = vld [vmem:[#allocation7 + $0xf4] ss:$8 sps:$4 sm:$0xff]   ;;  %v3951_v48 = vld [vmem:[#allocation5 + $0x84] ss:$8 sps:$4 sm:$0xff]   ;;  %v3992_v49 = vld [vmem:[#allocation7 + $0xf0] ss:$8 sps:$4 sm:$0xff]  }
  0xb6   : > { %1059 = vmatpush1.bf16.msra.mxu1 %v3974_v25  ;;  %v3953_v50 = vld [vmem:[#allocation5 + $0x80] ss:$8 sps:$4 sm:$0xff]   ;;  %v3993_v51 = vld [vmem:[#allocation7 + $0xe4] ss:$8 sps:$4 sm:$0xff]   ;;  %v3957_v54 = vld [vmem:[%s5001_s28 + $0x14] ss:$8 sps:$4 sm:$0xff]  }
  0xb7   : > { %762 = vmatpush1.bf16.msra.mxu0 %v3920_v9  ;;  %1060 = vmatprep.subr.bf16.mxu1 %v3975_v27  ;;  %v3954_v52 = vld [vmem:[%s5001_s28] ss:$8 sps:$4 sm:$0xff]   ;;  %v3996_v55 = vld [vmem:[#allocation7 + $0xd4] ss:$8 sps:$4 sm:$0xff]   ;;  %v3998_v56 = vld [vmem:[#allocation7 + $0xd0] ss:$8 sps:$4 sm:$0xff]  }
  0xb8   : > { %763 = vmatprep.subr.bf16.mxu0 %v3921_v10  ;;  %v3995_v53 = vld [vmem:[#allocation7 + $0xe0] ss:$8 sps:$4 sm:$0xff]   ;;  %v3999_v57 = vld [vmem:[#allocation7 + $0xc4] ss:$8 sps:$4 sm:$0xff]   ;;  %v3959_v58 = vld [vmem:[%s5001_s28 + $0x10] ss:$8 sps:$4 sm:$0xff]  }
  0xb9   : > { %v4001_v59 = vld [vmem:[#allocation7 + $0xc0] ss:$8 sps:$4 sm:$0xff]   ;;  %v3960_v60 = vld [vmem:[%s5001_s28 + $0x24] ss:$8 sps:$4 sm:$0xff]   ;;  %v4002_v61 = vld [vmem:[#allocation7 + $0xb4] ss:$8 sps:$4 sm:$0xff]  }
  0xba   : > { %1061 = vmatpush1.bf16.msra.mxu1 %v3977_v29  ;;  %v4004_v62 = vld [vmem:[#allocation7 + $0xb0] ss:$8 sps:$4 sm:$0xff]   ;;  %v3962_v63 = vld [vmem:[%s5001_s28 + $0x20] ss:$8 sps:$4 sm:$0xff]   ;;  %v3963_v0 = vld [vmem:[%s5001_s28 + $0x34] ss:$8 sps:$4 sm:$0xff]  }
  0xbb   : > { %764 = vmatpush1.bf16.msra.mxu0 %v3923_v11  ;;  %1062 = vmatprep.subr.bf16.mxu1 %v3978_v31  ;;  %v3965_v1 = vld [vmem:[%s5001_s28 + $0x30] ss:$8 sps:$4 sm:$0xff]   ;;  %v4005_v2 = vld [vmem:[#allocation7 + $0xa4] ss:$8 sps:$4 sm:$0xff]   ;;  %v4007_v3 = vld [vmem:[#allocation7 + $0xa0] ss:$8 sps:$4 sm:$0xff]  }
  0xbc   : > { %765 = vmatprep.subr.bf16.mxu0 %v3924_v12  ;;  %v4008_v4 = vld [vmem:[#allocation7 + $0x94] ss:$8 sps:$4 sm:$0xff]   ;;  %v4010_v5 = vld [vmem:[#allocation7 + $0x90] ss:$8 sps:$4 sm:$0xff]   ;;  %v4011_v6 = vld [vmem:[#allocation7 + $0x84] ss:$8 sps:$4 sm:$0xff]  }
  0xbd   : > { %v4013_v7 = vld [vmem:[#allocation7 + $0x80] ss:$8 sps:$4 sm:$0xff]   ;;  %v4014_v8 = vld [vmem:[#allocation8 + $0x70] ss:$8 sps:$4 sm:$0xff]   ;;  %v4016_v9 = vld [vmem:[#allocation8 + $0x74] ss:$8 sps:$4 sm:$0xff]  }
  0xbe   : > { %1063 = vmatpush1.bf16.msra.mxu1 %v3980_v34  ;;  %v4019_v10 = vld [vmem:[#allocation8 + $0x64] ss:$8 sps:$4 sm:$0xff]   ;;  %v4017_v11 = vld [vmem:[#allocation8 + $0x60] ss:$8 sps:$4 sm:$0xff]   ;;  %v4022_v12 = vld [vmem:[#allocation8 + $0x54] ss:$8 sps:$4 sm:$0xff]   ;;  %v543_v34 = vlaneseq }
  0xbf   : > { %766 = vmatpush1.bf16.msra.mxu0 %v3926_v14  ;;  %1064 = vmatprep.subr.bf16.mxu1 %v3981_v36  ;;  %v4020_v13 = vld [vmem:[#allocation8 + $0x50] ss:$8 sps:$4 sm:$0xff]   ;;  %v4025_v14 = vld [vmem:[#allocation8 + $0x44] ss:$8 sps:$4 sm:$0xff]   ;;  %v4029_v19 = vld [vmem:[#allocation8 + $0x20] ss:$8 sps:$4 sm:$0xff]  }
  0xc0   : > { %767 = vmatprep.subr.bf16.mxu0 %v3927_v15  ;;  %v4023_v15 = vld [vmem:[#allocation8 + $0x40] ss:$8 sps:$4 sm:$0xff]   ;;  %v4031_v18 = vld [vmem:[#allocation8 + $0x24] ss:$8 sps:$4 sm:$0xff]   ;;  %v4034_v20 = vld [vmem:[#allocation8 + $0x14] ss:$8 sps:$4 sm:$0xff]  }
  0xc1   : > { %v4032_v21 = vld [vmem:[#allocation8 + $0x10] ss:$8 sps:$4 sm:$0xff]   ;;  %v4035_v23 = vld [vmem:[#allocation8] ss:$8 sps:$4 sm:$0xff]   ;;  %s5040_s1 = sshll.u32 %s4997_s3, 7  ;;  %s5429_s21 = sshll.u32 %s4823_s19, 11 }
  0xc2   : > { %1065 = vmatpush1.bf16.msra.mxu1 %v3983_v37  ;;  %v4038_v25 = vld [vmem:[#allocation8 + $0xf0] ss:$8 sps:$4 sm:$0xff]   ;;  %v4041_v27 = vld [vmem:[#allocation8 + $0xe0] ss:$8 sps:$4 sm:$0xff]   ;;  %s5045_s20 = scalar_lea.vmem [#allocation16], %s5040_s1  ;;  %s5385_s29 = scalar_lea.vmem [#allocation17], %s5040_s1 }
  0xc3   : > { %768 = vmatpush1.bf16.msra.mxu0 %v3929_v16  ;;  %1066 = vmatprep.subr.bf16.mxu1 %v3984_v39  ;;  %v4028_v16 = vld [vmem:[#allocation8 + $0x34] ss:$8 sps:$4 sm:$0xff]   ;;  %v4044_v29 = vld [vmem:[#allocation8 + $0xd0] ss:$8 sps:$4 sm:$0xff]   ;;  %v4047_v31 = vld [vmem:[#allocation8 + $0xc0] ss:$8 sps:$4 sm:$0xff]   ;;  %s5451_s18 = scalar_lea.hbm %s5951_s8, %s5429_s21 }
  0xc4   : > { %769 = vmatprep.subr.bf16.mxu0 %v3930_v17  ;;  %v4026_v17 = vld [vmem:[#allocation8 + $0x30] ss:$8 sps:$4 sm:$0xff]   ;;  %s5395_s23 = scalar_lea.vmem [#allocation19], %s5040_s1  ;;  %s3222_s22 = sshll.u32 %s5045_s20, 4  ;;  %s5467_s22 = int_to_ptr.vmem [resolvable:$true] %s3222_s22 }
  0xc5   : > { %s4592_s11 = scalar_lea.vmem %s5467_s22, 2048  ;;  %p6008_p13 = scmp.ne.s32.totalorder %s5973_s12, 0 }
  0xc6   : > { %1067 = vmatpush1.bf16.msra.mxu1 %v3986_v41  ;;  %p4593_p12 = scmp.ne.s32.totalorder %s5467_s22, %s4592_s11  ;;  %s4742_s4 = smov [#allocation16]  }
  0xc7   : > { %770 = vmatpush2.bf16.msra.mxu0 %v3932_v22  ;;  %1068 = vmatprep.subr.bf16.mxu1 %v3987_v43  ;;  %v4037_v22 = vld [vmem:[#allocation8 + $0x4] ss:$8 sps:$4 sm:$0xff]   ;;  %s4596_s27 = sshll.u32 %s4742_s4, 4  ;;  %s4597_s27 = int_to_ptr.vmem [resolvable:$false] %s4596_s27 }
  0xc8   : > { %771 = vmatprep.subr.bf16.mxu0 %v3933_v24  ;;  %v4040_v24 = vld [vmem:[#allocation8 + $0xf4] ss:$8 sps:$4 sm:$0xff]   ;;  %p4594_p6 = pnand %p4593_p12, %p6008_p13  ;;  %s4598_s28 = scalar_lea.vmem %s4597_s27, 4096 }
  0xc9   : > { %p4599_p1 = scmp.lt.s32.totalorder %s5467_s22, %s4597_s27  ;;  %p4600_p3 = scmp.lt.s32.totalorder %s4598_s28, %s4592_s11 }
  0xca   : > { %1069 = vmatpush1.bf16.msra.mxu1 %v3989_v45  ;;  %p4595_p7 = pneg %p4594_p6 }
  0xcb   : > { %772 = vmatpush2.bf16.msra.mxu0 %v3935_v26  ;;  %1070 = vmatprep.subr.bf16.mxu1 %v3990_v47  ;;  %v4043_v26 = vld [vmem:[#allocation8 + $0xe4] ss:$8 sps:$4 sm:$0xff]   ;;  %p4601_p11 = por %p4600_p3, %p4599_p1 }
  0xcc   : > { %773 = vmatprep.subr.bf16.mxu0 %v3936_v28  ;;  %v4046_v28 = vld [vmem:[#allocation8 + $0xd4] ss:$8 sps:$4 sm:$0xff]  }
  0xcd   : > { %p4602_p5 = pnand %p4601_p11, %p4595_p7 }
  0xce   : > { %1071 = vmatpush2.bf16.msra.mxu1 %v3992_v49 }
  0xcf   : > { %774 = vmatpush2.bf16.msra.mxu0 %v3938_v30  ;;  %1072 = vmatprep.subr.bf16.mxu1 %v3993_v51  ;;  %v4049_v30 = vld [vmem:[#allocation8 + $0xc4] ss:$8 sps:$4 sm:$0xff]  }
  0xd0   : > { %775 = vmatprep.subr.bf16.mxu0 %v3939_v32  ;;  %v4052_v32 = vld [vmem:[#allocation8 + $0xb4] ss:$8 sps:$4 sm:$0xff]  }
  0xd2   : > { %1073 = vmatpush2.bf16.msra.mxu1 %v3995_v53 }
  0xd3   : > { %776 = vmatpush2.bf16.msra.mxu0 %v3941_v33  ;;  %1074 = vmatprep.subr.bf16.mxu1 %v3996_v55  ;;  %v4050_v33 = vld [vmem:[#allocation8 + $0xb0] ss:$8 sps:$4 sm:$0xff]  }
  0xd4   : > { %777 = vmatprep.subr.bf16.mxu0 %v3942_v35  ;;  %v544_v35 = vshrl.u32 %v543_v34, 7  ;;  %v4053_v34 = vld [vmem:[#allocation8 + $0xa0] ss:$8 sps:$4 sm:$0xff]  }
  0xd6   : > { %1075 = vmatpush2.bf16.msra.mxu1 %v3998_v56  ;;  %v5031_v36 = vsub.s32 1, %v544_v35  ;;  %v5033_v37 = vsub.s32 0, %v544_v35  ;;  %v4058_v35 = vld [vmem:[#allocation8 + $0x94] ss:$8 sps:$4 sm:$0xff]  }
  0xd7   : > { %778 = vmatpush2.bf16.msra.mxu0 %v3944_v38  ;;  %1076 = vmatprep.subr.bf16.mxu1 %v3999_v57  ;;  %v541_v38 = vld [vmem:[#allocation14] sm:$0x3] }
  0xd8   : > { %779 = vmatprep.subr.bf16.mxu0 %v3945_v40  ;;  %v550_v40 = vrot.slane %v541_v38, %v5031_v36  ;;  %v546_v41 = vrot.slane %v541_v38, %v5033_v37  ;;  %v4056_v38 = vld [vmem:[#allocation8 + $0x90] ss:$8 sps:$4 sm:$0xff]  }
  0xda   : > { %1077 = vmatpush2.bf16.msra.mxu1 %v4001_v59 }
  0xdb   : > { %780 = vmatpush2.bf16.msra.mxu0 %v3947_v42  ;;  %1078 = vmatprep.subr.bf16.mxu1 %v4002_v61 }
  0xdc   : > { %781 = vmatprep.subr.bf16.mxu0 %v3948_v44 }
  0xde   : > { %1079 = vmatpush2.bf16.msra.mxu1 %v4004_v62 }
  0xdf   : > { %782 = vmatpush2.bf16.msra.mxu0 %v3950_v46  ;;  %1080 = vmatprep.subr.bf16.mxu1 %v4005_v2 }
  0xe0   : > { %783 = vmatprep.subr.bf16.mxu0 %v3951_v48 }
  0xe2   : > { %1081 = vmatpush2.bf16.msra.mxu1 %v4007_v3 }
  0xe3   : > { %784 = vmatpush2.bf16.msra.mxu0 %v3953_v50  ;;  %1082 = vmatprep.subr.bf16.mxu1 %v4008_v4 }
  0xe4   : > { %1355 = vmatprep.subr.bf16.mxu0 %v4016_v9 }
  0xe6   : > { %786 = vmatmul.mubr.bf16.vlgmr.msra.gmra.mxu0 %v3954_v52  ;;  %1083 = vmatpush2.bf16.msra.mxu1 %v4010_v5 }
  0xe7   : > { %795 = vmatprep.mubr.bf16.mxu0 %v3957_v54  ;;  %1084 = vmatprep.subr.bf16.mxu1 %v4011_v6 }
  0xe8   : > { %1356 = vmatpush1.bf16.msra.mxu0 %v4014_v8 }
  0xe9   : > { %1357 = vmatprep.subr.bf16.mxu0 %v4019_v10 }
  0xea   : > { %1085 = vmatpush2.bf16.msra.mxu1 %v4013_v7 }
  0xec   : > { %1358 = vmatpush1.bf16.msra.mxu0 %v4017_v11 }
  0xed   : > { %1359 = vmatprep.subr.bf16.mxu0 %v4022_v12 }
  0xee   : > { %796 = vmatmul.mubr.bf16.gmra.mxu0 %v3959_v58 }
  0xef   : > { %805 = vmatprep.mubr.bf16.mxu0 %v3960_v60 }
  0xf0   : > { %1360 = vmatpush1.bf16.msra.mxu0 %v4020_v13 }
  0xf1   : > { %1361 = vmatprep.subr.bf16.mxu0 %v4025_v14 }
  0xf4   : > { %1362 = vmatpush1.bf16.msra.mxu0 %v4023_v15 }
  0xf5   : > { %1363 = vmatprep.subr.bf16.mxu0 %v4028_v16 }
  0xf6   : > { %806 = vmatmul.mubr.bf16.gmra.mxu0 %v3962_v63 }
  0xf7   : > { %815 = vmatprep.mubr.bf16.mxu0 %v3963_v0 }
  0xf8   : > { %1364 = vmatpush1.bf16.msra.mxu0 %v4026_v17 }
  0xf9   : > { %1365 = vmatprep.subr.bf16.mxu0 %v4031_v18 }
  0xfc   : > { %1366 = vmatpush1.bf16.msra.mxu0 %v4029_v19 }
  0xfd   : > { %1367 = vmatprep.subr.bf16.mxu0 %v4034_v20 }
  0xfe   : > { %816 = vmatmul.mubr.bf16.gmra.mxu0 %v3965_v1 }
 0x100   : > { %1368 = vmatpush1.bf16.msra.mxu0 %v4032_v21 }
 0x101   : > { %1369 = vmatprep.subr.bf16.mxu0 %v4037_v22 }
 0x104   : > { %1370 = vmatpush1.bf16.msra.mxu0 %v4035_v23 }
 0x105   : > { %1371 = vmatprep.subr.bf16.mxu0 %v4040_v24 }
 0x108   : > { %1372 = vmatpush2.bf16.msra.mxu0 %v4038_v25 }
 0x109   : > { %1373 = vmatprep.subr.bf16.mxu0 %v4043_v26 }
 0x10c   : > { %1374 = vmatpush2.bf16.msra.mxu0 %v4041_v27 }
 0x10d   : > { %1375 = vmatprep.subr.bf16.mxu0 %v4046_v28 }
 0x110   : > { %1376 = vmatpush2.bf16.msra.mxu0 %v4044_v29 }
 0x111   : > { %1377 = vmatprep.subr.bf16.mxu0 %v4049_v30 }
 0x114   : > { %1378 = vmatpush2.bf16.msra.mxu0 %v4047_v31 }
 0x115   : > { %1379 = vmatprep.subr.bf16.mxu0 %v4052_v32 }
 0x118   : > { %1380 = vmatpush2.bf16.msra.mxu0 %v4050_v33  ;;  %v4055_v33 = vld [vmem:[#allocation8 + $0xa4] ss:$8 sps:$4 sm:$0xff]  }
 0x119   : > { %1381 = vmatprep.subr.bf16.mxu0 %v4055_v33 }
 0x11c   : > { %1382 = vmatpush2.bf16.msra.mxu0 %v4053_v34 }
 0x11d   : > { %1383 = vmatprep.subr.bf16.mxu0 %v4058_v35 }
 0x120   : > { %1384 = vmatpush2.bf16.msra.mxu0 %v4056_v38 }
 0x1a6   : > { %v787_v39 = vpop.f32.mrf.mxu0 }
 0x1a7   : > { %v788_v46 = vadd.f32 %v787_v39, %v546_v41  ;;  %v4061_v39 = vld [vmem:[#allocation8 + $0x84] ss:$8 sps:$4 sm:$0xff]  }
 0x1a8   : > { %v789_v42 = vpop.f32.mrf.mxu0  ;;  %1385 = vmatprep.subr.bf16.mxu0 %v4061_v39 }
 0x1a9   : > { %v790_v44 = vadd.f32 %v789_v42, %v550_v40  ;;  %v826_v53 = vmax.f32 %v788_v46, 0.0  ;;  %v4062_v42 = vld [vmem:[#allocation10 + $0x70] ss:$8 sps:$4 sm:$0xff]  }
 0x1aa   : > { %v791_v43 = vpop.f32.mrf.mxu0  ;;  %v4068_v46 = vld [vmem:[#allocation10 + $0x50] ss:$8 sps:$4 sm:$0xff]  }
 0x1ab   : > { %v792_v45 = vadd.f32 %v791_v43, %v546_v41  ;;  %v827_v51 = vmax.f32 %v790_v44, 0.0  ;;  %v4064_v43 = vld [vmem:[#allocation10 + $0x74] ss:$8 sps:$4 sm:$0xff]   ;;  %v4065_v44 = vld [vmem:[#allocation10 + $0x60] ss:$8 sps:$4 sm:$0xff]  }
 0x1ac   : > { %v793_v47 = vpop.f32.mrf.mxu0  ;;  %1656 = vmatprep.subr.bf16.mxu1 %v4064_v43 }
 0x1ad   : > { %v794_v48 = vadd.f32 %v793_v47, %v550_v40  ;;  %v828_v49 = vmax.f32 %v792_v45, 0.0  ;;  %v4070_v45 = vld [vmem:[#allocation10 + $0x54] ss:$8 sps:$4 sm:$0xff]   ;;  %v4073_v47 = vld [vmem:[#allocation10 + $0x44] ss:$8 sps:$4 sm:$0xff]  }
 0x1ae   : > { %v797_v50 = vpop.f32.mrf.mxu0 }
 0x1af   : > { %v829_v52 = vmax.f32 %v794_v48, 0.0  ;;  %v798_v54 = vadd.f32 %v797_v50, %v546_v41  ;;  %v842_v58 = vpack.c.bf16 %v828_v49, %v826_v53  ;;  %v4071_v48 = vld [vmem:[#allocation10 + $0x40] ss:$8 sps:$4 sm:$0xff]   ;;  %v4076_v49 = vld [vmem:[#allocation10 + $0x34] ss:$8 sps:$4 sm:$0xff]  }
 0x1b0   : > { %v799_v55 = vpop.f32.mrf.mxu0  ;;  %v4074_v50 = vld [vmem:[#allocation10 + $0x30] ss:$8 sps:$4 sm:$0xff]   ;;  %v4082_v53 = vld [vmem:[#allocation10 + $0x14] ss:$8 sps:$4 sm:$0xff]  }
 0x1b1   : > { %v800_v56 = vadd.f32 %v799_v55, %v550_v40  ;;  %v843_v57 = vpack.c.bf16 %v829_v52, %v827_v51  ;;  %v830_v61 = vmax.f32 %v798_v54, 0.0  ;;  %v4079_v51 = vld [vmem:[#allocation10 + $0x24] ss:$8 sps:$4 sm:$0xff]   ;;  %v4077_v52 = vld [vmem:[#allocation10 + $0x20] ss:$8 sps:$4 sm:$0xff]  }
 0x1b2   : > { %v801_v59 = vpop.f32.mrf.mxu0  ;;  %v4080_v54 = vld [vmem:[#allocation10 + $0x10] ss:$8 sps:$4 sm:$0xff]   ;;  %v4085_v55 = vld [vmem:[#allocation10 + $0x4] ss:$8 sps:$4 sm:$0xff]  }
 0x1b3   : > { %v802_v60 = vadd.f32 %v801_v59, %v546_v41  ;;  %1086 = vmatprep.mubr.bf16.mxu1 %v843_v57  ;;  %v831_v63 = vmax.f32 %v800_v56, 0.0  ;;  %v4083_v56 = vld [vmem:[#allocation10] ss:$8 sps:$4 sm:$0xff]   ;;  %v4088_v57 = vld [vmem:[#allocation10 + $0xf4] ss:$8 sps:$4 sm:$0xff]  }
 0x1b4   : > { %v803_v62 = vpop.f32.mrf.mxu0  ;;  %1087 = vmatmul.mubr.bf16.vlgmr.msra.gmra.mxu1 %v842_v58  ;;  %v4086_v58 = vld [vmem:[#allocation10 + $0xf0] ss:$8 sps:$4 sm:$0xff]   ;;  %v4091_v59 = vld [vmem:[#allocation10 + $0xe4] ss:$8 sps:$4 sm:$0xff]  }
 0x1b5   : > { %v832_v0 = vmax.f32 %v802_v60, 0.0  ;;  %v804_v1 = vadd.f32 %v803_v62, %v550_v40  ;;  %1657 = vmatpush1.bf16.msra.mxu1 %v4062_v42  ;;  %v4089_v60 = vld [vmem:[#allocation10 + $0xe0] ss:$8 sps:$4 sm:$0xff]   ;;  %v4092_v62 = vld [vmem:[#allocation10 + $0xd0] ss:$8 sps:$4 sm:$0xff]  }
 0x1b6   : > { %v807_v2 = vpop.f32.mrf.mxu0 }
 0x1b7   : > { %v833_v3 = vmax.f32 %v804_v1, 0.0  ;;  %v844_v4 = vpack.c.bf16 %v832_v0, %v830_v61  ;;  %v808_v5 = vadd.f32 %v807_v2, %v546_v41  ;;  %v4094_v61 = vld [vmem:[#allocation10 + $0xd4] ss:$8 sps:$4 sm:$0xff]   ;;  %v4095_v0 = vld [vmem:[#allocation10 + $0xc0] ss:$8 sps:$4 sm:$0xff]  }
 0x1b8   : > { %v809_v6 = vpop.f32.mrf.mxu0  ;;  %v4100_v1 = vld [vmem:[#allocation10 + $0xb4] ss:$8 sps:$4 sm:$0xff]   ;;  %v4098_v2 = vld [vmem:[#allocation10 + $0xb0] ss:$8 sps:$4 sm:$0xff]  }
 0x1b9   : > { %v845_v7 = vpack.c.bf16 %v833_v3, %v831_v63  ;;  %v810_v8 = vadd.f32 %v809_v6, %v550_v40  ;;  %v834_v11 = vmax.f32 %v808_v5, 0.0  ;;  %v4097_v63 = vld [vmem:[#allocation10 + $0xc4] ss:$8 sps:$4 sm:$0xff]   ;;  %v882_v3 = vld [vmem:[#allocation14 + $0x2] sm:$0x3] }
 0x1ba   : > { %v811_v9 = vpop.f32.mrf.mxu0  ;;  %v891_v5 = vrot.slane %v882_v3, %v5031_v36  ;;  %v887_v6 = vrot.slane %v882_v3, %v5033_v37  ;;  %v4104_v3 = vld [vmem:[#allocation10 + $0x90] ss:$8 sps:$4 sm:$0xff]  }
 0x1bb   : > { %v812_v10 = vadd.f32 %v811_v9, %v546_v41  ;;  %1096 = vmatprep.mubr.bf16.mxu1 %v845_v7  ;;  %v835_v13 = vmax.f32 %v810_v8, 0.0 }
 0x1bc   : > { %v813_v12 = vpop.f32.mrf.mxu0  ;;  %1097 = vmatmul.mubr.bf16.gmra.mxu1 %v844_v4 }
 0x1bd   : > { %v836_v14 = vmax.f32 %v812_v10, 0.0  ;;  %v814_v15 = vadd.f32 %v813_v12, %v550_v40 }
 0x1be   : > { %v817_v16 = vpop.f32.mrf.mxu0 }
 0x1bf   : > { %v837_v17 = vmax.f32 %v814_v15, 0.0  ;;  %v846_v18 = vpack.c.bf16 %v836_v14, %v834_v11  ;;  %v818_v19 = vadd.f32 %v817_v16, %v546_v41 }
 0x1c0   : > { %v819_v20 = vpop.f32.mrf.mxu0 }
 0x1c1   : > { %v847_v21 = vpack.c.bf16 %v837_v17, %v835_v13  ;;  %v820_v22 = vadd.f32 %v819_v20, %v550_v40  ;;  %v838_v25 = vmax.f32 %v818_v19, 0.0 }
 0x1c2   : > { %v821_v23 = vpop.f32.mrf.mxu0 }
 0x1c3   : > { %v822_v24 = vadd.f32 %v821_v23, %v546_v41  ;;  %1106 = vmatprep.mubr.bf16.mxu1 %v847_v21  ;;  %v839_v27 = vmax.f32 %v820_v22, 0.0  ;;  %v4059_v41 = vld [vmem:[#allocation8 + $0x80] ss:$8 sps:$4 sm:$0xff]  }
 0x1c4   : > { %v823_v26 = vpop.f32.mrf.mxu0  ;;  %1107 = vmatmul.mubr.bf16.gmra.mxu1 %v846_v18  ;;  %1386 = vmatpush2.bf16.msra.mxu0 %v4059_v41 }
 0x1c5   : > { %v840_v28 = vmax.f32 %v822_v24, 0.0  ;;  %v824_v29 = vadd.f32 %v823_v26, %v550_v40  ;;  %v4067_v40 = vld [vmem:[#allocation10 + $0x64] ss:$8 sps:$4 sm:$0xff]  }
 0x1c6   : > { %1658 = vmatprep.subr.bf16.mxu1 %v4067_v40 }
 0x1c7   : > { %v841_v30 = vmax.f32 %v824_v29, 0.0  ;;  %v848_v31 = vpack.c.bf16 %v840_v28, %v838_v25  ;;  %1659 = vmatpush1.bf16.msra.mxu1 %v4065_v44 }
 0x1c8   : > { %1660 = vmatprep.subr.bf16.mxu1 %v4070_v45 }
 0x1c9   : > { %v849_v32 = vpack.c.bf16 %v841_v30, %v839_v27 }
 0x1cb   : > { %1116 = vmatprep.mubr.bf16.mxu1 %v849_v32  ;;  %1661 = vmatpush1.bf16.msra.mxu1 %v4068_v46 }
 0x1cc   : > { %1117 = vmatmul.mubr.bf16.gmra.mxu1 %v848_v31  ;;  %1662 = vmatprep.subr.bf16.mxu1 %v4073_v47 }
 0x1cf   : > { %1663 = vmatpush1.bf16.msra.mxu1 %v4071_v48 }
 0x1d0   : > { %1664 = vmatprep.subr.bf16.mxu1 %v4076_v49 }
 0x1d3   : > { %1665 = vmatpush1.bf16.msra.mxu1 %v4074_v50 }
 0x1d4   : > { %1666 = vmatprep.subr.bf16.mxu1 %v4079_v51 }
 0x1d7   : > { %1667 = vmatpush1.bf16.msra.mxu1 %v4077_v52 }
 0x1d8   : > { %1668 = vmatprep.subr.bf16.mxu1 %v4082_v53 }
 0x1db   : > { %1669 = vmatpush1.bf16.msra.mxu1 %v4080_v54 }
 0x1dc   : > { %1670 = vmatprep.subr.bf16.mxu1 %v4085_v55 }
 0x1df   : > { %1671 = vmatpush1.bf16.msra.mxu1 %v4083_v56 }
 0x1e0   : > { %1672 = vmatprep.subr.bf16.mxu1 %v4088_v57 }
 0x1e3   : > { %1673 = vmatpush2.bf16.msra.mxu1 %v4086_v58 }
 0x1e4   : > { %1674 = vmatprep.subr.bf16.mxu1 %v4091_v59 }
 0x1e7   : > { %1675 = vmatpush2.bf16.msra.mxu1 %v4089_v60 }
 0x1e8   : > { %1676 = vmatprep.subr.bf16.mxu1 %v4094_v61 }
 0x1eb   : > { %1677 = vmatpush2.bf16.msra.mxu1 %v4092_v62 }
 0x1ec   : > { %1678 = vmatprep.subr.bf16.mxu1 %v4097_v63 }
 0x1ef   : > { %1679 = vmatpush2.bf16.msra.mxu1 %v4095_v0  ;;  %v4103_v0 = vld [vmem:[#allocation10 + $0xa4] ss:$8 sps:$4 sm:$0xff]  }
 0x1f0   : > { %1680 = vmatprep.subr.bf16.mxu1 %v4100_v1  ;;  %v4101_v1 = vld [vmem:[#allocation10 + $0xa0] ss:$8 sps:$4 sm:$0xff]  }
 0x1f3   : > { %1681 = vmatpush2.bf16.msra.mxu1 %v4098_v2  ;;  %v4106_v2 = vld [vmem:[#allocation10 + $0x94] ss:$8 sps:$4 sm:$0xff]  }
 0x1f4   : > { %1682 = vmatprep.subr.bf16.mxu1 %v4103_v0 }
 0x1f7   : > { %1683 = vmatpush2.bf16.msra.mxu1 %v4101_v1 }
 0x1f8   : > { %1684 = vmatprep.subr.bf16.mxu1 %v4106_v2 }
 0x1fb   : > { %1685 = vmatpush2.bf16.msra.mxu1 %v4104_v3 }
 0x274   : > { %v1088_v4 = vpop.f32.mrf.mxu1 }
 0x275   : > { %v1089_v11 = vadd.f32 %v1088_v4, %v887_v6  ;;  %v4109_v4 = vld [vmem:[#allocation10 + $0x84] ss:$8 sps:$4 sm:$0xff]  }
 0x276   : > { %v1090_v7 = vpop.f32.mrf.mxu1  ;;  %1686 = vmatprep.subr.bf16.mxu1 %v4109_v4 }
 0x277   : > { %v1091_v9 = vadd.f32 %v1090_v7, %v891_v5  ;;  %v1127_v18 = vmax.f32 %v1089_v11, 0.0  ;;  %v4110_v7 = vld [vmem:[#allocation11 + $0x70] ss:$8 sps:$4 sm:$0xff]  }
 0x278   : > { %v1092_v8 = vpop.f32.mrf.mxu1  ;;  %v4116_v11 = vld [vmem:[#allocation11 + $0x50] ss:$8 sps:$4 sm:$0xff]  }
 0x279   : > { %v1093_v10 = vadd.f32 %v1092_v8, %v887_v6  ;;  %v1128_v16 = vmax.f32 %v1091_v9, 0.0  ;;  %v4112_v8 = vld [vmem:[#allocation11 + $0x74] ss:$8 sps:$4 sm:$0xff]   ;;  %v4113_v9 = vld [vmem:[#allocation11 + $0x60] ss:$8 sps:$4 sm:$0xff]  }
 0x27a   : > { %v1094_v12 = vpop.f32.mrf.mxu1  ;;  %1957 = vmatprep.subr.bf16.mxu0 %v4112_v8 }
 0x27b   : > { %v1095_v13 = vadd.f32 %v1094_v12, %v891_v5  ;;  %v1129_v14 = vmax.f32 %v1093_v10, 0.0  ;;  %v4118_v10 = vld [vmem:[#allocation11 + $0x54] ss:$8 sps:$4 sm:$0xff]   ;;  %v4121_v12 = vld [vmem:[#allocation11 + $0x44] ss:$8 sps:$4 sm:$0xff]  }
 0x27c   : > { %v1098_v15 = vpop.f32.mrf.mxu1 }
 0x27d   : > { %v1130_v17 = vmax.f32 %v1095_v13, 0.0  ;;  %v1099_v19 = vadd.f32 %v1098_v15, %v887_v6  ;;  %v1143_v23 = vpack.c.bf16 %v1129_v14, %v1127_v18  ;;  %v4119_v13 = vld [vmem:[#allocation11 + $0x40] ss:$8 sps:$4 sm:$0xff]   ;;  %v4124_v14 = vld [vmem:[#allocation11 + $0x34] ss:$8 sps:$4 sm:$0xff]  }
 0x27e   : > { %v1100_v20 = vpop.f32.mrf.mxu1  ;;  %v4122_v15 = vld [vmem:[#allocation11 + $0x30] ss:$8 sps:$4 sm:$0xff]   ;;  %v4130_v18 = vld [vmem:[#allocation11 + $0x14] ss:$8 sps:$4 sm:$0xff]  }
 0x27f   : > { %v1144_v21 = vpack.c.bf16 %v1130_v17, %v1128_v16  ;;  %v1101_v22 = vadd.f32 %v1100_v20, %v891_v5  ;;  %v1131_v26 = vmax.f32 %v1099_v19, 0.0  ;;  %v4127_v16 = vld [vmem:[#allocation11 + $0x24] ss:$8 sps:$4 sm:$0xff]   ;;  %v4125_v17 = vld [vmem:[#allocation11 + $0x20] ss:$8 sps:$4 sm:$0xff]  }
 0x280   : > { %v1102_v24 = vpop.f32.mrf.mxu1  ;;  %v4128_v19 = vld [vmem:[#allocation11 + $0x10] ss:$8 sps:$4 sm:$0xff]   ;;  %v4133_v20 = vld [vmem:[#allocation11 + $0x4] ss:$8 sps:$4 sm:$0xff]  }
 0x281   : > { %v1103_v25 = vadd.f32 %v1102_v24, %v887_v6  ;;  %1387 = vmatprep.mubr.bf16.mxu0 %v1144_v21  ;;  %v1132_v28 = vmax.f32 %v1101_v22, 0.0  ;;  %v4131_v21 = vld [vmem:[#allocation11] ss:$8 sps:$4 sm:$0xff]   ;;  %v4136_v22 = vld [vmem:[#allocation11 + $0xf4] ss:$8 sps:$4 sm:$0xff]  }
 0x282   : > { %v1104_v27 = vpop.f32.mrf.mxu1  ;;  %1388 = vmatmul.mubr.bf16.vlgmr.msra.gmra.mxu0 %v1143_v23  ;;  %v4134_v23 = vld [vmem:[#allocation11 + $0xf0] ss:$8 sps:$4 sm:$0xff]   ;;  %v4139_v24 = vld [vmem:[#allocation11 + $0xe4] ss:$8 sps:$4 sm:$0xff]  }
 0x283   : > { %v1133_v29 = vmax.f32 %v1103_v25, 0.0  ;;  %v1105_v30 = vadd.f32 %v1104_v27, %v891_v5  ;;  %1958 = vmatpush1.bf16.msra.mxu0 %v4110_v7  ;;  %v4137_v25 = vld [vmem:[#allocation11 + $0xe0] ss:$8 sps:$4 sm:$0xff]   ;;  %v4140_v27 = vld [vmem:[#allocation11 + $0xd0] ss:$8 sps:$4 sm:$0xff]  }
 0x284   : > { %v1108_v31 = vpop.f32.mrf.mxu1 }
 0x285   : > { %v1134_v32 = vmax.f32 %v1105_v30, 0.0  ;;  %v1145_v33 = vpack.c.bf16 %v1133_v29, %v1131_v26  ;;  %v1109_v34 = vadd.f32 %v1108_v31, %v887_v6  ;;  %v4142_v26 = vld [vmem:[#allocation11 + $0xd4] ss:$8 sps:$4 sm:$0xff]   ;;  %v4143_v29 = vld [vmem:[#allocation11 + $0xc0] ss:$8 sps:$4 sm:$0xff]  }
 0x286   : > { %v1110_v35 = vpop.f32.mrf.mxu1  ;;  %v4148_v30 = vld [vmem:[#allocation11 + $0xb4] ss:$8 sps:$4 sm:$0xff]   ;;  %v4146_v31 = vld [vmem:[#allocation11 + $0xb0] ss:$8 sps:$4 sm:$0xff]  }
 0x287   : > { %v1146_v38 = vpack.c.bf16 %v1134_v32, %v1132_v28  ;;  %v1111_v39 = vadd.f32 %v1110_v35, %v891_v5  ;;  %v1135_v43 = vmax.f32 %v1109_v34, 0.0  ;;  %v4145_v28 = vld [vmem:[#allocation11 + $0xc4] ss:$8 sps:$4 sm:$0xff]  }
 0x288   : > { %v1112_v41 = vpop.f32.mrf.mxu1  ;;  %v1183_v32 = vld [vmem:[#allocation14 + $0x4] sm:$0x3] }
 0x289   : > { %v1113_v42 = vadd.f32 %v1112_v41, %v887_v6  ;;  %1397 = vmatprep.mubr.bf16.mxu0 %v1146_v38  ;;  %v1136_v44 = vmax.f32 %v1111_v39, 0.0  ;;  %v1192_v34 = vrot.slane %v1183_v32, %v5031_v36 }
 0x28a   : > { %v1114_v40 = vpop.f32.mrf.mxu1  ;;  %1398 = vmatmul.mubr.bf16.gmra.mxu0 %v1145_v33  ;;  %v1188_v33 = vrot.slane %v1183_v32, %v5033_v37  ;;  %v4196_v32 = vld [vmem:[#allocation13 + $0x24] ss:$16 sps:$4 sm:$0xff]  }
 0x28b   : > { %v1137_v45 = vmax.f32 %v1113_v42, 0.0  ;;  %v1115_v46 = vadd.f32 %v1114_v40, %v891_v5 }
 0x28c   : > { %v1118_v47 = vpop.f32.mrf.mxu1 }
 0x28d   : > { %v1138_v48 = vmax.f32 %v1115_v46, 0.0  ;;  %v1147_v49 = vpack.c.bf16 %v1137_v45, %v1135_v43  ;;  %v1119_v50 = vadd.f32 %v1118_v47, %v887_v6 }
 0x28e   : > { %v1120_v51 = vpop.f32.mrf.mxu1 }
 0x28f   : > { %v1148_v52 = vpack.c.bf16 %v1138_v48, %v1136_v44  ;;  %v1121_v53 = vadd.f32 %v1120_v51, %v891_v5  ;;  %v1139_v56 = vmax.f32 %v1119_v50, 0.0 }
 0x290   : > { %v1122_v54 = vpop.f32.mrf.mxu1 }
 0x291   : > { %v1123_v55 = vadd.f32 %v1122_v54, %v887_v6  ;;  %1407 = vmatprep.mubr.bf16.mxu0 %v1148_v52  ;;  %v1140_v58 = vmax.f32 %v1121_v53, 0.0  ;;  %v4107_v6 = vld [vmem:[#allocation10 + $0x80] ss:$8 sps:$4 sm:$0xff]  }
 0x292   : > { %v1124_v57 = vpop.f32.mrf.mxu1  ;;  %1408 = vmatmul.mubr.bf16.gmra.mxu0 %v1147_v49  ;;  %1687 = vmatpush2.bf16.msra.mxu1 %v4107_v6 }
 0x293   : > { %v1141_v59 = vmax.f32 %v1123_v55, 0.0  ;;  %v1125_v60 = vadd.f32 %v1124_v57, %v891_v5  ;;  %v4115_v5 = vld [vmem:[#allocation11 + $0x64] ss:$8 sps:$4 sm:$0xff]  }
 0x294   : > { %1959 = vmatprep.subr.bf16.mxu0 %v4115_v5 }
 0x295   : > { %v1142_v61 = vmax.f32 %v1125_v60, 0.0  ;;  %v1149_v62 = vpack.c.bf16 %v1141_v59, %v1139_v56  ;;  %1960 = vmatpush1.bf16.msra.mxu0 %v4113_v9 }
 0x296   : > { %1961 = vmatprep.subr.bf16.mxu0 %v4118_v10 }
 0x297   : > { %v1150_v63 = vpack.c.bf16 %v1142_v61, %v1140_v58 }
 0x299   : > { %1417 = vmatprep.mubr.bf16.mxu0 %v1150_v63  ;;  %1962 = vmatpush1.bf16.msra.mxu0 %v4116_v11 }
 0x29a   : > { %1418 = vmatmul.mubr.bf16.gmra.mxu0 %v1149_v62  ;;  %1963 = vmatprep.subr.bf16.mxu0 %v4121_v12 }
 0x29d   : > { %1964 = vmatpush1.bf16.msra.mxu0 %v4119_v13  ;;  %v4151_v13 = vld [vmem:[#allocation11 + $0xa4] ss:$8 sps:$4 sm:$0xff]  }
 0x29e   : > { %1965 = vmatprep.subr.bf16.mxu0 %v4124_v14  ;;  %v4149_v14 = vld [vmem:[#allocation11 + $0xa0] ss:$8 sps:$4 sm:$0xff]  }
 0x2a1   : > { %1966 = vmatpush1.bf16.msra.mxu0 %v4122_v15  ;;  %v4154_v15 = vld [vmem:[#allocation11 + $0x94] ss:$8 sps:$4 sm:$0xff]  }
 0x2a2   : > { %1967 = vmatprep.subr.bf16.mxu0 %v4127_v16  ;;  %v4152_v16 = vld [vmem:[#allocation11 + $0x90] ss:$8 sps:$4 sm:$0xff]  }
 0x2a5   : > { %1968 = vmatpush1.bf16.msra.mxu0 %v4125_v17  ;;  %v4157_v17 = vld [vmem:[#allocation11 + $0x84] ss:$8 sps:$4 sm:$0xff]  }
 0x2a6   : > { %1969 = vmatprep.subr.bf16.mxu0 %v4130_v18  ;;  %v4155_v18 = vld [vmem:[#allocation11 + $0x80] ss:$8 sps:$4 sm:$0xff]  }
 0x2a9   : > { %1970 = vmatpush1.bf16.msra.mxu0 %v4128_v19  ;;  %v4158_v19 = vld [vmem:[#allocation13 + $0xe0] ss:$16 sps:$4 sm:$0xff]  }
 0x2aa   : > { %1971 = vmatprep.subr.bf16.mxu0 %v4133_v20  ;;  %v4160_v20 = vld [vmem:[#allocation13 + $0xe4] ss:$16 sps:$4 sm:$0xff]  }
 0x2ab   : > { %2262 = vmatprep.subr.bf16.mxu1 %v4160_v20 }
 0x2ad   : > { %1972 = vmatpush1.bf16.msra.mxu0 %v4131_v21  ;;  %v5063_v21 = vld [vmem:[#allocation13 + $0xec] ss:$16 sps:$4 sm:$0xff]  }
 0x2ae   : > { %1973 = vmatprep.subr.bf16.mxu0 %v4136_v22  ;;  %v4166_v22 = vld [vmem:[#allocation13 + $0xc4] ss:$16 sps:$4 sm:$0xff]  }
 0x2b1   : > { %1974 = vmatpush2.bf16.msra.mxu0 %v4134_v23  ;;  %v4164_v23 = vld [vmem:[#allocation13 + $0xc0] ss:$16 sps:$4 sm:$0xff]  }
 0x2b2   : > { %1975 = vmatprep.subr.bf16.mxu0 %v4139_v24  ;;  %v4172_v24 = vld [vmem:[#allocation13 + $0xa4] ss:$16 sps:$4 sm:$0xff]  }
 0x2b5   : > { %1976 = vmatpush2.bf16.msra.mxu0 %v4137_v25  ;;  %v4170_v25 = vld [vmem:[#allocation13 + $0xa0] ss:$16 sps:$4 sm:$0xff]  }
 0x2b6   : > { %1977 = vmatprep.subr.bf16.mxu0 %v4142_v26  ;;  %v4178_v26 = vld [vmem:[#allocation13 + $0x84] ss:$16 sps:$4 sm:$0xff]  }
 0x2b9   : > { %1978 = vmatpush2.bf16.msra.mxu0 %v4140_v27  ;;  %v4176_v27 = vld [vmem:[#allocation13 + $0x80] ss:$16 sps:$4 sm:$0xff]  }
 0x2ba   : > { %1979 = vmatprep.subr.bf16.mxu0 %v4145_v28  ;;  %v4184_v28 = vld [vmem:[#allocation13 + $0x64] ss:$16 sps:$4 sm:$0xff]  }
 0x2bd   : > { %1980 = vmatpush2.bf16.msra.mxu0 %v4143_v29  ;;  %v4182_v29 = vld [vmem:[#allocation13 + $0x60] ss:$16 sps:$4 sm:$0xff]  }
 0x2be   : > { %1981 = vmatprep.subr.bf16.mxu0 %v4148_v30  ;;  %v4190_v30 = vld [vmem:[#allocation13 + $0x44] ss:$16 sps:$4 sm:$0xff]  }
 0x2c1   : > { %1982 = vmatpush2.bf16.msra.mxu0 %v4146_v31  ;;  %v4188_v31 = vld [vmem:[#allocation13 + $0x40] ss:$16 sps:$4 sm:$0xff]  }
 0x2c2   : > { %1983 = vmatprep.subr.bf16.mxu0 %v4151_v13 }
 0x2c5   : > { %1984 = vmatpush2.bf16.msra.mxu0 %v4149_v14  ;;  %v5085_v14 = vld [vmem:[#allocation13 + $0xc8] ss:$16 sps:$4 sm:$0xff]  }
 0x2c6   : > { %1985 = vmatprep.subr.bf16.mxu0 %v4154_v15 }
 0x2c9   : > { %1986 = vmatpush2.bf16.msra.mxu0 %v4152_v16  ;;  %v5088_v16 = vld [vmem:[#allocation13 + $0xac] ss:$16 sps:$4 sm:$0xff]  }
 0x2ca   : > { %1987 = vmatprep.subr.bf16.mxu0 %v4157_v17 }
 0x2cd   : > { %1988 = vmatpush2.bf16.msra.mxu0 %v4155_v18 }
 0x2ce   : > { %2836 = vmatprep.subr.bf16.mxu0 %v5063_v21 }
 0x342   : > { %v1389_v35 = vpop.f32.mrf.mxu0 }
 0x343   : > { %v1390_v38 = vadd.f32 %v1389_v35, %v1188_v33  ;;  %v4200_v35 = vld [vmem:[#allocation13] ss:$16 sps:$4 sm:$0xff]  }
 0x344   : > { %v1391_v39 = vpop.f32.mrf.mxu0 }
 0x345   : > { %1428 = vst [vmem:[%s5045_s20] sm:$0xff] %v1390_v38  ;;  %v1392_v41 = vadd.f32 %v1391_v39, %v1192_v34  ;;  %v4206_v39 = vld [vmem:[#allocation13 + $0x1e0] ss:$16 sps:$4 sm:$0xff]  }
 0x346   : > { %v1393_v42 = vpop.f32.mrf.mxu0 }
 0x347   : > { %1429 = vst [vmem:[%s5045_s20 + $0x8] sm:$0xff] %v1392_v41  ;;  %v1394_v43 = vadd.f32 %v1393_v42, %v1188_v33  ;;  %v4212_v42 = vld [vmem:[#allocation13 + $0x1c0] ss:$16 sps:$4 sm:$0xff]  }
 0x348   : > { %v1395_v40 = vpop.f32.mrf.mxu0 }
 0x349   : > { %1430 = vst [vmem:[%s5045_s20 + $0x10] sm:$0xff] %v1394_v43  ;;  %v1396_v44 = vadd.f32 %v1395_v40, %v1192_v34  ;;  %v1444_v48 = vpack.c.bf16 %v1394_v43, %v1390_v38  ;;  %v4208_v38 = vld [vmem:[#allocation13 + $0x1e4] ss:$16 sps:$4 sm:$0xff]   ;;  %v4218_v40 = vld [vmem:[#allocation13 + $0x1a0] ss:$16 sps:$4 sm:$0xff]  }
 0x34a   : > { %v1399_v45 = vpop.f32.mrf.mxu0  ;;  %v4220_v43 = vld [vmem:[#allocation13 + $0x1a4] ss:$16 sps:$4 sm:$0xff]  }
 0x34b   : > { %1431 = vst [vmem:[%s5045_s20 + $0x18] sm:$0xff] %v1396_v44  ;;  %v1445_v46 = vpack.c.bf16 %v1396_v44, %v1392_v41  ;;  %v1400_v47 = vadd.f32 %v1399_v45, %v1188_v33  ;;  %v4214_v41 = vld [vmem:[#allocation13 + $0x1c4] ss:$16 sps:$4 sm:$0xff]   ;;  %v4224_v45 = vld [vmem:[#allocation13 + $0x180] ss:$16 sps:$4 sm:$0xff]  }
 0x34c   : > { %v1401_v49 = vpop.f32.mrf.mxu0  ;;  %v4226_v44 = vld [vmem:[#allocation13 + $0x184] ss:$16 sps:$4 sm:$0xff]  }
 0x34d   : > { %1432 = vst [vmem:[%s5045_s20 + $0x20] sm:$0xff] %v1400_v47  ;;  %v1402_v50 = vadd.f32 %v1401_v49, %v1192_v34  ;;  %1688 = vmatprep.mubr.bf16.mxu1 %v1445_v46  ;;  %v4232_v46 = vld [vmem:[#allocation13 + $0x164] ss:$16 sps:$4 sm:$0xff]  }
 0x34e   : > { %v1403_v51 = vpop.f32.mrf.mxu0  ;;  %1689 = vmatmul.mubr.bf16.vlgmr.msra.gmra.mxu1 %v1444_v48  ;;  %v1484_v48 = vld [vmem:[#allocation14 + $0x6] sm:$0x3] }
 0x34f   : > { %1433 = vst [vmem:[%s5045_s20 + $0x28] sm:$0xff] %v1402_v50  ;;  %v1404_v52 = vadd.f32 %v1403_v51, %v1188_v33  ;;  %2263 = vmatpush1.bf16.msra.mxu1 %v4158_v19  ;;  %v5070_v51 = vrot.slane %v1484_v48, %v5033_v37 }
 0x350   : > { %v1405_v53 = vpop.f32.mrf.mxu0  ;;  %2264 = vmatprep.subr.bf16.mxu1 %v4166_v22 }
 0x351   : > { %1434 = vst [vmem:[%s5045_s20 + $0x30] sm:$0xff] %v1404_v52  ;;  %v1406_v54 = vadd.f32 %v1405_v53, %v1192_v34  ;;  %v1446_v55 = vpack.c.bf16 %v1404_v52, %v1400_v47  ;;  %v4230_v47 = vld [vmem:[#allocation13 + $0x160] ss:$16 sps:$4 sm:$0xff]  }
 0x352   : > { %v1409_v56 = vpop.f32.mrf.mxu0 }
 0x353   : > { %1435 = vst [vmem:[%s5045_s20 + $0x38] sm:$0xff] %v1406_v54  ;;  %v1447_v57 = vpack.c.bf16 %v1406_v54, %v1402_v50  ;;  %v1410_v58 = vadd.f32 %v1409_v56, %v1188_v33  ;;  %2265 = vmatpush1.bf16.msra.mxu1 %v4164_v23  ;;  %v5067_v50 = vrot.slane %v1484_v48, %v5031_v36 }
 0x354   : > { %v1411_v59 = vpop.f32.mrf.mxu0  ;;  %2266 = vmatprep.subr.bf16.mxu1 %v4172_v24  ;;  %v5093_v24 = vld [vmem:[#allocation13 + $0xa8] ss:$16 sps:$4 sm:$0xff]  }
 0x355   : > { %1436 = vst [vmem:[%s5045_s20 + $0x40] sm:$0xff] %v1410_v58  ;;  %v1412_v60 = vadd.f32 %v1411_v59, %v1192_v34  ;;  %1698 = vmatprep.mubr.bf16.mxu1 %v1447_v57 }
 0x356   : > { %v1413_v61 = vpop.f32.mrf.mxu0  ;;  %1699 = vmatmul.mubr.bf16.gmra.mxu1 %v1446_v55 }
 0x357   : > { %1437 = vst [vmem:[%s5045_s20 + $0x48] sm:$0xff] %v1412_v60  ;;  %v1414_v62 = vadd.f32 %v1413_v61, %v1188_v33  ;;  %2267 = vmatpush1.bf16.msra.mxu1 %v4170_v25 }
 0x358   : > { %v1415_v63 = vpop.f32.mrf.mxu0  ;;  %2268 = vmatprep.subr.bf16.mxu1 %v4178_v26  ;;  %v5096_v26 = vld [vmem:[#allocation13 + $0x8c] ss:$16 sps:$4 sm:$0xff]  }
 0x359   : > { %1438 = vst [vmem:[%s5045_s20 + $0x50] sm:$0xff] %v1414_v62  ;;  %v1416_v0 = vadd.f32 %v1415_v63, %v1192_v34  ;;  %v1448_v1 = vpack.c.bf16 %v1414_v62, %v1410_v58 }
 0x35a   : > { %v1419_v2 = vpop.f32.mrf.mxu0 }
 0x35b   : > { %1439 = vst [vmem:[%s5045_s20 + $0x58] sm:$0xff] %v1416_v0  ;;  %v1449_v3 = vpack.c.bf16 %v1416_v0, %v1412_v60  ;;  %v1420_v4 = vadd.f32 %v1419_v2, %v1188_v33  ;;  %2269 = vmatpush1.bf16.msra.mxu1 %v4176_v27 }
 0x35c   : > { %v1421_v6 = vpop.f32.mrf.mxu0  ;;  %2270 = vmatprep.subr.bf16.mxu1 %v4184_v28 }
 0x35d   : > { %1440 = vst [vmem:[%s5045_s20 + $0x60] sm:$0xff] %v1420_v4  ;;  %v1422_v7 = vadd.f32 %v1421_v6, %v1192_v34  ;;  %1708 = vmatprep.mubr.bf16.mxu1 %v1449_v3 }
 0x35e   : > { %v1423_v8 = vpop.f32.mrf.mxu0  ;;  %1709 = vmatmul.mubr.bf16.gmra.mxu1 %v1448_v1 }
 0x35f   : > { %1441 = vst [vmem:[%s5045_s20 + $0x68] sm:$0xff] %v1422_v7  ;;  %v1424_v5 = vadd.f32 %v1423_v8, %v1188_v33  ;;  %2271 = vmatpush1.bf16.msra.mxu1 %v4182_v29  ;;  %v4194_v33 = vld [vmem:[#allocation13 + $0x20] ss:$16 sps:$4 sm:$0xff]   ;;  %v5080_v8 = vld [vmem:[#allocation13 + $0xcc] ss:$16 sps:$4 sm:$0xff]  }
 0x360   : > { %v1425_v9 = vpop.f32.mrf.mxu0  ;;  %2272 = vmatprep.subr.bf16.mxu1 %v4190_v30 }
 0x361   : > { %1442 = vst [vmem:[%s5045_s20 + $0x70] sm:$0xff] %v1424_v5  ;;  %v1426_v10 = vadd.f32 %v1425_v9, %v1192_v34  ;;  %v1450_v11 = vpack.c.bf16 %v1424_v5, %v1420_v4  ;;  %v4202_v34 = vld [vmem:[#allocation13 + $0x4] ss:$16 sps:$4 sm:$0xff]   ;;  %v5078_v4 = vld [vmem:[#allocation13 + $0xe8] ss:$16 sps:$4 sm:$0xff]  }
 0x363   : > { %1443 = vst [vmem:[%s5045_s20 + $0x78] sm:$0xff] %v1426_v10  ;;  %v1451_v12 = vpack.c.bf16 %v1426_v10, %v1422_v7  ;;  %2273 = vmatpush1.bf16.msra.mxu1 %v4188_v31 }
 0x364   : > { %2274 = vmatprep.subr.bf16.mxu1 %v4196_v32 }
 0x365   : > { %1718 = vmatprep.mubr.bf16.mxu1 %v1451_v12 }
 0x366   : > { %1719 = vmatmul.mubr.bf16.gmra.mxu1 %v1450_v11 }
 0x367   : > { %2275 = vmatpush1.bf16.msra.mxu1 %v4194_v33  ;;  %v5101_v33 = vld [vmem:[#allocation13 + $0x88] ss:$16 sps:$4 sm:$0xff]  }
 0x368   : > { %2276 = vmatprep.subr.bf16.mxu1 %v4202_v34 }
 0x36b   : > { %2277 = vmatpush1.bf16.msra.mxu1 %v4200_v35  ;;  %v5104_v35 = vld [vmem:[#allocation13 + $0x6c] ss:$16 sps:$4 sm:$0xff]  }
 0x36c   : > { %2278 = vmatprep.subr.bf16.mxu1 %v4208_v38 }
 0x36f   : > { %2279 = vmatpush2.bf16.msra.mxu1 %v4206_v39 }
 0x370   : > { %2280 = vmatprep.subr.bf16.mxu1 %v4214_v41 }
 0x373   : > { %2281 = vmatpush2.bf16.msra.mxu1 %v4212_v42 }
 0x374   : > { %2282 = vmatprep.subr.bf16.mxu1 %v4220_v43 }
 0x377   : > { %2283 = vmatpush2.bf16.msra.mxu1 %v4218_v40 }
 0x378   : > { %2284 = vmatprep.subr.bf16.mxu1 %v4226_v44  ;;  %v5109_v44 = vld [vmem:[#allocation13 + $0x68] ss:$16 sps:$4 sm:$0xff]  }
 0x37b   : > { %2285 = vmatpush2.bf16.msra.mxu1 %v4224_v45 }
 0x37c   : > { %2286 = vmatprep.subr.bf16.mxu1 %v4232_v46  ;;  %v5112_v46 = vld [vmem:[#allocation13 + $0x4c] ss:$16 sps:$4 sm:$0xff]  }
 0x37f   : > { %2287 = vmatpush2.bf16.msra.mxu1 %v4230_v47 }
 0x40e   : > { %v1690_v49 = vpop.f32.mrf.mxu1 }
 0x40f   : > { %v1691_v56 = vadd.f32 %v1690_v49, %v5070_v51 }
 0x410   : > { %v1692_v52 = vpop.f32.mrf.mxu1 }
 0x411   : > { %v1693_v54 = vadd.f32 %v1692_v52, %v5067_v50  ;;  %v1729_v63 = vmax.f32 %v1691_v56, 0.0  ;;  %v5120_v56 = vld [vmem:[#allocation13 + $0x2c] ss:$16 sps:$4 sm:$0xff]  }
 0x412   : > { %v1694_v53 = vpop.f32.mrf.mxu1 }
 0x413   : > { %v1695_v55 = vadd.f32 %v1694_v53, %v5070_v51  ;;  %v1730_v61 = vmax.f32 %v1693_v54, 0.0 }
 0x414   : > { %v1696_v57 = vpop.f32.mrf.mxu1 }
 0x415   : > { %v1697_v58 = vadd.f32 %v1696_v57, %v5067_v50  ;;  %v1731_v59 = vmax.f32 %v1695_v55, 0.0  ;;  %v5117_v55 = vld [vmem:[#allocation13 + $0x48] ss:$16 sps:$4 sm:$0xff]  }
 0x416   : > { %v1700_v60 = vpop.f32.mrf.mxu1 }
 0x417   : > { %v1732_v62 = vmax.f32 %v1697_v58, 0.0  ;;  %v1701_v0 = vadd.f32 %v1700_v60, %v5070_v51  ;;  %v1745_v6 = vpack.c.bf16 %v1731_v59, %v1729_v63  ;;  %v5126_v60 = vld [vmem:[#allocation13 + $0xc] ss:$16 sps:$4 sm:$0xff]  }
 0x418   : > { %v1702_v1 = vpop.f32.mrf.mxu1  ;;  %v5138_v63 = vld [vmem:[#allocation13 + $0x1cc] ss:$16 sps:$4 sm:$0xff]  }
 0x419   : > { %v1746_v2 = vpack.c.bf16 %v1732_v62, %v1730_v61  ;;  %v1703_v3 = vadd.f32 %v1702_v1, %v5067_v50  ;;  %v1733_v9 = vmax.f32 %v1701_v0, 0.0  ;;  %v5132_v61 = vld [vmem:[#allocation13 + $0x1ec] ss:$16 sps:$4 sm:$0xff]   ;;  %v5135_v62 = vld [vmem:[#allocation13 + $0x1e8] ss:$16 sps:$4 sm:$0xff]  }
 0x41a   : > { %v1704_v7 = vpop.f32.mrf.mxu1  ;;  %v5141_v0 = vld [vmem:[#allocation13 + $0x1c8] ss:$16 sps:$4 sm:$0xff]   ;;  %v5144_v1 = vld [vmem:[#allocation13 + $0x1ac] ss:$16 sps:$4 sm:$0xff]  }
 0x41b   : > { %v1705_v5 = vadd.f32 %v1704_v7, %v5070_v51  ;;  %1989 = vmatprep.mubr.bf16.mxu0 %v1746_v2  ;;  %v1734_v11 = vmax.f32 %v1703_v3, 0.0  ;;  %v5147_v2 = vld [vmem:[#allocation13 + $0x1a8] ss:$16 sps:$4 sm:$0xff]   ;;  %v5150_v3 = vld [vmem:[#allocation13 + $0x18c] ss:$16 sps:$4 sm:$0xff]  }
 0x41c   : > { %v1706_v10 = vpop.f32.mrf.mxu1  ;;  %1990 = vmatmul.mubr.bf16.vlgmr.msra.gmra.mxu0 %v1745_v6  ;;  %v5153_v6 = vld [vmem:[#allocation13 + $0x188] ss:$16 sps:$4 sm:$0xff]   ;;  %v5156_v7 = vld [vmem:[#allocation13 + $0x16c] ss:$16 sps:$4 sm:$0xff]  }
 0x41d   : > { %v1735_v12 = vmax.f32 %v1705_v5, 0.0  ;;  %v1707_v13 = vadd.f32 %v1706_v10, %v5067_v50  ;;  %2837 = vmatpush1.bf16.msra.mxu0 %v5078_v4  ;;  %v5159_v5 = vld [vmem:[#allocation13 + $0x168] ss:$16 sps:$4 sm:$0xff]   ;;  %v4236_v10 = vld [vmem:[#allocation13 + $0x140] ss:$16 sps:$4 sm:$0xff]  }
 0x41e   : > { %v1710_v15 = vpop.f32.mrf.mxu1  ;;  %2838 = vmatprep.subr.bf16.mxu0 %v5080_v8 }
 0x41f   : > { %v1736_v17 = vmax.f32 %v1707_v13, 0.0  ;;  %v1747_v18 = vpack.c.bf16 %v1735_v12, %v1733_v9  ;;  %v1711_v19 = vadd.f32 %v1710_v15, %v5070_v51  ;;  %v4238_v9 = vld [vmem:[#allocation13 + $0x144] ss:$16 sps:$4 sm:$0xff]   ;;  %v5165_v12 = vld [vmem:[#allocation13 + $0x148] ss:$16 sps:$4 sm:$0xff]  }
 0x420   : > { %v1712_v20 = vpop.f32.mrf.mxu1  ;;  %2288 = vmatprep.subr.bf16.mxu1 %v4238_v9  ;;  %v4244_v13 = vld [vmem:[#allocation13 + $0x124] ss:$16 sps:$4 sm:$0xff]   ;;  %v4242_v15 = vld [vmem:[#allocation13 + $0x120] ss:$16 sps:$4 sm:$0xff]  }
 0x421   : > { %v1748_v22 = vpack.c.bf16 %v1736_v17, %v1734_v11  ;;  %v1713_v23 = vadd.f32 %v1712_v20, %v5067_v50  ;;  %2839 = vmatpush1.bf16.msra.mxu0 %v5085_v14  ;;  %v1737_v28 = vmax.f32 %v1711_v19, 0.0  ;;  %v5163_v11 = vld [vmem:[#allocation13 + $0x14c] ss:$16 sps:$4 sm:$0xff]   ;;  %2289 = vmatpush2.bf16.msra.mxu1 %v4236_v10  ;;  %v4250_v19 = vld [vmem:[#allocation13 + $0x104] ss:$16 sps:$4 sm:$0xff]  }
 0x422   : > { %v1714_v25 = vpop.f32.mrf.mxu1  ;;  %2840 = vmatprep.subr.bf16.mxu0 %v5088_v16  ;;  %v5169_v17 = vld [vmem:[#allocation13 + $0x12c] ss:$16 sps:$4 sm:$0xff]   ;;  %2290 = vmatprep.subr.bf16.mxu1 %v4244_v13  ;;  %v4248_v20 = vld [vmem:[#allocation13 + $0x100] ss:$16 sps:$4 sm:$0xff]  }
 0x423   : > { %v1715_v27 = vadd.f32 %v1714_v25, %v5070_v51  ;;  %1999 = vmatprep.mubr.bf16.mxu0 %v1748_v22  ;;  %v1738_v30 = vmax.f32 %v1713_v23, 0.0  ;;  %v5175_v22 = vld [vmem:[#allocation13 + $0x10c] ss:$16 sps:$4 sm:$0xff]   ;;  %v5177_v23 = vld [vmem:[#allocation13 + $0x108] ss:$16 sps:$4 sm:$0xff]  }
 0x424   : > { %v1716_v29 = vpop.f32.mrf.mxu1  ;;  %2000 = vmatmul.mubr.bf16.gmra.mxu0 %v1747_v18  ;;  %v5171_v18 = vld [vmem:[#allocation13 + $0x128] ss:$16 sps:$4 sm:$0xff]  }
 0x425   : > { %v1739_v31 = vmax.f32 %v1715_v27, 0.0  ;;  %v1717_v32 = vadd.f32 %v1716_v29, %v5067_v50  ;;  %2841 = vmatpush1.bf16.msra.mxu0 %v5093_v24  ;;  %2291 = vmatpush2.bf16.msra.mxu1 %v4242_v15  ;;  %v1785_v25 = vld [vmem:[#allocation14 + $0x8] sm:$0x3] }
 0x426   : > { %v1720_v34 = vpop.f32.mrf.mxu1  ;;  %2842 = vmatprep.subr.bf16.mxu0 %v5096_v26  ;;  %2292 = vmatprep.subr.bf16.mxu1 %v4250_v19  ;;  %v5186_v29 = vrot.slane %v1785_v25, %v5033_v37 }
 0x427   : > { %v1740_v38 = vmax.f32 %v1717_v32, 0.0  ;;  %v1749_v39 = vpack.c.bf16 %v1739_v31, %v1737_v28  ;;  %v1721_v41 = vadd.f32 %v1720_v34, %v5070_v51  ;;  %v5183_v28 = vrot.slane %v1785_v25, %v5031_v36 }
 0x428   : > { %v1722_v42 = vpop.f32.mrf.mxu1 }
 0x429   : > { %v1750_v43 = vpack.c.bf16 %v1740_v38, %v1738_v30  ;;  %v1723_v40 = vadd.f32 %v1722_v42, %v5067_v50  ;;  %2843 = vmatpush1.bf16.msra.mxu0 %v5101_v33  ;;  %v1741_v48 = vmax.f32 %v1721_v41, 0.0  ;;  %2293 = vmatpush2.bf16.msra.mxu1 %v4248_v20 }
 0x42a   : > { %v1724_v45 = vpop.f32.mrf.mxu1  ;;  %2844 = vmatprep.subr.bf16.mxu0 %v5104_v35  ;;  %3741 = vmatprep.subr.bf16.mxu1 %v5063_v21 }
 0x42b   : > { %v1725_v47 = vadd.f32 %v1724_v45, %v5070_v51  ;;  %2009 = vmatprep.mubr.bf16.mxu0 %v1750_v43  ;;  %v1742_v52 = vmax.f32 %v1723_v40, 0.0  ;;  %v5123_v51 = vld [vmem:[#allocation13 + $0x28] ss:$16 sps:$4 sm:$0xff]  }
 0x42c   : > { %v1726_v49 = vpop.f32.mrf.mxu1  ;;  %2010 = vmatmul.mubr.bf16.gmra.mxu0 %v1749_v39 }
 0x42d   : > { %v1743_v53 = vmax.f32 %v1725_v47, 0.0  ;;  %v1727_v54 = vadd.f32 %v1726_v49, %v5067_v50  ;;  %2845 = vmatpush1.bf16.msra.mxu0 %v5109_v44  ;;  %v5129_v50 = vld [vmem:[#allocation13 + $0x8] ss:$16 sps:$4 sm:$0xff]  }
 0x42e   : > { %2846 = vmatprep.subr.bf16.mxu0 %v5112_v46 }
 0x42f   : > { %v1744_v57 = vmax.f32 %v1727_v54, 0.0  ;;  %v1751_v58 = vpack.c.bf16 %v1743_v53, %v1741_v48 }
 0x431   : > { %v1752_v59 = vpack.c.bf16 %v1744_v57, %v1742_v52  ;;  %2847 = vmatpush1.bf16.msra.mxu0 %v5117_v55 }
 0x432   : > { %2848 = vmatprep.subr.bf16.mxu0 %v5120_v56 }
 0x433   : > { %2019 = vmatprep.mubr.bf16.mxu0 %v1752_v59 }
 0x434   : > { %2020 = vmatmul.mubr.bf16.gmra.mxu0 %v1751_v58 }
 0x435   : > { %2849 = vmatpush1.bf16.msra.mxu0 %v5123_v51 }
 0x436   : > { %2850 = vmatprep.subr.bf16.mxu0 %v5126_v60 }
 0x439   : > { %2851 = vmatpush1.bf16.msra.mxu0 %v5129_v50 }
 0x43a   : > { %2852 = vmatprep.subr.bf16.mxu0 %v5132_v61 }
 0x43d   : > { %2853 = vmatpush2.bf16.msra.mxu0 %v5135_v62 }
 0x43e   : > { %2854 = vmatprep.subr.bf16.mxu0 %v5138_v63 }
 0x441   : > { %2855 = vmatpush2.bf16.msra.mxu0 %v5141_v0 }
 0x442   : > { %2856 = vmatprep.subr.bf16.mxu0 %v5144_v1 }
 0x445   : > { %2857 = vmatpush2.bf16.msra.mxu0 %v5147_v2 }
 0x446   : > { %2858 = vmatprep.subr.bf16.mxu0 %v5150_v3 }
 0x449   : > { %2859 = vmatpush2.bf16.msra.mxu0 %v5153_v6 }
 0x44a   : > { %2860 = vmatprep.subr.bf16.mxu0 %v5156_v7 }
 0x44d   : > { %2861 = vmatpush2.bf16.msra.mxu0 %v5159_v5 }
 0x44e   : > { %2862 = vmatprep.subr.bf16.mxu0 %v5163_v11 }
 0x451   : > { %2863 = vmatpush2.bf16.msra.mxu0 %v5165_v12 }
 0x452   : > { %2864 = vmatprep.subr.bf16.mxu0 %v5169_v17 }
 0x455   : > { %2865 = vmatpush2.bf16.msra.mxu0 %v5171_v18 }
 0x456   : > { %2866 = vmatprep.subr.bf16.mxu0 %v5175_v22 }
 0x459   : > { %2867 = vmatpush2.bf16.msra.mxu0 %v5177_v23 }
 0x4dc   : > { %v1991_v27 = vpop.f32.mrf.mxu0 }
 0x4dd   : > { %v1992_v38 = vadd.f32 %v1991_v27, %v5186_v29 }
 0x4de   : > { %v1993_v30 = vpop.f32.mrf.mxu0 }
 0x4df   : > { %v1994_v32 = vadd.f32 %v1993_v30, %v5183_v28  ;;  %v2030_v45 = vmax.f32 %v1992_v38, 0.0 }
 0x4e0   : > { %v1995_v31 = vpop.f32.mrf.mxu0 }
 0x4e1   : > { %v1996_v34 = vadd.f32 %v1995_v31, %v5186_v29  ;;  %v2031_v43 = vmax.f32 %v1994_v32, 0.0 }
 0x4e2   : > { %v1997_v39 = vpop.f32.mrf.mxu0 }
 0x4e3   : > { %v1998_v41 = vadd.f32 %v1997_v39, %v5183_v28  ;;  %v2032_v21 = vmax.f32 %v1996_v34, 0.0 }
 0x4e4   : > { %v2001_v42 = vpop.f32.mrf.mxu0 }
 0x4e5   : > { %v2033_v40 = vmax.f32 %v1998_v41, 0.0  ;;  %v2046_v49 = vpack.c.bf16 %v2032_v21, %v2030_v45  ;;  %v2002_v52 = vadd.f32 %v2001_v42, %v5186_v29 }
 0x4e6   : > { %v2003_v47 = vpop.f32.mrf.mxu0 }
 0x4e7   : > { %v2047_v48 = vpack.c.bf16 %v2033_v40, %v2031_v43  ;;  %v2004_v54 = vadd.f32 %v2003_v47, %v5183_v28  ;;  %v2034_v9 = vmax.f32 %v2002_v52, 0.0 }
 0x4e8   : > { %v2005_v53 = vpop.f32.mrf.mxu0 }
 0x4e9   : > { %v2006_v57 = vadd.f32 %v2005_v53, %v5186_v29  ;;  %2294 = vmatprep.mubr.bf16.mxu1 %v2047_v48  ;;  %2868 = vmatprep.mubr.bf16.mxu0 %v2047_v48  ;;  %v2035_v15 = vmax.f32 %v2004_v54, 0.0 }
 0x4ea   : > { %v2007_v58 = vpop.f32.mrf.mxu0  ;;  %2295 = vmatmul.mubr.bf16.vlgmr.msra.gmra.mxu1 %v2046_v49  ;;  %2869 = vmatmul.mubr.bf16.vlgmr.msra.gmra.mxu0 %v2046_v49 }
 0x4eb   : > { %v2008_v59 = vadd.f32 %v2007_v58, %v5183_v28  ;;  %3757 = vmatpush1.bf16.msra.mxu1 %v5078_v4  ;;  %v2036_v10 = vmax.f32 %v2006_v57, 0.0 }
 0x4ec   : > { %v2011_v13 = vpop.f32.mrf.mxu0  ;;  %3742 = vmatprep.subr.bf16.mxu1 %v5080_v8 }
 0x4ed   : > { %v2037_v19 = vmax.f32 %v2008_v59, 0.0  ;;  %v2048_v27 = vpack.c.bf16 %v2036_v10, %v2034_v9  ;;  %v2012_v30 = vadd.f32 %v2011_v13, %v5186_v29 }
 0x4ee   : > { %v2013_v20 = vpop.f32.mrf.mxu0 }
 0x4ef   : > { %v2049_v25 = vpack.c.bf16 %v2037_v19, %v2035_v15  ;;  %3758 = vmatpush1.bf16.msra.mxu1 %v5085_v14  ;;  %v2014_v32 = vadd.f32 %v2013_v20, %v5183_v28  ;;  %v2038_v14 = vmax.f32 %v2012_v30, 0.0 }
 0x4f0   : > { %v2015_v31 = vpop.f32.mrf.mxu0  ;;  %3743 = vmatprep.subr.bf16.mxu1 %v5088_v16 }
 0x4f1   : > { %v2016_v4 = vadd.f32 %v2015_v31, %v5186_v29  ;;  %2304 = vmatprep.mubr.bf16.mxu1 %v2049_v25  ;;  %2878 = vmatprep.mubr.bf16.mxu0 %v2049_v25  ;;  %v2039_v41 = vmax.f32 %v2014_v32, 0.0 }
 0x4f2   : > { %v2017_v34 = vpop.f32.mrf.mxu0  ;;  %2305 = vmatmul.mubr.bf16.gmra.mxu1 %v2048_v27  ;;  %2879 = vmatmul.mubr.bf16.gmra.mxu0 %v2048_v27 }
 0x4f3   : > { %v2018_v8 = vadd.f32 %v2017_v34, %v5183_v28  ;;  %3759 = vmatpush1.bf16.msra.mxu1 %v5093_v24  ;;  %v2040_v38 = vmax.f32 %v2016_v4, 0.0 }
 0x4f4   : > { %v2021_v39 = vpop.f32.mrf.mxu0  ;;  %3744 = vmatprep.subr.bf16.mxu1 %v5096_v26 }
 0x4f5   : > { %v2041_v16 = vmax.f32 %v2018_v8, 0.0  ;;  %v2050_v43 = vpack.c.bf16 %v2040_v38, %v2038_v14  ;;  %v2022_v40 = vadd.f32 %v2021_v39, %v5186_v29 }
 0x4f6   : > { %v2023_v21 = vpop.f32.mrf.mxu0 }
 0x4f7   : > { %v2051_v42 = vpack.c.bf16 %v2041_v16, %v2039_v41  ;;  %3760 = vmatpush1.bf16.msra.mxu1 %v5101_v33  ;;  %v2024_v47 = vadd.f32 %v2023_v21, %v5183_v28  ;;  %v2042_v49 = vmax.f32 %v2022_v40, 0.0 }
 0x4f8   : > { %v2025_v45 = vpop.f32.mrf.mxu0  ;;  %3745 = vmatprep.subr.bf16.mxu1 %v5104_v35 }
 0x4f9   : > { %v2026_v24 = vadd.f32 %v2025_v45, %v5186_v29  ;;  %2314 = vmatprep.mubr.bf16.mxu1 %v2051_v42  ;;  %v2043_v33 = vmax.f32 %v2024_v47, 0.0 }
 0x4fa   : > { %v2027_v48 = vpop.f32.mrf.mxu0  ;;  %2315 = vmatmul.mubr.bf16.gmra.mxu1 %v2050_v43 }
 0x4fb   : > { %v2028_v26 = vadd.f32 %v2027_v48, %v5183_v28  ;;  %3761 = vmatpush1.bf16.msra.mxu1 %v5109_v44  ;;  %v2044_v52 = vmax.f32 %v2026_v24, 0.0  ;;  %v2090_v44 = vld [vmem:[#allocation14 + $0xa] sm:$0x3] }
 0x4fc   : > { %3746 = vmatprep.subr.bf16.mxu1 %v5112_v46  ;;  %v2664_v46 = vld [vmem:[#allocation14 + $0xc] sm:$0x3] }
 0x4fd   : > { %v2045_v53 = vmax.f32 %v2028_v26, 0.0  ;;  %v2052_v35 = vpack.c.bf16 %v2044_v52, %v2042_v49 }
 0x4ff   : > { %v2053_v54 = vpack.c.bf16 %v2045_v53, %v2043_v33  ;;  %3762 = vmatpush1.bf16.msra.mxu1 %v5117_v55  ;;  %v5236_v55 = vrot.slane %v2090_v44, %v5033_v37 }
 0x500   : > { %3747 = vmatprep.subr.bf16.mxu1 %v5120_v56  ;;  %v5239_v56 = vrot.slane %v2664_v46, %v5033_v37 }
 0x501   : > { %2324 = vmatprep.mubr.bf16.mxu1 %v2053_v54 }
 0x502   : > { %2325 = vmatmul.mubr.bf16.gmra.mxu1 %v2052_v35 }
 0x503   : > { %3763 = vmatpush1.bf16.msra.mxu1 %v5123_v51  ;;  %2888 = vmatprep.mubr.bf16.mxu1 %v2051_v42 }
 0x504   : > { %3748 = vmatprep.subr.bf16.mxu1 %v5126_v60 }
 0x507   : > { %3764 = vmatpush1.bf16.msra.mxu1 %v5129_v50  ;;  %v5242_v50 = vrot.slane %v2090_v44, %v5031_v36 }
 0x508   : > { %3749 = vmatprep.subr.bf16.mxu1 %v5132_v61  ;;  %v5245_v61 = vrot.slane %v2664_v46, %v5031_v36 }
 0x50b   : > { %3765 = vmatpush2.bf16.msra.mxu1 %v5135_v62 }
 0x50c   : > { %3750 = vmatprep.subr.bf16.mxu1 %v5138_v63 }
 0x50f   : > { %3766 = vmatpush2.bf16.msra.mxu1 %v5141_v0 }
 0x510   : > { %3751 = vmatprep.subr.bf16.mxu1 %v5144_v1 }
 0x513   : > { %3767 = vmatpush2.bf16.msra.mxu1 %v5147_v2 }
 0x514   : > { %3752 = vmatprep.subr.bf16.mxu1 %v5150_v3 }
 0x517   : > { %3768 = vmatpush2.bf16.msra.mxu1 %v5153_v6 }
 0x518   : > { %3753 = vmatprep.subr.bf16.mxu1 %v5156_v7 }
 0x51b   : > { %3769 = vmatpush2.bf16.msra.mxu1 %v5159_v5 }
 0x51c   : > { %3754 = vmatprep.subr.bf16.mxu1 %v5163_v11 }
 0x51f   : > { %3770 = vmatpush2.bf16.msra.mxu1 %v5165_v12 }
 0x520   : > { %3755 = vmatprep.subr.bf16.mxu1 %v5169_v17 }
 0x523   : > { %3771 = vmatpush2.bf16.msra.mxu1 %v5171_v18 }
 0x524   : > { %3756 = vmatprep.subr.bf16.mxu1 %v5175_v22 }
 0x527   : > { %3772 = vmatpush2.bf16.msra.mxu1 %v5177_v23 }
 0x52a   : > { %2889 = vmatmul.mubr.bf16.vlgmr.msra.gmra.mxu1 %v2050_v43 }
 0x52b   : > { %2898 = vmatprep.mubr.bf16.mxu1 %v2053_v54 }
 0x532   : > { %2899 = vmatmul.mubr.bf16.gmra.mxu1 %v2052_v35 }
 0x5aa   : > { %v2296_v51 = vpop.f32.mrf.mxu1  ;;  %v2870_v60 = vpop.f32.mrf.mxu0 }
 0x5ab   : > { %v2297_v62 = vadd.f32 %v2296_v51, %v5236_v55  ;;  %v2871_v63 = vadd.f32 %v2870_v60, %v5239_v56 }
 0x5ac   : > { %v2298_v0 = vpop.f32.mrf.mxu1  ;;  %v2872_v1 = vpop.f32.mrf.mxu0 }
 0x5ad   : > { %vm2335_vm0 = vcmp.ge.f32.partialorder %v2297_v62, 0.0  ;;  %v2351_v2 = vmul.f32 0.01, %v2297_v62  ;;  %vm2909_vm1 = vcmp.ge.f32.partialorder %v2871_v63, 0.0  ;;  %v2925_v3 = vmul.f32 0.01, %v2871_v63 }
 0x5ae   : > { %v2299_v37 = vadd.f32 %v2298_v0, %v5242_v50  ;;  %v2873_v6 = vadd.f32 %v2872_v1, %v5245_v61  ;;  %v2300_v7 = vpop.f32.mrf.mxu1  ;;  %v2874_v5 = vpop.f32.mrf.mxu0 }
 0x5af   : > { %v5251_v11 = vsel %vm2335_vm0, %v2297_v62, %v2351_v2  ;;  %v5253_v36 = vsel %vm2909_vm1, %v2871_v63, %v2925_v3  ;;  %v2301_v12 = vadd.f32 %v2300_v7, %v5236_v55  ;;  %v2875_v17 = vadd.f32 %v2874_v5, %v5239_v56 }
 0x5b0   : > { %v2399_v18 = vmul.f32 1.442695, %v5251_v11  ;;  %v2973_v22 = vmul.f32 1.442695, %v5253_v36  ;;  %vm2336_vm2 = vcmp.ge.f32.partialorder %v2299_v37, 0.0  ;;  %vm2910_vm3 = vcmp.ge.f32.partialorder %v2873_v6, 0.0  ;;  %v2302_v29 = vpop.f32.mrf.mxu1  ;;  %v2876_v58 = vpop.f32.mrf.mxu0 }
 0x5b1   : > { %v2352_v23 = vmul.f32 0.01, %v2299_v37  ;;  %v2926_v28 = vmul.f32 0.01, %v2873_v6  ;;  %vm2337_vm4 = vcmp.ge.f32.partialorder %v2301_v12, 0.0  ;;  %vm2911_vm5 = vcmp.ge.f32.partialorder %v2875_v17, 0.0 }
 0x5b2   : > { %4254 = vpow2.f32 %v2399_v18  ;;  %v2353_v57 = vmul.f32 0.01, %v2301_v12  ;;  %v2927_v10 = vmul.f32 0.01, %v2875_v17  ;;  %v2303_v25 = vadd.f32 %v2302_v29, %v5242_v50  ;;  %v2306_v30 = vpop.f32.mrf.mxu1  ;;  %v2880_v32 = vpop.f32.mrf.mxu0 }
 0x5b3   : > { %4256 = vpow2.f32 %v2973_v22  ;;  %v5259_v59 = vsel %vm2336_vm2, %v2299_v37, %v2352_v23  ;;  %v5261_v9 = vsel %vm2910_vm3, %v2873_v6, %v2926_v28  ;;  %v2877_v27 = vadd.f32 %v2876_v58, %v5245_v61 }
 0x5b4   : > { %v2401_v13 = vmul.f32 1.442695, %v5259_v59  ;;  %v2975_v15 = vmul.f32 1.442695, %v5261_v9  ;;  %v5265_v19 = vsel %vm2337_vm4, %v2301_v12, %v2353_v57  ;;  %v5267_v20 = vsel %vm2911_vm5, %v2875_v17, %v2927_v10  ;;  %v2308_v41 = vpop.f32.mrf.mxu1  ;;  %v2882_v35 = vpop.f32.mrf.mxu0 }
 0x5b5   : > { %v2403_v31 = vmul.f32 1.442695, %v5265_v19  ;;  %v2977_v4 = vmul.f32 1.442695, %v5267_v20  ;;  %vm2338_vm6 = vcmp.ge.f32.partialorder %v2303_v25, 0.0  ;;  %vm2912_vm7 = vcmp.ge.f32.partialorder %v2877_v27, 0.0 }
 0x5b6   : > { %4258 = vpow2.f32 %v2401_v13  ;;  %v2354_v34 = vmul.f32 0.01, %v2303_v25  ;;  %v2928_v8 = vmul.f32 0.01, %v2877_v27  ;;  %v2307_v14 = vadd.f32 %v2306_v30, %v5236_v55  ;;  %v2310_v51 = vpop.f32.mrf.mxu1 }
 0x5b7   : > { %4260 = vpow2.f32 %v2975_v15  ;;  %v2881_v39 = vadd.f32 %v2880_v32, %v5239_v56  ;;  %v2309_v45 = vadd.f32 %v2308_v41, %v5242_v50  ;;  %v5291_v6 = vadd.f32 %v2882_v35, %v5245_v61 }
 0x5b8   : > { %4262 = vpow2.f32 %v2403_v31  ;;  %v5274_v38 = vsel %vm2338_vm6, %v2303_v25, %v2354_v34  ;;  %v5278_v21 = vsel %vm2912_vm7, %v2877_v27, %v2928_v8  ;;  %vm2339_vm8 = vcmp.ge.f32.partialorder %v2307_v14, 0.0 }
 0x5b9   : > { %4264 = vpow2.f32 %v2977_v4  ;;  %v2405_v16 = vmul.f32 1.442695, %v5274_v38  ;;  %v2979_v42 = vmul.f32 1.442695, %v5278_v21  ;;  %v2355_v43 = vmul.f32 0.01, %v2307_v14 }
 0x5ba   : > { %vm2913_vm9 = vcmp.ge.f32.partialorder %v2881_v39, 0.0  ;;  %v2929_v40 = vmul.f32 0.01, %v2881_v39  ;;  %v2356_v53 = vmul.f32 0.01, %v2309_v45  ;;  %vm2340_vm10 = vcmp.ge.f32.partialorder %v2309_v45, 0.0 }
 0x5bb   : > { %4266 = vpow2.f32 %v2405_v16  ;;  %v5282_v47 = vsel %vm2339_vm8, %v2307_v14, %v2355_v43  ;;  %v5296_v17 = vadd.f32 %v2310_v51, %v5236_v55  ;;  %vm2914_vm12 = vcmp.ge.f32.partialorder %v5291_v6, 0.0 }
 0x5bc   : > { %4268 = vpow2.f32 %v2979_v42  ;;  %v2407_v24 = vmul.f32 1.442695, %v5282_v47  ;;  %v5285_v48 = vsel %vm2913_vm9, %v2881_v39, %v2929_v40  ;;  %v5288_v0 = vsel %vm2340_vm10, %v2309_v45, %v2356_v53 }
 0x5bd   : > { %v2981_v49 = vmul.f32 1.442695, %v5285_v48  ;;  %v2409_v23 = vmul.f32 1.442695, %v5288_v0  ;;  %vm2383_vm13 = vcmp.gt.f32.partialorder %v5251_v11, 20.0  ;;  %vm2957_vm15 = vcmp.gt.f32.partialorder %v5253_v36, 20.0 }
 0x5be   : > { %4270 = vpow2.f32 %v2407_v24  ;;  %v2930_v14 = vmul.f32 0.01, %v5291_v6  ;;  %vm2384_vm1 = vcmp.gt.f32.partialorder %v5259_v59, 20.0  ;;  %vm2958_vm3 = vcmp.gt.f32.partialorder %v5261_v9, 20.0 }
 0x5bf   : > { %v4255_v26 = vpop.eup %4254  ;;  %4272 = vpow2.f32 %v2981_v49  ;;  %vm2385_vm5 = vcmp.gt.f32.partialorder %v5265_v19, 20.0  ;;  %vm2959_vm7 = vcmp.gt.f32.partialorder %v5267_v20, 20.0  ;;  %vm2386_vm9 = vcmp.gt.f32.partialorder %v5274_v38, 20.0 }
 0x5c0   : > { %v4257_v52 = vpop.eup %4256  ;;  %v2431_v33 = vadd.f32 1.0, %v4255_v26  ;;  %v2434_v46 = vmul.f32 -0.5, %v4255_v26  ;;  %v2437_v2 = vand.u32 2147483647, %v4255_v26 }
 0x5c1   : > { %v3005_v54 = vadd.f32 1.0, %v4257_v52  ;;  %v3008_v62 = vmul.f32 -0.5, %v4257_v52  ;;  %v3011_v5 = vand.u32 2147483647, %v4257_v52 }
 0x5c2   : > { %4274 = vlog2.f32 %v2431_v33  ;;  %v2435_v18 = vadd.f32 1.0, %v2434_v46  ;;  %vm5302_vm11 = vcmp.lt.f32.partialorder %v2437_v2, 0.0004427343 }
 0x5c3   : > { %v4259_v44 = vpop.eup %4258  ;;  %4276 = vlog2.f32 %v3005_v54  ;;  %v3009_v28 = vadd.f32 1.0, %v3008_v62  ;;  %vm5310_vm14 = vcmp.lt.f32.partialorder %v3011_v5, 0.0004427343 }
 0x5c4   : > { %v4261_v60 = vpop.eup %4260  ;;  %v2440_v63 = vadd.f32 1.0, %v4259_v44  ;;  %v2443_v3 = vmul.f32 -0.5, %v4259_v44  ;;  %v2446_v15 = vand.u32 2147483647, %v4259_v44  ;;  %v2436_v4 = vmul.f32 %v4255_v26, %v2435_v18 }
 0x5c5   : > { %v4263_v1 = vpop.eup %4262  ;;  %v3014_v37 = vadd.f32 1.0, %v4261_v60  ;;  %v3017_v22 = vmul.f32 -0.5, %v4261_v60  ;;  %v3020_v30 = vand.u32 2147483647, %v4261_v60  ;;  %v3010_v39 = vmul.f32 %v4257_v52, %v3009_v28 }
 0x5c6   : > { %v5293_v7 = vpop.eup %4264  ;;  %4278 = vlog2.f32 %v2440_v63  ;;  %v2449_v12 = vadd.f32 1.0, %v4263_v1  ;;  %v2452_v29 = vmul.f32 -0.5, %v4263_v1  ;;  %v2444_v13 = vadd.f32 1.0, %v2443_v3 }
 0x5c7   : > { %4280 = vlog2.f32 %v3014_v37  ;;  %v3023_v57 = vadd.f32 1.0, %v5293_v7  ;;  %v3026_v31 = vmul.f32 -0.5, %v5293_v7  ;;  %v3018_v34 = vadd.f32 1.0, %v3017_v22 }
 0x5c8   : > { %4282 = vlog2.f32 %v2449_v12  ;;  %v5300_v58 = vpop.eup %4266  ;;  %v2455_v8 = vand.u32 2147483647, %v4263_v1  ;;  %v2453_v41 = vadd.f32 1.0, %v2452_v29  ;;  %v5321_v43 = vmul.f32 %v4259_v44, %v2444_v13 }
 0x5c9   : > { %v5307_v25 = vpop.eup %4268  ;;  %4284 = vlog2.f32 %v3023_v57  ;;  %v2458_v32 = vadd.f32 1.0, %v5300_v58  ;;  %vm5323_vm0 = vcmp.lt.f32.partialorder %v2446_v15, 0.0004427343  ;;  %v3029_v45 = vand.u32 2147483647, %v5293_v7 }
 0x5ca   : > { %v3032_v16 = vadd.f32 1.0, %v5307_v25  ;;  %v2461_v24 = vmul.f32 -0.5, %v5300_v58  ;;  %vm5332_vm2 = vcmp.lt.f32.partialorder %v3020_v30, 0.0004427343  ;;  %v3027_v52 = vadd.f32 1.0, %v3026_v31 }
 0x5cb   : > { %4286 = vlog2.f32 %v2458_v32  ;;  %v5319_v42 = vpop.eup %4270  ;;  %v3035_v33 = vmul.f32 -0.5, %v5307_v25  ;;  %v3019_v35 = vmul.f32 %v4261_v60, %v3018_v34  ;;  %vm5339_vm4 = vcmp.lt.f32.partialorder %v2455_v8, 0.0004427343  ;;  %v2884_v32 = vpop.f32.mrf.mxu0 }
 0x5cc   : > { %4288 = vpow2.f32 %v2409_v23  ;;  %v5329_v26 = vpop.eup %4272  ;;  %v2467_v53 = vadd.f32 1.0, %v5319_v42  ;;  %v2464_v46 = vand.u32 2147483647, %v5300_v58  ;;  %v2454_v2 = vmul.f32 %v4263_v1, %v2453_v41  ;;  %v5382_v41 = vpop.f32.mrf.mxu1 }
 0x5cd   : > { %4290 = vlog2.f32 %v3032_v16  ;;  %v3041_v51 = vadd.f32 1.0, %v5329_v26  ;;  %v2470_v3 = vmul.f32 -0.5, %v5319_v42  ;;  %vm5347_vm6 = vcmp.lt.f32.partialorder %v3029_v45, 0.0004427343 }
 0x5ce   : > { %4292 = vlog2.f32 %v2467_v53  ;;  %v2462_v60 = vadd.f32 1.0, %v2461_v24  ;;  %v3038_v12 = vand.u32 2147483647, %v5307_v25  ;;  %v3028_v22 = vmul.f32 %v5293_v7, %v3027_v52  ;;  %v5426_v44 = vpop.f32.mrf.mxu1 }
 0x5cf   : > { %v4275_v54 = vpop.eup %4274  ;;  %4294 = vlog2.f32 %v3041_v51  ;;  %v3036_v1 = vadd.f32 1.0, %v3035_v33  ;;  %v2473_v23 = vand.u32 2147483647, %v5319_v42  ;;  %vm5362_vm8 = vcmp.lt.f32.partialorder %v2464_v46, 0.0004427343 }
 0x5d0   : > { %v4277_v62 = vpop.eup %4276  ;;  %v2433_v63 = vmul.f32 0.6931472, %v4275_v54  ;;  %v3044_v10 = vmul.f32 -0.5, %v5329_v26  ;;  %v5370_v7 = vsel %vm2914_vm12, %v5291_v6, %v2930_v14  ;;  %v2471_v31 = vadd.f32 1.0, %v2470_v3 }
 0x5d1   : > { %v3007_v37 = vmul.f32 0.6931472, %v4277_v62  ;;  %vm5377_vm10 = vcmp.lt.f32.partialorder %v3038_v12, 0.0004427343  ;;  %v3047_v14 = vand.u32 2147483647, %v5329_v26  ;;  %v5409_v33 = vadd.f32 %v2884_v32, %v5239_v56 }
 0x5d2   : > { %v2439_v18 = vsel %vm5302_vm11, %v2436_v4, %v2433_v63  ;;  %vm2960_vm11 = vcmp.gt.f32.partialorder %v5278_v21, 20.0  ;;  %vm2341_vm12 = vcmp.ge.f32.partialorder %v5296_v17, 0.0  ;;  %v2357_v52 = vmul.f32 0.01, %v5296_v17 }
 0x5d3   : > { %v4279_v28 = vpop.eup %4278  ;;  %v2575_v29 = vsel %vm2383_vm13, %v5251_v11, %v2439_v18  ;;  %v3013_v57 = vsel %vm5310_vm14, %v3010_v39, %v3007_v37  ;;  %v2463_v39 = vmul.f32 %v5300_v58, %v2462_v60  ;;  %v2983_v58 = vmul.f32 1.442695, %v5370_v7 }
 0x5d4   : > { %v4281_v15 = vpop.eup %4280  ;;  %v2591_v30 = vadd.f32 0.001, %v2575_v29  ;;  %v3149_v11 = vsel %vm2957_vm15, %v5253_v36, %v3013_v57  ;;  %v2442_v27 = vmul.f32 0.6931472, %v4279_v28  ;;  %vm5403_vm13 = vcmp.lt.f32.partialorder %v2473_v23, 0.0004427343  ;;  %v2886_v28 = vpop.f32.mrf.mxu0 }
 0x5d5   : > { %v4283_v4 = vpop.eup %4282  ;;  %v3165_v34 = vadd.f32 0.001, %v3149_v11  ;;  %v3016_v8 = vmul.f32 0.6931472, %v4281_v15  ;;  %vm2387_vm14 = vcmp.gt.f32.partialorder %v5282_v47, 20.0  ;;  %vm2961_vm15 = vcmp.gt.f32.partialorder %v5285_v48, 20.0  ;;  %v5461_v29 = vpop.f32.mrf.mxu1 }
 0x5d6   : > { %2607 = vst [vmem:[%s5385_s29] sm:$0xff] %v2591_v30  ;;  %v2448_v36 = vsel %vm5323_vm0, %v5321_v43, %v2442_v27  ;;  %v2451_v16 = vmul.f32 0.6931472, %v4283_v4  ;;  %v4285_v45 = vpop.eup %4284  ;;  %4296 = vpow2.f32 %v2983_v58  ;;  %v3037_v3 = vmul.f32 %v5307_v25, %v3036_v1 }
 0x5d7   : > { %3181 = vst [vmem:[%s5395_s23] sm:$0xff] %v3165_v34  ;;  %v2576_v24 = vsel %vm2384_vm1, %v5259_v59, %v2448_v36  ;;  %v3022_v40 = vsel %vm5332_vm2, %v3019_v35, %v3016_v8  ;;  %v3025_v49 = vmul.f32 0.6931472, %v4285_v45  ;;  %v2472_v60 = vmul.f32 %v5319_v42, %v2471_v31 }
 0x5d8   : > { %v2592_v53 = vadd.f32 0.001, %v2576_v24  ;;  %v3150_v54 = vsel %vm2958_vm3, %v5261_v9, %v3022_v40  ;;  %v2457_v59 = vsel %vm5339_vm4, %v2454_v2, %v2451_v16  ;;  %v4287_v35 = vpop.eup %4286  ;;  %v5424_v9 = vsel %vm2341_vm12, %v5296_v17, %v2357_v52 }
 0x5d9   : > { %v3166_v46 = vadd.f32 0.001, %v3150_v54  ;;  %v2577_v51 = vsel %vm2385_vm5, %v5265_v19, %v2457_v59  ;;  %v5431_v62 = vpop.eup %4288  ;;  %v3031_v19 = vsel %vm5347_vm6, %v3028_v22, %v3025_v49  ;;  %v2460_v2 = vmul.f32 0.6931472, %v4287_v35 }
 0x5da   : > { %2608 = vst [vmem:[%s5385_s29 + $0x8] sm:$0xff] %v2592_v53  ;;  %v2593_v63 = vadd.f32 0.001, %v2577_v51  ;;  %v4291_v37 = vpop.eup %4290  ;;  %v3151_v17 = vsel %vm2959_vm7, %v5267_v20, %v3031_v19  ;;  %v3045_v12 = vadd.f32 1.0, %v3044_v10  ;;  %v2476_v18 = vadd.f32 1.0, %v5431_v62 }
 0x5db   : > { %3182 = vst [vmem:[%s5395_s23 + $0x8] sm:$0xff] %v3166_v46  ;;  %v3167_v23 = vadd.f32 0.001, %v3151_v17  ;;  %v2466_v5 = vsel %vm5362_vm8, %v2463_v39, %v2460_v2  ;;  %v3034_v22 = vmul.f32 0.6931472, %v4291_v37  ;;  %v4293_v20 = vpop.eup %4292  ;;  %vm2915_vm1 = vcmp.ge.f32.partialorder %v5409_v33, 0.0 }
 0x5dc   : > { %2609 = vst [vmem:[%s5385_s29 + $0x10] sm:$0xff] %v2593_v63  ;;  %v2411_v25 = vmul.f32 1.442695, %v5424_v9  ;;  %v2578_v42 = vsel %vm2386_vm9, %v5274_v38, %v2466_v5  ;;  %vm5456_vm0 = vcmp.lt.f32.partialorder %v3047_v14, 0.0004427343  ;;  %4298 = vlog2.f32 %v2476_v18  ;;  %v4295_v57 = vpop.eup %4294 }
 0x5dd   : > { %3183 = vst [vmem:[%s5395_s23 + $0x10] sm:$0xff] %v3167_v23  ;;  %v2594_v13 = vadd.f32 0.001, %v2578_v42  ;;  %v3040_v10 = vsel %vm5377_vm10, %v3037_v3, %v3034_v22  ;;  %v2469_v38 = vmul.f32 0.6931472, %v4293_v20  ;;  %v3046_v11 = vmul.f32 %v5329_v26, %v3045_v12 }
 0x5de   : > { %4300 = vpow2.f32 %v2411_v25  ;;  %v3152_v15 = vsel %vm2960_vm11, %v5278_v21, %v3040_v10  ;;  %v3043_v30 = vmul.f32 0.6931472, %v4295_v57  ;;  %v2931_v27 = vmul.f32 0.01, %v5409_v33 }
 0x5df   : > { %4605 = shalt.err (!%p4602_p5)
}
 0x5e0   : > { %s4606_s1 = scalar_lea.hbm %s5451_s18, 2048  ;;  %s4610_s30 = scalar_lea.hbm %s5951_s8, 8192 }
 0x5e1   : > { %p4607_p0 = scmp.ne.s32.totalorder %s5451_s18, %s4606_s1  ;;  %p4611_p8 = scmp.lt.s32.totalorder %s5451_s18, %s5951_s8 }
 0x5e2   : > { %p4612_p9 = scmp.lt.s32.totalorder %s4610_s30, %s4606_s1 }
 0x5e3   : > { %p4608_p2 = pnand %p4607_p0, %p6008_p13 }
 0x5e4   : > { %p4613_p10 = por %p4612_p9, %p4611_p8 }
 0x5e5   : > { %p4609_p4 = pneg %p4608_p2 }
 0x5e7   : > { %p4614_p12 = pnand %p4613_p10, %p4609_p4 }
 0x5e9   : > { %4617 = shalt.err (!%p4614_p12)
}
 0x5ea   : > { %s4743_s11 = smov 256   ;;  %s4744_s27 = smov 16   ;;  %2610 = vst [vmem:[%s5385_s29 + $0x18] sm:$0xff] %v2594_v13  ;;  %v3168_v21 = vadd.f32 0.001, %v3152_v15  ;;  %v2475_v26 = vsel %vm5403_vm13, %v2472_v60, %v2469_v38  ;;  %v2313_v31 = vadd.f32 %v5382_v41, %v5242_v50  ;;  %v2887_v32 = vadd.f32 %v2886_v28, %v5245_v61  ;;  %v2320_v6 = vpop.f32.mrf.mxu1  ;;  %v5530_v52 = vpop.eup %4296 }
 0x5eb   : > { %s6009_s28 = scalar_lea.sflag [#allocation4], %s4997_s3  ;;  %v2579_v4 = vsel %vm2387_vm14, %v5282_v47, %v2475_v26  ;;  %v3049_v34 = vsel %vm5456_vm0, %v3046_v11, %v3043_v30  ;;  %v5514_v8 = vsel %vm2915_vm1, %v5409_v33, %v2931_v27  ;;  %v2317_v39 = vadd.f32 %v5426_v44, %v5236_v55  ;;  %v4299_v2 = vpop.eup %4298  ;;  %s3202_s3 = sand.u32 1, %s4823_s19  }
 0x5ec   : > { %3803 = dma.vmem_to_hbm [thread:$0]  (%p6008_p13), %s5467_s22, 2048, %s5451_s18, %s6009_s28, %s4743_s11, %s4743_s11, %s4744_s27   ;;  %v2595_v14 = vadd.f32 0.001, %v2579_v4  ;;  %v3153_v41 = vsel %vm2961_vm15, %v5285_v48, %v3049_v34  ;;  %v2479_v47 = vmul.f32 -0.5, %v5431_v62  ;;  %v2985_v36 = vmul.f32 1.442695, %v5514_v8  ;;  %v2322_v48 = vpop.f32.mrf.mxu1  ;;  %v4301_v17 = vpop.eup %4300 }
 0x5ed   : > { %3184 = vst [vmem:[%s5395_s23 + $0x18] sm:$0xff] %v3168_v21  ;;  %v3169_v16 = vadd.f32 0.001, %v3153_v41  ;;  %vm2342_vm2 = vcmp.ge.f32.partialorder %v2313_v31, 0.0  ;;  %v2358_v58 = vmul.f32 0.01, %v2313_v31  ;;  %v2319_v43 = vadd.f32 %v5461_v29, %v5242_v50  ;;  %s5812_s1 = scalar_lea.hbm %s5952_s9, %s5429_s21 }
 0x5ee   : > { %vm2916_vm3 = vcmp.ge.f32.partialorder %v2887_v32, 0.0  ;;  %2611 = vst [vmem:[%s5385_s29 + $0x20] sm:$0xff] %v2595_v14  ;;  %4302 = vpow2.f32 %v2985_v36  ;;  %v2932_v45 = vmul.f32 0.01, %v2887_v32  ;;  %vm2343_vm4 = vcmp.ge.f32.partialorder %v2317_v39, 0.0  ;;  %v2326_v19 = vpop.f32.mrf.mxu1  ;;  %s3239_s18 = sshll.u32 %s5385_s29, 4  ;;  %s5814_s18 = int_to_ptr.vmem [resolvable:$true] %s3239_s18 }
 0x5ef   : > { %v2359_v24 = vmul.f32 0.01, %v2317_v39  ;;  %3185 = vst [vmem:[%s5395_s23 + $0x20] sm:$0xff] %v3169_v16  ;;  %v5526_v40 = vsel %vm2342_vm2, %v2313_v31, %v2358_v58  ;;  %v2321_v59 = vadd.f32 %v2320_v6, %v5236_v55  ;;  %v2480_v49 = vadd.f32 1.0, %v2479_v47  ;;  %s5830_s20 = scalar_lea.sflag [#allocation18], %s3202_s3  ;;  %s4745_s17 = smov [#allocation17]  }
 0x5f0   : > { %v2413_v33 = vmul.f32 1.442695, %v5526_v40  ;;  %v5533_v53 = vsel %vm2916_vm3, %v2887_v32, %v2932_v45  ;;  %v3050_v35 = vadd.f32 1.0, %v5530_v52  ;;  %v2482_v46 = vand.u32 2147483647, %v5431_v62  ;;  %v2328_v20 = vpop.f32.mrf.mxu1  ;;  %s4622_s30 = sshll.u32 %s4745_s17, 4  ;;  %s4623_s30 = int_to_ptr.vmem [resolvable:$false] %s4622_s30 }
 0x5f1   : > { %v5535_v54 = vsel %vm2343_vm4, %v2317_v39, %v2359_v24  ;;  %v2987_v51 = vmul.f32 1.442695, %v5533_v53  ;;  %vm2344_vm5 = vcmp.ge.f32.partialorder %v2319_v43, 0.0  ;;  %v2323_v63 = vadd.f32 %v2322_v48, %v5242_v50  ;;  %s4624_s4 = scalar_lea.vmem %s4623_s30, 4096  ;;  %p4625_p3 = scmp.lt.s32.totalorder %s5814_s18, %s4623_s30 }
 0x5f2   : > { %4304 = vpow2.f32 %v2413_v33  ;;  %v2415_v44 = vmul.f32 1.442695, %v5535_v54  ;;  %v2360_v3 = vmul.f32 0.01, %v2319_v43  ;;  %vm2345_vm6 = vcmp.ge.f32.partialorder %v2321_v59, 0.0  ;;  %v2330_v15 = vpop.f32.mrf.mxu1 }
 0x5f3   : > { %4306 = vlog2.f32 %v3050_v35  ;;  %v2361_v37 = vmul.f32 0.01, %v2321_v59  ;;  %v2478_v60 = vmul.f32 0.6931472, %v4299_v2  ;;  %v2481_v12 = vmul.f32 %v5431_v62, %v2480_v49 }
 0x5f4   : > { %4308 = vpow2.f32 %v2987_v51  ;;  %vm2483_vm7 = vcmp.lt.f32.partialorder %v2482_v46, 0.0004427343  ;;  %v2485_v18 = vadd.f32 1.0, %v4301_v17  ;;  %v5544_v23 = vsel %vm2344_vm5, %v2319_v43, %v2360_v3  ;;  %v2332_v39 = vpop.f32.mrf.mxu1 }
 0x5f5   : > { %4310 = vpow2.f32 %v2415_v44  ;;  %vm2388_vm8 = vcmp.gt.f32.partialorder %v5288_v0, 20.0  ;;  %v2484_v5 = vsel %vm2483_vm7, %v2481_v12, %v2478_v60  ;;  %v2417_v22 = vmul.f32 1.442695, %v5544_v23 }
 0x5f6   : > { %v5548_v25 = vsel %vm2345_vm6, %v2321_v59, %v2361_v37  ;;  %v2580_v42 = vsel %vm2388_vm8, %v5288_v0, %v2484_v5  ;;  %v3053_v1 = vmul.f32 -0.5, %v5530_v52  ;;  %4312 = vlog2.f32 %v2485_v18 }
 0x5f7   : > { %vm2346_vm9 = vcmp.ge.f32.partialorder %v2323_v63, 0.0  ;;  %v2596_v62 = vadd.f32 0.001, %v2580_v42  ;;  %v2488_v28 = vmul.f32 -0.5, %v4301_v17  ;;  %4314 = vpow2.f32 %v2417_v22 }
 0x5f8   : > { %v2419_v29 = vmul.f32 1.442695, %v5548_v25  ;;  %v2362_v57 = vmul.f32 0.01, %v2323_v63  ;;  %v2327_v13 = vadd.f32 %v2326_v19, %v5236_v55  ;;  %v3056_v38 = vand.u32 2147483647, %v5530_v52 }
 0x5f9   : > { %2612 = vst [vmem:[%s5385_s29 + $0x28] sm:$0xff] %v2596_v62  ;;  %v3054_v0 = vadd.f32 1.0, %v3053_v1  ;;  %v2491_v30 = vand.u32 2147483647, %v4301_v17  ;;  %v2489_v21 = vadd.f32 1.0, %v2488_v28  ;;  %vm2962_vm11 = vcmp.gt.f32.partialorder %v5370_v7, 20.0 }
 0x5fa   : > { %4316 = vpow2.f32 %v2419_v29  ;;  %v5559_v27 = vsel %vm2346_vm9, %v2323_v63, %v2362_v57  ;;  %vm2347_vm10 = vcmp.ge.f32.partialorder %v2327_v13, 0.0  ;;  %v2363_v31 = vmul.f32 0.01, %v2327_v13 }
 0x5fb   : > { %v5554_v10 = vpop.eup %4302  ;;  %v2421_v26 = vmul.f32 1.442695, %v5559_v27  ;;  %vm5563_vm12 = vcmp.lt.f32.partialorder %v3056_v38, 0.0004427343  ;;  %v3055_v14 = vmul.f32 %v5530_v52, %v3054_v0  ;;  %vm2389_vm13 = vcmp.gt.f32.partialorder %v5424_v9, 20.0 }
 0x5fc   : > { %v3059_v11 = vadd.f32 1.0, %v5554_v10  ;;  %v5567_v34 = vsel %vm2347_vm10, %v2327_v13, %v2363_v31  ;;  %v3062_v41 = vmul.f32 -0.5, %v5554_v10  ;;  %v2329_v36 = vadd.f32 %v2328_v20, %v5242_v50 }
 0x5fd   : > { %v2490_v45 = vmul.f32 %v4301_v17, %v2489_v21  ;;  %vm5575_vm14 = vcmp.lt.f32.partialorder %v2491_v30, 0.0004427343  ;;  %v5580_v43 = vadd.f32 %v2330_v15, %v5236_v55  ;;  %v2423_v33 = vmul.f32 1.442695, %v5567_v34  ;;  %v2890_v55 = vpop.f32.mrf.mxu1 }
 0x5fe   : > { %4318 = vlog2.f32 %v3059_v11  ;;  %v5587_v59 = vadd.f32 %v2332_v39, %v5242_v50  ;;  %v3065_v35 = vand.u32 2147483647, %v5554_v10  ;;  %v3063_v63 = vadd.f32 1.0, %v3062_v41 }
 0x5ff   : > { %v4305_v32 = vpop.eup %4304  ;;  %4320 = vpow2.f32 %v2421_v26  ;;  %v2364_v19 = vmul.f32 0.01, %v2329_v36  ;;  %vm2348_vm15 = vcmp.ge.f32.partialorder %v2329_v36, 0.0  ;;  %vm2963_vm0 = vcmp.gt.f32.partialorder %v5514_v8, 20.0 }
 0x600   : > { %v4307_v6 = vpop.eup %4306  ;;  %v2494_v47 = vadd.f32 1.0, %v4305_v32  ;;  %v2497_v46 = vmul.f32 -0.5, %v4305_v32  ;;  %v2500_v3 = vand.u32 2147483647, %v4305_v32  ;;  %v5601_v12 = vadd.f32 %v2890_v55, %v5239_v56 }
 0x601   : > { %v5573_v16 = vpop.eup %4308  ;;  %v3052_v58 = vmul.f32 0.6931472, %v4307_v6  ;;  %vm5604_vm1 = vcmp.lt.f32.partialorder %v3065_v35, 0.0004427343  ;;  %vm2349_vm2 = vcmp.ge.f32.partialorder %v5580_v43, 0.0  ;;  %v3064_v42 = vmul.f32 %v5554_v10, %v3063_v63 }
 0x602   : > { %v5582_v48 = vpop.eup %4310  ;;  %4322 = vlog2.f32 %v2494_v47  ;;  %v3068_v52 = vadd.f32 1.0, %v5573_v16  ;;  %v3071_v60 = vmul.f32 -0.5, %v5573_v16  ;;  %v2498_v18 = vadd.f32 1.0, %v2497_v46 }
 0x603   : > { %v3058_v49 = vsel %vm5563_vm12, %v3055_v14, %v3052_v58  ;;  %v2503_v51 = vadd.f32 1.0, %v5582_v48  ;;  %v4313_v2 = vpop.eup %4312  ;;  %v3074_v1 = vand.u32 2147483647, %v5573_v16  ;;  %v5617_v62 = vsel %vm2348_vm15, %v2329_v36, %v2364_v19 }
 0x604   : > { %v3154_v44 = vsel %vm2962_vm11, %v5370_v7, %v3058_v49  ;;  %4324 = vlog2.f32 %v3068_v52  ;;  %v5596_v37 = vpop.eup %4314  ;;  %v2487_v17 = vmul.f32 0.6931472, %v4313_v2  ;;  %vm5622_vm3 = vcmp.lt.f32.partialorder %v2500_v3, 0.0004427343 }
 0x605   : > { %v3170_v50 = vadd.f32 0.001, %v3154_v44  ;;  %4326 = vlog2.f32 %v2503_v51  ;;  %v2512_v5 = vadd.f32 1.0, %v5596_v37  ;;  %v2506_v57 = vmul.f32 -0.5, %v5582_v48 }
 0x606   : > { %4328 = vpow2.f32 %v2423_v33  ;;  %v2493_v20 = vsel %vm5575_vm14, %v2490_v45, %v2487_v17  ;;  %vm2390_vm4 = vcmp.gt.f32.partialorder %v5526_v40, 20.0  ;;  %v3072_v10 = vadd.f32 1.0, %v3071_v60  ;;  %v2892_v33 = vpop.f32.mrf.mxu1 }
 0x607   : > { %3186 = vst [vmem:[%s5395_s23 + $0x28] sm:$0xff] %v3170_v50  ;;  %v5610_v22 = vpop.eup %4316  ;;  %v2581_v28 = vsel %vm2389_vm13, %v5424_v9, %v2493_v20  ;;  %4330 = vlog2.f32 %v2512_v5  ;;  %v2515_v38 = vmul.f32 -0.5, %v5596_v37  ;;  %v2499_v30 = vmul.f32 %v4305_v32, %v2498_v18 }
 0x608   : > { %v2597_v13 = vadd.f32 0.001, %v2581_v28  ;;  %v2521_v15 = vadd.f32 1.0, %v5610_v22  ;;  %v2509_v11 = vand.u32 2147483647, %v5582_v48  ;;  %vm2964_vm5 = vcmp.gt.f32.partialorder %v5533_v53, 20.0  ;;  %v2894_v18 = vpop.f32.mrf.mxu1 }
 0x609   : > { %v2425_v9 = vmul.f32 1.442695, %v5617_v62  ;;  %v2365_v21 = vmul.f32 0.01, %v5580_v43  ;;  %vm5637_vm6 = vcmp.lt.f32.partialorder %v3074_v1, 0.0004427343  ;;  %v3073_v24 = vmul.f32 %v5573_v16, %v3072_v10 }
 0x60a   : > { %2613 = vst [vmem:[%s5385_s29 + $0x30] sm:$0xff] %v2597_v13  ;;  %v2518_v39 = vand.u32 2147483647, %v5596_v37  ;;  %4332 = vlog2.f32 %v2521_v15  ;;  %vm2391_vm7 = vcmp.gt.f32.partialorder %v5535_v54, 20.0  ;;  %v2507_v32 = vadd.f32 1.0, %v2506_v57 }
 0x60b   : > { %v4319_v0 = vpop.eup %4318  ;;  %4334 = vpow2.f32 %v2425_v9  ;;  %vm2350_vm8 = vcmp.ge.f32.partialorder %v5587_v59, 0.0  ;;  %v2516_v41 = vadd.f32 1.0, %v2515_v38  ;;  %v5650_v47 = vsel %vm2349_vm2, %v5580_v43, %v2365_v21 }
 0x60c   : > { %v5633_v26 = vpop.eup %4320  ;;  %v3061_v31 = vmul.f32 0.6931472, %v4319_v0  ;;  %v2366_v36 = vmul.f32 0.01, %v5587_v59  ;;  %vm5657_vm9 = vcmp.lt.f32.partialorder %v2509_v11, 0.0004427343  ;;  %v2508_v16 = vmul.f32 %v5582_v48, %v2507_v32  ;;  %v2896_v0 = vpop.f32.mrf.mxu1 }
 0x60d   : > { %v2530_v6 = vadd.f32 1.0, %v5633_v26  ;;  %vm5661_vm10 = vcmp.lt.f32.partialorder %v2518_v39, 0.0004427343  ;;  %v2524_v46 = vmul.f32 -0.5, %v5610_v22  ;;  %vm2392_vm11 = vcmp.gt.f32.partialorder %v5544_v23, 20.0 }
 0x60e   : > { %v3067_v14 = vsel %vm5604_vm1, %v3064_v42, %v3061_v31  ;;  %v5667_v51 = vsel %vm2350_vm8, %v5587_v59, %v2366_v36  ;;  %v2527_v55 = vand.u32 2147483647, %v5610_v22  ;;  %v2427_v44 = vmul.f32 1.442695, %v5650_v47 }
 0x60f   : > { %v4323_v58 = vpop.eup %4322  ;;  %v3155_v45 = vsel %vm2963_vm0, %v5514_v8, %v3067_v14  ;;  %4336 = vlog2.f32 %v2530_v6  ;;  %v2429_v63 = vmul.f32 1.442695, %v5667_v51  ;;  %v2517_v59 = vmul.f32 %v5596_v37, %v2516_v41 }
 0x610   : > { %v3171_v49 = vadd.f32 0.001, %v3155_v45  ;;  %v2496_v35 = vmul.f32 0.6931472, %v4323_v58  ;;  %v2533_v3 = vmul.f32 -0.5, %v5633_v26  ;;  %4338 = vpow2.f32 %v2427_v44  ;;  %v2900_v45 = vpop.f32.mrf.mxu1 }
 0x611   : > { %v4325_v8 = vpop.eup %4324  ;;  %v2933_v7 = vmul.f32 0.01, %v5601_v12  ;;  %vm2917_vm12 = vcmp.ge.f32.partialorder %v5601_v12, 0.0  ;;  %4340 = vpow2.f32 %v2429_v63  ;;  %v2893_v1 = vadd.f32 %v2892_v33, %v5245_v61 }
 0x612   : > { %v4327_v19 = vpop.eup %4326  ;;  %3187 = vst [vmem:[%s5395_s23 + $0x30] sm:$0xff] %v3171_v49  ;;  %v2502_v2 = vsel %vm5622_vm3, %v2499_v30, %v2496_v35  ;;  %v3070_v50 = vmul.f32 0.6931472, %v4325_v8  ;;  %v2525_v13 = vadd.f32 1.0, %v2524_v46  ;;  %vm5699_vm13 = vcmp.lt.f32.partialorder %v2527_v55, 0.0004427343 }
 0x613   : > { %v5679_v48 = vpop.eup %4328  ;;  %v2582_v17 = vsel %vm2390_vm4, %v5526_v40, %v2502_v2  ;;  %v2505_v60 = vmul.f32 0.6931472, %v4327_v19  ;;  %v5704_v15 = vsel %vm2917_vm12, %v5601_v12, %v2933_v7  ;;  %vm2393_vm14 = vcmp.gt.f32.partialorder %v5548_v25, 20.0 }
 0x614   : > { %v2598_v5 = vadd.f32 0.001, %v2582_v17  ;;  %v3076_v20 = vsel %vm5637_vm6, %v3073_v24, %v3070_v50  ;;  %v2539_v37 = vadd.f32 1.0, %v5679_v48  ;;  %v4331_v28 = vpop.eup %4330  ;;  %v2534_v30 = vadd.f32 1.0, %v2533_v3 }
 0x615   : > { %v3156_v42 = vsel %vm2964_vm5, %v5533_v53, %v3076_v20  ;;  %v2511_v40 = vsel %vm5657_vm9, %v2508_v16, %v2505_v60  ;;  %v2514_v38 = vmul.f32 0.6931472, %v4331_v28  ;;  %v2536_v11 = vand.u32 2147483647, %v5633_v26 }
 0x616   : > { %2614 = vst [vmem:[%s5385_s29 + $0x38] sm:$0xff] %v2598_v5  ;;  %v3172_v29 = vadd.f32 0.001, %v3156_v42  ;;  %v2583_v57 = vsel %vm2391_vm7, %v5535_v54, %v2511_v40  ;;  %4342 = vlog2.f32 %v2539_v37  ;;  %v2989_v54 = vmul.f32 1.442695, %v5704_v15  ;;  %v2902_v5 = vpop.f32.mrf.mxu1 }
 0x617   : > { %v2599_v10 = vadd.f32 0.001, %v2583_v57  ;;  %v4333_v9 = vpop.eup %4332  ;;  %v2520_v21 = vsel %vm5661_vm10, %v2517_v59, %v2514_v38  ;;  %vm2918_vm15 = vcmp.ge.f32.partialorder %v2893_v1, 0.0  ;;  %v2934_v31 = vmul.f32 0.01, %v2893_v1 }
 0x618   : > { %3188 = vst [vmem:[%s5395_s23 + $0x38] sm:$0xff] %v3172_v29  ;;  %v2895_v4 = vadd.f32 %v2894_v18, %v5239_v56  ;;  %v5714_v12 = vpop.eup %4334  ;;  %v2584_v39 = vsel %vm2392_vm11, %v5544_v23, %v2520_v21  ;;  %v2523_v32 = vmul.f32 0.6931472, %v4333_v9  ;;  %v2526_v6 = vmul.f32 %v5610_v22, %v2525_v13 }
 0x619   : > { %2615 = vst [vmem:[%s5385_s29 + $0x40] sm:$0xff] %v2599_v10  ;;  %4344 = vpow2.f32 %v2989_v54  ;;  %v2600_v14 = vadd.f32 0.001, %v2584_v39  ;;  %v2542_v41 = vmul.f32 -0.5, %v5679_v48  ;;  %v2548_v36 = vadd.f32 1.0, %v5714_v12 }
 0x61a   : > { %v2897_v58 = vadd.f32 %v2896_v0, %v5245_v61  ;;  %v2529_v52 = vsel %vm5699_vm13, %v2526_v6, %v2523_v32  ;;  %v5725_v33 = vsel %vm2918_vm15, %v2893_v1, %v2934_v31  ;;  %vm2919_vm0 = vcmp.ge.f32.partialorder %v2895_v4, 0.0 }
 0x61b   : > { %v2935_v23 = vmul.f32 0.01, %v2895_v4  ;;  %2616 = vst [vmem:[%s5385_s29 + $0x48] sm:$0xff] %v2600_v14  ;;  %v2585_v22 = vsel %vm2393_vm14, %v5548_v25, %v2529_v52  ;;  %v2535_v35 = vmul.f32 %v5633_v26, %v2534_v30  ;;  %4346 = vlog2.f32 %v2548_v36 }
 0x61c   : > { %v4337_v24 = vpop.eup %4336  ;;  %v2601_v43 = vadd.f32 0.001, %v2585_v22  ;;  %vm2537_vm1 = vcmp.lt.f32.partialorder %v2536_v11, 0.0004427343  ;;  %v2901_v8 = vadd.f32 %v2900_v45, %v5239_v56  ;;  %vm2394_vm2 = vcmp.gt.f32.partialorder %v5559_v27, 20.0 }
 0x61d   : > { %v2532_v49 = vmul.f32 0.6931472, %v4337_v24  ;;  %v5732_v46 = vsel %vm2919_vm0, %v2895_v4, %v2935_v23  ;;  %v2543_v55 = vadd.f32 1.0, %v2542_v41  ;;  %v2991_v44 = vmul.f32 1.442695, %v5725_v33  ;;  %v5737_v63 = vpop.eup %4338 }
 0x61e   : > { %2617 = vst [vmem:[%s5385_s29 + $0x50] sm:$0xff] %v2601_v43  ;;  %v2993_v26 = vmul.f32 1.442695, %v5732_v46  ;;  %vm2920_vm3 = vcmp.ge.f32.partialorder %v2897_v58, 0.0  ;;  %v2936_v19 = vmul.f32 0.01, %v2897_v58  ;;  %v5744_v3 = vpop.eup %4340  ;;  %v2903_v30 = vadd.f32 %v2902_v5, %v5245_v61 }
 0x61f   : > { %v2538_v16 = vsel %vm2537_vm1, %v2535_v35, %v2532_v49  ;;  %v2545_v50 = vand.u32 2147483647, %v5679_v48  ;;  %v2557_v59 = vadd.f32 1.0, %v5737_v63  ;;  %4348 = vpow2.f32 %v2991_v44 }
 0x620   : > { %v2586_v25 = vsel %vm2394_vm2, %v5559_v27, %v2538_v16  ;;  %v5746_v17 = vsel %vm2920_vm3, %v2897_v58, %v2936_v19  ;;  %v2937_v60 = vmul.f32 0.01, %v2901_v8  ;;  %v2551_v18 = vmul.f32 -0.5, %v5714_v12 }
 0x621   : > { %v2602_v2 = vadd.f32 0.001, %v2586_v25  ;;  %4350 = vlog2.f32 %v2557_v59  ;;  %v2566_v27 = vadd.f32 1.0, %v5744_v3  ;;  %vm2921_vm4 = vcmp.ge.f32.partialorder %v2901_v8, 0.0 }
 0x622   : > { %v2544_v37 = vmul.f32 %v5679_v48, %v2543_v55  ;;  %4352 = vpow2.f32 %v2993_v26  ;;  %vm2546_vm5 = vcmp.lt.f32.partialorder %v2545_v50, 0.0004427343  ;;  %v2995_v42 = vmul.f32 1.442695, %v5746_v17  ;;  %v2904_v48 = vpop.f32.mrf.mxu1 }
 0x623   : > { %v4343_v7 = vpop.eup %4342  ;;  %2618 = vst [vmem:[%s5385_s29 + $0x58] sm:$0xff] %v2602_v2  ;;  %4354 = vlog2.f32 %v2566_v27  ;;  %vm2395_vm6 = vcmp.gt.f32.partialorder %v5567_v34, 20.0  ;;  %v5754_v1 = vsel %vm2921_vm4, %v2901_v8, %v2937_v60  ;;  %v2552_v57 = vadd.f32 1.0, %v2551_v18 }
 0x624   : > { %v2541_v20 = vmul.f32 0.6931472, %v4343_v7  ;;  %4356 = vpow2.f32 %v2995_v42  ;;  %v2997_v13 = vmul.f32 1.442695, %v5754_v1  ;;  %v2554_v38 = vand.u32 2147483647, %v5714_v12  ;;  %v2906_v31 = vpop.f32.mrf.mxu1 }
 0x625   : > { %v2560_v0 = vmul.f32 -0.5, %v5737_v63  ;;  %v2569_v54 = vmul.f32 -0.5, %v5744_v3  ;;  %v2553_v9 = vmul.f32 %v5714_v12, %v2552_v57  ;;  %vm2922_vm7 = vcmp.ge.f32.partialorder %v2903_v30, 0.0 }
 0x626   : > { %v2547_v40 = vsel %vm2546_vm5, %v2544_v37, %v2541_v20  ;;  %v5756_v28 = vpop.eup %4344  ;;  %4358 = vpow2.f32 %v2997_v13  ;;  %v2905_v21 = vadd.f32 %v2904_v48, %v5239_v56  ;;  %vm2396_vm8 = vcmp.gt.f32.partialorder %v5617_v62, 20.0 }
 0x627   : > { %v2587_v29 = vsel %vm2395_vm6, %v5567_v34, %v2547_v40  ;;  %v3077_v53 = vadd.f32 1.0, %v5756_v28  ;;  %vm2555_vm9 = vcmp.lt.f32.partialorder %v2554_v38, 0.0004427343  ;;  %v2938_v4 = vmul.f32 0.01, %v2903_v30 }
 0x628   : > { %v2603_v10 = vadd.f32 0.001, %v2587_v29  ;;  %v4347_v11 = vpop.eup %4346  ;;  %vm2397_vm10 = vcmp.gt.f32.partialorder %v5650_v47, 20.0  ;;  %v2561_v32 = vadd.f32 1.0, %v2560_v0  ;;  %v2563_v6 = vand.u32 2147483647, %v5737_v63 }
 0x629   : > { %4360 = vlog2.f32 %v3077_v53  ;;  %v2550_v34 = vmul.f32 0.6931472, %v4347_v11  ;;  %v2570_v41 = vadd.f32 1.0, %v2569_v54  ;;  %v5772_v36 = vsel %vm2922_vm7, %v2903_v30, %v2938_v4 }
 0x62a   : > { %2619 = vst [vmem:[%s5385_s29 + $0x60] sm:$0xff] %v2603_v10  ;;  %v2907_v12 = vadd.f32 %v2906_v31, %v5245_v61  ;;  %v2999_v45 = vmul.f32 1.442695, %v5772_v36  ;;  %v2939_v24 = vmul.f32 0.01, %v2905_v21  ;;  %v3080_v22 = vmul.f32 -0.5, %v5756_v28 }
 0x62b   : > { %v2556_v39 = vsel %vm2555_vm9, %v2553_v9, %v2550_v34  ;;  %v2572_v23 = vand.u32 2147483647, %v5744_v3  ;;  %vm2923_vm11 = vcmp.ge.f32.partialorder %v2905_v21, 0.0  ;;  %v2562_v61 = vmul.f32 %v5737_v63, %v2561_v32 }
 0x62c   : > { %v2588_v14 = vsel %vm2396_vm8, %v5617_v62, %v2556_v39  ;;  %v5775_v56 = vpop.eup %4348  ;;  %vm2564_vm12 = vcmp.lt.f32.partialorder %v2563_v6, 0.0004427343  ;;  %4362 = vpow2.f32 %v2999_v45  ;;  %v2571_v8 = vmul.f32 %v5744_v3, %v2570_v41 }
 0x62d   : > { %v2604_v58 = vadd.f32 0.001, %v2588_v14  ;;  %v3086_v49 = vadd.f32 1.0, %v5775_v56  ;;  %v2940_v55 = vmul.f32 0.01, %v2907_v12  ;;  %v5787_v26 = vsel %vm2923_vm11, %v2905_v21, %v2939_v24 }
 0x62e   : > { %v4351_v52 = vpop.eup %4350  ;;  %vm2924_vm13 = vcmp.ge.f32.partialorder %v2907_v12, 0.0  ;;  %vm2573_vm14 = vcmp.lt.f32.partialorder %v2572_v23, 0.0004427343  ;;  %v3081_v2 = vadd.f32 1.0, %v3080_v22  ;;  %vm2398_vm15 = vcmp.gt.f32.partialorder %v5667_v51, 20.0 }
 0x62f   : > { %v5781_v62 = vpop.eup %4352  ;;  %2620 = vst [vmem:[%s5385_s29 + $0x68] sm:$0xff] %v2604_v58  ;;  %v2559_v35 = vmul.f32 0.6931472, %v4351_v52  ;;  %4364 = vlog2.f32 %v3086_v49  ;;  %v3083_v3 = vand.u32 2147483647, %v5756_v28  ;;  %v5804_v27 = vsel %vm2924_vm13, %v2907_v12, %v2940_v55 }
 0x630   : > { %v4355_v43 = vpop.eup %4354  ;;  %v3095_v16 = vadd.f32 1.0, %v5781_v62  ;;  %v3082_v42 = vmul.f32 %v5756_v28, %v3081_v2  ;;  %v3089_v40 = vmul.f32 -0.5, %v5775_v56  ;;  %v3003_v57 = vmul.f32 1.442695, %v5804_v27 }
 0x631   : > { %v2565_v44 = vsel %vm2564_vm12, %v2562_v61, %v2559_v35  ;;  %v2568_v25 = vmul.f32 0.6931472, %v4355_v43  ;;  %v5790_v19 = vpop.eup %4356  ;;  %vm5819_vm0 = vcmp.lt.f32.partialorder %v3083_v3, 0.0004427343  ;;  %vm2965_vm1 = vcmp.gt.f32.partialorder %v5704_v15, 20.0 }
 0x632   : > { %v2589_v63 = vsel %vm2397_vm10, %v5650_v47, %v2565_v44  ;;  %4366 = vlog2.f32 %v3095_v16  ;;  %v3104_v18 = vadd.f32 1.0, %v5790_v19  ;;  %v3001_v47 = vmul.f32 1.442695, %v5787_v26 }
 0x633   : > { %v2605_v50 = vadd.f32 0.001, %v2589_v63  ;;  %v2574_v59 = vsel %vm2573_vm14, %v2571_v8, %v2568_v25  ;;  %v5798_v60 = vpop.eup %4358  ;;  %v3098_v48 = vmul.f32 -0.5, %v5781_v62 }
 0x634   : > { %v2590_v7 = vsel %vm2398_vm15, %v5667_v51, %v2574_v59  ;;  %v3113_v37 = vadd.f32 1.0, %v5798_v60  ;;  %4368 = vlog2.f32 %v3104_v18 }
 0x635   : > { %2621 = vst [vmem:[%s5385_s29 + $0x70] sm:$0xff] %v2605_v50  ;;  %v2606_v20 = vadd.f32 0.001, %v2590_v7 }
 0x636   : > { %v4361_v5 = vpop.eup %4360  ;;  %4370 = vlog2.f32 %v3113_v37 }
 0x637   : > { %v3079_v51 = vmul.f32 0.6931472, %v4361_v5  ;;  %2622 = vst [vmem:[%s5385_s29 + $0x78] sm:$0xff] %v2606_v20  ;;  %4372 = vpow2.f32 %v3001_v47  ;;  %s4618_s29 = scalar_lea.vmem %s5814_s18, 2048 }
 0x638   : > { %p4619_p6 = scmp.ne.s32.totalorder %s5814_s18, %s4618_s29  ;;  %p4626_p11 = scmp.lt.s32.totalorder %s4624_s4, %s4618_s29 }
 0x639   : > { %v3085_v13 = vsel %vm5819_vm0, %v3082_v42, %v3079_v51 }
 0x63a   : > { %p4620_p7 = pnand %p4619_p6, %p6008_p13  ;;  %p4627_p5 = por %p4626_p11, %p4625_p3 }
 0x63c   : > { %p4621_p1 = pneg %p4620_p7 }
 0x63e   : > { %p4628_p0 = pnand %p4627_p5, %p4621_p1 }
 0x640   : > { %4631 = shalt.err (!%p4628_p0)
}
 0x641   : > { %s4632_s19 = scalar_lea.hbm %s5812_s1, 2048  ;;  %s4636_s22 = scalar_lea.hbm %s5952_s9, 8192 }
 0x642   : > { %p4633_p2 = scmp.ne.s32.totalorder %s5812_s1, %s4632_s19  ;;  %p4637_p9 = scmp.lt.s32.totalorder %s5812_s1, %s5952_s9 }
 0x643   : > { %p4638_p10 = scmp.lt.s32.totalorder %s4636_s22, %s4632_s19 }
 0x644   : > { %p4634_p4 = pnand %p4633_p2, %p6008_p13 }
 0x645   : > { %p4639_p12 = por %p4638_p10, %p4637_p9 }
 0x646   : > { %p4635_p8 = pneg %p4634_p4 }
 0x648   : > { %p4640_p6 = pnand %p4639_p12, %p4635_p8 }
 0x64a   : > { %4643 = shalt.err (!%p4640_p6)
}
 0x64b   : > { %3804 = dma.vmem_to_hbm [thread:$0]  (%p6008_p13), %s5814_s18, 2048, %s5812_s1, %s5830_s20, %s4743_s11, %s4743_s11, %s4744_s27   ;;  %v3157_v28 = vsel %vm2965_vm1, %v5704_v15, %v3085_v13  ;;  %4374 = vpow2.f32 %v3003_v57  ;;  %v3090_v38 = vadd.f32 1.0, %v3089_v40  ;;  %v3092_v53 = vand.u32 2147483647, %v5775_v56  ;;  %v4363_v0 = vpop.eup %4362 }
 0x64c   : > { %v3173_v10 = vadd.f32 0.001, %v3157_v28  ;;  %v3099_v30 = vadd.f32 1.0, %v3098_v48  ;;  %v3107_v11 = vmul.f32 -0.5, %v5790_v19  ;;  %v4365_v54 = vpop.eup %4364  ;;  %v3101_v34 = vand.u32 2147483647, %v5781_v62  ;;  %s5894_s30 = scalar_lea.hbm %s5953_s10, %s5429_s21 }
 0x64d   : > { %v3116_v9 = vmul.f32 -0.5, %v5798_v60  ;;  %v3122_v21 = vadd.f32 1.0, %v4363_v0  ;;  %v3088_v31 = vmul.f32 0.6931472, %v4365_v54  ;;  %v3091_v4 = vmul.f32 %v5775_v56, %v3090_v38  ;;  %v4367_v15 = vpop.eup %4366  ;;  %s3256_s18 = sshll.u32 %s5395_s23, 4  ;;  %s4746_s19 = smov [#allocation19]   ;;  %s5896_s18 = int_to_ptr.vmem [resolvable:$true] %s3256_s18 }
 0x64e   : > { %3189 = vst [vmem:[%s5395_s23 + $0x40] sm:$0xff] %v3173_v10  ;;  %vm2966_vm2 = vcmp.gt.f32.partialorder %v5725_v33, 20.0  ;;  %vm3093_vm3 = vcmp.lt.f32.partialorder %v3092_v53, 0.0004427343  ;;  %v3097_v32 = vmul.f32 0.6931472, %v4367_v15  ;;  %v3100_v6 = vmul.f32 %v5781_v62, %v3099_v30  ;;  %v4369_v52 = vpop.eup %4368 }
 0x64f   : > { %4376 = vlog2.f32 %v3122_v21  ;;  %v3094_v39 = vsel %vm3093_vm3, %v3091_v4, %v3088_v31  ;;  %v3108_v14 = vadd.f32 1.0, %v3107_v11  ;;  %vm3102_vm4 = vcmp.lt.f32.partialorder %v3101_v34, 0.0004427343  ;;  %v4371_v22 = vpop.eup %4370  ;;  %s4644_s4 = scalar_lea.vmem %s5896_s18, 2048  ;;  %s4648_s28 = sshll.u32 %s4746_s19, 4  ;;  %s4649_s28 = int_to_ptr.vmem [resolvable:$false] %s4648_s28 }
 0x650   : > { %v3158_v41 = vsel %vm2966_vm2, %v5725_v33, %v3094_v39  ;;  %v3110_v12 = vand.u32 2147483647, %v5790_v19  ;;  %v3117_v58 = vadd.f32 1.0, %v3116_v9  ;;  %vm2967_vm5 = vcmp.gt.f32.partialorder %v5732_v46, 20.0  ;;  %v4373_v35 = vpop.eup %4372  ;;  %p4645_p7 = scmp.ne.s32.totalorder %s5896_s18, %s4644_s4  ;;  %s4650_s3 = scalar_lea.vmem %s4649_s28, 4096 }
 0x651   : > { %v3174_v45 = vadd.f32 0.001, %v3158_v41  ;;  %v3103_v56 = vsel %vm3102_vm4, %v3100_v6, %v3097_v32  ;;  %v3119_v24 = vand.u32 2147483647, %v5798_v60  ;;  %v3106_v62 = vmul.f32 0.6931472, %v4369_v52  ;;  %p4651_p11 = scmp.lt.s32.totalorder %s5896_s18, %s4649_s28  ;;  %p4652_p5 = scmp.lt.s32.totalorder %s4650_s3, %s4644_s4 }
 0x652   : > { %v3159_v23 = vsel %vm2967_vm5, %v5732_v46, %v3103_v56  ;;  %v3109_v33 = vmul.f32 %v5790_v19, %v3108_v14  ;;  %vm3111_vm6 = vcmp.lt.f32.partialorder %v3110_v12, 0.0004427343  ;;  %v3115_v61 = vmul.f32 0.6931472, %v4371_v22  ;;  %p4646_p1 = pnand %p4645_p7, %p6008_p13 }
 0x653   : > { %3190 = vst [vmem:[%s5395_s23 + $0x48] sm:$0xff] %v3174_v45  ;;  %v3175_v49 = vadd.f32 0.001, %v3159_v23  ;;  %v3118_v43 = vmul.f32 %v5798_v60, %v3117_v58  ;;  %v3125_v8 = vmul.f32 -0.5, %v4363_v0  ;;  %vm2968_vm7 = vcmp.gt.f32.partialorder %v5746_v17, 20.0  ;;  %p4653_p0 = por %p4652_p5, %p4651_p11 }
 0x654   : > { %v3112_v55 = vsel %vm3111_vm6, %v3109_v33, %v3106_v62  ;;  %vm3120_vm8 = vcmp.lt.f32.partialorder %v3119_v24, 0.0004427343  ;;  %v3131_v46 = vadd.f32 1.0, %v4373_v35  ;;  %vm2969_vm9 = vcmp.gt.f32.partialorder %v5754_v1, 20.0  ;;  %p4647_p3 = pneg %p4646_p1 }
 0x655   : > { %3191 = vst [vmem:[%s5395_s23 + $0x50] sm:$0xff] %v3175_v49  ;;  %v3160_v44 = vsel %vm2968_vm7, %v5746_v17, %v3112_v55  ;;  %v3121_v25 = vsel %vm3120_vm8, %v3118_v43, %v3115_v61  ;;  %v3126_v59 = vadd.f32 1.0, %v3125_v8  ;;  %v3128_v3 = vand.u32 2147483647, %v4363_v0 }
 0x656   : > { %v3176_v63 = vadd.f32 0.001, %v3160_v44  ;;  %v3161_v2 = vsel %vm2969_vm9, %v5754_v1, %v3121_v25  ;;  %4378 = vlog2.f32 %v3131_v46  ;;  %v3134_v17 = vmul.f32 -0.5, %v4373_v35  ;;  %p4654_p2 = pnand %p4653_p0, %p4647_p3 }
 0x657   : > { %v3177_v50 = vadd.f32 0.001, %v3161_v2  ;;  %v3127_v18 = vmul.f32 %v4363_v0, %v3126_v59  ;;  %vm3129_vm10 = vcmp.lt.f32.partialorder %v3128_v3, 0.0004427343  ;;  %vm2970_vm11 = vcmp.gt.f32.partialorder %v5772_v36, 20.0 }
 0x658   : > { %v4375_v16 = vpop.eup %4374  ;;  %3192 = vst [vmem:[%s5395_s23 + $0x58] sm:$0xff] %v3176_v63  ;;  %v3135_v37 = vadd.f32 1.0, %v3134_v17  ;;  %v3137_v51 = vand.u32 2147483647, %v4373_v35  ;;  %vm2971_vm13 = vcmp.gt.f32.partialorder %v5787_v26, 20.0  ;;  %vm2972_vm15 = vcmp.gt.f32.partialorder %v5804_v27, 20.0 }
 0x659   : > { %v3140_v19 = vadd.f32 1.0, %v4375_v16  ;;  %3193 = vst [vmem:[%s5395_s23 + $0x60] sm:$0xff] %v3177_v50  ;;  %v3143_v5 = vmul.f32 -0.5, %v4375_v16  ;;  %v3146_v40 = vand.u32 2147483647, %v4375_v16 }
 0x65a   : > { %v3136_v48 = vmul.f32 %v4373_v35, %v3135_v37  ;;  %vm3138_vm12 = vcmp.lt.f32.partialorder %v3137_v51, 0.0004427343 }
 0x65b   : > { %4380 = vlog2.f32 %v3140_v19  ;;  %v3144_v42 = vadd.f32 1.0, %v3143_v5  ;;  %vm3147_vm14 = vcmp.lt.f32.partialorder %v3146_v40, 0.0004427343 }
 0x65c   : > { %v4377_v60 = vpop.eup %4376 }
 0x65d   : > { %v3124_v7 = vmul.f32 0.6931472, %v4377_v60  ;;  %v3145_v10 = vmul.f32 %v4375_v16, %v3144_v42 }
 0x65f   : > { %v3130_v47 = vsel %vm3129_vm10, %v3127_v18, %v3124_v7 }
 0x660   : > { %v3162_v20 = vsel %vm2970_vm11, %v5772_v36, %v3130_v47 }
 0x661   : > { %v3178_v1 = vadd.f32 0.001, %v3162_v20 }
 0x663   : > { %3194 = vst [vmem:[%s5395_s23 + $0x68] sm:$0xff] %v3178_v1  ;;  %v4379_v29 = vpop.eup %4378 }
 0x664   : > { %v3133_v13 = vmul.f32 0.6931472, %v4379_v29 }
 0x666   : > { %v3139_v36 = vsel %vm3138_vm12, %v3136_v48, %v3133_v13 }
 0x667   : > { %v3163_v38 = vsel %vm2971_vm13, %v5787_v26, %v3139_v36 }
 0x668   : > { %v4381_v57 = vpop.eup %4380  ;;  %v3179_v0 = vadd.f32 0.001, %v3163_v38 }
 0x669   : > { %v3142_v28 = vmul.f32 0.6931472, %v4381_v57 }
 0x66a   : > { %3195 = vst [vmem:[%s5395_s23 + $0x70] sm:$0xff] %v3179_v0 }
 0x66b   : > { %v3148_v53 = vsel %vm3147_vm14, %v3145_v10, %v3142_v28 }
 0x66c   : > { %v3164_v30 = vsel %vm2972_vm15, %v5804_v27, %v3148_v53 }
 0x66d   : > { %v3180_v11 = vadd.f32 0.001, %v3164_v30 }
 0x66f   : > { %3196 = vst [vmem:[%s5395_s23 + $0x78] sm:$0xff] %v3180_v11 }
 0x670   : > { %4657 = shalt.err (!%p4654_p2)
}
 0x671   : > { %s4658_s21 = scalar_lea.hbm %s5894_s30, 2048  ;;  %s4662_s2 = scalar_lea.hbm %s5953_s10, 8192 }
 0x672   : > { %p4659_p4 = scmp.ne.s32.totalorder %s5894_s30, %s4658_s21  ;;  %p4663_p10 = scmp.lt.s32.totalorder %s5894_s30, %s5953_s10 }
 0x673   : > { %p4664_p12 = scmp.lt.s32.totalorder %s4662_s2, %s4658_s21 }
 0x674   : > { %p4660_p8 = pnand %p4659_p4, %p6008_p13 }
 0x675   : > { %p4665_p6 = por %p4664_p12, %p4663_p10 }
 0x676   : > { %p4661_p9 = pneg %p4660_p8 }
 0x678   : > { %p4666_p7 = pnand %p4665_p6, %p4661_p9 }
 0x67a   : > { %4669 = shalt.err (!%p4666_p7)
}
 0x67b   : > { %3805 = dma.vmem_to_hbm [thread:$0]  (%p6008_p13), %s5896_s18, 2048, %s5894_s30, %s5830_s20, %s4743_s11, %s4743_s11, %s4744_s27  }
 0x67c PF: > { %p3860_p1 = scmp.ge.s32.totalorder %s4728_s16, 2  ;;  %s3271_s29 = sand.u32 1, %s4716_s13  }
 0x67d   : > { %p6028_p3 = scmp.ne.s32.totalorder %s5974_s24, 0  ;;  %s3272_s4 = scalar_lea.sflag [#allocation4], %s3271_s29 }
 0x67f   : > { %p3836_p11 = pnand %p3860_p1, %p6028_p3 }
 0x681   : > { %p3837_p5 = pneg %p3836_p11 }
 0x683   : > { %4707 = dma.done.wait (%p3837_p5), %s3272_s4, 2048  }
 0x684   : > { %4709 = vsyncadd (%p3837_p5), %s3272_s4, 4294965248  ;;  %s6029_s12 = sadd.s32 4294967294, %s4728_s16  }
 0x685   : > { %s3280_s19 = sand.u32 1, %s6029_s12  }
 0x686   : > { %s3281_s28 = scalar_lea.sflag [#allocation18], %s3280_s19 }
 0x687   : > { %4711 = dma.done.wait (%p3837_p5), %s3281_s28, 4096  }
 0x688   : > { %4713 = vsyncadd (%p3837_p5), %s3281_s28, 4294963200  ;;  %p31_p13 = scmp.ge.s32.totalorder %s4926_s26, 6   ;;  %s6030_s13 = smov %s4720_s14 }
 0x689   : > { %s6031_s14 = smov %s4724_s15  ;;  %s6032_s15 = smov %s4938_s25 }
 0x68a   : > { %s6033_s16 = smov %s4926_s26  ;;  %33 = sbr.rel (!%p31_p13) target bundleno = 16 (0x10), region = 160 }
 0x68f   :  { %3295 = vsyncpa [#allocation3], 1 }
 0x690   :  { %3297 = vsyncpa [#allocation3 + $0x1], 1 }
 0x691   :  { %3298 = vsyncpa [#allocation6], 1 }
 0x692   :  { %3299 = vsyncpa [#allocation9], 1 }
 0x693   :  { %3300 = vsyncpa [#allocation12], 1 }
 0x694   :  { %3301 = vsyncpa [#allocation15], 1 }
 0x695   :  { %3302 = vsyncpa [#allocation4], 1 }
 0x696   :  { %3304 = vsyncpa [#allocation4 + $0x1], 1 }
 0x697   :  { %3305 = vsyncpa [#allocation18], 1 }
 0x698   :  { %3307 = vsyncpa [#allocation18 + $0x1], 1 }

// kernel: tpu_custom_call.1
= control target key start
LH: loop header
LB: loop body
LE: loop exit
PB: predicated region body
PF: predicated region fallthrough
CT: control target
= control target key end

     0   :  { %s5943_s0 = inlined_call_operand.hbm [shape: bf16[256,256], index: 0, kind: input, shape index: {}]   ;;  %s5944_s1 = inlined_call_operand.hbm [shape: bf16[256,256], index: 1, kind: input, shape index: {}]   ;;  %s5945_s2 = inlined_call_operand.hbm [shape: bf16[256,256], index: 2, kind: input, shape index: {}]   ;;  %s5946_s3 = inlined_call_operand.hbm [shape: bf16[256,256], index: 3, kind: input, shape index: {}]   ;;  %s5947_s4 = inlined_call_operand.hbm [shape: bf16[256,256], index: 4, kind: input, shape index: {}]   ;;  %s5948_s5 = inlined_call_operand.hbm [shape: bf16[256,256], index: 5, kind: input, shape index: {}]   ;;  %s5949_s6 = inlined_call_operand.hbm [shape: bf16[256,512], index: 6, kind: input, shape index: {}]   ;;  %s5950_s7 = inlined_call_operand.hbm [shape: f32[1,1792], index: 7, kind: input, shape index: {}]   ;;  %s5951_s8 = inlined_call_operand.hbm [shape: f32[256,256], index: 8, kind: output, shape index: {0}]   ;;  %s5952_s9 = inlined_call_operand.hbm [shape: f32[256,256], index: 9, kind: output, shape index: {1}]   ;;  %s5953_s10 = inlined_call_operand.hbm [shape: f32[256,256], index: 10, kind: output, shape index: {2}]  }
   0x1   :  { %5961 = sst [smem:[#allocation27_spill]] %s5944_s1 }
   0x2   :  { %5962 = sst [smem:[#allocation28_spill]] %s5945_s2 }
   0x3   :  { %5963 = sst [smem:[#allocation29_spill]] %s5946_s3 }
   0x4   :  { %5964 = sst [smem:[#allocation30_spill]] %s5947_s4 }
   0x5   :  { %16 = vsyncpa [#allocation3], 0 }
   0x6   :  { %18 = vsyncpa [#allocation3 + $0x1], 0 }
   0x7   :  { %19 = vsyncpa [#allocation6], 0 }
   0x8   :  { %20 = vsyncpa [#allocation9], 0 }
   0x9   :  { %21 = vsyncpa [#allocation12], 0 }
   0xa   :  { %22 = vsyncpa [#allocation15], 0 }
   0xb   :  { %23 = vsyncpa [#allocation4], 0 }
   0xc   :  { %25 = vsyncpa [#allocation4 + $0x1], 0 }
   0xd   :  { %26 = vsyncpa [#allocation18], 0 }
   0xe   :  { %28 = vsyncpa [#allocation18 + $0x1], 0  ;;  %s4802_s13 = smov 0   ;;  %s4804_s14 = smov 0  }
   0xf   :  { %s4806_s15 = smov 0   ;;  %s4808_s16 = smov 0  }
  0x10 LB: > { %s4730_s17 = smov [#allocation5]   ;;  %s4823_s19 = sadd.s32 4294967295, %s4728_s16   ;;  %s4728_s16 = sphi %s4808_s16, %s6033_s16   ;;  %s4724_s15 = sphi %s4806_s15, %s6032_s15   ;;  %s4720_s14 = sphi %s4804_s14, %s6031_s14   ;;  %s4716_s13 = sphi %s4802_s13, %s6030_s13  }
  0x11   : > { %s302_s18 = sshll.u32 %s4730_s17, 4  ;;  %p3462_p0 = scmp.ge.s32.totalorder %s4728_s16, 1  ;;  %s303_s18 = int_to_ptr.vmem [resolvable:$true] %s302_s18 }
  0x12   : > { %p5957_p1 = scmp.eq.s32.totalorder %s4823_s19, 0  ;;  %p290_p2 = scmp.lt.s32.totalorder %s4728_s16, 5 }
  0x13   : > { %s4731_s21 = smov [#allocation8]   ;;  %s4732_s24 = smov [#allocation11]  }
  0x14   : > { %p4828_p3 = pnand %p3462_p0, %p290_p2  ;;  %s328_s22 = sshll.u32 %s4731_s21, 4  ;;  %s4840_s22 = int_to_ptr.vmem [resolvable:$true] %s328_s22 }
  0x15   : > { %s354_s25 = sshll.u32 %s4732_s24, 4  ;;  %s4393_s27 = scalar_lea.vmem %s303_s18, 4096  ;;  %s4842_s25 = int_to_ptr.vmem [resolvable:$true] %s354_s25 }
  0x16   : > { %s5965_s20 = scalar_select %p4828_p3, 1, 0 }
  0x17   : > { %p3809_p4 = pneg %p4828_p3  ;;  %p4394_p7 = scmp.ne.s32.totalorder %s303_s18, %s4393_s27 }
  0x18   : > { %p4401_p10 = scmp.lt.s32.totalorder %s303_s18, %s303_s18  ;;  %p4402_p11 = scmp.lt.s32.totalorder %s4393_s27, %s4393_s27 }
  0x19   : > { %p4836_p5 = pnand %p3809_p4, %p5957_p1 }
  0x1a   : > { %p4403_p12 = por %p4402_p11, %p4401_p10 }
  0x1b   : > { %p4846_p6 = pneg %p4836_p5 }
  0x1d   : > { %p4396_p8 = pnand %p4394_p7, %p4846_p6 }
  0x1f   : > { %p4397_p9 = pneg %p4396_p8 }
  0x21   : > { %p4404_p13 = pnand %p4403_p12, %p4397_p9 }
  0x23   : > { %4407 = shalt.err (!%p4404_p13)
}
  0x24   : > { %s5954_s28 = smov 128   ;;  %s5955_s29 = smov 8  }
  0x25   : > { %s5968_s1 = sld [smem:[#allocation27_spill]]  ;;  %s4419_s12 = scalar_lea.vmem %s4840_s22, 4096 }
  0x26   : > { %p4420_p0 = scmp.ne.s32.totalorder %s4840_s22, %s4419_s12  ;;  %p4427_p7 = scmp.lt.s32.totalorder %s4840_s22, %s4840_s22 }
  0x27   : > { %p4428_p8 = scmp.lt.s32.totalorder %s4419_s12, %s4419_s12 }
  0x28   : > { %p4422_p2 = pnand %p4420_p0, %p4846_p6 }
  0x29   : > { %p4429_p9 = por %p4428_p8, %p4427_p7 }
  0x2a   : > { %p4423_p4 = pneg %p4422_p2 }
  0x2b   : > { %3812 = dma.hbm_to_vmem [thread:$0]  (!%p4836_p5), %s5968_s1, 4096, %s303_s18, [#allocation6], %s5954_s28, %s5954_s28, %s5955_s29  }
  0x2c   : > { %p4430_p10 = pnand %p4429_p9, %p4423_p4 }
  0x2e   : > { %4433 = shalt.err (!%p4430_p10)
}
  0x2f   : > { %s5969_s3 = sld [smem:[#allocation29_spill]]  ;;  %s4445_s18 = scalar_lea.vmem %s4842_s25, 4096 }
  0x30   : > { %p4446_p11 = scmp.ne.s32.totalorder %s4842_s25, %s4445_s18  ;;  %p4453_p0 = scmp.lt.s32.totalorder %s4842_s25, %s4842_s25 }
  0x31   : > { %p4454_p2 = scmp.lt.s32.totalorder %s4445_s18, %s4445_s18 }
  0x32   : > { %p4448_p12 = pnand %p4446_p11, %p4846_p6 }
  0x33   : > { %p4455_p4 = por %p4454_p2, %p4453_p0 }
  0x34   : > { %p4449_p13 = pneg %p4448_p12 }
  0x35   : > { %3818 = dma.hbm_to_vmem [thread:$0]  (!%p4836_p5), %s5969_s3, 4096, %s4840_s22, [#allocation9], %s5954_s28, %s5954_s28, %s5955_s29  }
  0x36   : > { %p4456_p7 = pnand %p4455_p4, %p4449_p13 }
  0x38   : > { %4459 = shalt.err (!%p4456_p7)
}
  0x39   : > { %3824 = dma.hbm_to_vmem [thread:$0]  (!%p4836_p5), %s5948_s5, 4096, %s4842_s25, [#allocation12], %s5954_s28, %s5954_s28, %s5955_s29  }
  0x3a   : > { %s4735_s22 = smov [#allocation7]   ;;  %s4736_s11 = smov [#allocation10]  }
  0x3b   : > { %s315_s30 = sshll.u32 %s4735_s22, 4  ;;  %s341_s12 = sshll.u32 %s4736_s11, 4  ;;  %s316_s30 = int_to_ptr.vmem [resolvable:$true] %s315_s30  ;;  %s342_s12 = int_to_ptr.vmem [resolvable:$true] %s341_s12 }
  0x3c   : > { %s4471_s17 = scalar_lea.vmem %s316_s30, 4096  ;;  %p4479_p11 = scmp.lt.s32.totalorder %s316_s30, %s316_s30 }
  0x3d   : > { %p4472_p8 = scmp.ne.s32.totalorder %s316_s30, %s4471_s17  ;;  %p4480_p12 = scmp.lt.s32.totalorder %s4471_s17, %s4471_s17 }
  0x3f   : > { %p4474_p9 = pnand %p4472_p8, %p4846_p6  ;;  %p4481_p13 = por %p4480_p12, %p4479_p11 }
  0x41   : > { %p4475_p10 = pneg %p4474_p9 }
  0x43   : > { %p4482_p0 = pnand %p4481_p13, %p4475_p10 }
  0x45   : > { %4485 = shalt.err (!%p4482_p0)
}
  0x46   : > { %s5970_s2 = sld [smem:[#allocation28_spill]]  ;;  %s4497_s18 = scalar_lea.vmem %s342_s12, 4096 }
  0x47   : > { %p4498_p2 = scmp.ne.s32.totalorder %s342_s12, %s4497_s18  ;;  %p4505_p8 = scmp.lt.s32.totalorder %s342_s12, %s342_s12 }
  0x48   : > { %p4506_p9 = scmp.lt.s32.totalorder %s4497_s18, %s4497_s18 }
  0x49   : > { %p4500_p4 = pnand %p4498_p2, %p4846_p6 }
  0x4a   : > { %p4507_p10 = por %p4506_p9, %p4505_p8 }
  0x4b   : > { %p4501_p7 = pneg %p4500_p4 }
  0x4c   : > { %3815 = dma.hbm_to_vmem [thread:$0]  (!%p4836_p5), %s5970_s2, 4096, %s316_s30, [#allocation6], %s5954_s28, %s5954_s28, %s5955_s29  }
  0x4d   : > { %p4508_p11 = pnand %p4507_p10, %p4501_p7 }
  0x4f   : > { %4511 = shalt.err (!%p4508_p11)
}
  0x50   : > { %s5971_s4 = sld [smem:[#allocation30_spill]]  ;;  %s4737_s22 = smov [#allocation13]  }
  0x51   : > { %s367_s30 = sshll.u32 %s4737_s22, 4  ;;  %s368_s30 = int_to_ptr.vmem [resolvable:$true] %s367_s30 }
  0x52   : > { %s4523_s11 = scalar_lea.vmem %s368_s30, 8192  ;;  %p4531_p2 = scmp.lt.s32.totalorder %s368_s30, %s368_s30 }
  0x53   : > { %p4524_p12 = scmp.ne.s32.totalorder %s368_s30, %s4523_s11  ;;  %p4532_p4 = scmp.lt.s32.totalorder %s4523_s11, %s4523_s11 }
  0x55   : > { %p4526_p13 = pnand %p4524_p12, %p4846_p6  ;;  %p4533_p7 = por %p4532_p4, %p4531_p2 }
  0x56   : > { %3821 = dma.hbm_to_vmem [thread:$0]  (!%p4836_p5), %s5971_s4, 4096, %s342_s12, [#allocation9], %s5954_s28, %s5954_s28, %s5955_s29  }
  0x57   : > { %p4527_p0 = pneg %p4526_p13 }
  0x59   : > { %p4534_p8 = pnand %p4533_p7, %p4527_p0 }
  0x5b   : > { %4537 = shalt.err (!%p4534_p8)
}
  0x5c   : > { %s4738_s17 = smov 256   ;;  %s4739_s25 = smov 16  }
  0x5d   : > { %3827 = dma.hbm_to_vmem [thread:$0]  (!%p4836_p5), %s5949_s6, 8192, %s368_s30, [#allocation12], %s4738_s17, %s4738_s17, %s4739_s25  }
  0x5e   : > { %s4740_s18 = smov [#allocation14]  }
  0x5f   : > { %s381_s24 = sshll.u32 %s4740_s18, 4  ;;  %s382_s24 = int_to_ptr.vmem [resolvable:$true] %s381_s24 }
  0x60   : > { %s4549_s27 = scalar_lea.vmem %s382_s24, 224  ;;  %p4557_p12 = scmp.lt.s32.totalorder %s382_s24, %s382_s24 }
  0x61   : > { %p4550_p9 = scmp.ne.s32.totalorder %s382_s24, %s4549_s27  ;;  %p4558_p13 = scmp.lt.s32.totalorder %s4549_s27, %s4549_s27 }
  0x63   : > { %p4552_p10 = pnand %p4550_p9, %p4846_p6  ;;  %p4559_p0 = por %p4558_p13, %p4557_p12 }
  0x65   : > { %p4553_p11 = pneg %p4552_p10 }
  0x67   : > { %p4560_p2 = pnand %p4559_p0, %p4553_p11 }
  0x69   : > { %4563 = shalt.err (!%p4560_p2)
}
  0x6a   : > { %3830 = dma.hbm_to_vmem [thread:$0]  (!%p4836_p5), %s5950_s7, 224, %s382_s24, [#allocation15]  }
  0x6b   : > { %s5956_s23 = sadd.s32 4294967294, %s4728_s16   ;;  %s4926_s26 = sadd.s32 1, %s4728_s16  }
  0x6c   : > { %s41_s30 = sadd.s32 1, %s4724_s15  ;;  %s38_s17 = ssub.s32 %s4728_s16, %s4926_s26 }
  0x6d   : > { %p48_p6 = scmp.ne.s32.totalorder %s4724_s15, %s4720_s14  ;;  %p39_p4 = scmp.eq.s32.totalorder %s38_s17, 0 }
  0x6e   : > { %p49_p7 = scmp.eq.s32.totalorder %s4728_s16, 0  ;;  %p54_p8 = scmp.ne.s32.totalorder %s4720_s14, %s4716_s13 }
  0x6f   : > { %p225_p9 = scmp.eq.s32.totalorder %s4823_s19, 3  ;;  %p231_p12 = scmp.eq.s32.totalorder %s5956_s23, 3 }
  0x70   : > { %s4938_s25 = scalar_select %p39_p4, %s4724_s15, %s41_s30  }
  0x71   : > { %p50_p10 = por %p49_p7, %p48_p6  ;;  %p4942_p11 = por %p5957_p1, %p54_p8 }
  0x72   : > { %p4946_p5 = por %p225_p9, %p48_p6  ;;  %p3852_p13 = scmp.lt.s32.totalorder %s4728_s16, 4 }
  0x73   : > { %s5972_s21 = scalar_select %p4942_p11, 1, 0 }
  0x74   : > { %s5973_s12 = scalar_select %p4946_p5, 1, 0 }
  0x75   : > { %s392_s18 = sand.u32 1, %s4724_s15   ;;  %p4954_p0 = por %p231_p12, %p54_p8 }
  0x76   : > { %s3471_s27 = sshll.u32 %s392_s18, 6  ;;  %s3734_s22 = sshll.u32 %s4728_s16, 10 }
  0x77   : > { %s5974_s24 = scalar_select %p4954_p0, 1, 0 }
  0x78   : > { %s4962_s17 = scalar_lea.hbm %s5943_s0, %s3734_s22  ;;  %s396_s28 = scalar_lea.vmem [#allocation2], %s3471_s27 }
  0x79   : > { %s404_s29 = sshll.u32 %s396_s28, 4  ;;  %p4964_p2 = pnand %p3852_p13, %p50_p10  ;;  %s4968_s29 = int_to_ptr.vmem [resolvable:$true] %s404_s29 }
  0x7a   : > { %s4970_s1 = scalar_lea.sflag [#allocation3], %s392_s18  ;;  %s4564_s2 = scalar_lea.hbm %s4962_s17, 1024 }
  0x7b   : > { %p4565_p6 = scmp.ne.s32.totalorder %s4962_s17, %s4564_s2  ;;  %p4566_p4 = pneg %p4964_p2 }
  0x7c   : > { %s4569_s27 = scalar_lea.hbm %s5943_s0, 4096  ;;  %p4570_p9 = scmp.lt.s32.totalorder %s4962_s17, %s5943_s0 }
  0x7d   : > { %p4567_p7 = pnand %p4566_p4, %p4565_p6  ;;  %p4571_p10 = scmp.lt.s32.totalorder %s4569_s27, %s4564_s2 }
  0x7f   : > { %p4568_p8 = pneg %p4567_p7  ;;  %p4572_p12 = por %p4571_p10, %p4570_p9 }
  0x81   : > { %p4573_p13 = pnand %p4572_p12, %p4568_p8 }
  0x83   : > { %4576 = shalt.err (!%p4573_p13)
}
  0x84   : > { %s4577_s18 = scalar_lea.vmem %s4968_s29, 1024  ;;  %s4741_s3 = smov [#allocation2]  }
  0x85   : > { %p4578_p1 = scmp.ne.s32.totalorder %s4968_s29, %s4577_s18  ;;  %s4582_s4 = sshll.u32 %s4741_s3, 4  ;;  %s4583_s4 = int_to_ptr.vmem [resolvable:$false] %s4582_s4 }
  0x86   : > { %s4584_s22 = scalar_lea.vmem %s4583_s4, 2048  ;;  %p4585_p7 = scmp.lt.s32.totalorder %s4968_s29, %s4583_s4 }
  0x87   : > { %p4580_p0 = pnand %p4578_p1, %p4566_p4  ;;  %p4586_p5 = scmp.lt.s32.totalorder %s4584_s22, %s4577_s18 }
  0x89   : > { %p4581_p6 = pneg %p4580_p0  ;;  %p4587_p11 = por %p4586_p5, %p4585_p7 }
  0x8b   : > { %p4588_p3 = pnand %p4587_p11, %p4581_p6 }
  0x8d   : > { %4591 = shalt.err (!%p4588_p3)
}
  0x8e   : > { %s5976_s2 = smov 8   ;;  %s5977_s11 = smov 128  }
  0x8f   : > { %3834 = dma.hbm_to_vmem [thread:$0]  (!%p4964_p2), %s4962_s17, 1024, %s4968_s29, %s4970_s1, %s5977_s11, %s5977_s11, %s5976_s2  }
  0x90   : > { %p5978_p1 = scmp.ne.s32.totalorder %s5965_s20, 0 }
  0x91   : > { %s4997_s3 = sand.u32 (!%p5978_p1), 1, %s4720_s14   ;;  %p5979_p3 = scmp.ne.s32.totalorder (!%p5978_p1), %s5972_s21, 0 }
  0x92   : > { %416 = sbr.rel (%p5978_p1) target bundleno = 1660 (0x67c), region = 52  ;;  %s3476_s4 = sshll.u32 (!%p5978_p1), %s4997_s3, 6 }
  0x93   : > { %s419_s27 = scalar_lea.sflag (!%p5978_p1), [#allocation3], %s4997_s3  ;;  %s5001_s28 = scalar_lea.vmem (!%p5978_p1), [#allocation2], %s3476_s4 }
  0x97   : > { %4687 = dma.done.wait (%p5979_p3), %s419_s27, 1024  }
  0x98   : > { %4689 = vsyncadd (%p5979_p3), %s419_s27, 4294966272  ;;  %p5980_p11 = scmp.eq.s32.totalorder %s4823_s19, 0 }
  0x9a   : > { %4691 = dma.done.wait (%p5980_p11), [#allocation6], 8192   ;;  %p5981_p5 = pmov %p5980_p11 }
  0x9c   : > { %4693 = vsyncadd (%p5981_p5), [#allocation6], 4294959104  ;;  %p5982_p0 = pmov %p5981_p5 }
  0x9e   : > { %4695 = dma.done.wait (%p5982_p0), [#allocation9], 8192   ;;  %p5983_p2 = pmov %p5982_p0 }
  0x9f   : > { %p5984_p4 = pmov %p5982_p0 }
  0xa0   : > { %4697 = vsyncadd (%p5983_p2), [#allocation9], 4294959104 }
  0xa1   : > { %4699 = dma.done.wait (%p5984_p4), [#allocation12], 12288   ;;  %p5985_p8 = pmov %p5982_p0 }
  0xa2   : > { %p5986_p9 = pmov %p5982_p0 }
  0xa3   : > { %4701 = vsyncadd (%p5985_p8), [#allocation12], 4294955008 }
  0xa4   : > { %4703 = dma.done.wait (%p5986_p9), [#allocation15], 224   ;;  %p5987_p10 = pmov %p5982_p0 }
  0xa5   : > { %v3906_v0 = vld [vmem:[#allocation5 + $0x74] ss:$8 sps:$4 sm:$0xff]   ;;  %v3908_v1 = vld [vmem:[#allocation5 + $0x70] ss:$8 sps:$4 sm:$0xff]   ;;  %v3909_v2 = vld [vmem:[#allocation5 + $0x64] ss:$8 sps:$4 sm:$0xff]  }
  0xa6   : > { %4705 = vsyncadd (%p5987_p10), [#allocation15], 4294967072  ;;  %753 = vmatprep.subr.bf16.mxu0 %v3906_v0  ;;  %v3911_v3 = vld [vmem:[#allocation5 + $0x60] ss:$8 sps:$4 sm:$0xff]   ;;  %v3912_v4 = vld [vmem:[#allocation5 + $0x54] ss:$8 sps:$4 sm:$0xff]  }
  0xa7   : > { %754 = vmatpush1.bf16.msra.mxu0 %v3908_v1  ;;  %v3914_v5 = vld [vmem:[#allocation5 + $0x50] ss:$8 sps:$4 sm:$0xff]   ;;  %v3915_v6 = vld [vmem:[#allocation5 + $0x44] ss:$8 sps:$4 sm:$0xff]   ;;  %v3917_v7 = vld [vmem:[#allocation5 + $0x40] ss:$8 sps:$4 sm:$0xff]  }
  0xa8   : > { %755 = vmatprep.subr.bf16.mxu0 %v3909_v2  ;;  %v3918_v8 = vld [vmem:[#allocation5 + $0x34] ss:$8 sps:$4 sm:$0xff]   ;;  %v3920_v9 = vld [vmem:[#allocation5 + $0x30] ss:$8 sps:$4 sm:$0xff]   ;;  %v3921_v10 = vld [vmem:[#allocation5 + $0x24] ss:$8 sps:$4 sm:$0xff]  }
  0xa9   : > { %v3923_v11 = vld [vmem:[#allocation5 + $0x20] ss:$8 sps:$4 sm:$0xff]   ;;  %v3924_v12 = vld [vmem:[#allocation5 + $0x14] ss:$8 sps:$4 sm:$0xff]   ;;  %v3956_v13 = vld [vmem:[%s5001_s28 + $0x4] ss:$8 sps:$4 sm:$0xff]  }
  0xaa   : > { %v3926_v14 = vld [vmem:[#allocation5 + $0x10] ss:$8 sps:$4 sm:$0xff]   ;;  %v3927_v15 = vld [vmem:[#allocation5 + $0x4] ss:$8 sps:$4 sm:$0xff]   ;;  %785 = vmatprep.mubr.bf16.mxu0 %v3956_v13  ;;  %v3929_v16 = vld [vmem:[#allocation5] ss:$8 sps:$4 sm:$0xff]  }
  0xab   : > { %756 = vmatpush1.bf16.msra.mxu0 %v3911_v3  ;;  %v3930_v17 = vld [vmem:[#allocation5 + $0xf4] ss:$8 sps:$4 sm:$0xff]   ;;  %v3968_v19 = vld [vmem:[#allocation7 + $0x70] ss:$8 sps:$4 sm:$0xff]   ;;  %v3969_v20 = vld [vmem:[#allocation7 + $0x64] ss:$8 sps:$4 sm:$0xff]  }
  0xac   : > { %757 = vmatprep.subr.bf16.mxu0 %v3912_v4  ;;  %v3966_v18 = vld [vmem:[#allocation7 + $0x74] ss:$8 sps:$4 sm:$0xff]   ;;  %v3971_v21 = vld [vmem:[#allocation7 + $0x60] ss:$8 sps:$4 sm:$0xff]   ;;  %v3932_v22 = vld [vmem:[#allocation5 + $0xf0] ss:$8 sps:$4 sm:$0xff]  }
  0xad   : > { %1054 = vmatprep.subr.bf16.mxu1 %v3966_v18  ;;  %v3972_v23 = vld [vmem:[#allocation7 + $0x54] ss:$8 sps:$4 sm:$0xff]   ;;  %v3933_v24 = vld [vmem:[#allocation5 + $0xe4] ss:$8 sps:$4 sm:$0xff]   ;;  %v3974_v25 = vld [vmem:[#allocation7 + $0x50] ss:$8 sps:$4 sm:$0xff]  }
  0xae   : > { %1055 = vmatpush1.bf16.msra.mxu1 %v3968_v19  ;;  %v3935_v26 = vld [vmem:[#allocation5 + $0xe0] ss:$8 sps:$4 sm:$0xff]   ;;  %v3975_v27 = vld [vmem:[#allocation7 + $0x44] ss:$8 sps:$4 sm:$0xff]   ;;  %v3936_v28 = vld [vmem:[#allocation5 + $0xd4] ss:$8 sps:$4 sm:$0xff]  }
  0xaf   : > { %758 = vmatpush1.bf16.msra.mxu0 %v3914_v5  ;;  %1056 = vmatprep.subr.bf16.mxu1 %v3969_v20  ;;  %v3977_v29 = vld [vmem:[#allocation7 + $0x40] ss:$8 sps:$4 sm:$0xff]   ;;  %v3938_v30 = vld [vmem:[#allocation5 + $0xd0] ss:$8 sps:$4 sm:$0xff]   ;;  %v3978_v31 = vld [vmem:[#allocation7 + $0x34] ss:$8 sps:$4 sm:$0xff]  }
  0xb0   : > { %759 = vmatprep.subr.bf16.mxu0 %v3915_v6  ;;  %v3939_v32 = vld [vmem:[#allocation5 + $0xc4] ss:$8 sps:$4 sm:$0xff]   ;;  %v3941_v33 = vld [vmem:[#allocation5 + $0xc0] ss:$8 sps:$4 sm:$0xff]   ;;  %v3980_v34 = vld [vmem:[#allocation7 + $0x30] ss:$8 sps:$4 sm:$0xff]  }
  0xb1   : > { %v3942_v35 = vld [vmem:[#allocation5 + $0xb4] ss:$8 sps:$4 sm:$0xff]   ;;  %v3981_v36 = vld [vmem:[#allocation7 + $0x24] ss:$8 sps:$4 sm:$0xff]   ;;  %v3983_v37 = vld [vmem:[#allocation7 + $0x20] ss:$8 sps:$4 sm:$0xff]  }
  0xb2   : > { %1057 = vmatpush1.bf16.msra.mxu1 %v3971_v21  ;;  %v3944_v38 = vld [vmem:[#allocation5 + $0xb0] ss:$8 sps:$4 sm:$0xff]   ;;  %v3984_v39 = vld [vmem:[#allocation7 + $0x14] ss:$8 sps:$4 sm:$0xff]   ;;  %v3945_v40 = vld [vmem:[#allocation5 + $0xa4] ss:$8 sps:$4 sm:$0xff]  }
  0xb3   : > { %760 = vmatpush1.bf16.msra.mxu0 %v3917_v7  ;;  %1058 = vmatprep.subr.bf16.mxu1 %v3972_v23  ;;  %v3986_v41 = vld [vmem:[#allocation7 + $0x10] ss:$8 sps:$4 sm:$0xff]   ;;  %v3947_v42 = vld [vmem:[#allocation5 + $0xa0] ss:$8 sps:$4 sm:$0xff]   ;;  %v3987_v43 = vld [vmem:[#allocation7 + $0x4] ss:$8 sps:$4 sm:$0xff]  }
  0xb4   : > { %761 = vmatprep.subr.bf16.mxu0 %v3918_v8  ;;  %v3948_v44 = vld [vmem:[#allocation5 + $0x94] ss:$8 sps:$4 sm:$0xff]   ;;  %v3989_v45 = vld [vmem:[#allocation7] ss:$8 sps:$4 sm:$0xff]   ;;  %v3950_v46 = vld [vmem:[#allocation5 + $0x90] ss:$8 sps:$4 sm:$0xff]  }
  0xb5   : > { %v3990_v47 = vld [vmem:[#allocation7 + $0xf4] ss:$8 sps:$4 sm:$0xff]   ;;  %v3951_v48 = vld [vmem:[#allocation5 + $0x84] ss:$8 sps:$4 sm:$0xff]   ;;  %v3992_v49 = vld [vmem:[#allocation7 + $0xf0] ss:$8 sps:$4 sm:$0xff]  }
  0xb6   : > { %1059 = vmatpush1.bf16.msra.mxu1 %v3974_v25  ;;  %v3953_v50 = vld [vmem:[#allocation5 + $0x80] ss:$8 sps:$4 sm:$0xff]   ;;  %v3993_v51 = vld [vmem:[#allocation7 + $0xe4] ss:$8 sps:$4 sm:$0xff]   ;;  %v3957_v54 = vld [vmem:[%s5001_s28 + $0x14] ss:$8 sps:$4 sm:$0xff]  }
  0xb7   : > { %762 = vmatpush1.bf16.msra.mxu0 %v3920_v9  ;;  %1060 = vmatprep.subr.bf16.mxu1 %v3975_v27  ;;  %v3954_v52 = vld [vmem:[%s5001_s28] ss:$8 sps:$4 sm:$0xff]   ;;  %v3996_v55 = vld [vmem:[#allocation7 + $0xd4] ss:$8 sps:$4 sm:$0xff]   ;;  %v3998_v56 = vld [vmem:[#allocation7 + $0xd0] ss:$8 sps:$4 sm:$0xff]  }
  0xb8   : > { %763 = vmatprep.subr.bf16.mxu0 %v3921_v10  ;;  %v3995_v53 = vld [vmem:[#allocation7 + $0xe0] ss:$8 sps:$4 sm:$0xff]   ;;  %v3999_v57 = vld [vmem:[#allocation7 + $0xc4] ss:$8 sps:$4 sm:$0xff]   ;;  %v3959_v58 = vld [vmem:[%s5001_s28 + $0x10] ss:$8 sps:$4 sm:$0xff]  }
  0xb9   : > { %v4001_v59 = vld [vmem:[#allocation7 + $0xc0] ss:$8 sps:$4 sm:$0xff]   ;;  %v3960_v60 = vld [vmem:[%s5001_s28 + $0x24] ss:$8 sps:$4 sm:$0xff]   ;;  %v4002_v61 = vld [vmem:[#allocation7 + $0xb4] ss:$8 sps:$4 sm:$0xff]  }
  0xba   : > { %1061 = vmatpush1.bf16.msra.mxu1 %v3977_v29  ;;  %v4004_v62 = vld [vmem:[#allocation7 + $0xb0] ss:$8 sps:$4 sm:$0xff]   ;;  %v3962_v63 = vld [vmem:[%s5001_s28 + $0x20] ss:$8 sps:$4 sm:$0xff]   ;;  %v3963_v0 = vld [vmem:[%s5001_s28 + $0x34] ss:$8 sps:$4 sm:$0xff]  }
  0xbb   : > { %764 = vmatpush1.bf16.msra.mxu0 %v3923_v11  ;;  %1062 = vmatprep.subr.bf16.mxu1 %v3978_v31  ;;  %v3965_v1 = vld [vmem:[%s5001_s28 + $0x30] ss:$8 sps:$4 sm:$0xff]   ;;  %v4005_v2 = vld [vmem:[#allocation7 + $0xa4] ss:$8 sps:$4 sm:$0xff]   ;;  %v4007_v3 = vld [vmem:[#allocation7 + $0xa0] ss:$8 sps:$4 sm:$0xff]  }
  0xbc   : > { %765 = vmatprep.subr.bf16.mxu0 %v3924_v12  ;;  %v4008_v4 = vld [vmem:[#allocation7 + $0x94] ss:$8 sps:$4 sm:$0xff]   ;;  %v4010_v5 = vld [vmem:[#allocation7 + $0x90] ss:$8 sps:$4 sm:$0xff]   ;;  %v4011_v6 = vld [vmem:[#allocation7 + $0x84] ss:$8 sps:$4 sm:$0xff]  }
  0xbd   : > { %v4013_v7 = vld [vmem:[#allocation7 + $0x80] ss:$8 sps:$4 sm:$0xff]   ;;  %v4014_v8 = vld [vmem:[#allocation8 + $0x70] ss:$8 sps:$4 sm:$0xff]   ;;  %v4016_v9 = vld [vmem:[#allocation8 + $0x74] ss:$8 sps:$4 sm:$0xff]  }
  0xbe   : > { %1063 = vmatpush1.bf16.msra.mxu1 %v3980_v34  ;;  %v4019_v10 = vld [vmem:[#allocation8 + $0x64] ss:$8 sps:$4 sm:$0xff]   ;;  %v4017_v11 = vld [vmem:[#allocation8 + $0x60] ss:$8 sps:$4 sm:$0xff]   ;;  %v4022_v12 = vld [vmem:[#allocation8 + $0x54] ss:$8 sps:$4 sm:$0xff]   ;;  %v543_v34 = vlaneseq }
  0xbf   : > { %766 = vmatpush1.bf16.msra.mxu0 %v3926_v14  ;;  %1064 = vmatprep.subr.bf16.mxu1 %v3981_v36  ;;  %v4020_v13 = vld [vmem:[#allocation8 + $0x50] ss:$8 sps:$4 sm:$0xff]   ;;  %v4025_v14 = vld [vmem:[#allocation8 + $0x44] ss:$8 sps:$4 sm:$0xff]   ;;  %v4029_v19 = vld [vmem:[#allocation8 + $0x20] ss:$8 sps:$4 sm:$0xff]  }
  0xc0   : > { %767 = vmatprep.subr.bf16.mxu0 %v3927_v15  ;;  %v4023_v15 = vld [vmem:[#allocation8 + $0x40] ss:$8 sps:$4 sm:$0xff]   ;;  %v4031_v18 = vld [vmem:[#allocation8 + $0x24] ss:$8 sps:$4 sm:$0xff]   ;;  %v4034_v20 = vld [vmem:[#allocation8 + $0x14] ss:$8 sps:$4 sm:$0xff]  }
  0xc1   : > { %v4032_v21 = vld [vmem:[#allocation8 + $0x10] ss:$8 sps:$4 sm:$0xff]   ;;  %v4035_v23 = vld [vmem:[#allocation8] ss:$8 sps:$4 sm:$0xff]   ;;  %s5040_s1 = sshll.u32 %s4997_s3, 7  ;;  %s5429_s21 = sshll.u32 %s4823_s19, 11 }
  0xc2   : > { %1065 = vmatpush1.bf16.msra.mxu1 %v3983_v37  ;;  %v4038_v25 = vld [vmem:[#allocation8 + $0xf0] ss:$8 sps:$4 sm:$0xff]   ;;  %v4041_v27 = vld [vmem:[#allocation8 + $0xe0] ss:$8 sps:$4 sm:$0xff]   ;;  %s5045_s20 = scalar_lea.vmem [#allocation16], %s5040_s1  ;;  %s5385_s29 = scalar_lea.vmem [#allocation17], %s5040_s1 }
  0xc3   : > { %768 = vmatpush1.bf16.msra.mxu0 %v3929_v16  ;;  %1066 = vmatprep.subr.bf16.mxu1 %v3984_v39  ;;  %v4028_v16 = vld [vmem:[#allocation8 + $0x34] ss:$8 sps:$4 sm:$0xff]   ;;  %v4044_v29 = vld [vmem:[#allocation8 + $0xd0] ss:$8 sps:$4 sm:$0xff]   ;;  %v4047_v31 = vld [vmem:[#allocation8 + $0xc0] ss:$8 sps:$4 sm:$0xff]   ;;  %s5451_s18 = scalar_lea.hbm %s5951_s8, %s5429_s21 }
  0xc4   : > { %769 = vmatprep.subr.bf16.mxu0 %v3930_v17  ;;  %v4026_v17 = vld [vmem:[#allocation8 + $0x30] ss:$8 sps:$4 sm:$0xff]   ;;  %s5395_s23 = scalar_lea.vmem [#allocation19], %s5040_s1  ;;  %s3222_s22 = sshll.u32 %s5045_s20, 4  ;;  %s5467_s22 = int_to_ptr.vmem [resolvable:$true] %s3222_s22 }
  0xc5   : > { %s4592_s11 = scalar_lea.vmem %s5467_s22, 2048  ;;  %p6008_p13 = scmp.ne.s32.totalorder %s5973_s12, 0 }
  0xc6   : > { %1067 = vmatpush1.bf16.msra.mxu1 %v3986_v41  ;;  %p4593_p12 = scmp.ne.s32.totalorder %s5467_s22, %s4592_s11  ;;  %s4742_s4 = smov [#allocation16]  }
  0xc7   : > { %770 = vmatpush2.bf16.msra.mxu0 %v3932_v22  ;;  %1068 = vmatprep.subr.bf16.mxu1 %v3987_v43  ;;  %v4037_v22 = vld [vmem:[#allocation8 + $0x4] ss:$8 sps:$4 sm:$0xff]   ;;  %s4596_s27 = sshll.u32 %s4742_s4, 4  ;;  %s4597_s27 = int_to_ptr.vmem [resolvable:$false] %s4596_s27 }
  0xc8   : > { %771 = vmatprep.subr.bf16.mxu0 %v3933_v24  ;;  %v4040_v24 = vld [vmem:[#allocation8 + $0xf4] ss:$8 sps:$4 sm:$0xff]   ;;  %p4594_p6 = pnand %p4593_p12, %p6008_p13  ;;  %s4598_s28 = scalar_lea.vmem %s4597_s27, 4096 }
  0xc9   : > { %p4599_p1 = scmp.lt.s32.totalorder %s5467_s22, %s4597_s27  ;;  %p4600_p3 = scmp.lt.s32.totalorder %s4598_s28, %s4592_s11 }
  0xca   : > { %1069 = vmatpush1.bf16.msra.mxu1 %v3989_v45  ;;  %p4595_p7 = pneg %p4594_p6 }
  0xcb   : > { %772 = vmatpush2.bf16.msra.mxu0 %v3935_v26  ;;  %1070 = vmatprep.subr.bf16.mxu1 %v3990_v47  ;;  %v4043_v26 = vld [vmem:[#allocation8 + $0xe4] ss:$8 sps:$4 sm:$0xff]   ;;  %p4601_p11 = por %p4600_p3, %p4599_p1 }
  0xcc   : > { %773 = vmatprep.subr.bf16.mxu0 %v3936_v28  ;;  %v4046_v28 = vld [vmem:[#allocation8 + $0xd4] ss:$8 sps:$4 sm:$0xff]  }
  0xcd   : > { %p4602_p5 = pnand %p4601_p11, %p4595_p7 }
  0xce   : > { %1071 = vmatpush2.bf16.msra.mxu1 %v3992_v49 }
  0xcf   : > { %774 = vmatpush2.bf16.msra.mxu0 %v3938_v30  ;;  %1072 = vmatprep.subr.bf16.mxu1 %v3993_v51  ;;  %v4049_v30 = vld [vmem:[#allocation8 + $0xc4] ss:$8 sps:$4 sm:$0xff]  }
  0xd0   : > { %775 = vmatprep.subr.bf16.mxu0 %v3939_v32  ;;  %v4052_v32 = vld [vmem:[#allocation8 + $0xb4] ss:$8 sps:$4 sm:$0xff]  }
  0xd2   : > { %1073 = vmatpush2.bf16.msra.mxu1 %v3995_v53 }
  0xd3   : > { %776 = vmatpush2.bf16.msra.mxu0 %v3941_v33  ;;  %1074 = vmatprep.subr.bf16.mxu1 %v3996_v55  ;;  %v4050_v33 = vld [vmem:[#allocation8 + $0xb0] ss:$8 sps:$4 sm:$0xff]  }
  0xd4   : > { %777 = vmatprep.subr.bf16.mxu0 %v3942_v35  ;;  %v544_v35 = vshrl.u32 %v543_v34, 7  ;;  %v4053_v34 = vld [vmem:[#allocation8 + $0xa0] ss:$8 sps:$4 sm:$0xff]  }
  0xd6   : > { %1075 = vmatpush2.bf16.msra.mxu1 %v3998_v56  ;;  %v5031_v36 = vsub.s32 1, %v544_v35  ;;  %v5033_v37 = vsub.s32 0, %v544_v35  ;;  %v4058_v35 = vld [vmem:[#allocation8 + $0x94] ss:$8 sps:$4 sm:$0xff]  }
  0xd7   : > { %778 = vmatpush2.bf16.msra.mxu0 %v3944_v38  ;;  %1076 = vmatprep.subr.bf16.mxu1 %v3999_v57  ;;  %v541_v38 = vld [vmem:[#allocation14] sm:$0x3] }
  0xd8   : > { %779 = vmatprep.subr.bf16.mxu0 %v3945_v40  ;;  %v550_v40 = vrot.slane %v541_v38, %v5031_v36  ;;  %v546_v41 = vrot.slane %v541_v38, %v5033_v37  ;;  %v4056_v38 = vld [vmem:[#allocation8 + $0x90] ss:$8 sps:$4 sm:$0xff]  }
  0xda   : > { %1077 = vmatpush2.bf16.msra.mxu1 %v4001_v59 }
  0xdb   : > { %780 = vmatpush2.bf16.msra.mxu0 %v3947_v42  ;;  %1078 = vmatprep.subr.bf16.mxu1 %v4002_v61 }
  0xdc   : > { %781 = vmatprep.subr.bf16.mxu0 %v3948_v44 }
  0xde   : > { %1079 = vmatpush2.bf16.msra.mxu1 %v4004_v62 }
  0xdf   : > { %782 = vmatpush2.bf16.msra.mxu0 %v3950_v46  ;;  %1080 = vmatprep.subr.bf16.mxu1 %v4005_v2 }
  0xe0   : > { %783 = vmatprep.subr.bf16.mxu0 %v3951_v48 }
  0xe2   : > { %1081 = vmatpush2.bf16.msra.mxu1 %v4007_v3 }
  0xe3   : > { %784 = vmatpush2.bf16.msra.mxu0 %v3953_v50  ;;  %1082 = vmatprep.subr.bf16.mxu1 %v4008_v4 }
  0xe4   : > { %1355 = vmatprep.subr.bf16.mxu0 %v4016_v9 }
  0xe6   : > { %786 = vmatmul.mubr.bf16.vlgmr.msra.gmra.mxu0 %v3954_v52  ;;  %1083 = vmatpush2.bf16.msra.mxu1 %v4010_v5 }
  0xe7   : > { %795 = vmatprep.mubr.bf16.mxu0 %v3957_v54  ;;  %1084 = vmatprep.subr.bf16.mxu1 %v4011_v6 }
  0xe8   : > { %1356 = vmatpush1.bf16.msra.mxu0 %v4014_v8 }
  0xe9   : > { %1357 = vmatprep.subr.bf16.mxu0 %v4019_v10 }
  0xea   : > { %1085 = vmatpush2.bf16.msra.mxu1 %v4013_v7 }
  0xec   : > { %1358 = vmatpush1.bf16.msra.mxu0 %v4017_v11 }
  0xed   : > { %1359 = vmatprep.subr.bf16.mxu0 %v4022_v12 }
  0xee   : > { %796 = vmatmul.mubr.bf16.gmra.mxu0 %v3959_v58 }
  0xef   : > { %805 = vmatprep.mubr.bf16.mxu0 %v3960_v60 }
  0xf0   : > { %1360 = vmatpush1.bf16.msra.mxu0 %v4020_v13 }
  0xf1   : > { %1361 = vmatprep.subr.bf16.mxu0 %v4025_v14 }
  0xf4   : > { %1362 = vmatpush1.bf16.msra.mxu0 %v4023_v15 }
  0xf5   : > { %1363 = vmatprep.subr.bf16.mxu0 %v4028_v16 }
  0xf6   : > { %806 = vmatmul.mubr.bf16.gmra.mxu0 %v3962_v63 }
  0xf7   : > { %815 = vmatprep.mubr.bf16.mxu0 %v3963_v0 }
  0xf8   : > { %1364 = vmatpush1.bf16.msra.mxu0 %v4026_v17 }
  0xf9   : > { %1365 = vmatprep.subr.bf16.mxu0 %v4031_v18 }
  0xfc   : > { %1366 = vmatpush1.bf16.msra.mxu0 %v4029_v19 }
  0xfd   : > { %1367 = vmatprep.subr.bf16.mxu0 %v4034_v20 }
  0xfe   : > { %816 = vmatmul.mubr.bf16.gmra.mxu0 %v3965_v1 }
 0x100   : > { %1368 = vmatpush1.bf16.msra.mxu0 %v4032_v21 }
 0x101   : > { %1369 = vmatprep.subr.bf16.mxu0 %v4037_v22 }
 0x104   : > { %1370 = vmatpush1.bf16.msra.mxu0 %v4035_v23 }
 0x105   : > { %1371 = vmatprep.subr.bf16.mxu0 %v4040_v24 }
 0x108   : > { %1372 = vmatpush2.bf16.msra.mxu0 %v4038_v25 }
 0x109   : > { %1373 = vmatprep.subr.bf16.mxu0 %v4043_v26 }
 0x10c   : > { %1374 = vmatpush2.bf16.msra.mxu0 %v4041_v27 }
 0x10d   : > { %1375 = vmatprep.subr.bf16.mxu0 %v4046_v28 }
 0x110   : > { %1376 = vmatpush2.bf16.msra.mxu0 %v4044_v29 }
 0x111   : > { %1377 = vmatprep.subr.bf16.mxu0 %v4049_v30 }
 0x114   : > { %1378 = vmatpush2.bf16.msra.mxu0 %v4047_v31 }
 0x115   : > { %1379 = vmatprep.subr.bf16.mxu0 %v4052_v32 }
 0x118   : > { %1380 = vmatpush2.bf16.msra.mxu0 %v4050_v33  ;;  %v4055_v33 = vld [vmem:[#allocation8 + $0xa4] ss:$8 sps:$4 sm:$0xff]  }
 0x119   : > { %1381 = vmatprep.subr.bf16.mxu0 %v4055_v33 }
 0x11c   : > { %1382 = vmatpush2.bf16.msra.mxu0 %v4053_v34 }
 0x11d   : > { %1383 = vmatprep.subr.bf16.mxu0 %v4058_v35 }
 0x120   : > { %1384 = vmatpush2.bf16.msra.mxu0 %v4056_v38 }
 0x1a6   : > { %v787_v39 = vpop.f32.mrf.mxu0 }
 0x1a7   : > { %v788_v46 = vadd.f32 %v787_v39, %v546_v41  ;;  %v4061_v39 = vld [vmem:[#allocation8 + $0x84] ss:$8 sps:$4 sm:$0xff]  }
 0x1a8   : > { %v789_v42 = vpop.f32.mrf.mxu0  ;;  %1385 = vmatprep.subr.bf16.mxu0 %v4061_v39 }
 0x1a9   : > { %v790_v44 = vadd.f32 %v789_v42, %v550_v40  ;;  %v826_v53 = vmax.f32 %v788_v46, 0.0  ;;  %v4062_v42 = vld [vmem:[#allocation10 + $0x70] ss:$8 sps:$4 sm:$0xff]  }
 0x1aa   : > { %v791_v43 = vpop.f32.mrf.mxu0  ;;  %v4068_v46 = vld [vmem:[#allocation10 + $0x50] ss:$8 sps:$4 sm:$0xff]  }
 0x1ab   : > { %v792_v45 = vadd.f32 %v791_v43, %v546_v41  ;;  %v827_v51 = vmax.f32 %v790_v44, 0.0  ;;  %v4064_v43 = vld [vmem:[#allocation10 + $0x74] ss:$8 sps:$4 sm:$0xff]   ;;  %v4065_v44 = vld [vmem:[#allocation10 + $0x60] ss:$8 sps:$4 sm:$0xff]  }
 0x1ac   : > { %v793_v47 = vpop.f32.mrf.mxu0  ;;  %1656 = vmatprep.subr.bf16.mxu1 %v4064_v43 }
 0x1ad   : > { %v794_v48 = vadd.f32 %v793_v47, %v550_v40  ;;  %v828_v49 = vmax.f32 %v792_v45, 0.0  ;;  %v4070_v45 = vld [vmem:[#allocation10 + $0x54] ss:$8 sps:$4 sm:$0xff]   ;;  %v4073_v47 = vld [vmem:[#allocation10 + $0x44] ss:$8 sps:$4 sm:$0xff]  }
 0x1ae   : > { %v797_v50 = vpop.f32.mrf.mxu0 }
 0x1af   : > { %v829_v52 = vmax.f32 %v794_v48, 0.0  ;;  %v798_v54 = vadd.f32 %v797_v50, %v546_v41  ;;  %v842_v58 = vpack.c.bf16 %v828_v49, %v826_v53  ;;  %v4071_v48 = vld [vmem:[#allocation10 + $0x40] ss:$8 sps:$4 sm:$0xff]   ;;  %v4076_v49 = vld [vmem:[#allocation10 + $0x34] ss:$8 sps:$4 sm:$0xff]  }
 0x1b0   : > { %v799_v55 = vpop.f32.mrf.mxu0  ;;  %v4074_v50 = vld [vmem:[#allocation10 + $0x30] ss:$8 sps:$4 sm:$0xff]   ;;  %v4082_v53 = vld [vmem:[#allocation10 + $0x14] ss:$8 sps:$4 sm:$0xff]  }
 0x1b1   : > { %v800_v56 = vadd.f32 %v799_v55, %v550_v40  ;;  %v843_v57 = vpack.c.bf16 %v829_v52, %v827_v51  ;;  %v830_v61 = vmax.f32 %v798_v54, 0.0  ;;  %v4079_v51 = vld [vmem:[#allocation10 + $0x24] ss:$8 sps:$4 sm:$0xff]   ;;  %v4077_v52 = vld [vmem:[#allocation10 + $0x20] ss:$8 sps:$4 sm:$0xff]  }
 0x1b2   : > { %v801_v59 = vpop.f32.mrf.mxu0  ;;  %v4080_v54 = vld [vmem:[#allocation10 + $0x10] ss:$8 sps:$4 sm:$0xff]   ;;  %v4085_v55 = vld [vmem:[#allocation10 + $0x4] ss:$8 sps:$4 sm:$0xff]  }
 0x1b3   : > { %v802_v60 = vadd.f32 %v801_v59, %v546_v41  ;;  %1086 = vmatprep.mubr.bf16.mxu1 %v843_v57  ;;  %v831_v63 = vmax.f32 %v800_v56, 0.0  ;;  %v4083_v56 = vld [vmem:[#allocation10] ss:$8 sps:$4 sm:$0xff]   ;;  %v4088_v57 = vld [vmem:[#allocation10 + $0xf4] ss:$8 sps:$4 sm:$0xff]  }
 0x1b4   : > { %v803_v62 = vpop.f32.mrf.mxu0  ;;  %1087 = vmatmul.mubr.bf16.vlgmr.msra.gmra.mxu1 %v842_v58  ;;  %v4086_v58 = vld [vmem:[#allocation10 + $0xf0] ss:$8 sps:$4 sm:$0xff]   ;;  %v4091_v59 = vld [vmem:[#allocation10 + $0xe4] ss:$8 sps:$4 sm:$0xff]  }
 0x1b5   : > { %v832_v0 = vmax.f32 %v802_v60, 0.0  ;;  %v804_v1 = vadd.f32 %v803_v62, %v550_v40  ;;  %1657 = vmatpush1.bf16.msra.mxu1 %v4062_v42  ;;  %v4089_v60 = vld [vmem:[#allocation10 + $0xe0] ss:$8 sps:$4 sm:$0xff]   ;;  %v4092_v62 = vld [vmem:[#allocation10 + $0xd0] ss:$8 sps:$4 sm:$0xff]  }
 0x1b6   : > { %v807_v2 = vpop.f32.mrf.mxu0 }
 0x1b7   : > { %v833_v3 = vmax.f32 %v804_v1, 0.0  ;;  %v844_v4 = vpack.c.bf16 %v832_v0, %v830_v61  ;;  %v808_v5 = vadd.f32 %v807_v2, %v546_v41  ;;  %v4094_v61 = vld [vmem:[#allocation10 + $0xd4] ss:$8 sps:$4 sm:$0xff]   ;;  %v4095_v0 = vld [vmem:[#allocation10 + $0xc0] ss:$8 sps:$4 sm:$0xff]  }
 0x1b8   : > { %v809_v6 = vpop.f32.mrf.mxu0  ;;  %v4100_v1 = vld [vmem:[#allocation10 + $0xb4] ss:$8 sps:$4 sm:$0xff]   ;;  %v4098_v2 = vld [vmem:[#allocation10 + $0xb0] ss:$8 sps:$4 sm:$0xff]  }
 0x1b9   : > { %v845_v7 = vpack.c.bf16 %v833_v3, %v831_v63  ;;  %v810_v8 = vadd.f32 %v809_v6, %v550_v40  ;;  %v834_v11 = vmax.f32 %v808_v5, 0.0  ;;  %v4097_v63 = vld [vmem:[#allocation10 + $0xc4] ss:$8 sps:$4 sm:$0xff]   ;;  %v882_v3 = vld [vmem:[#allocation14 + $0x2] sm:$0x3] }
 0x1ba   : > { %v811_v9 = vpop.f32.mrf.mxu0  ;;  %v891_v5 = vrot.slane %v882_v3, %v5031_v36  ;;  %v887_v6 = vrot.slane %v882_v3, %v5033_v37  ;;  %v4104_v3 = vld [vmem:[#allocation10 + $0x90] ss:$8 sps:$4 sm:$0xff]  }
 0x1bb   : > { %v812_v10 = vadd.f32 %v811_v9, %v546_v41  ;;  %1096 = vmatprep.mubr.bf16.mxu1 %v845_v7  ;;  %v835_v13 = vmax.f32 %v810_v8, 0.0 }
 0x1bc   : > { %v813_v12 = vpop.f32.mrf.mxu0  ;;  %1097 = vmatmul.mubr.bf16.gmra.mxu1 %v844_v4 }
 0x1bd   : > { %v836_v14 = vmax.f32 %v812_v10, 0.0  ;;  %v814_v15 = vadd.f32 %v813_v12, %v550_v40 }
 0x1be   : > { %v817_v16 = vpop.f32.mrf.mxu0 }
 0x1bf   : > { %v837_v17 = vmax.f32 %v814_v15, 0.0  ;;  %v846_v18 = vpack.c.bf16 %v836_v14, %v834_v11  ;;  %v818_v19 = vadd.f32 %v817_v16, %v546_v41 }
 0x1c0   : > { %v819_v20 = vpop.f32.mrf.mxu0 }
 0x1c1   : > { %v847_v21 = vpack.c.bf16 %v837_v17, %v835_v13  ;;  %v820_v22 = vadd.f32 %v819_v20, %v550_v40  ;;  %v838_v25 = vmax.f32 %v818_v19, 0.0 }
 0x1c2   : > { %v821_v23 = vpop.f32.mrf.mxu0 }
 0x1c3   : > { %v822_v24 = vadd.f32 %v821_v23, %v546_v41  ;;  %1106 = vmatprep.mubr.bf16.mxu1 %v847_v21  ;;  %v839_v27 = vmax.f32 %v820_v22, 0.0  ;;  %v4059_v41 = vld [vmem:[#allocation8 + $0x80] ss:$8 sps:$4 sm:$0xff]  }
 0x1c4   : > { %v823_v26 = vpop.f32.mrf.mxu0  ;;  %1107 = vmatmul.mubr.bf16.gmra.mxu1 %v846_v18  ;;  %1386 = vmatpush2.bf16.msra.mxu0 %v4059_v41 }
 0x1c5   : > { %v840_v28 = vmax.f32 %v822_v24, 0.0  ;;  %v824_v29 = vadd.f32 %v823_v26, %v550_v40  ;;  %v4067_v40 = vld [vmem:[#allocation10 + $0x64] ss:$8 sps:$4 sm:$0xff]  }
 0x1c6   : > { %1658 = vmatprep.subr.bf16.mxu1 %v4067_v40 }
 0x1c7   : > { %v841_v30 = vmax.f32 %v824_v29, 0.0  ;;  %v848_v31 = vpack.c.bf16 %v840_v28, %v838_v25  ;;  %1659 = vmatpush1.bf16.msra.mxu1 %v4065_v44 }
 0x1c8   : > { %1660 = vmatprep.subr.bf16.mxu1 %v4070_v45 }
 0x1c9   : > { %v849_v32 = vpack.c.bf16 %v841_v30, %v839_v27 }
 0x1cb   : > { %1116 = vmatprep.mubr.bf16.mxu1 %v849_v32  ;;  %1661 = vmatpush1.bf16.msra.mxu1 %v4068_v46 }
 0x1cc   : > { %1117 = vmatmul.mubr.bf16.gmra.mxu1 %v848_v31  ;;  %1662 = vmatprep.subr.bf16.mxu1 %v4073_v47 }
 0x1cf   : > { %1663 = vmatpush1.bf16.msra.mxu1 %v4071_v48 }
 0x1d0   : > { %1664 = vmatprep.subr.bf16.mxu1 %v4076_v49 }
 0x1d3   : > { %1665 = vmatpush1.bf16.msra.mxu1 %v4074_v50 }
 0x1d4   : > { %1666 = vmatprep.subr.bf16.mxu1 %v4079_v51 }
 0x1d7   : > { %1667 = vmatpush1.bf16.msra.mxu1 %v4077_v52 }
 0x1d8   : > { %1668 = vmatprep.subr.bf16.mxu1 %v4082_v53 }
 0x1db   : > { %1669 = vmatpush1.bf16.msra.mxu1 %v4080_v54 }
 0x1dc   : > { %1670 = vmatprep.subr.bf16.mxu1 %v4085_v55 }
 0x1df   : > { %1671 = vmatpush1.bf16.msra.mxu1 %v4083_v56 }
 0x1e0   : > { %1672 = vmatprep.subr.bf16.mxu1 %v4088_v57 }
 0x1e3   : > { %1673 = vmatpush2.bf16.msra.mxu1 %v4086_v58 }
 0x1e4   : > { %1674 = vmatprep.subr.bf16.mxu1 %v4091_v59 }
 0x1e7   : > { %1675 = vmatpush2.bf16.msra.mxu1 %v4089_v60 }
 0x1e8   : > { %1676 = vmatprep.subr.bf16.mxu1 %v4094_v61 }
 0x1eb   : > { %1677 = vmatpush2.bf16.msra.mxu1 %v4092_v62 }
 0x1ec   : > { %1678 = vmatprep.subr.bf16.mxu1 %v4097_v63 }
 0x1ef   : > { %1679 = vmatpush2.bf16.msra.mxu1 %v4095_v0  ;;  %v4103_v0 = vld [vmem:[#allocation10 + $0xa4] ss:$8 sps:$4 sm:$0xff]  }
 0x1f0   : > { %1680 = vmatprep.subr.bf16.mxu1 %v4100_v1  ;;  %v4101_v1 = vld [vmem:[#allocation10 + $0xa0] ss:$8 sps:$4 sm:$0xff]  }
 0x1f3   : > { %1681 = vmatpush2.bf16.msra.mxu1 %v4098_v2  ;;  %v4106_v2 = vld [vmem:[#allocation10 + $0x94] ss:$8 sps:$4 sm:$0xff]  }
 0x1f4   : > { %1682 = vmatprep.subr.bf16.mxu1 %v4103_v0 }
 0x1f7   : > { %1683 = vmatpush2.bf16.msra.mxu1 %v4101_v1 }
 0x1f8   : > { %1684 = vmatprep.subr.bf16.mxu1 %v4106_v2 }
 0x1fb   : > { %1685 = vmatpush2.bf16.msra.mxu1 %v4104_v3 }
 0x274   : > { %v1088_v4 = vpop.f32.mrf.mxu1 }
 0x275   : > { %v1089_v11 = vadd.f32 %v1088_v4, %v887_v6  ;;  %v4109_v4 = vld [vmem:[#allocation10 + $0x84] ss:$8 sps:$4 sm:$0xff]  }
 0x276   : > { %v1090_v7 = vpop.f32.mrf.mxu1  ;;  %1686 = vmatprep.subr.bf16.mxu1 %v4109_v4 }
 0x277   : > { %v1091_v9 = vadd.f32 %v1090_v7, %v891_v5  ;;  %v1127_v18 = vmax.f32 %v1089_v11, 0.0  ;;  %v4110_v7 = vld [vmem:[#allocation11 + $0x70] ss:$8 sps:$4 sm:$0xff]  }
 0x278   : > { %v1092_v8 = vpop.f32.mrf.mxu1  ;;  %v4116_v11 = vld [vmem:[#allocation11 + $0x50] ss:$8 sps:$4 sm:$0xff]  }
 0x279   : > { %v1093_v10 = vadd.f32 %v1092_v8, %v887_v6  ;;  %v1128_v16 = vmax.f32 %v1091_v9, 0.0  ;;  %v4112_v8 = vld [vmem:[#allocation11 + $0x74] ss:$8 sps:$4 sm:$0xff]   ;;  %v4113_v9 = vld [vmem:[#allocation11 + $0x60] ss:$8 sps:$4 sm:$0xff]  }
 0x27a   : > { %v1094_v12 = vpop.f32.mrf.mxu1  ;;  %1957 = vmatprep.subr.bf16.mxu0 %v4112_v8 }
 0x27b   : > { %v1095_v13 = vadd.f32 %v1094_v12, %v891_v5  ;;  %v1129_v14 = vmax.f32 %v1093_v10, 0.0  ;;  %v4118_v10 = vld [vmem:[#allocation11 + $0x54] ss:$8 sps:$4 sm:$0xff]   ;;  %v4121_v12 = vld [vmem:[#allocation11 + $0x44] ss:$8 sps:$4 sm:$0xff]  }
 0x27c   : > { %v1098_v15 = vpop.f32.mrf.mxu1 }
 0x27d   : > { %v1130_v17 = vmax.f32 %v1095_v13, 0.0  ;;  %v1099_v19 = vadd.f32 %v1098_v15, %v887_v6  ;;  %v1143_v23 = vpack.c.bf16 %v1129_v14, %v1127_v18  ;;  %v4119_v13 = vld [vmem:[#allocation11 + $0x40] ss:$8 sps:$4 sm:$0xff]   ;;  %v4124_v14 = vld [vmem:[#allocation11 + $0x34] ss:$8 sps:$4 sm:$0xff]  }
 0x27e   : > { %v1100_v20 = vpop.f32.mrf.mxu1  ;;  %v4122_v15 = vld [vmem:[#allocation11 + $0x30] ss:$8 sps:$4 sm:$0xff]   ;;  %v4130_v18 = vld [vmem:[#allocation11 + $0x14] ss:$8 sps:$4 sm:$0xff]  }
 0x27f   : > { %v1144_v21 = vpack.c.bf16 %v1130_v17, %v1128_v16  ;;  %v1101_v22 = vadd.f32 %v1100_v20, %v891_v5  ;;  %v1131_v26 = vmax.f32 %v1099_v19, 0.0  ;;  %v4127_v16 = vld [vmem:[#allocation11 + $0x24] ss:$8 sps:$4 sm:$0xff]   ;;  %v4125_v17 = vld [vmem:[#allocation11 + $0x20] ss:$8 sps:$4 sm:$0xff]  }
 0x280   : > { %v1102_v24 = vpop.f32.mrf.mxu1  ;;  %v4128_v19 = vld [vmem:[#allocation11 + $0x10] ss:$8 sps:$4 sm:$0xff]   ;;  %v4133_v20 = vld [vmem:[#allocation11 + $0x4] ss:$8 sps:$4 sm:$0xff]  }
 0x281   : > { %v1103_v25 = vadd.f32 %v1102_v24, %v887_v6  ;;  %1387 = vmatprep.mubr.bf16.mxu0 %v1144_v21  ;;  %v1132_v28 = vmax.f32 %v1101_v22, 0.0  ;;  %v4131_v21 = vld [vmem:[#allocation11] ss:$8 sps:$4 sm:$0xff]   ;;  %v4136_v22 = vld [vmem:[#allocation11 + $0xf4] ss:$8 sps:$4 sm:$0xff]  }
 0x282   : > { %v1104_v27 = vpop.f32.mrf.mxu1  ;;  %1388 = vmatmul.mubr.bf16.vlgmr.msra.gmra.mxu0 %v1143_v23  ;;  %v4134_v23 = vld [vmem:[#allocation11 + $0xf0] ss:$8 sps:$4 sm:$0xff]   ;;  %v4139_v24 = vld [vmem:[#allocation11 + $0xe4] ss:$8 sps:$4 sm:$0xff]  }
 0x283   : > { %v1133_v29 = vmax.f32 %v1103_v25, 0.0  ;;  %v1105_v30 = vadd.f32 %v1104_v27, %v891_v5  ;;  %1958 = vmatpush1.bf16.msra.mxu0 %v4110_v7  ;;  %v4137_v25 = vld [vmem:[#allocation11 + $0xe0] ss:$8 sps:$4 sm:$0xff]   ;;  %v4140_v27 = vld [vmem:[#allocation11 + $0xd0] ss:$8 sps:$4 sm:$0xff]  }
 0x284   : > { %v1108_v31 = vpop.f32.mrf.mxu1 }
 0x285   : > { %v1134_v32 = vmax.f32 %v1105_v30, 0.0  ;;  %v1145_v33 = vpack.c.bf16 %v1133_v29, %v1131_v26  ;;  %v1109_v34 = vadd.f32 %v1108_v31, %v887_v6  ;;  %v4142_v26 = vld [vmem:[#allocation11 + $0xd4] ss:$8 sps:$4 sm:$0xff]   ;;  %v4143_v29 = vld [vmem:[#allocation11 + $0xc0] ss:$8 sps:$4 sm:$0xff]  }
 0x286   : > { %v1110_v35 = vpop.f32.mrf.mxu1  ;;  %v4148_v30 = vld [vmem:[#allocation11 + $0xb4] ss:$8 sps:$4 sm:$0xff]   ;;  %v4146_v31 = vld [vmem:[#allocation11 + $0xb0] ss:$8 sps:$4 sm:$0xff]  }
 0x287   : > { %v1146_v38 = vpack.c.bf16 %v1134_v32, %v1132_v28  ;;  %v1111_v39 = vadd.f32 %v1110_v35, %v891_v5  ;;  %v1135_v43 = vmax.f32 %v1109_v34, 0.0  ;;  %v4145_v28 = vld [vmem:[#allocation11 + $0xc4] ss:$8 sps:$4 sm:$0xff]  }
 0x288   : > { %v1112_v41 = vpop.f32.mrf.mxu1  ;;  %v1183_v32 = vld [vmem:[#allocation14 + $0x4] sm:$0x3] }
 0x289   : > { %v1113_v42 = vadd.f32 %v1112_v41, %v887_v6  ;;  %1397 = vmatprep.mubr.bf16.mxu0 %v1146_v38  ;;  %v1136_v44 = vmax.f32 %v1111_v39, 0.0  ;;  %v1192_v34 = vrot.slane %v1183_v32, %v5031_v36 }
 0x28a   : > { %v1114_v40 = vpop.f32.mrf.mxu1  ;;  %1398 = vmatmul.mubr.bf16.gmra.mxu0 %v1145_v33  ;;  %v1188_v33 = vrot.slane %v1183_v32, %v5033_v37  ;;  %v4196_v32 = vld [vmem:[#allocation13 + $0x24] ss:$16 sps:$4 sm:$0xff]  }
 0x28b   : > { %v1137_v45 = vmax.f32 %v1113_v42, 0.0  ;;  %v1115_v46 = vadd.f32 %v1114_v40, %v891_v5 }
 0x28c   : > { %v1118_v47 = vpop.f32.mrf.mxu1 }
 0x28d   : > { %v1138_v48 = vmax.f32 %v1115_v46, 0.0  ;;  %v1147_v49 = vpack.c.bf16 %v1137_v45, %v1135_v43  ;;  %v1119_v50 = vadd.f32 %v1118_v47, %v887_v6 }
 0x28e   : > { %v1120_v51 = vpop.f32.mrf.mxu1 }
 0x28f   : > { %v1148_v52 = vpack.c.bf16 %v1138_v48, %v1136_v44  ;;  %v1121_v53 = vadd.f32 %v1120_v51, %v891_v5  ;;  %v1139_v56 = vmax.f32 %v1119_v50, 0.0 }
 0x290   : > { %v1122_v54 = vpop.f32.mrf.mxu1 }
 0x291   : > { %v1123_v55 = vadd.f32 %v1122_v54, %v887_v6  ;;  %1407 = vmatprep.mubr.bf16.mxu0 %v1148_v52  ;;  %v1140_v58 = vmax.f32 %v1121_v53, 0.0  ;;  %v4107_v6 = vld [vmem:[#allocation10 + $0x80] ss:$8 sps:$4 sm:$0xff]  }
 0x292   : > { %v1124_v57 = vpop.f32.mrf.mxu1  ;;  %1408 = vmatmul.mubr.bf16.gmra.mxu0 %v1147_v49  ;;  %1687 = vmatpush2.bf16.msra.mxu1 %v4107_v6 }
 0x293   : > { %v1141_v59 = vmax.f32 %v1123_v55, 0.0  ;;  %v1125_v60 = vadd.f32 %v1124_v57, %v891_v5  ;;  %v4115_v5 = vld [vmem:[#allocation11 + $0x64] ss:$8 sps:$4 sm:$0xff]  }
 0x294   : > { %1959 = vmatprep.subr.bf16.mxu0 %v4115_v5 }
 0x295   : > { %v1142_v61 = vmax.f32 %v1125_v60, 0.0  ;;  %v1149_v62 = vpack.c.bf16 %v1141_v59, %v1139_v56  ;;  %1960 = vmatpush1.bf16.msra.mxu0 %v4113_v9 }
 0x296   : > { %1961 = vmatprep.subr.bf16.mxu0 %v4118_v10 }
 0x297   : > { %v1150_v63 = vpack.c.bf16 %v1142_v61, %v1140_v58 }
 0x299   : > { %1417 = vmatprep.mubr.bf16.mxu0 %v1150_v63  ;;  %1962 = vmatpush1.bf16.msra.mxu0 %v4116_v11 }
 0x29a   : > { %1418 = vmatmul.mubr.bf16.gmra.mxu0 %v1149_v62  ;;  %1963 = vmatprep.subr.bf16.mxu0 %v4121_v12 }
 0x29d   : > { %1964 = vmatpush1.bf16.msra.mxu0 %v4119_v13  ;;  %v4151_v13 = vld [vmem:[#allocation11 + $0xa4] ss:$8 sps:$4 sm:$0xff]  }
 0x29e   : > { %1965 = vmatprep.subr.bf16.mxu0 %v4124_v14  ;;  %v4149_v14 = vld [vmem:[#allocation11 + $0xa0] ss:$8 sps:$4 sm:$0xff]  }
 0x2a1   : > { %1966 = vmatpush1.bf16.msra.mxu0 %v4122_v15  ;;  %v4154_v15 = vld [vmem:[#allocation11 + $0x94] ss:$8 sps:$4 sm:$0xff]  }
 0x2a2   : > { %1967 = vmatprep.subr.bf16.mxu0 %v4127_v16  ;;  %v4152_v16 = vld [vmem:[#allocation11 + $0x90] ss:$8 sps:$4 sm:$0xff]  }
 0x2a5   : > { %1968 = vmatpush1.bf16.msra.mxu0 %v4125_v17  ;;  %v4157_v17 = vld [vmem:[#allocation11 + $0x84] ss:$8 sps:$4 sm:$0xff]  }
 0x2a6   : > { %1969 = vmatprep.subr.bf16.mxu0 %v4130_v18  ;;  %v4155_v18 = vld [vmem:[#allocation11 + $0x80] ss:$8 sps:$4 sm:$0xff]  }
 0x2a9   : > { %1970 = vmatpush1.bf16.msra.mxu0 %v4128_v19  ;;  %v4158_v19 = vld [vmem:[#allocation13 + $0xe0] ss:$16 sps:$4 sm:$0xff]  }
 0x2aa   : > { %1971 = vmatprep.subr.bf16.mxu0 %v4133_v20  ;;  %v4160_v20 = vld [vmem:[#allocation13 + $0xe4] ss:$16 sps:$4 sm:$0xff]  }
 0x2ab   : > { %2262 = vmatprep.subr.bf16.mxu1 %v4160_v20 }
 0x2ad   : > { %1972 = vmatpush1.bf16.msra.mxu0 %v4131_v21  ;;  %v5063_v21 = vld [vmem:[#allocation13 + $0xec] ss:$16 sps:$4 sm:$0xff]  }
 0x2ae   : > { %1973 = vmatprep.subr.bf16.mxu0 %v4136_v22  ;;  %v4166_v22 = vld [vmem:[#allocation13 + $0xc4] ss:$16 sps:$4 sm:$0xff]  }
 0x2b1   : > { %1974 = vmatpush2.bf16.msra.mxu0 %v4134_v23  ;;  %v4164_v23 = vld [vmem:[#allocation13 + $0xc0] ss:$16 sps:$4 sm:$0xff]  }
 0x2b2   : > { %1975 = vmatprep.subr.bf16.mxu0 %v4139_v24  ;;  %v4172_v24 = vld [vmem:[#allocation13 + $0xa4] ss:$16 sps:$4 sm:$0xff]  }
 0x2b5   : > { %1976 = vmatpush2.bf16.msra.mxu0 %v4137_v25  ;;  %v4170_v25 = vld [vmem:[#allocation13 + $0xa0] ss:$16 sps:$4 sm:$0xff]  }
 0x2b6   : > { %1977 = vmatprep.subr.bf16.mxu0 %v4142_v26  ;;  %v4178_v26 = vld [vmem:[#allocation13 + $0x84] ss:$16 sps:$4 sm:$0xff]  }
 0x2b9   : > { %1978 = vmatpush2.bf16.msra.mxu0 %v4140_v27  ;;  %v4176_v27 = vld [vmem:[#allocation13 + $0x80] ss:$16 sps:$4 sm:$0xff]  }
 0x2ba   : > { %1979 = vmatprep.subr.bf16.mxu0 %v4145_v28  ;;  %v4184_v28 = vld [vmem:[#allocation13 + $0x64] ss:$16 sps:$4 sm:$0xff]  }
 0x2bd   : > { %1980 = vmatpush2.bf16.msra.mxu0 %v4143_v29  ;;  %v4182_v29 = vld [vmem:[#allocation13 + $0x60] ss:$16 sps:$4 sm:$0xff]  }
 0x2be   : > { %1981 = vmatprep.subr.bf16.mxu0 %v4148_v30  ;;  %v4190_v30 = vld [vmem:[#allocation13 + $0x44] ss:$16 sps:$4 sm:$0xff]  }
 0x2c1   : > { %1982 = vmatpush2.bf16.msra.mxu0 %v4146_v31  ;;  %v4188_v31 = vld [vmem:[#allocation13 + $0x40] ss:$16 sps:$4 sm:$0xff]  }
 0x2c2   : > { %1983 = vmatprep.subr.bf16.mxu0 %v4151_v13 }
 0x2c5   : > { %1984 = vmatpush2.bf16.msra.mxu0 %v4149_v14  ;;  %v5085_v14 = vld [vmem:[#allocation13 + $0xc8] ss:$16 sps:$4 sm:$0xff]  }
 0x2c6   : > { %1985 = vmatprep.subr.bf16.mxu0 %v4154_v15 }
 0x2c9   : > { %1986 = vmatpush2.bf16.msra.mxu0 %v4152_v16  ;;  %v5088_v16 = vld [vmem:[#allocation13 + $0xac] ss:$16 sps:$4 sm:$0xff]  }
 0x2ca   : > { %1987 = vmatprep.subr.bf16.mxu0 %v4157_v17 }
 0x2cd   : > { %1988 = vmatpush2.bf16.msra.mxu0 %v4155_v18 }
 0x2ce   : > { %2836 = vmatprep.subr.bf16.mxu0 %v5063_v21 }
 0x342   : > { %v1389_v35 = vpop.f32.mrf.mxu0 }
 0x343   : > { %v1390_v38 = vadd.f32 %v1389_v35, %v1188_v33  ;;  %v4200_v35 = vld [vmem:[#allocation13] ss:$16 sps:$4 sm:$0xff]  }
 0x344   : > { %v1391_v39 = vpop.f32.mrf.mxu0 }
 0x345   : > { %1428 = vst [vmem:[%s5045_s20] sm:$0xff] %v1390_v38  ;;  %v1392_v41 = vadd.f32 %v1391_v39, %v1192_v34  ;;  %v4206_v39 = vld [vmem:[#allocation13 + $0x1e0] ss:$16 sps:$4 sm:$0xff]  }
 0x346   : > { %v1393_v42 = vpop.f32.mrf.mxu0 }
 0x347   : > { %1429 = vst [vmem:[%s5045_s20 + $0x8] sm:$0xff] %v1392_v41  ;;  %v1394_v43 = vadd.f32 %v1393_v42, %v1188_v33  ;;  %v4212_v42 = vld [vmem:[#allocation13 + $0x1c0] ss:$16 sps:$4 sm:$0xff]  }
 0x348   : > { %v1395_v40 = vpop.f32.mrf.mxu0 }
 0x349   : > { %1430 = vst [vmem:[%s5045_s20 + $0x10] sm:$0xff] %v1394_v43  ;;  %v1396_v44 = vadd.f32 %v1395_v40, %v1192_v34  ;;  %v1444_v48 = vpack.c.bf16 %v1394_v43, %v1390_v38  ;;  %v4208_v38 = vld [vmem:[#allocation13 + $0x1e4] ss:$16 sps:$4 sm:$0xff]   ;;  %v4218_v40 = vld [vmem:[#allocation13 + $0x1a0] ss:$16 sps:$4 sm:$0xff]  }
 0x34a   : > { %v1399_v45 = vpop.f32.mrf.mxu0  ;;  %v4220_v43 = vld [vmem:[#allocation13 + $0x1a4] ss:$16 sps:$4 sm:$0xff]  }
 0x34b   : > { %1431 = vst [vmem:[%s5045_s20 + $0x18] sm:$0xff] %v1396_v44  ;;  %v1445_v46 = vpack.c.bf16 %v1396_v44, %v1392_v41  ;;  %v1400_v47 = vadd.f32 %v1399_v45, %v1188_v33  ;;  %v4214_v41 = vld [vmem:[#allocation13 + $0x1c4] ss:$16 sps:$4 sm:$0xff]   ;;  %v4224_v45 = vld [vmem:[#allocation13 + $0x180] ss:$16 sps:$4 sm:$0xff]  }
 0x34c   : > { %v1401_v49 = vpop.f32.mrf.mxu0  ;;  %v4226_v44 = vld [vmem:[#allocation13 + $0x184] ss:$16 sps:$4 sm:$0xff]  }
 0x34d   : > { %1432 = vst [vmem:[%s5045_s20 + $0x20] sm:$0xff] %v1400_v47  ;;  %v1402_v50 = vadd.f32 %v1401_v49, %v1192_v34  ;;  %1688 = vmatprep.mubr.bf16.mxu1 %v1445_v46  ;;  %v4232_v46 = vld [vmem:[#allocation13 + $0x164] ss:$16 sps:$4 sm:$0xff]  }
 0x34e   : > { %v1403_v51 = vpop.f32.mrf.mxu0  ;;  %1689 = vmatmul.mubr.bf16.vlgmr.msra.gmra.mxu1 %v1444_v48  ;;  %v1484_v48 = vld [vmem:[#allocation14 + $0x6] sm:$0x3] }
 0x34f   : > { %1433 = vst [vmem:[%s5045_s20 + $0x28] sm:$0xff] %v1402_v50  ;;  %v1404_v52 = vadd.f32 %v1403_v51, %v1188_v33  ;;  %2263 = vmatpush1.bf16.msra.mxu1 %v4158_v19  ;;  %v5070_v51 = vrot.slane %v1484_v48, %v5033_v37 }
 0x350   : > { %v1405_v53 = vpop.f32.mrf.mxu0  ;;  %2264 = vmatprep.subr.bf16.mxu1 %v4166_v22 }
 0x351   : > { %1434 = vst [vmem:[%s5045_s20 + $0x30] sm:$0xff] %v1404_v52  ;;  %v1406_v54 = vadd.f32 %v1405_v53, %v1192_v34  ;;  %v1446_v55 = vpack.c.bf16 %v1404_v52, %v1400_v47  ;;  %v4230_v47 = vld [vmem:[#allocation13 + $0x160] ss:$16 sps:$4 sm:$0xff]  }
 0x352   : > { %v1409_v56 = vpop.f32.mrf.mxu0 }
 0x353   : > { %1435 = vst [vmem:[%s5045_s20 + $0x38] sm:$0xff] %v1406_v54  ;;  %v1447_v57 = vpack.c.bf16 %v1406_v54, %v1402_v50  ;;  %v1410_v58 = vadd.f32 %v1409_v56, %v1188_v33  ;;  %2265 = vmatpush1.bf16.msra.mxu1 %v4164_v23  ;;  %v5067_v50 = vrot.slane %v1484_v48, %v5031_v36 }
 0x354   : > { %v1411_v59 = vpop.f32.mrf.mxu0  ;;  %2266 = vmatprep.subr.bf16.mxu1 %v4172_v24  ;;  %v5093_v24 = vld [vmem:[#allocation13 + $0xa8] ss:$16 sps:$4 sm:$0xff]  }
 0x355   : > { %1436 = vst [vmem:[%s5045_s20 + $0x40] sm:$0xff] %v1410_v58  ;;  %v1412_v60 = vadd.f32 %v1411_v59, %v1192_v34  ;;  %1698 = vmatprep.mubr.bf16.mxu1 %v1447_v57 }
 0x356   : > { %v1413_v61 = vpop.f32.mrf.mxu0  ;;  %1699 = vmatmul.mubr.bf16.gmra.mxu1 %v1446_v55 }
 0x357   : > { %1437 = vst [vmem:[%s5045_s20 + $0x48] sm:$0xff] %v1412_v60  ;;  %v1414_v62 = vadd.f32 %v1413_v61, %v1188_v33  ;;  %2267 = vmatpush1.bf16.msra.mxu1 %v4170_v25 }
 0x358   : > { %v1415_v63 = vpop.f32.mrf.mxu0  ;;  %2268 = vmatprep.subr.bf16.mxu1 %v4178_v26  ;;  %v5096_v26 = vld [vmem:[#allocation13 + $0x8c] ss:$16 sps:$4 sm:$0xff]  }
 0x359   : > { %1438 = vst [vmem:[%s5045_s20 + $0x50] sm:$0xff] %v1414_v62  ;;  %v1416_v0 = vadd.f32 %v1415_v63, %v1192_v34  ;;  %v1448_v1 = vpack.c.bf16 %v1414_v62, %v1410_v58 }
 0x35a   : > { %v1419_v2 = vpop.f32.mrf.mxu0 }
 0x35b   : > { %1439 = vst [vmem:[%s5045_s20 + $0x58] sm:$0xff] %v1416_v0  ;;  %v1449_v3 = vpack.c.bf16 %v1416_v0, %v1412_v60  ;;  %v1420_v4 = vadd.f32 %v1419_v2, %v1188_v33  ;;  %2269 = vmatpush1.bf16.msra.mxu1 %v4176_v27 }
 0x35c   : > { %v1421_v6 = vpop.f32.mrf.mxu0  ;;  %2270 = vmatprep.subr.bf16.mxu1 %v4184_v28 }
 0x35d   : > { %1440 = vst [vmem:[%s5045_s20 + $0x60] sm:$0xff] %v1420_v4  ;;  %v1422_v7 = vadd.f32 %v1421_v6, %v1192_v34  ;;  %1708 = vmatprep.mubr.bf16.mxu1 %v1449_v3 }
 0x35e   : > { %v1423_v8 = vpop.f32.mrf.mxu0  ;;  %1709 = vmatmul.mubr.bf16.gmra.mxu1 %v1448_v1 }
 0x35f   : > { %1441 = vst [vmem:[%s5045_s20 + $0x68] sm:$0xff] %v1422_v7  ;;  %v1424_v5 = vadd.f32 %v1423_v8, %v1188_v33  ;;  %2271 = vmatpush1.bf16.msra.mxu1 %v4182_v29  ;;  %v4194_v33 = vld [vmem:[#allocation13 + $0x20] ss:$16 sps:$4 sm:$0xff]   ;;  %v5080_v8 = vld [vmem:[#allocation13 + $0xcc] ss:$16 sps:$4 sm:$0xff]  }
 0x360   : > { %v1425_v9 = vpop.f32.mrf.mxu0  ;;  %2272 = vmatprep.subr.bf16.mxu1 %v4190_v30 }
 0x361   : > { %1442 = vst [vmem:[%s5045_s20 + $0x70] sm:$0xff] %v1424_v5  ;;  %v1426_v10 = vadd.f32 %v1425_v9, %v1192_v34  ;;  %v1450_v11 = vpack.c.bf16 %v1424_v5, %v1420_v4  ;;  %v4202_v34 = vld [vmem:[#allocation13 + $0x4] ss:$16 sps:$4 sm:$0xff]   ;;  %v5078_v4 = vld [vmem:[#allocation13 + $0xe8] ss:$16 sps:$4 sm:$0xff]  }
 0x363   : > { %1443 = vst [vmem:[%s5045_s20 + $0x78] sm:$0xff] %v1426_v10  ;;  %v1451_v12 = vpack.c.bf16 %v1426_v10, %v1422_v7  ;;  %2273 = vmatpush1.bf16.msra.mxu1 %v4188_v31 }
 0x364   : > { %2274 = vmatprep.subr.bf16.mxu1 %v4196_v32 }
 0x365   : > { %1718 = vmatprep.mubr.bf16.mxu1 %v1451_v12 }
 0x366   : > { %1719 = vmatmul.mubr.bf16.gmra.mxu1 %v1450_v11 }
 0x367   : > { %2275 = vmatpush1.bf16.msra.mxu1 %v4194_v33  ;;  %v5101_v33 = vld [vmem:[#allocation13 + $0x88] ss:$16 sps:$4 sm:$0xff]  }
 0x368   : > { %2276 = vmatprep.subr.bf16.mxu1 %v4202_v34 }
 0x36b   : > { %2277 = vmatpush1.bf16.msra.mxu1 %v4200_v35  ;;  %v5104_v35 = vld [vmem:[#allocation13 + $0x6c] ss:$16 sps:$4 sm:$0xff]  }
 0x36c   : > { %2278 = vmatprep.subr.bf16.mxu1 %v4208_v38 }
 0x36f   : > { %2279 = vmatpush2.bf16.msra.mxu1 %v4206_v39 }
 0x370   : > { %2280 = vmatprep.subr.bf16.mxu1 %v4214_v41 }
 0x373   : > { %2281 = vmatpush2.bf16.msra.mxu1 %v4212_v42 }
 0x374   : > { %2282 = vmatprep.subr.bf16.mxu1 %v4220_v43 }
 0x377   : > { %2283 = vmatpush2.bf16.msra.mxu1 %v4218_v40 }
 0x378   : > { %2284 = vmatprep.subr.bf16.mxu1 %v4226_v44  ;;  %v5109_v44 = vld [vmem:[#allocation13 + $0x68] ss:$16 sps:$4 sm:$0xff]  }
 0x37b   : > { %2285 = vmatpush2.bf16.msra.mxu1 %v4224_v45 }
 0x37c   : > { %2286 = vmatprep.subr.bf16.mxu1 %v4232_v46  ;;  %v5112_v46 = vld [vmem:[#allocation13 + $0x4c] ss:$16 sps:$4 sm:$0xff]  }
 0x37f   : > { %2287 = vmatpush2.bf16.msra.mxu1 %v4230_v47 }
 0x40e   : > { %v1690_v49 = vpop.f32.mrf.mxu1 }
 0x40f   : > { %v1691_v56 = vadd.f32 %v1690_v49, %v5070_v51 }
 0x410   : > { %v1692_v52 = vpop.f32.mrf.mxu1 }
 0x411   : > { %v1693_v54 = vadd.f32 %v1692_v52, %v5067_v50  ;;  %v1729_v63 = vmax.f32 %v1691_v56, 0.0  ;;  %v5120_v56 = vld [vmem:[#allocation13 + $0x2c] ss:$16 sps:$4 sm:$0xff]  }
 0x412   : > { %v1694_v53 = vpop.f32.mrf.mxu1 }
 0x413   : > { %v1695_v55 = vadd.f32 %v1694_v53, %v5070_v51  ;;  %v1730_v61 = vmax.f32 %v1693_v54, 0.0 }
 0x414   : > { %v1696_v57 = vpop.f32.mrf.mxu1 }
 0x415   : > { %v1697_v58 = vadd.f32 %v1696_v57, %v5067_v50  ;;  %v1731_v59 = vmax.f32 %v1695_v55, 0.0  ;;  %v5117_v55 = vld [vmem:[#allocation13 + $0x48] ss:$16 sps:$4 sm:$0xff]  }
 0x416   : > { %v1700_v60 = vpop.f32.mrf.mxu1 }
 0x417   : > { %v1732_v62 = vmax.f32 %v1697_v58, 0.0  ;;  %v1701_v0 = vadd.f32 %v1700_v60, %v5070_v51  ;;  %v1745_v6 = vpack.c.bf16 %v1731_v59, %v1729_v63  ;;  %v5126_v60 = vld [vmem:[#allocation13 + $0xc] ss:$16 sps:$4 sm:$0xff]  }
 0x418   : > { %v1702_v1 = vpop.f32.mrf.mxu1  ;;  %v5138_v63 = vld [vmem:[#allocation13 + $0x1cc] ss:$16 sps:$4 sm:$0xff]  }
 0x419   : > { %v1746_v2 = vpack.c.bf16 %v1732_v62, %v1730_v61  ;;  %v1703_v3 = vadd.f32 %v1702_v1, %v5067_v50  ;;  %v1733_v9 = vmax.f32 %v1701_v0, 0.0  ;;  %v5132_v61 = vld [vmem:[#allocation13 + $0x1ec] ss:$16 sps:$4 sm:$0xff]   ;;  %v5135_v62 = vld [vmem:[#allocation13 + $0x1e8] ss:$16 sps:$4 sm:$0xff]  }
 0x41a   : > { %v1704_v7 = vpop.f32.mrf.mxu1  ;;  %v5141_v0 = vld [vmem:[#allocation13 + $0x1c8] ss:$16 sps:$4 sm:$0xff]   ;;  %v5144_v1 = vld [vmem:[#allocation13 + $0x1ac] ss:$16 sps:$4 sm:$0xff]  }
 0x41b   : > { %v1705_v5 = vadd.f32 %v1704_v7, %v5070_v51  ;;  %1989 = vmatprep.mubr.bf16.mxu0 %v1746_v2  ;;  %v1734_v11 = vmax.f32 %v1703_v3, 0.0  ;;  %v5147_v2 = vld [vmem:[#allocation13 + $0x1a8] ss:$16 sps:$4 sm:$0xff]   ;;  %v5150_v3 = vld [vmem:[#allocation13 + $0x18c] ss:$16 sps:$4 sm:$0xff]  }
 0x41c   : > { %v1706_v10 = vpop.f32.mrf.mxu1  ;;  %1990 = vmatmul.mubr.bf16.vlgmr.msra.gmra.mxu0 %v1745_v6  ;;  %v5153_v6 = vld [vmem:[#allocation13 + $0x188] ss:$16 sps:$4 sm:$0xff]   ;;  %v5156_v7 = vld [vmem:[#allocation13 + $0x16c] ss:$16 sps:$4 sm:$0xff]  }
 0x41d   : > { %v1735_v12 = vmax.f32 %v1705_v5, 0.0  ;;  %v1707_v13 = vadd.f32 %v1706_v10, %v5067_v50  ;;  %2837 = vmatpush1.bf16.msra.mxu0 %v5078_v4  ;;  %v5159_v5 = vld [vmem:[#allocation13 + $0x168] ss:$16 sps:$4 sm:$0xff]   ;;  %v4236_v10 = vld [vmem:[#allocation13 + $0x140] ss:$16 sps:$4 sm:$0xff]  }
 0x41e   : > { %v1710_v15 = vpop.f32.mrf.mxu1  ;;  %2838 = vmatprep.subr.bf16.mxu0 %v5080_v8 }
 0x41f   : > { %v1736_v17 = vmax.f32 %v1707_v13, 0.0  ;;  %v1747_v18 = vpack.c.bf16 %v1735_v12, %v1733_v9  ;;  %v1711_v19 = vadd.f32 %v1710_v15, %v5070_v51  ;;  %v4238_v9 = vld [vmem:[#allocation13 + $0x144] ss:$16 sps:$4 sm:$0xff]   ;;  %v5165_v12 = vld [vmem:[#allocation13 + $0x148] ss:$16 sps:$4 sm:$0xff]  }
 0x420   : > { %v1712_v20 = vpop.f32.mrf.mxu1  ;;  %2288 = vmatprep.subr.bf16.mxu1 %v4238_v9  ;;  %v4244_v13 = vld [vmem:[#allocation13 + $0x124] ss:$16 sps:$4 sm:$0xff]   ;;  %v4242_v15 = vld [vmem:[#allocation13 + $0x120] ss:$16 sps:$4 sm:$0xff]  }
 0x421   : > { %v1748_v22 = vpack.c.bf16 %v1736_v17, %v1734_v11  ;;  %v1713_v23 = vadd.f32 %v1712_v20, %v5067_v50  ;;  %2839 = vmatpush1.bf16.msra.mxu0 %v5085_v14  ;;  %v1737_v28 = vmax.f32 %v1711_v19, 0.0  ;;  %v5163_v11 = vld [vmem:[#allocation13 + $0x14c] ss:$16 sps:$4 sm:$0xff]   ;;  %2289 = vmatpush2.bf16.msra.mxu1 %v4236_v10  ;;  %v4250_v19 = vld [vmem:[#allocation13 + $0x104] ss:$16 sps:$4 sm:$0xff]  }
 0x422   : > { %v1714_v25 = vpop.f32.mrf.mxu1  ;;  %2840 = vmatprep.subr.bf16.mxu0 %v5088_v16  ;;  %v5169_v17 = vld [vmem:[#allocation13 + $0x12c] ss:$16 sps:$4 sm:$0xff]   ;;  %2290 = vmatprep.subr.bf16.mxu1 %v4244_v13  ;;  %v4248_v20 = vld [vmem:[#allocation13 + $0x100] ss:$16 sps:$4 sm:$0xff]  }
 0x423   : > { %v1715_v27 = vadd.f32 %v1714_v25, %v5070_v51  ;;  %1999 = vmatprep.mubr.bf16.mxu0 %v1748_v22  ;;  %v1738_v30 = vmax.f32 %v1713_v23, 0.0  ;;  %v5175_v22 = vld [vmem:[#allocation13 + $0x10c] ss:$16 sps:$4 sm:$0xff]   ;;  %v5177_v23 = vld [vmem:[#allocation13 + $0x108] ss:$16 sps:$4 sm:$0xff]  }
 0x424   : > { %v1716_v29 = vpop.f32.mrf.mxu1  ;;  %2000 = vmatmul.mubr.bf16.gmra.mxu0 %v1747_v18  ;;  %v5171_v18 = vld [vmem:[#allocation13 + $0x128] ss:$16 sps:$4 sm:$0xff]  }
 0x425   : > { %v1739_v31 = vmax.f32 %v1715_v27, 0.0  ;;  %v1717_v32 = vadd.f32 %v1716_v29, %v5067_v50  ;;  %2841 = vmatpush1.bf16.msra.mxu0 %v5093_v24  ;;  %2291 = vmatpush2.bf16.msra.mxu1 %v4242_v15  ;;  %v1785_v25 = vld [vmem:[#allocation14 + $0x8] sm:$0x3] }
 0x426   : > { %v1720_v34 = vpop.f32.mrf.mxu1  ;;  %2842 = vmatprep.subr.bf16.mxu0 %v5096_v26  ;;  %2292 = vmatprep.subr.bf16.mxu1 %v4250_v19  ;;  %v5186_v29 = vrot.slane %v1785_v25, %v5033_v37 }
 0x427   : > { %v1740_v38 = vmax.f32 %v1717_v32, 0.0  ;;  %v1749_v39 = vpack.c.bf16 %v1739_v31, %v1737_v28  ;;  %v1721_v41 = vadd.f32 %v1720_v34, %v5070_v51  ;;  %v5183_v28 = vrot.slane %v1785_v25, %v5031_v36 }
 0x428   : > { %v1722_v42 = vpop.f32.mrf.mxu1 }
 0x429   : > { %v1750_v43 = vpack.c.bf16 %v1740_v38, %v1738_v30  ;;  %v1723_v40 = vadd.f32 %v1722_v42, %v5067_v50  ;;  %2843 = vmatpush1.bf16.msra.mxu0 %v5101_v33  ;;  %v1741_v48 = vmax.f32 %v1721_v41, 0.0  ;;  %2293 = vmatpush2.bf16.msra.mxu1 %v4248_v20 }
 0x42a   : > { %v1724_v45 = vpop.f32.mrf.mxu1  ;;  %2844 = vmatprep.subr.bf16.mxu0 %v5104_v35  ;;  %3741 = vmatprep.subr.bf16.mxu1 %v5063_v21 }
 0x42b   : > { %v1725_v47 = vadd.f32 %v1724_v45, %v5070_v51  ;;  %2009 = vmatprep.mubr.bf16.mxu0 %v1750_v43  ;;  %v1742_v52 = vmax.f32 %v1723_v40, 0.0  ;;  %v5123_v51 = vld [vmem:[#allocation13 + $0x28] ss:$16 sps:$4 sm:$0xff]  }
 0x42c   : > { %v1726_v49 = vpop.f32.mrf.mxu1  ;;  %2010 = vmatmul.mubr.bf16.gmra.mxu0 %v1749_v39 }
 0x42d   : > { %v1743_v53 = vmax.f32 %v1725_v47, 0.0  ;;  %v1727_v54 = vadd.f32 %v1726_v49, %v5067_v50  ;;  %2845 = vmatpush1.bf16.msra.mxu0 %v5109_v44  ;;  %v5129_v50 = vld [vmem:[#allocation13 + $0x8] ss:$16 sps:$4 sm:$0xff]  }
 0x42e   : > { %2846 = vmatprep.subr.bf16.mxu0 %v5112_v46 }
 0x42f   : > { %v1744_v57 = vmax.f32 %v1727_v54, 0.0  ;;  %v1751_v58 = vpack.c.bf16 %v1743_v53, %v1741_v48 }
 0x431   : > { %v1752_v59 = vpack.c.bf16 %v1744_v57, %v1742_v52  ;;  %2847 = vmatpush1.bf16.msra.mxu0 %v5117_v55 }
 0x432   : > { %2848 = vmatprep.subr.bf16.mxu0 %v5120_v56 }
 0x433   : > { %2019 = vmatprep.mubr.bf16.mxu0 %v1752_v59 }
 0x434   : > { %2020 = vmatmul.mubr.bf16.gmra.mxu0 %v1751_v58 }
 0x435   : > { %2849 = vmatpush1.bf16.msra.mxu0 %v5123_v51 }
 0x436   : > { %2850 = vmatprep.subr.bf16.mxu0 %v5126_v60 }
 0x439   : > { %2851 = vmatpush1.bf16.msra.mxu0 %v5129_v50 }
 0x43a   : > { %2852 = vmatprep.subr.bf16.mxu0 %v5132_v61 }
 0x43d   : > { %2853 = vmatpush2.bf16.msra.mxu0 %v5135_v62 }
 0x43e   : > { %2854 = vmatprep.subr.bf16.mxu0 %v5138_v63 }
 0x441   : > { %2855 = vmatpush2.bf16.msra.mxu0 %v5141_v0 }
 0x442   : > { %2856 = vmatprep.subr.bf16.mxu0 %v5144_v1 }
 0x445   : > { %2857 = vmatpush2.bf16.msra.mxu0 %v5147_v2 }
 0x446   : > { %2858 = vmatprep.subr.bf16.mxu0 %v5150_v3 }
 0x449   : > { %2859 = vmatpush2.bf16.msra.mxu0 %v5153_v6 }
 0x44a   : > { %2860 = vmatprep.subr.bf16.mxu0 %v5156_v7 }
 0x44d   : > { %2861 = vmatpush2.bf16.msra.mxu0 %v5159_v5 }
 0x44e   : > { %2862 = vmatprep.subr.bf16.mxu0 %v5163_v11 }
 0x451   : > { %2863 = vmatpush2.bf16.msra.mxu0 %v5165_v12 }
 0x452   : > { %2864 = vmatprep.subr.bf16.mxu0 %v5169_v17 }
 0x455   : > { %2865 = vmatpush2.bf16.msra.mxu0 %v5171_v18 }
 0x456   : > { %2866 = vmatprep.subr.bf16.mxu0 %v5175_v22 }
 0x459   : > { %2867 = vmatpush2.bf16.msra.mxu0 %v5177_v23 }
 0x4dc   : > { %v1991_v27 = vpop.f32.mrf.mxu0 }
 0x4dd   : > { %v1992_v38 = vadd.f32 %v1991_v27, %v5186_v29 }
 0x4de   : > { %v1993_v30 = vpop.f32.mrf.mxu0 }
 0x4df   : > { %v1994_v32 = vadd.f32 %v1993_v30, %v5183_v28  ;;  %v2030_v45 = vmax.f32 %v1992_v38, 0.0 }
 0x4e0   : > { %v1995_v31 = vpop.f32.mrf.mxu0 }
 0x4e1   : > { %v1996_v34 = vadd.f32 %v1995_v31, %v5186_v29  ;;  %v2031_v43 = vmax.f32 %v1994_v32, 0.0 }
 0x4e2   : > { %v1997_v39 = vpop.f32.mrf.mxu0 }
 0x4e3   : > { %v1998_v41 = vadd.f32 %v1997_v39, %v5183_v28  ;;  %v2032_v21 = vmax.f32 %v1996_v34, 0.0 }
 0x4e4   : > { %v2001_v42 = vpop.f32.mrf.mxu0 }
 0x4e5   : > { %v2033_v40 = vmax.f32 %v1998_v41, 0.0  ;;  %v2046_v49 = vpack.c.bf16 %v2032_v21, %v2030_v45  ;;  %v2002_v52 = vadd.f32 %v2001_v42, %v5186_v29 }
 0x4e6   : > { %v2003_v47 = vpop.f32.mrf.mxu0 }
 0x4e7   : > { %v2047_v48 = vpack.c.bf16 %v2033_v40, %v2031_v43  ;;  %v2004_v54 = vadd.f32 %v2003_v47, %v5183_v28  ;;  %v2034_v9 = vmax.f32 %v2002_v52, 0.0 }
 0x4e8   : > { %v2005_v53 = vpop.f32.mrf.mxu0 }
 0x4e9   : > { %v2006_v57 = vadd.f32 %v2005_v53, %v5186_v29  ;;  %2294 = vmatprep.mubr.bf16.mxu1 %v2047_v48  ;;  %2868 = vmatprep.mubr.bf16.mxu0 %v2047_v48  ;;  %v2035_v15 = vmax.f32 %v2004_v54, 0.0 }
 0x4ea   : > { %v2007_v58 = vpop.f32.mrf.mxu0  ;;  %2295 = vmatmul.mubr.bf16.vlgmr.msra.gmra.mxu1 %v2046_v49  ;;  %2869 = vmatmul.mubr.bf16.vlgmr.msra.gmra.mxu0 %v2046_v49 }
 0x4eb   : > { %v2008_v59 = vadd.f32 %v2007_v58, %v5183_v28  ;;  %3757 = vmatpush1.bf16.msra.mxu1 %v5078_v4  ;;  %v2036_v10 = vmax.f32 %v2006_v57, 0.0 }
 0x4ec   : > { %v2011_v13 = vpop.f32.mrf.mxu0  ;;  %3742 = vmatprep.subr.bf16.mxu1 %v5080_v8 }
 0x4ed   : > { %v2037_v19 = vmax.f32 %v2008_v59, 0.0  ;;  %v2048_v27 = vpack.c.bf16 %v2036_v10, %v2034_v9  ;;  %v2012_v30 = vadd.f32 %v2011_v13, %v5186_v29 }
 0x4ee   : > { %v2013_v20 = vpop.f32.mrf.mxu0 }
 0x4ef   : > { %v2049_v25 = vpack.c.bf16 %v2037_v19, %v2035_v15  ;;  %3758 = vmatpush1.bf16.msra.mxu1 %v5085_v14  ;;  %v2014_v32 = vadd.f32 %v2013_v20, %v5183_v28  ;;  %v2038_v14 = vmax.f32 %v2012_v30, 0.0 }
 0x4f0   : > { %v2015_v31 = vpop.f32.mrf.mxu0  ;;  %3743 = vmatprep.subr.bf16.mxu1 %v5088_v16 }
 0x4f1   : > { %v2016_v4 = vadd.f32 %v2015_v31, %v5186_v29  ;;  %2304 = vmatprep.mubr.bf16.mxu1 %v2049_v25  ;;  %2878 = vmatprep.mubr.bf16.mxu0 %v2049_v25  ;;  %v2039_v41 = vmax.f32 %v2014_v32, 0.0 }
 0x4f2   : > { %v2017_v34 = vpop.f32.mrf.mxu0  ;;  %2305 = vmatmul.mubr.bf16.gmra.mxu1 %v2048_v27  ;;  %2879 = vmatmul.mubr.bf16.gmra.mxu0 %v2048_v27 }
 0x4f3   : > { %v2018_v8 = vadd.f32 %v2017_v34, %v5183_v28  ;;  %3759 = vmatpush1.bf16.msra.mxu1 %v5093_v24  ;;  %v2040_v38 = vmax.f32 %v2016_v4, 0.0 }
 0x4f4   : > { %v2021_v39 = vpop.f32.mrf.mxu0  ;;  %3744 = vmatprep.subr.bf16.mxu1 %v5096_v26 }
 0x4f5   : > { %v2041_v16 = vmax.f32 %v2018_v8, 0.0  ;;  %v2050_v43 = vpack.c.bf16 %v2040_v38, %v2038_v14  ;;  %v2022_v40 = vadd.f32 %v2021_v39, %v5186_v29 }
 0x4f6   : > { %v2023_v21 = vpop.f32.mrf.mxu0 }
 0x4f7   : > { %v2051_v42 = vpack.c.bf16 %v2041_v16, %v2039_v41  ;;  %3760 = vmatpush1.bf16.msra.mxu1 %v5101_v33  ;;  %v2024_v47 = vadd.f32 %v2023_v21, %v5183_v28  ;;  %v2042_v49 = vmax.f32 %v2022_v40, 0.0 }
 0x4f8   : > { %v2025_v45 = vpop.f32.mrf.mxu0  ;;  %3745 = vmatprep.subr.bf16.mxu1 %v5104_v35 }
 0x4f9   : > { %v2026_v24 = vadd.f32 %v2025_v45, %v5186_v29  ;;  %2314 = vmatprep.mubr.bf16.mxu1 %v2051_v42  ;;  %v2043_v33 = vmax.f32 %v2024_v47, 0.0 }
 0x4fa   : > { %v2027_v48 = vpop.f32.mrf.mxu0  ;;  %2315 = vmatmul.mubr.bf16.gmra.mxu1 %v2050_v43 }
 0x4fb   : > { %v2028_v26 = vadd.f32 %v2027_v48, %v5183_v28  ;;  %3761 = vmatpush1.bf16.msra.mxu1 %v5109_v44  ;;  %v2044_v52 = vmax.f32 %v2026_v24, 0.0  ;;  %v2090_v44 = vld [vmem:[#allocation14 + $0xa] sm:$0x3] }
 0x4fc   : > { %3746 = vmatprep.subr.bf16.mxu1 %v5112_v46  ;;  %v2664_v46 = vld [vmem:[#allocation14 + $0xc] sm:$0x3] }
 0x4fd   : > { %v2045_v53 = vmax.f32 %v2028_v26, 0.0  ;;  %v2052_v35 = vpack.c.bf16 %v2044_v52, %v2042_v49 }
 0x4ff   : > { %v2053_v54 = vpack.c.bf16 %v2045_v53, %v2043_v33  ;;  %3762 = vmatpush1.bf16.msra.mxu1 %v5117_v55  ;;  %v5236_v55 = vrot.slane %v2090_v44, %v5033_v37 }
 0x500   : > { %3747 = vmatprep.subr.bf16.mxu1 %v5120_v56  ;;  %v5239_v56 = vrot.slane %v2664_v46, %v5033_v37 }
 0x501   : > { %2324 = vmatprep.mubr.bf16.mxu1 %v2053_v54 }
 0x502   : > { %2325 = vmatmul.mubr.bf16.gmra.mxu1 %v2052_v35 }
 0x503   : > { %3763 = vmatpush1.bf16.msra.mxu1 %v5123_v51  ;;  %2888 = vmatprep.mubr.bf16.mxu1 %v2051_v42 }
 0x504   : > { %3748 = vmatprep.subr.bf16.mxu1 %v5126_v60 }
 0x507   : > { %3764 = vmatpush1.bf16.msra.mxu1 %v5129_v50  ;;  %v5242_v50 = vrot.slane %v2090_v44, %v5031_v36 }
 0x508   : > { %3749 = vmatprep.subr.bf16.mxu1 %v5132_v61  ;;  %v5245_v61 = vrot.slane %v2664_v46, %v5031_v36 }
 0x50b   : > { %3765 = vmatpush2.bf16.msra.mxu1 %v5135_v62 }
 0x50c   : > { %3750 = vmatprep.subr.bf16.mxu1 %v5138_v63 }
 0x50f   : > { %3766 = vmatpush2.bf16.msra.mxu1 %v5141_v0 }
 0x510   : > { %3751 = vmatprep.subr.bf16.mxu1 %v5144_v1 }
 0x513   : > { %3767 = vmatpush2.bf16.msra.mxu1 %v5147_v2 }
 0x514   : > { %3752 = vmatprep.subr.bf16.mxu1 %v5150_v3 }
 0x517   : > { %3768 = vmatpush2.bf16.msra.mxu1 %v5153_v6 }
 0x518   : > { %3753 = vmatprep.subr.bf16.mxu1 %v5156_v7 }
 0x51b   : > { %3769 = vmatpush2.bf16.msra.mxu1 %v5159_v5 }
 0x51c   : > { %3754 = vmatprep.subr.bf16.mxu1 %v5163_v11 }
 0x51f   : > { %3770 = vmatpush2.bf16.msra.mxu1 %v5165_v12 }
 0x520   : > { %3755 = vmatprep.subr.bf16.mxu1 %v5169_v17 }
 0x523   : > { %3771 = vmatpush2.bf16.msra.mxu1 %v5171_v18 }
 0x524   : > { %3756 = vmatprep.subr.bf16.mxu1 %v5175_v22 }
 0x527   : > { %3772 = vmatpush2.bf16.msra.mxu1 %v5177_v23 }
 0x52a   : > { %2889 = vmatmul.mubr.bf16.vlgmr.msra.gmra.mxu1 %v2050_v43 }
 0x52b   : > { %2898 = vmatprep.mubr.bf16.mxu1 %v2053_v54 }
 0x532   : > { %2899 = vmatmul.mubr.bf16.gmra.mxu1 %v2052_v35 }
 0x5aa   : > { %v2296_v51 = vpop.f32.mrf.mxu1  ;;  %v2870_v60 = vpop.f32.mrf.mxu0 }
 0x5ab   : > { %v2297_v62 = vadd.f32 %v2296_v51, %v5236_v55  ;;  %v2871_v63 = vadd.f32 %v2870_v60, %v5239_v56 }
 0x5ac   : > { %v2298_v0 = vpop.f32.mrf.mxu1  ;;  %v2872_v1 = vpop.f32.mrf.mxu0 }
 0x5ad   : > { %vm2335_vm0 = vcmp.ge.f32.partialorder %v2297_v62, 0.0  ;;  %v2351_v2 = vmul.f32 0.01, %v2297_v62  ;;  %vm2909_vm1 = vcmp.ge.f32.partialorder %v2871_v63, 0.0  ;;  %v2925_v3 = vmul.f32 0.01, %v2871_v63 }
 0x5ae   : > { %v2299_v37 = vadd.f32 %v2298_v0, %v5242_v50  ;;  %v2873_v6 = vadd.f32 %v2872_v1, %v5245_v61  ;;  %v2300_v7 = vpop.f32.mrf.mxu1  ;;  %v2874_v5 = vpop.f32.mrf.mxu0 }
 0x5af   : > { %v5251_v11 = vsel %vm2335_vm0, %v2297_v62, %v2351_v2  ;;  %v5253_v36 = vsel %vm2909_vm1, %v2871_v63, %v2925_v3  ;;  %v2301_v12 = vadd.f32 %v2300_v7, %v5236_v55  ;;  %v2875_v17 = vadd.f32 %v2874_v5, %v5239_v56 }
 0x5b0   : > { %v2399_v18 = vmul.f32 1.442695, %v5251_v11  ;;  %v2973_v22 = vmul.f32 1.442695, %v5253_v36  ;;  %vm2336_vm2 = vcmp.ge.f32.partialorder %v2299_v37, 0.0  ;;  %vm2910_vm3 = vcmp.ge.f32.partialorder %v2873_v6, 0.0  ;;  %v2302_v29 = vpop.f32.mrf.mxu1  ;;  %v2876_v58 = vpop.f32.mrf.mxu0 }
 0x5b1   : > { %v2352_v23 = vmul.f32 0.01, %v2299_v37  ;;  %v2926_v28 = vmul.f32 0.01, %v2873_v6  ;;  %vm2337_vm4 = vcmp.ge.f32.partialorder %v2301_v12, 0.0  ;;  %vm2911_vm5 = vcmp.ge.f32.partialorder %v2875_v17, 0.0 }
 0x5b2   : > { %4254 = vpow2.f32 %v2399_v18  ;;  %v2353_v57 = vmul.f32 0.01, %v2301_v12  ;;  %v2927_v10 = vmul.f32 0.01, %v2875_v17  ;;  %v2303_v25 = vadd.f32 %v2302_v29, %v5242_v50  ;;  %v2306_v30 = vpop.f32.mrf.mxu1  ;;  %v2880_v32 = vpop.f32.mrf.mxu0 }
 0x5b3   : > { %4256 = vpow2.f32 %v2973_v22  ;;  %v5259_v59 = vsel %vm2336_vm2, %v2299_v37, %v2352_v23  ;;  %v5261_v9 = vsel %vm2910_vm3, %v2873_v6, %v2926_v28  ;;  %v2877_v27 = vadd.f32 %v2876_v58, %v5245_v61 }
 0x5b4   : > { %v2401_v13 = vmul.f32 1.442695, %v5259_v59  ;;  %v2975_v15 = vmul.f32 1.442695, %v5261_v9  ;;  %v5265_v19 = vsel %vm2337_vm4, %v2301_v12, %v2353_v57  ;;  %v5267_v20 = vsel %vm2911_vm5, %v2875_v17, %v2927_v10  ;;  %v2308_v41 = vpop.f32.mrf.mxu1  ;;  %v2882_v35 = vpop.f32.mrf.mxu0 }
 0x5b5   : > { %v2403_v31 = vmul.f32 1.442695, %v5265_v19  ;;  %v2977_v4 = vmul.f32 1.442695, %v5267_v20  ;;  %vm2338_vm6 = vcmp.ge.f32.partialorder %v2303_v25, 0.0  ;;  %vm2912_vm7 = vcmp.ge.f32.partialorder %v2877_v27, 0.0 }
 0x5b6   : > { %4258 = vpow2.f32 %v2401_v13  ;;  %v2354_v34 = vmul.f32 0.01, %v2303_v25  ;;  %v2928_v8 = vmul.f32 0.01, %v2877_v27  ;;  %v2307_v14 = vadd.f32 %v2306_v30, %v5236_v55  ;;  %v2310_v51 = vpop.f32.mrf.mxu1 }
 0x5b7   : > { %4260 = vpow2.f32 %v2975_v15  ;;  %v2881_v39 = vadd.f32 %v2880_v32, %v5239_v56  ;;  %v2309_v45 = vadd.f32 %v2308_v41, %v5242_v50  ;;  %v5291_v6 = vadd.f32 %v2882_v35, %v5245_v61 }
 0x5b8   : > { %4262 = vpow2.f32 %v2403_v31  ;;  %v5274_v38 = vsel %vm2338_vm6, %v2303_v25, %v2354_v34  ;;  %v5278_v21 = vsel %vm2912_vm7, %v2877_v27, %v2928_v8  ;;  %vm2339_vm8 = vcmp.ge.f32.partialorder %v2307_v14, 0.0 }
 0x5b9   : > { %4264 = vpow2.f32 %v2977_v4  ;;  %v2405_v16 = vmul.f32 1.442695, %v5274_v38  ;;  %v2979_v42 = vmul.f32 1.442695, %v5278_v21  ;;  %v2355_v43 = vmul.f32 0.01, %v2307_v14 }
 0x5ba   : > { %vm2913_vm9 = vcmp.ge.f32.partialorder %v2881_v39, 0.0  ;;  %v2929_v40 = vmul.f32 0.01, %v2881_v39  ;;  %v2356_v53 = vmul.f32 0.01, %v2309_v45  ;;  %vm2340_vm10 = vcmp.ge.f32.partialorder %v2309_v45, 0.0 }
 0x5bb   : > { %4266 = vpow2.f32 %v2405_v16  ;;  %v5282_v47 = vsel %vm2339_vm8, %v2307_v14, %v2355_v43  ;;  %v5296_v17 = vadd.f32 %v2310_v51, %v5236_v55  ;;  %vm2914_vm12 = vcmp.ge.f32.partialorder %v5291_v6, 0.0 }
 0x5bc   : > { %4268 = vpow2.f32 %v2979_v42  ;;  %v2407_v24 = vmul.f32 1.442695, %v5282_v47  ;;  %v5285_v48 = vsel %vm2913_vm9, %v2881_v39, %v2929_v40  ;;  %v5288_v0 = vsel %vm2340_vm10, %v2309_v45, %v2356_v53 }
 0x5bd   : > { %v2981_v49 = vmul.f32 1.442695, %v5285_v48  ;;  %v2409_v23 = vmul.f32 1.442695, %v5288_v0  ;;  %vm2383_vm13 = vcmp.gt.f32.partialorder %v5251_v11, 20.0  ;;  %vm2957_vm15 = vcmp.gt.f32.partialorder %v5253_v36, 20.0 }
 0x5be   : > { %4270 = vpow2.f32 %v2407_v24  ;;  %v2930_v14 = vmul.f32 0.01, %v5291_v6  ;;  %vm2384_vm1 = vcmp.gt.f32.partialorder %v5259_v59, 20.0  ;;  %vm2958_vm3 = vcmp.gt.f32.partialorder %v5261_v9, 20.0 }
 0x5bf   : > { %v4255_v26 = vpop.eup %4254  ;;  %4272 = vpow2.f32 %v2981_v49  ;;  %vm2385_vm5 = vcmp.gt.f32.partialorder %v5265_v19, 20.0  ;;  %vm2959_vm7 = vcmp.gt.f32.partialorder %v5267_v20, 20.0  ;;  %vm2386_vm9 = vcmp.gt.f32.partialorder %v5274_v38, 20.0 }
 0x5c0   : > { %v4257_v52 = vpop.eup %4256  ;;  %v2431_v33 = vadd.f32 1.0, %v4255_v26  ;;  %v2434_v46 = vmul.f32 -0.5, %v4255_v26  ;;  %v2437_v2 = vand.u32 2147483647, %v4255_v26 }
 0x5c1   : > { %v3005_v54 = vadd.f32 1.0, %v4257_v52  ;;  %v3008_v62 = vmul.f32 -0.5, %v4257_v52  ;;  %v3011_v5 = vand.u32 2147483647, %v4257_v52 }
 0x5c2   : > { %4274 = vlog2.f32 %v2431_v33  ;;  %v2435_v18 = vadd.f32 1.0, %v2434_v46  ;;  %vm5302_vm11 = vcmp.lt.f32.partialorder %v2437_v2, 0.0004427343 }
 0x5c3   : > { %v4259_v44 = vpop.eup %4258  ;;  %4276 = vlog2.f32 %v3005_v54  ;;  %v3009_v28 = vadd.f32 1.0, %v3008_v62  ;;  %vm5310_vm14 = vcmp.lt.f32.partialorder %v3011_v5, 0.0004427343 }
 0x5c4   : > { %v4261_v60 = vpop.eup %4260  ;;  %v2440_v63 = vadd.f32 1.0, %v4259_v44  ;;  %v2443_v3 = vmul.f32 -0.5, %v4259_v44  ;;  %v2446_v15 = vand.u32 2147483647, %v4259_v44  ;;  %v2436_v4 = vmul.f32 %v4255_v26, %v2435_v18 }
 0x5c5   : > { %v4263_v1 = vpop.eup %4262  ;;  %v3014_v37 = vadd.f32 1.0, %v4261_v60  ;;  %v3017_v22 = vmul.f32 -0.5, %v4261_v60  ;;  %v3020_v30 = vand.u32 2147483647, %v4261_v60  ;;  %v3010_v39 = vmul.f32 %v4257_v52, %v3009_v28 }
 0x5c6   : > { %v5293_v7 = vpop.eup %4264  ;;  %4278 = vlog2.f32 %v2440_v63  ;;  %v2449_v12 = vadd.f32 1.0, %v4263_v1  ;;  %v2452_v29 = vmul.f32 -0.5, %v4263_v1  ;;  %v2444_v13 = vadd.f32 1.0, %v2443_v3 }
 0x5c7   : > { %4280 = vlog2.f32 %v3014_v37  ;;  %v3023_v57 = vadd.f32 1.0, %v5293_v7  ;;  %v3026_v31 = vmul.f32 -0.5, %v5293_v7  ;;  %v3018_v34 = vadd.f32 1.0, %v3017_v22 }
 0x5c8   : > { %4282 = vlog2.f32 %v2449_v12  ;;  %v5300_v58 = vpop.eup %4266  ;;  %v2455_v8 = vand.u32 2147483647, %v4263_v1  ;;  %v2453_v41 = vadd.f32 1.0, %v2452_v29  ;;  %v5321_v43 = vmul.f32 %v4259_v44, %v2444_v13 }
 0x5c9   : > { %v5307_v25 = vpop.eup %4268  ;;  %4284 = vlog2.f32 %v3023_v57  ;;  %v2458_v32 = vadd.f32 1.0, %v5300_v58  ;;  %vm5323_vm0 = vcmp.lt.f32.partialorder %v2446_v15, 0.0004427343  ;;  %v3029_v45 = vand.u32 2147483647, %v5293_v7 }
 0x5ca   : > { %v3032_v16 = vadd.f32 1.0, %v5307_v25  ;;  %v2461_v24 = vmul.f32 -0.5, %v5300_v58  ;;  %vm5332_vm2 = vcmp.lt.f32.partialorder %v3020_v30, 0.0004427343  ;;  %v3027_v52 = vadd.f32 1.0, %v3026_v31 }
 0x5cb   : > { %4286 = vlog2.f32 %v2458_v32  ;;  %v5319_v42 = vpop.eup %4270  ;;  %v3035_v33 = vmul.f32 -0.5, %v5307_v25  ;;  %v3019_v35 = vmul.f32 %v4261_v60, %v3018_v34  ;;  %vm5339_vm4 = vcmp.lt.f32.partialorder %v2455_v8, 0.0004427343  ;;  %v2884_v32 = vpop.f32.mrf.mxu0 }
 0x5cc   : > { %4288 = vpow2.f32 %v2409_v23  ;;  %v5329_v26 = vpop.eup %4272  ;;  %v2467_v53 = vadd.f32 1.0, %v5319_v42  ;;  %v2464_v46 = vand.u32 2147483647, %v5300_v58  ;;  %v2454_v2 = vmul.f32 %v4263_v1, %v2453_v41  ;;  %v5382_v41 = vpop.f32.mrf.mxu1 }
 0x5cd   : > { %4290 = vlog2.f32 %v3032_v16  ;;  %v3041_v51 = vadd.f32 1.0, %v5329_v26  ;;  %v2470_v3 = vmul.f32 -0.5, %v5319_v42  ;;  %vm5347_vm6 = vcmp.lt.f32.partialorder %v3029_v45, 0.0004427343 }
 0x5ce   : > { %4292 = vlog2.f32 %v2467_v53  ;;  %v2462_v60 = vadd.f32 1.0, %v2461_v24  ;;  %v3038_v12 = vand.u32 2147483647, %v5307_v25  ;;  %v3028_v22 = vmul.f32 %v5293_v7, %v3027_v52  ;;  %v5426_v44 = vpop.f32.mrf.mxu1 }
 0x5cf   : > { %v4275_v54 = vpop.eup %4274  ;;  %4294 = vlog2.f32 %v3041_v51  ;;  %v3036_v1 = vadd.f32 1.0, %v3035_v33  ;;  %v2473_v23 = vand.u32 2147483647, %v5319_v42  ;;  %vm5362_vm8 = vcmp.lt.f32.partialorder %v2464_v46, 0.0004427343 }
 0x5d0   : > { %v4277_v62 = vpop.eup %4276  ;;  %v2433_v63 = vmul.f32 0.6931472, %v4275_v54  ;;  %v3044_v10 = vmul.f32 -0.5, %v5329_v26  ;;  %v5370_v7 = vsel %vm2914_vm12, %v5291_v6, %v2930_v14  ;;  %v2471_v31 = vadd.f32 1.0, %v2470_v3 }
 0x5d1   : > { %v3007_v37 = vmul.f32 0.6931472, %v4277_v62  ;;  %vm5377_vm10 = vcmp.lt.f32.partialorder %v3038_v12, 0.0004427343  ;;  %v3047_v14 = vand.u32 2147483647, %v5329_v26  ;;  %v5409_v33 = vadd.f32 %v2884_v32, %v5239_v56 }
 0x5d2   : > { %v2439_v18 = vsel %vm5302_vm11, %v2436_v4, %v2433_v63  ;;  %vm2960_vm11 = vcmp.gt.f32.partialorder %v5278_v21, 20.0  ;;  %vm2341_vm12 = vcmp.ge.f32.partialorder %v5296_v17, 0.0  ;;  %v2357_v52 = vmul.f32 0.01, %v5296_v17 }
 0x5d3   : > { %v4279_v28 = vpop.eup %4278  ;;  %v2575_v29 = vsel %vm2383_vm13, %v5251_v11, %v2439_v18  ;;  %v3013_v57 = vsel %vm5310_vm14, %v3010_v39, %v3007_v37  ;;  %v2463_v39 = vmul.f32 %v5300_v58, %v2462_v60  ;;  %v2983_v58 = vmul.f32 1.442695, %v5370_v7 }
 0x5d4   : > { %v4281_v15 = vpop.eup %4280  ;;  %v2591_v30 = vadd.f32 0.001, %v2575_v29  ;;  %v3149_v11 = vsel %vm2957_vm15, %v5253_v36, %v3013_v57  ;;  %v2442_v27 = vmul.f32 0.6931472, %v4279_v28  ;;  %vm5403_vm13 = vcmp.lt.f32.partialorder %v2473_v23, 0.0004427343  ;;  %v2886_v28 = vpop.f32.mrf.mxu0 }
 0x5d5   : > { %v4283_v4 = vpop.eup %4282  ;;  %v3165_v34 = vadd.f32 0.001, %v3149_v11  ;;  %v3016_v8 = vmul.f32 0.6931472, %v4281_v15  ;;  %vm2387_vm14 = vcmp.gt.f32.partialorder %v5282_v47, 20.0  ;;  %vm2961_vm15 = vcmp.gt.f32.partialorder %v5285_v48, 20.0  ;;  %v5461_v29 = vpop.f32.mrf.mxu1 }
 0x5d6   : > { %2607 = vst [vmem:[%s5385_s29] sm:$0xff] %v2591_v30  ;;  %v2448_v36 = vsel %vm5323_vm0, %v5321_v43, %v2442_v27  ;;  %v2451_v16 = vmul.f32 0.6931472, %v4283_v4  ;;  %v4285_v45 = vpop.eup %4284  ;;  %4296 = vpow2.f32 %v2983_v58  ;;  %v3037_v3 = vmul.f32 %v5307_v25, %v3036_v1 }
 0x5d7   : > { %3181 = vst [vmem:[%s5395_s23] sm:$0xff] %v3165_v34  ;;  %v2576_v24 = vsel %vm2384_vm1, %v5259_v59, %v2448_v36  ;;  %v3022_v40 = vsel %vm5332_vm2, %v3019_v35, %v3016_v8  ;;  %v3025_v49 = vmul.f32 0.6931472, %v4285_v45  ;;  %v2472_v60 = vmul.f32 %v5319_v42, %v2471_v31 }
 0x5d8   : > { %v2592_v53 = vadd.f32 0.001, %v2576_v24  ;;  %v3150_v54 = vsel %vm2958_vm3, %v5261_v9, %v3022_v40  ;;  %v2457_v59 = vsel %vm5339_vm4, %v2454_v2, %v2451_v16  ;;  %v4287_v35 = vpop.eup %4286  ;;  %v5424_v9 = vsel %vm2341_vm12, %v5296_v17, %v2357_v52 }
 0x5d9   : > { %v3166_v46 = vadd.f32 0.001, %v3150_v54  ;;  %v2577_v51 = vsel %vm2385_vm5, %v5265_v19, %v2457_v59  ;;  %v5431_v62 = vpop.eup %4288  ;;  %v3031_v19 = vsel %vm5347_vm6, %v3028_v22, %v3025_v49  ;;  %v2460_v2 = vmul.f32 0.6931472, %v4287_v35 }
 0x5da   : > { %2608 = vst [vmem:[%s5385_s29 + $0x8] sm:$0xff] %v2592_v53  ;;  %v2593_v63 = vadd.f32 0.001, %v2577_v51  ;;  %v4291_v37 = vpop.eup %4290  ;;  %v3151_v17 = vsel %vm2959_vm7, %v5267_v20, %v3031_v19  ;;  %v3045_v12 = vadd.f32 1.0, %v3044_v10  ;;  %v2476_v18 = vadd.f32 1.0, %v5431_v62 }
 0x5db   : > { %3182 = vst [vmem:[%s5395_s23 + $0x8] sm:$0xff] %v3166_v46  ;;  %v3167_v23 = vadd.f32 0.001, %v3151_v17  ;;  %v2466_v5 = vsel %vm5362_vm8, %v2463_v39, %v2460_v2  ;;  %v3034_v22 = vmul.f32 0.6931472, %v4291_v37  ;;  %v4293_v20 = vpop.eup %4292  ;;  %vm2915_vm1 = vcmp.ge.f32.partialorder %v5409_v33, 0.0 }
 0x5dc   : > { %2609 = vst [vmem:[%s5385_s29 + $0x10] sm:$0xff] %v2593_v63  ;;  %v2411_v25 = vmul.f32 1.442695, %v5424_v9  ;;  %v2578_v42 = vsel %vm2386_vm9, %v5274_v38, %v2466_v5  ;;  %vm5456_vm0 = vcmp.lt.f32.partialorder %v3047_v14, 0.0004427343  ;;  %4298 = vlog2.f32 %v2476_v18  ;;  %v4295_v57 = vpop.eup %4294 }
 0x5dd   : > { %3183 = vst [vmem:[%s5395_s23 + $0x10] sm:$0xff] %v3167_v23  ;;  %v2594_v13 = vadd.f32 0.001, %v2578_v42  ;;  %v3040_v10 = vsel %vm5377_vm10, %v3037_v3, %v3034_v22  ;;  %v2469_v38 = vmul.f32 0.6931472, %v4293_v20  ;;  %v3046_v11 = vmul.f32 %v5329_v26, %v3045_v12 }
 0x5de   : > { %4300 = vpow2.f32 %v2411_v25  ;;  %v3152_v15 = vsel %vm2960_vm11, %v5278_v21, %v3040_v10  ;;  %v3043_v30 = vmul.f32 0.6931472, %v4295_v57  ;;  %v2931_v27 = vmul.f32 0.01, %v5409_v33 }
 0x5df   : > { %4605 = shalt.err (!%p4602_p5)
}
 0x5e0   : > { %s4606_s1 = scalar_lea.hbm %s5451_s18, 2048  ;;  %s4610_s30 = scalar_lea.hbm %s5951_s8, 8192 }
 0x5e1   : > { %p4607_p0 = scmp.ne.s32.totalorder %s5451_s18, %s4606_s1  ;;  %p4611_p8 = scmp.lt.s32.totalorder %s5451_s18, %s5951_s8 }
 0x5e2   : > { %p4612_p9 = scmp.lt.s32.totalorder %s4610_s30, %s4606_s1 }
 0x5e3   : > { %p4608_p2 = pnand %p4607_p0, %p6008_p13 }
 0x5e4   : > { %p4613_p10 = por %p4612_p9, %p4611_p8 }
 0x5e5   : > { %p4609_p4 = pneg %p4608_p2 }
 0x5e7   : > { %p4614_p12 = pnand %p4613_p10, %p4609_p4 }
 0x5e9   : > { %4617 = shalt.err (!%p4614_p12)
}
 0x5ea   : > { %s4743_s11 = smov 256   ;;  %s4744_s27 = smov 16   ;;  %2610 = vst [vmem:[%s5385_s29 + $0x18] sm:$0xff] %v2594_v13  ;;  %v3168_v21 = vadd.f32 0.001, %v3152_v15  ;;  %v2475_v26 = vsel %vm5403_vm13, %v2472_v60, %v2469_v38  ;;  %v2313_v31 = vadd.f32 %v5382_v41, %v5242_v50  ;;  %v2887_v32 = vadd.f32 %v2886_v28, %v5245_v61  ;;  %v2320_v6 = vpop.f32.mrf.mxu1  ;;  %v5530_v52 = vpop.eup %4296 }
 0x5eb   : > { %s6009_s28 = scalar_lea.sflag [#allocation4], %s4997_s3  ;;  %v2579_v4 = vsel %vm2387_vm14, %v5282_v47, %v2475_v26  ;;  %v3049_v34 = vsel %vm5456_vm0, %v3046_v11, %v3043_v30  ;;  %v5514_v8 = vsel %vm2915_vm1, %v5409_v33, %v2931_v27  ;;  %v2317_v39 = vadd.f32 %v5426_v44, %v5236_v55  ;;  %v4299_v2 = vpop.eup %4298  ;;  %s3202_s3 = sand.u32 1, %s4823_s19  }
 0x5ec   : > { %3803 = dma.vmem_to_hbm [thread:$0]  (%p6008_p13), %s5467_s22, 2048, %s5451_s18, %s6009_s28, %s4743_s11, %s4743_s11, %s4744_s27   ;;  %v2595_v14 = vadd.f32 0.001, %v2579_v4  ;;  %v3153_v41 = vsel %vm2961_vm15, %v5285_v48, %v3049_v34  ;;  %v2479_v47 = vmul.f32 -0.5, %v5431_v62  ;;  %v2985_v36 = vmul.f32 1.442695, %v5514_v8  ;;  %v2322_v48 = vpop.f32.mrf.mxu1  ;;  %v4301_v17 = vpop.eup %4300 }
 0x5ed   : > { %3184 = vst [vmem:[%s5395_s23 + $0x18] sm:$0xff] %v3168_v21  ;;  %v3169_v16 = vadd.f32 0.001, %v3153_v41  ;;  %vm2342_vm2 = vcmp.ge.f32.partialorder %v2313_v31, 0.0  ;;  %v2358_v58 = vmul.f32 0.01, %v2313_v31  ;;  %v2319_v43 = vadd.f32 %v5461_v29, %v5242_v50  ;;  %s5812_s1 = scalar_lea.hbm %s5952_s9, %s5429_s21 }
 0x5ee   : > { %vm2916_vm3 = vcmp.ge.f32.partialorder %v2887_v32, 0.0  ;;  %2611 = vst [vmem:[%s5385_s29 + $0x20] sm:$0xff] %v2595_v14  ;;  %4302 = vpow2.f32 %v2985_v36  ;;  %v2932_v45 = vmul.f32 0.01, %v2887_v32  ;;  %vm2343_vm4 = vcmp.ge.f32.partialorder %v2317_v39, 0.0  ;;  %v2326_v19 = vpop.f32.mrf.mxu1  ;;  %s3239_s18 = sshll.u32 %s5385_s29, 4  ;;  %s5814_s18 = int_to_ptr.vmem [resolvable:$true] %s3239_s18 }
 0x5ef   : > { %v2359_v24 = vmul.f32 0.01, %v2317_v39  ;;  %3185 = vst [vmem:[%s5395_s23 + $0x20] sm:$0xff] %v3169_v16  ;;  %v5526_v40 = vsel %vm2342_vm2, %v2313_v31, %v2358_v58  ;;  %v2321_v59 = vadd.f32 %v2320_v6, %v5236_v55  ;;  %v2480_v49 = vadd.f32 1.0, %v2479_v47  ;;  %s5830_s20 = scalar_lea.sflag [#allocation18], %s3202_s3  ;;  %s4745_s17 = smov [#allocation17]  }
 0x5f0   : > { %v2413_v33 = vmul.f32 1.442695, %v5526_v40  ;;  %v5533_v53 = vsel %vm2916_vm3, %v2887_v32, %v2932_v45  ;;  %v3050_v35 = vadd.f32 1.0, %v5530_v52  ;;  %v2482_v46 = vand.u32 2147483647, %v5431_v62  ;;  %v2328_v20 = vpop.f32.mrf.mxu1  ;;  %s4622_s30 = sshll.u32 %s4745_s17, 4  ;;  %s4623_s30 = int_to_ptr.vmem [resolvable:$false] %s4622_s30 }
 0x5f1   : > { %v5535_v54 = vsel %vm2343_vm4, %v2317_v39, %v2359_v24  ;;  %v2987_v51 = vmul.f32 1.442695, %v5533_v53  ;;  %vm2344_vm5 = vcmp.ge.f32.partialorder %v2319_v43, 0.0  ;;  %v2323_v63 = vadd.f32 %v2322_v48, %v5242_v50  ;;  %s4624_s4 = scalar_lea.vmem %s4623_s30, 4096  ;;  %p4625_p3 = scmp.lt.s32.totalorder %s5814_s18, %s4623_s30 }
 0x5f2   : > { %4304 = vpow2.f32 %v2413_v33  ;;  %v2415_v44 = vmul.f32 1.442695, %v5535_v54  ;;  %v2360_v3 = vmul.f32 0.01, %v2319_v43  ;;  %vm2345_vm6 = vcmp.ge.f32.partialorder %v2321_v59, 0.0  ;;  %v2330_v15 = vpop.f32.mrf.mxu1 }
 0x5f3   : > { %4306 = vlog2.f32 %v3050_v35  ;;  %v2361_v37 = vmul.f32 0.01, %v2321_v59  ;;  %v2478_v60 = vmul.f32 0.6931472, %v4299_v2  ;;  %v2481_v12 = vmul.f32 %v5431_v62, %v2480_v49 }
 0x5f4   : > { %4308 = vpow2.f32 %v2987_v51  ;;  %vm2483_vm7 = vcmp.lt.f32.partialorder %v2482_v46, 0.0004427343  ;;  %v2485_v18 = vadd.f32 1.0, %v4301_v17  ;;  %v5544_v23 = vsel %vm2344_vm5, %v2319_v43, %v2360_v3  ;;  %v2332_v39 = vpop.f32.mrf.mxu1 }
 0x5f5   : > { %4310 = vpow2.f32 %v2415_v44  ;;  %vm2388_vm8 = vcmp.gt.f32.partialorder %v5288_v0, 20.0  ;;  %v2484_v5 = vsel %vm2483_vm7, %v2481_v12, %v2478_v60  ;;  %v2417_v22 = vmul.f32 1.442695, %v5544_v23 }
 0x5f6   : > { %v5548_v25 = vsel %vm2345_vm6, %v2321_v59, %v2361_v37  ;;  %v2580_v42 = vsel %vm2388_vm8, %v5288_v0, %v2484_v5  ;;  %v3053_v1 = vmul.f32 -0.5, %v5530_v52  ;;  %4312 = vlog2.f32 %v2485_v18 }
 0x5f7   : > { %vm2346_vm9 = vcmp.ge.f32.partialorder %v2323_v63, 0.0  ;;  %v2596_v62 = vadd.f32 0.001, %v2580_v42  ;;  %v2488_v28 = vmul.f32 -0.5, %v4301_v17  ;;  %4314 = vpow2.f32 %v2417_v22 }
 0x5f8   : > { %v2419_v29 = vmul.f32 1.442695, %v5548_v25  ;;  %v2362_v57 = vmul.f32 0.01, %v2323_v63  ;;  %v2327_v13 = vadd.f32 %v2326_v19, %v5236_v55  ;;  %v3056_v38 = vand.u32 2147483647, %v5530_v52 }
 0x5f9   : > { %2612 = vst [vmem:[%s5385_s29 + $0x28] sm:$0xff] %v2596_v62  ;;  %v3054_v0 = vadd.f32 1.0, %v3053_v1  ;;  %v2491_v30 = vand.u32 2147483647, %v4301_v17  ;;  %v2489_v21 = vadd.f32 1.0, %v2488_v28  ;;  %vm2962_vm11 = vcmp.gt.f32.partialorder %v5370_v7, 20.0 }
 0x5fa   : > { %4316 = vpow2.f32 %v2419_v29  ;;  %v5559_v27 = vsel %vm2346_vm9, %v2323_v63, %v2362_v57  ;;  %vm2347_vm10 = vcmp.ge.f32.partialorder %v2327_v13, 0.0  ;;  %v2363_v31 = vmul.f32 0.01, %v2327_v13 }
 0x5fb   : > { %v5554_v10 = vpop.eup %4302  ;;  %v2421_v26 = vmul.f32 1.442695, %v5559_v27  ;;  %vm5563_vm12 = vcmp.lt.f32.partialorder %v3056_v38, 0.0004427343  ;;  %v3055_v14 = vmul.f32 %v5530_v52, %v3054_v0  ;;  %vm2389_vm13 = vcmp.gt.f32.partialorder %v5424_v9, 20.0 }
 0x5fc   : > { %v3059_v11 = vadd.f32 1.0, %v5554_v10  ;;  %v5567_v34 = vsel %vm2347_vm10, %v2327_v13, %v2363_v31  ;;  %v3062_v41 = vmul.f32 -0.5, %v5554_v10  ;;  %v2329_v36 = vadd.f32 %v2328_v20, %v5242_v50 }
 0x5fd   : > { %v2490_v45 = vmul.f32 %v4301_v17, %v2489_v21  ;;  %vm5575_vm14 = vcmp.lt.f32.partialorder %v2491_v30, 0.0004427343  ;;  %v5580_v43 = vadd.f32 %v2330_v15, %v5236_v55  ;;  %v2423_v33 = vmul.f32 1.442695, %v5567_v34  ;;  %v2890_v55 = vpop.f32.mrf.mxu1 }
 0x5fe   : > { %4318 = vlog2.f32 %v3059_v11  ;;  %v5587_v59 = vadd.f32 %v2332_v39, %v5242_v50  ;;  %v3065_v35 = vand.u32 2147483647, %v5554_v10  ;;  %v3063_v63 = vadd.f32 1.0, %v3062_v41 }
 0x5ff   : > { %v4305_v32 = vpop.eup %4304  ;;  %4320 = vpow2.f32 %v2421_v26  ;;  %v2364_v19 = vmul.f32 0.01, %v2329_v36  ;;  %vm2348_vm15 = vcmp.ge.f32.partialorder %v2329_v36, 0.0  ;;  %vm2963_vm0 = vcmp.gt.f32.partialorder %v5514_v8, 20.0 }
 0x600   : > { %v4307_v6 = vpop.eup %4306  ;;  %v2494_v47 = vadd.f32 1.0, %v4305_v32  ;;  %v2497_v46 = vmul.f32 -0.5, %v4305_v32  ;;  %v2500_v3 = vand.u32 2147483647, %v4305_v32  ;;  %v5601_v12 = vadd.f32 %v2890_v55, %v5239_v56 }
 0x601   : > { %v5573_v16 = vpop.eup %4308  ;;  %v3052_v58 = vmul.f32 0.6931472, %v4307_v6  ;;  %vm5604_vm1 = vcmp.lt.f32.partialorder %v3065_v35, 0.0004427343  ;;  %vm2349_vm2 = vcmp.ge.f32.partialorder %v5580_v43, 0.0  ;;  %v3064_v42 = vmul.f32 %v5554_v10, %v3063_v63 }
 0x602   : > { %v5582_v48 = vpop.eup %4310  ;;  %4322 = vlog2.f32 %v2494_v47  ;;  %v3068_v52 = vadd.f32 1.0, %v5573_v16  ;;  %v3071_v60 = vmul.f32 -0.5, %v5573_v16  ;;  %v2498_v18 = vadd.f32 1.0, %v2497_v46 }
 0x603   : > { %v3058_v49 = vsel %vm5563_vm12, %v3055_v14, %v3052_v58  ;;  %v2503_v51 = vadd.f32 1.0, %v5582_v48  ;;  %v4313_v2 = vpop.eup %4312  ;;  %v3074_v1 = vand.u32 2147483647, %v5573_v16  ;;  %v5617_v62 = vsel %vm2348_vm15, %v2329_v36, %v2364_v19 }
 0x604   : > { %v3154_v44 = vsel %vm2962_vm11, %v5370_v7, %v3058_v49  ;;  %4324 = vlog2.f32 %v3068_v52  ;;  %v5596_v37 = vpop.eup %4314  ;;  %v2487_v17 = vmul.f32 0.6931472, %v4313_v2  ;;  %vm5622_vm3 = vcmp.lt.f32.partialorder %v2500_v3, 0.0004427343 }
 0x605   : > { %v3170_v50 = vadd.f32 0.001, %v3154_v44  ;;  %4326 = vlog2.f32 %v2503_v51  ;;  %v2512_v5 = vadd.f32 1.0, %v5596_v37  ;;  %v2506_v57 = vmul.f32 -0.5, %v5582_v48 }
 0x606   : > { %4328 = vpow2.f32 %v2423_v33  ;;  %v2493_v20 = vsel %vm5575_vm14, %v2490_v45, %v2487_v17  ;;  %vm2390_vm4 = vcmp.gt.f32.partialorder %v5526_v40, 20.0  ;;  %v3072_v10 = vadd.f32 1.0, %v3071_v60  ;;  %v2892_v33 = vpop.f32.mrf.mxu1 }
 0x607   : > { %3186 = vst [vmem:[%s5395_s23 + $0x28] sm:$0xff] %v3170_v50  ;;  %v5610_v22 = vpop.eup %4316  ;;  %v2581_v28 = vsel %vm2389_vm13, %v5424_v9, %v2493_v20  ;;  %4330 = vlog2.f32 %v2512_v5  ;;  %v2515_v38 = vmul.f32 -0.5, %v5596_v37  ;;  %v2499_v30 = vmul.f32 %v4305_v32, %v2498_v18 }
 0x608   : > { %v2597_v13 = vadd.f32 0.001, %v2581_v28  ;;  %v2521_v15 = vadd.f32 1.0, %v5610_v22  ;;  %v2509_v11 = vand.u32 2147483647, %v5582_v48  ;;  %vm2964_vm5 = vcmp.gt.f32.partialorder %v5533_v53, 20.0  ;;  %v2894_v18 = vpop.f32.mrf.mxu1 }
 0x609   : > { %v2425_v9 = vmul.f32 1.442695, %v5617_v62  ;;  %v2365_v21 = vmul.f32 0.01, %v5580_v43  ;;  %vm5637_vm6 = vcmp.lt.f32.partialorder %v3074_v1, 0.0004427343  ;;  %v3073_v24 = vmul.f32 %v5573_v16, %v3072_v10 }
 0x60a   : > { %2613 = vst [vmem:[%s5385_s29 + $0x30] sm:$0xff] %v2597_v13  ;;  %v2518_v39 = vand.u32 2147483647, %v5596_v37  ;;  %4332 = vlog2.f32 %v2521_v15  ;;  %vm2391_vm7 = vcmp.gt.f32.partialorder %v5535_v54, 20.0  ;;  %v2507_v32 = vadd.f32 1.0, %v2506_v57 }
 0x60b   : > { %v4319_v0 = vpop.eup %4318  ;;  %4334 = vpow2.f32 %v2425_v9  ;;  %vm2350_vm8 = vcmp.ge.f32.partialorder %v5587_v59, 0.0  ;;  %v2516_v41 = vadd.f32 1.0, %v2515_v38  ;;  %v5650_v47 = vsel %vm2349_vm2, %v5580_v43, %v2365_v21 }
 0x60c   : > { %v5633_v26 = vpop.eup %4320  ;;  %v3061_v31 = vmul.f32 0.6931472, %v4319_v0  ;;  %v2366_v36 = vmul.f32 0.01, %v5587_v59  ;;  %vm5657_vm9 = vcmp.lt.f32.partialorder %v2509_v11, 0.0004427343  ;;  %v2508_v16 = vmul.f32 %v5582_v48, %v2507_v32  ;;  %v2896_v0 = vpop.f32.mrf.mxu1 }
 0x60d   : > { %v2530_v6 = vadd.f32 1.0, %v5633_v26  ;;  %vm5661_vm10 = vcmp.lt.f32.partialorder %v2518_v39, 0.0004427343  ;;  %v2524_v46 = vmul.f32 -0.5, %v5610_v22  ;;  %vm2392_vm11 = vcmp.gt.f32.partialorder %v5544_v23, 20.0 }
 0x60e   : > { %v3067_v14 = vsel %vm5604_vm1, %v3064_v42, %v3061_v31  ;;  %v5667_v51 = vsel %vm2350_vm8, %v5587_v59, %v2366_v36  ;;  %v2527_v55 = vand.u32 2147483647, %v5610_v22  ;;  %v2427_v44 = vmul.f32 1.442695, %v5650_v47 }
 0x60f   : > { %v4323_v58 = vpop.eup %4322  ;;  %v3155_v45 = vsel %vm2963_vm0, %v5514_v8, %v3067_v14  ;;  %4336 = vlog2.f32 %v2530_v6  ;;  %v2429_v63 = vmul.f32 1.442695, %v5667_v51  ;;  %v2517_v59 = vmul.f32 %v5596_v37, %v2516_v41 }
 0x610   : > { %v3171_v49 = vadd.f32 0.001, %v3155_v45  ;;  %v2496_v35 = vmul.f32 0.6931472, %v4323_v58  ;;  %v2533_v3 = vmul.f32 -0.5, %v5633_v26  ;;  %4338 = vpow2.f32 %v2427_v44  ;;  %v2900_v45 = vpop.f32.mrf.mxu1 }
 0x611   : > { %v4325_v8 = vpop.eup %4324  ;;  %v2933_v7 = vmul.f32 0.01, %v5601_v12  ;;  %vm2917_vm12 = vcmp.ge.f32.partialorder %v5601_v12, 0.0  ;;  %4340 = vpow2.f32 %v2429_v63  ;;  %v2893_v1 = vadd.f32 %v2892_v33, %v5245_v61 }
 0x612   : > { %v4327_v19 = vpop.eup %4326  ;;  %3187 = vst [vmem:[%s5395_s23 + $0x30] sm:$0xff] %v3171_v49  ;;  %v2502_v2 = vsel %vm5622_vm3, %v2499_v30, %v2496_v35  ;;  %v3070_v50 = vmul.f32 0.6931472, %v4325_v8  ;;  %v2525_v13 = vadd.f32 1.0, %v2524_v46  ;;  %vm5699_vm13 = vcmp.lt.f32.partialorder %v2527_v55, 0.0004427343 }
 0x613   : > { %v5679_v48 = vpop.eup %4328  ;;  %v2582_v17 = vsel %vm2390_vm4, %v5526_v40, %v2502_v2  ;;  %v2505_v60 = vmul.f32 0.6931472, %v4327_v19  ;;  %v5704_v15 = vsel %vm2917_vm12, %v5601_v12, %v2933_v7  ;;  %vm2393_vm14 = vcmp.gt.f32.partialorder %v5548_v25, 20.0 }
 0x614   : > { %v2598_v5 = vadd.f32 0.001, %v2582_v17  ;;  %v3076_v20 = vsel %vm5637_vm6, %v3073_v24, %v3070_v50  ;;  %v2539_v37 = vadd.f32 1.0, %v5679_v48  ;;  %v4331_v28 = vpop.eup %4330  ;;  %v2534_v30 = vadd.f32 1.0, %v2533_v3 }
 0x615   : > { %v3156_v42 = vsel %vm2964_vm5, %v5533_v53, %v3076_v20  ;;  %v2511_v40 = vsel %vm5657_vm9, %v2508_v16, %v2505_v60  ;;  %v2514_v38 = vmul.f32 0.6931472, %v4331_v28  ;;  %v2536_v11 = vand.u32 2147483647, %v5633_v26 }
 0x616   : > { %2614 = vst [vmem:[%s5385_s29 + $0x38] sm:$0xff] %v2598_v5  ;;  %v3172_v29 = vadd.f32 0.001, %v3156_v42  ;;  %v2583_v57 = vsel %vm2391_vm7, %v5535_v54, %v2511_v40  ;;  %4342 = vlog2.f32 %v2539_v37  ;;  %v2989_v54 = vmul.f32 1.442695, %v5704_v15  ;;  %v2902_v5 = vpop.f32.mrf.mxu1 }
 0x617   : > { %v2599_v10 = vadd.f32 0.001, %v2583_v57  ;;  %v4333_v9 = vpop.eup %4332  ;;  %v2520_v21 = vsel %vm5661_vm10, %v2517_v59, %v2514_v38  ;;  %vm2918_vm15 = vcmp.ge.f32.partialorder %v2893_v1, 0.0  ;;  %v2934_v31 = vmul.f32 0.01, %v2893_v1 }
 0x618   : > { %3188 = vst [vmem:[%s5395_s23 + $0x38] sm:$0xff] %v3172_v29  ;;  %v2895_v4 = vadd.f32 %v2894_v18, %v5239_v56  ;;  %v5714_v12 = vpop.eup %4334  ;;  %v2584_v39 = vsel %vm2392_vm11, %v5544_v23, %v2520_v21  ;;  %v2523_v32 = vmul.f32 0.6931472, %v4333_v9  ;;  %v2526_v6 = vmul.f32 %v5610_v22, %v2525_v13 }
 0x619   : > { %2615 = vst [vmem:[%s5385_s29 + $0x40] sm:$0xff] %v2599_v10  ;;  %4344 = vpow2.f32 %v2989_v54  ;;  %v2600_v14 = vadd.f32 0.001, %v2584_v39  ;;  %v2542_v41 = vmul.f32 -0.5, %v5679_v48  ;;  %v2548_v36 = vadd.f32 1.0, %v5714_v12 }
 0x61a   : > { %v2897_v58 = vadd.f32 %v2896_v0, %v5245_v61  ;;  %v2529_v52 = vsel %vm5699_vm13, %v2526_v6, %v2523_v32  ;;  %v5725_v33 = vsel %vm2918_vm15, %v2893_v1, %v2934_v31  ;;  %vm2919_vm0 = vcmp.ge.f32.partialorder %v2895_v4, 0.0 }
 0x61b   : > { %v2935_v23 = vmul.f32 0.01, %v2895_v4  ;;  %2616 = vst [vmem:[%s5385_s29 + $0x48] sm:$0xff] %v2600_v14  ;;  %v2585_v22 = vsel %vm2393_vm14, %v5548_v25, %v2529_v52  ;;  %v2535_v35 = vmul.f32 %v5633_v26, %v2534_v30  ;;  %4346 = vlog2.f32 %v2548_v36 }
 0x61c   : > { %v4337_v24 = vpop.eup %4336  ;;  %v2601_v43 = vadd.f32 0.001, %v2585_v22  ;;  %vm2537_vm1 = vcmp.lt.f32.partialorder %v2536_v11, 0.0004427343  ;;  %v2901_v8 = vadd.f32 %v2900_v45, %v5239_v56  ;;  %vm2394_vm2 = vcmp.gt.f32.partialorder %v5559_v27, 20.0 }
 0x61d   : > { %v2532_v49 = vmul.f32 0.6931472, %v4337_v24  ;;  %v5732_v46 = vsel %vm2919_vm0, %v2895_v4, %v2935_v23  ;;  %v2543_v55 = vadd.f32 1.0, %v2542_v41  ;;  %v2991_v44 = vmul.f32 1.442695, %v5725_v33  ;;  %v5737_v63 = vpop.eup %4338 }
 0x61e   : > { %2617 = vst [vmem:[%s5385_s29 + $0x50] sm:$0xff] %v2601_v43  ;;  %v2993_v26 = vmul.f32 1.442695, %v5732_v46  ;;  %vm2920_vm3 = vcmp.ge.f32.partialorder %v2897_v58, 0.0  ;;  %v2936_v19 = vmul.f32 0.01, %v2897_v58  ;;  %v5744_v3 = vpop.eup %4340  ;;  %v2903_v30 = vadd.f32 %v2902_v5, %v5245_v61 }
 0x61f   : > { %v2538_v16 = vsel %vm2537_vm1, %v2535_v35, %v2532_v49  ;;  %v2545_v50 = vand.u32 2147483647, %v5679_v48  ;;  %v2557_v59 = vadd.f32 1.0, %v5737_v63  ;;  %4348 = vpow2.f32 %v2991_v44 }
 0x620   : > { %v2586_v25 = vsel %vm2394_vm2, %v5559_v27, %v2538_v16  ;;  %v5746_v17 = vsel %vm2920_vm3, %v2897_v58, %v2936_v19  ;;  %v2937_v60 = vmul.f32 0.01, %v2901_v8  ;;  %v2551_v18 = vmul.f32 -0.5, %v5714_v12 }
 0x621   : > { %v2602_v2 = vadd.f32 0.001, %v2586_v25  ;;  %4350 = vlog2.f32 %v2557_v59  ;;  %v2566_v27 = vadd.f32 1.0, %v5744_v3  ;;  %vm2921_vm4 = vcmp.ge.f32.partialorder %v2901_v8, 0.0 }
 0x622   : > { %v2544_v37 = vmul.f32 %v5679_v48, %v2543_v55  ;;  %4352 = vpow2.f32 %v2993_v26  ;;  %vm2546_vm5 = vcmp.lt.f32.partialorder %v2545_v50, 0.0004427343  ;;  %v2995_v42 = vmul.f32 1.442695, %v5746_v17  ;;  %v2904_v48 = vpop.f32.mrf.mxu1 }
 0x623   : > { %v4343_v7 = vpop.eup %4342  ;;  %2618 = vst [vmem:[%s5385_s29 + $0x58] sm:$0xff] %v2602_v2  ;;  %4354 = vlog2.f32 %v2566_v27  ;;  %vm2395_vm6 = vcmp.gt.f32.partialorder %v5567_v34, 20.0  ;;  %v5754_v1 = vsel %vm2921_vm4, %v2901_v8, %v2937_v60  ;;  %v2552_v57 = vadd.f32 1.0, %v2551_v18 }
 0x624   : > { %v2541_v20 = vmul.f32 0.6931472, %v4343_v7  ;;  %4356 = vpow2.f32 %v2995_v42  ;;  %v2997_v13 = vmul.f32 1.442695, %v5754_v1  ;;  %v2554_v38 = vand.u32 2147483647, %v5714_v12  ;;  %v2906_v31 = vpop.f32.mrf.mxu1 }
 0x625   : > { %v2560_v0 = vmul.f32 -0.5, %v5737_v63  ;;  %v2569_v54 = vmul.f32 -0.5, %v5744_v3  ;;  %v2553_v9 = vmul.f32 %v5714_v12, %v2552_v57  ;;  %vm2922_vm7 = vcmp.ge.f32.partialorder %v2903_v30, 0.0 }
 0x626   : > { %v2547_v40 = vsel %vm2546_vm5, %v2544_v37, %v2541_v20  ;;  %v5756_v28 = vpop.eup %4344  ;;  %4358 = vpow2.f32 %v2997_v13  ;;  %v2905_v21 = vadd.f32 %v2904_v48, %v5239_v56  ;;  %vm2396_vm8 = vcmp.gt.f32.partialorder %v5617_v62, 20.0 }
 0x627   : > { %v2587_v29 = vsel %vm2395_vm6, %v5567_v34, %v2547_v40  ;;  %v3077_v53 = vadd.f32 1.0, %v5756_v28  ;;  %vm2555_vm9 = vcmp.lt.f32.partialorder %v2554_v38, 0.0004427343  ;;  %v2938_v4 = vmul.f32 0.01, %v2903_v30 }
 0x628   : > { %v2603_v10 = vadd.f32 0.001, %v2587_v29  ;;  %v4347_v11 = vpop.eup %4346  ;;  %vm2397_vm10 = vcmp.gt.f32.partialorder %v5650_v47, 20.0  ;;  %v2561_v32 = vadd.f32 1.0, %v2560_v0  ;;  %v2563_v6 = vand.u32 2147483647, %v5737_v63 }
 0x629   : > { %4360 = vlog2.f32 %v3077_v53  ;;  %v2550_v34 = vmul.f32 0.6931472, %v4347_v11  ;;  %v2570_v41 = vadd.f32 1.0, %v2569_v54  ;;  %v5772_v36 = vsel %vm2922_vm7, %v2903_v30, %v2938_v4 }
 0x62a   : > { %2619 = vst [vmem:[%s5385_s29 + $0x60] sm:$0xff] %v2603_v10  ;;  %v2907_v12 = vadd.f32 %v2906_v31, %v5245_v61  ;;  %v2999_v45 = vmul.f32 1.442695, %v5772_v36  ;;  %v2939_v24 = vmul.f32 0.01, %v2905_v21  ;;  %v3080_v22 = vmul.f32 -0.5, %v5756_v28 }
 0x62b   : > { %v2556_v39 = vsel %vm2555_vm9, %v2553_v9, %v2550_v34  ;;  %v2572_v23 = vand.u32 2147483647, %v5744_v3  ;;  %vm2923_vm11 = vcmp.ge.f32.partialorder %v2905_v21, 0.0  ;;  %v2562_v61 = vmul.f32 %v5737_v63, %v2561_v32 }
 0x62c   : > { %v2588_v14 = vsel %vm2396_vm8, %v5617_v62, %v2556_v39  ;;  %v5775_v56 = vpop.eup %4348  ;;  %vm2564_vm12 = vcmp.lt.f32.partialorder %v2563_v6, 0.0004427343  ;;  %4362 = vpow2.f32 %v2999_v45  ;;  %v2571_v8 = vmul.f32 %v5744_v3, %v2570_v41 }
 0x62d   : > { %v2604_v58 = vadd.f32 0.001, %v2588_v14  ;;  %v3086_v49 = vadd.f32 1.0, %v5775_v56  ;;  %v2940_v55 = vmul.f32 0.01, %v2907_v12  ;;  %v5787_v26 = vsel %vm2923_vm11, %v2905_v21, %v2939_v24 }
 0x62e   : > { %v4351_v52 = vpop.eup %4350  ;;  %vm2924_vm13 = vcmp.ge.f32.partialorder %v2907_v12, 0.0  ;;  %vm2573_vm14 = vcmp.lt.f32.partialorder %v2572_v23, 0.0004427343  ;;  %v3081_v2 = vadd.f32 1.0, %v3080_v22  ;;  %vm2398_vm15 = vcmp.gt.f32.partialorder %v5667_v51, 20.0 }
 0x62f   : > { %v5781_v62 = vpop.eup %4352  ;;  %2620 = vst [vmem:[%s5385_s29 + $0x68] sm:$0xff] %v2604_v58  ;;  %v2559_v35 = vmul.f32 0.6931472, %v4351_v52  ;;  %4364 = vlog2.f32 %v3086_v49  ;;  %v3083_v3 = vand.u32 2147483647, %v5756_v28  ;;  %v5804_v27 = vsel %vm2924_vm13, %v2907_v12, %v2940_v55 }
 0x630   : > { %v4355_v43 = vpop.eup %4354  ;;  %v3095_v16 = vadd.f32 1.0, %v5781_v62  ;;  %v3082_v42 = vmul.f32 %v5756_v28, %v3081_v2  ;;  %v3089_v40 = vmul.f32 -0.5, %v5775_v56  ;;  %v3003_v57 = vmul.f32 1.442695, %v5804_v27 }
 0x631   : > { %v2565_v44 = vsel %vm2564_vm12, %v2562_v61, %v2559_v35  ;;  %v2568_v25 = vmul.f32 0.6931472, %v4355_v43  ;;  %v5790_v19 = vpop.eup %4356  ;;  %vm5819_vm0 = vcmp.lt.f32.partialorder %v3083_v3, 0.0004427343  ;;  %vm2965_vm1 = vcmp.gt.f32.partialorder %v5704_v15, 20.0 }
 0x632   : > { %v2589_v63 = vsel %vm2397_vm10, %v5650_v47, %v2565_v44  ;;  %4366 = vlog2.f32 %v3095_v16  ;;  %v3104_v18 = vadd.f32 1.0, %v5790_v19  ;;  %v3001_v47 = vmul.f32 1.442695, %v5787_v26 }
 0x633   : > { %v2605_v50 = vadd.f32 0.001, %v2589_v63  ;;  %v2574_v59 = vsel %vm2573_vm14, %v2571_v8, %v2568_v25  ;;  %v5798_v60 = vpop.eup %4358  ;;  %v3098_v48 = vmul.f32 -0.5, %v5781_v62 }
 0x634   : > { %v2590_v7 = vsel %vm2398_vm15, %v5667_v51, %v2574_v59  ;;  %v3113_v37 = vadd.f32 1.0, %v5798_v60  ;;  %4368 = vlog2.f32 %v3104_v18 }
 0x635   : > { %2621 = vst [vmem:[%s5385_s29 + $0x70] sm:$0xff] %v2605_v50  ;;  %v2606_v20 = vadd.f32 0.001, %v2590_v7 }
 0x636   : > { %v4361_v5 = vpop.eup %4360  ;;  %4370 = vlog2.f32 %v3113_v37 }
 0x637   : > { %v3079_v51 = vmul.f32 0.6931472, %v4361_v5  ;;  %2622 = vst [vmem:[%s5385_s29 + $0x78] sm:$0xff] %v2606_v20  ;;  %4372 = vpow2.f32 %v3001_v47  ;;  %s4618_s29 = scalar_lea.vmem %s5814_s18, 2048 }
 0x638   : > { %p4619_p6 = scmp.ne.s32.totalorder %s5814_s18, %s4618_s29  ;;  %p4626_p11 = scmp.lt.s32.totalorder %s4624_s4, %s4618_s29 }
 0x639   : > { %v3085_v13 = vsel %vm5819_vm0, %v3082_v42, %v3079_v51 }
 0x63a   : > { %p4620_p7 = pnand %p4619_p6, %p6008_p13  ;;  %p4627_p5 = por %p4626_p11, %p4625_p3 }
 0x63c   : > { %p4621_p1 = pneg %p4620_p7 }
 0x63e   : > { %p4628_p0 = pnand %p4627_p5, %p4621_p1 }
 0x640   : > { %4631 = shalt.err (!%p4628_p0)
}
 0x641   : > { %s4632_s19 = scalar_lea.hbm %s5812_s1, 2048  ;;  %s4636_s22 = scalar_lea.hbm %s5952_s9, 8192 }
 0x642   : > { %p4633_p2 = scmp.ne.s32.totalorder %s5812_s1, %s4632_s19  ;;  %p4637_p9 = scmp.lt.s32.totalorder %s5812_s1, %s5952_s9 }
 0x643   : > { %p4638_p10 = scmp.lt.s32.totalorder %s4636_s22, %s4632_s19 }
 0x644   : > { %p4634_p4 = pnand %p4633_p2, %p6008_p13 }
 0x645   : > { %p4639_p12 = por %p4638_p10, %p4637_p9 }
 0x646   : > { %p4635_p8 = pneg %p4634_p4 }
 0x648   : > { %p4640_p6 = pnand %p4639_p12, %p4635_p8 }
 0x64a   : > { %4643 = shalt.err (!%p4640_p6)
}
 0x64b   : > { %3804 = dma.vmem_to_hbm [thread:$0]  (%p6008_p13), %s5814_s18, 2048, %s5812_s1, %s5830_s20, %s4743_s11, %s4743_s11, %s4744_s27   ;;  %v3157_v28 = vsel %vm2965_vm1, %v5704_v15, %v3085_v13  ;;  %4374 = vpow2.f32 %v3003_v57  ;;  %v3090_v38 = vadd.f32 1.0, %v3089_v40  ;;  %v3092_v53 = vand.u32 2147483647, %v5775_v56  ;;  %v4363_v0 = vpop.eup %4362 }
 0x64c   : > { %v3173_v10 = vadd.f32 0.001, %v3157_v28  ;;  %v3099_v30 = vadd.f32 1.0, %v3098_v48  ;;  %v3107_v11 = vmul.f32 -0.5, %v5790_v19  ;;  %v4365_v54 = vpop.eup %4364  ;;  %v3101_v34 = vand.u32 2147483647, %v5781_v62  ;;  %s5894_s30 = scalar_lea.hbm %s5953_s10, %s5429_s21 }
 0x64d   : > { %v3116_v9 = vmul.f32 -0.5, %v5798_v60  ;;  %v3122_v21 = vadd.f32 1.0, %v4363_v0  ;;  %v3088_v31 = vmul.f32 0.6931472, %v4365_v54  ;;  %v3091_v4 = vmul.f32 %v5775_v56, %v3090_v38  ;;  %v4367_v15 = vpop.eup %4366  ;;  %s3256_s18 = sshll.u32 %s5395_s23, 4  ;;  %s4746_s19 = smov [#allocation19]   ;;  %s5896_s18 = int_to_ptr.vmem [resolvable:$true] %s3256_s18 }
 0x64e   : > { %3189 = vst [vmem:[%s5395_s23 + $0x40] sm:$0xff] %v3173_v10  ;;  %vm2966_vm2 = vcmp.gt.f32.partialorder %v5725_v33, 20.0  ;;  %vm3093_vm3 = vcmp.lt.f32.partialorder %v3092_v53, 0.0004427343  ;;  %v3097_v32 = vmul.f32 0.6931472, %v4367_v15  ;;  %v3100_v6 = vmul.f32 %v5781_v62, %v3099_v30  ;;  %v4369_v52 = vpop.eup %4368 }
 0x64f   : > { %4376 = vlog2.f32 %v3122_v21  ;;  %v3094_v39 = vsel %vm3093_vm3, %v3091_v4, %v3088_v31  ;;  %v3108_v14 = vadd.f32 1.0, %v3107_v11  ;;  %vm3102_vm4 = vcmp.lt.f32.partialorder %v3101_v34, 0.0004427343  ;;  %v4371_v22 = vpop.eup %4370  ;;  %s4644_s4 = scalar_lea.vmem %s5896_s18, 2048  ;;  %s4648_s28 = sshll.u32 %s4746_s19, 4  ;;  %s4649_s28 = int_to_ptr.vmem [resolvable:$false] %s4648_s28 }
 0x650   : > { %v3158_v41 = vsel %vm2966_vm2, %v5725_v33, %v3094_v39  ;;  %v3110_v12 = vand.u32 2147483647, %v5790_v19  ;;  %v3117_v58 = vadd.f32 1.0, %v3116_v9  ;;  %vm2967_vm5 = vcmp.gt.f32.partialorder %v5732_v46, 20.0  ;;  %v4373_v35 = vpop.eup %4372  ;;  %p4645_p7 = scmp.ne.s32.totalorder %s5896_s18, %s4644_s4  ;;  %s4650_s3 = scalar_lea.vmem %s4649_s28, 4096 }
 0x651   : > { %v3174_v45 = vadd.f32 0.001, %v3158_v41  ;;  %v3103_v56 = vsel %vm3102_vm4, %v3100_v6, %v3097_v32  ;;  %v3119_v24 = vand.u32 2147483647, %v5798_v60  ;;  %v3106_v62 = vmul.f32 0.6931472, %v4369_v52  ;;  %p4651_p11 = scmp.lt.s32.totalorder %s5896_s18, %s4649_s28  ;;  %p4652_p5 = scmp.lt.s32.totalorder %s4650_s3, %s4644_s4 }
 0x652   : > { %v3159_v23 = vsel %vm2967_vm5, %v5732_v46, %v3103_v56  ;;  %v3109_v33 = vmul.f32 %v5790_v19, %v3108_v14  ;;  %vm3111_vm6 = vcmp.lt.f32.partialorder %v3110_v12, 0.0004427343  ;;  %v3115_v61 = vmul.f32 0.6931472, %v4371_v22  ;;  %p4646_p1 = pnand %p4645_p7, %p6008_p13 }
 0x653   : > { %3190 = vst [vmem:[%s5395_s23 + $0x48] sm:$0xff] %v3174_v45  ;;  %v3175_v49 = vadd.f32 0.001, %v3159_v23  ;;  %v3118_v43 = vmul.f32 %v5798_v60, %v3117_v58  ;;  %v3125_v8 = vmul.f32 -0.5, %v4363_v0  ;;  %vm2968_vm7 = vcmp.gt.f32.partialorder %v5746_v17, 20.0  ;;  %p4653_p0 = por %p4652_p5, %p4651_p11 }
 0x654   : > { %v3112_v55 = vsel %vm3111_vm6, %v3109_v33, %v3106_v62  ;;  %vm3120_vm8 = vcmp.lt.f32.partialorder %v3119_v24, 0.0004427343  ;;  %v3131_v46 = vadd.f32 1.0, %v4373_v35  ;;  %vm2969_vm9 = vcmp.gt.f32.partialorder %v5754_v1, 20.0  ;;  %p4647_p3 = pneg %p4646_p1 }
 0x655   : > { %3191 = vst [vmem:[%s5395_s23 + $0x50] sm:$0xff] %v3175_v49  ;;  %v3160_v44 = vsel %vm2968_vm7, %v5746_v17, %v3112_v55  ;;  %v3121_v25 = vsel %vm3120_vm8, %v3118_v43, %v3115_v61  ;;  %v3126_v59 = vadd.f32 1.0, %v3125_v8  ;;  %v3128_v3 = vand.u32 2147483647, %v4363_v0 }
 0x656   : > { %v3176_v63 = vadd.f32 0.001, %v3160_v44  ;;  %v3161_v2 = vsel %vm2969_vm9, %v5754_v1, %v3121_v25  ;;  %4378 = vlog2.f32 %v3131_v46  ;;  %v3134_v17 = vmul.f32 -0.5, %v4373_v35  ;;  %p4654_p2 = pnand %p4653_p0, %p4647_p3 }
 0x657   : > { %v3177_v50 = vadd.f32 0.001, %v3161_v2  ;;  %v3127_v18 = vmul.f32 %v4363_v0, %v3126_v59  ;;  %vm3129_vm10 = vcmp.lt.f32.partialorder %v3128_v3, 0.0004427343  ;;  %vm2970_vm11 = vcmp.gt.f32.partialorder %v5772_v36, 20.0 }
 0x658   : > { %v4375_v16 = vpop.eup %4374  ;;  %3192 = vst [vmem:[%s5395_s23 + $0x58] sm:$0xff] %v3176_v63  ;;  %v3135_v37 = vadd.f32 1.0, %v3134_v17  ;;  %v3137_v51 = vand.u32 2147483647, %v4373_v35  ;;  %vm2971_vm13 = vcmp.gt.f32.partialorder %v5787_v26, 20.0  ;;  %vm2972_vm15 = vcmp.gt.f32.partialorder %v5804_v27, 20.0 }
 0x659   : > { %v3140_v19 = vadd.f32 1.0, %v4375_v16  ;;  %3193 = vst [vmem:[%s5395_s23 + $0x60] sm:$0xff] %v3177_v50  ;;  %v3143_v5 = vmul.f32 -0.5, %v4375_v16  ;;  %v3146_v40 = vand.u32 2147483647, %v4375_v16 }
 0x65a   : > { %v3136_v48 = vmul.f32 %v4373_v35, %v3135_v37  ;;  %vm3138_vm12 = vcmp.lt.f32.partialorder %v3137_v51, 0.0004427343 }
 0x65b   : > { %4380 = vlog2.f32 %v3140_v19  ;;  %v3144_v42 = vadd.f32 1.0, %v3143_v5  ;;  %vm3147_vm14 = vcmp.lt.f32.partialorder %v3146_v40, 0.0004427343 }
 0x65c   : > { %v4377_v60 = vpop.eup %4376 }
 0x65d   : > { %v3124_v7 = vmul.f32 0.6931472, %v4377_v60  ;;  %v3145_v10 = vmul.f32 %v4375_v16, %v3144_v42 }
 0x65f   : > { %v3130_v47 = vsel %vm3129_vm10, %v3127_v18, %v3124_v7 }
 0x660   : > { %v3162_v20 = vsel %vm2970_vm11, %v5772_v36, %v3130_v47 }
 0x661   : > { %v3178_v1 = vadd.f32 0.001, %v3162_v20 }
 0x663   : > { %3194 = vst [vmem:[%s5395_s23 + $0x68] sm:$0xff] %v3178_v1  ;;  %v4379_v29 = vpop.eup %4378 }
 0x664   : > { %v3133_v13 = vmul.f32 0.6931472, %v4379_v29 }
 0x666   : > { %v3139_v36 = vsel %vm3138_vm12, %v3136_v48, %v3133_v13 }
 0x667   : > { %v3163_v38 = vsel %vm2971_vm13, %v5787_v26, %v3139_v36 }
 0x668   : > { %v4381_v57 = vpop.eup %4380  ;;  %v3179_v0 = vadd.f32 0.001, %v3163_v38 }
 0x669   : > { %v3142_v28 = vmul.f32 0.6931472, %v4381_v57 }
 0x66a   : > { %3195 = vst [vmem:[%s5395_s23 + $0x70] sm:$0xff] %v3179_v0 }
 0x66b   : > { %v3148_v53 = vsel %vm3147_vm14, %v3145_v10, %v3142_v28 }
 0x66c   : > { %v3164_v30 = vsel %vm2972_vm15, %v5804_v27, %v3148_v53 }
 0x66d   : > { %v3180_v11 = vadd.f32 0.001, %v3164_v30 }
 0x66f   : > { %3196 = vst [vmem:[%s5395_s23 + $0x78] sm:$0xff] %v3180_v11 }
 0x670   : > { %4657 = shalt.err (!%p4654_p2)
}
 0x671   : > { %s4658_s21 = scalar_lea.hbm %s5894_s30, 2048  ;;  %s4662_s2 = scalar_lea.hbm %s5953_s10, 8192 }
 0x672   : > { %p4659_p4 = scmp.ne.s32.totalorder %s5894_s30, %s4658_s21  ;;  %p4663_p10 = scmp.lt.s32.totalorder %s5894_s30, %s5953_s10 }
 0x673   : > { %p4664_p12 = scmp.lt.s32.totalorder %s4662_s2, %s4658_s21 }
 0x674   : > { %p4660_p8 = pnand %p4659_p4, %p6008_p13 }
 0x675   : > { %p4665_p6 = por %p4664_p12, %p4663_p10 }
 0x676   : > { %p4661_p9 = pneg %p4660_p8 }
 0x678   : > { %p4666_p7 = pnand %p4665_p6, %p4661_p9 }
 0x67a   : > { %4669 = shalt.err (!%p4666_p7)
}
 0x67b   : > { %3805 = dma.vmem_to_hbm [thread:$0]  (%p6008_p13), %s5896_s18, 2048, %s5894_s30, %s5830_s20, %s4743_s11, %s4743_s11, %s4744_s27  }
 0x67c PF: > { %p3860_p1 = scmp.ge.s32.totalorder %s4728_s16, 2  ;;  %s3271_s29 = sand.u32 1, %s4716_s13  }
 0x67d   : > { %p6028_p3 = scmp.ne.s32.totalorder %s5974_s24, 0  ;;  %s3272_s4 = scalar_lea.sflag [#allocation4], %s3271_s29 }
 0x67f   : > { %p3836_p11 = pnand %p3860_p1, %p6028_p3 }
 0x681   : > { %p3837_p5 = pneg %p3836_p11 }
 0x683   : > { %4707 = dma.done.wait (%p3837_p5), %s3272_s4, 2048  }
 0x684   : > { %4709 = vsyncadd (%p3837_p5), %s3272_s4, 4294965248  ;;  %s6029_s12 = sadd.s32 4294967294, %s4728_s16  }
 0x685   : > { %s3280_s19 = sand.u32 1, %s6029_s12  }
 0x686   : > { %s3281_s28 = scalar_lea.sflag [#allocation18], %s3280_s19 }
 0x687   : > { %4711 = dma.done.wait (%p3837_p5), %s3281_s28, 4096  }
 0x688   : > { %4713 = vsyncadd (%p3837_p5), %s3281_s28, 4294963200  ;;  %p31_p13 = scmp.ge.s32.totalorder %s4926_s26, 6   ;;  %s6030_s13 = smov %s4720_s14 }
 0x689   : > { %s6031_s14 = smov %s4724_s15  ;;  %s6032_s15 = smov %s4938_s25 }
 0x68a   : > { %s6033_s16 = smov %s4926_s26  ;;  %33 = sbr.rel (!%p31_p13) target bundleno = 16 (0x10), region = 160 }
 0x68f   :  { %3295 = vsyncpa [#allocation3], 1 }
 0x690   :  { %3297 = vsyncpa [#allocation3 + $0x1], 1 }
 0x691   :  { %3298 = vsyncpa [#allocation6], 1 }
 0x692   :  { %3299 = vsyncpa [#allocation9], 1 }
 0x693   :  { %3300 = vsyncpa [#allocation12], 1 }
 0x694   :  { %3301 = vsyncpa [#allocation15], 1 }
 0x695   :  { %3302 = vsyncpa [#allocation4], 1 }
 0x696   :  { %3304 = vsyncpa [#allocation4 + $0x1], 1 }
 0x697   :  { %3305 = vsyncpa [#allocation18], 1 }
 0x698   :  { %3307 = vsyncpa [#allocation18 + $0x1], 1 }

</bundles_post_ra>
